<compile_context>
chip_gen: v5e
topology: v5e:2x2
jax: 0.10.0
libtpu: 0.0.40
codegen_flags: <defaults>
</compile_context>

<pallas_src>
import math

import jax
import jax.numpy as jnp
from jax import lax
from jax.experimental import pallas as pl
from jax.experimental.pallas import tpu as pltpu

# ---- small Starcoder2-like config -----------------------------------------
BATCH = 2
SEQ = 256
HIDDEN = 128
NUM_HEADS = 4
NUM_KV_HEADS = 2
HEAD_DIM = HIDDEN // NUM_HEADS          # 32
NUM_KV_GROUPS = NUM_HEADS // NUM_KV_HEADS
ROPE_THETA = 10000.0

Q_WIDTH = NUM_HEADS * HEAD_DIM          # 128
KV_WIDTH = NUM_KV_HEADS * HEAD_DIM      # 64
QKV_WIDTH = Q_WIDTH + 2 * KV_WIDTH      # 256

MASK_VALUE = -1e30


# ---------------------------------------------------------------------------
# Fused layer kernel: QKV proj + RoPE + causal GQA attention + output proj
# ---------------------------------------------------------------------------
def fused_attn_kernel(x_ref, cos_ref, sin_ref, mask_ref,
                      wqkv_ref, wqkv_rot_ref, bqkv_ref, bqkv_rot_ref,
                      wo_ref, bo_ref, o_ref):
    # ---- fused QKV projection (+ rotate-half projection): bf16 MXU, f32 acc
    x = x_ref[0].astype(jnp.bfloat16)                                   # (S, 128)
    qkv = jnp.dot(x, wqkv_ref[...],
                  preferred_element_type=jnp.float32) + bqkv_ref[...]   # (S, 256)
    qkv_rh = jnp.dot(x, wqkv_rot_ref[...],
                     preferred_element_type=jnp.float32) + bqkv_rot_ref[...]

    # ---- RoPE, lane-dense over the packed 256-lane slab (v lanes: cos=1, sin=0)
    qkv = qkv * cos_ref[0] + qkv_rh * sin_ref[0]                        # (S, 256) f32

    mask_add = mask_ref[...]                                            # (S, S) f32
    qkv_bf = qkv.astype(jnp.bfloat16)

    head_outs = []
    for kvh in range(NUM_KV_HEADS):
        k_lo = Q_WIDTH + kvh * HEAD_DIM
        v_lo = Q_WIDTH + KV_WIDTH + kvh * HEAD_DIM
        kh = qkv_bf[:, k_lo:k_lo + HEAD_DIM]                            # (S, D) bf16
        vh = qkv_bf[:, v_lo:v_lo + HEAD_DIM]                            # (S, D) bf16
        for g in range(NUM_KV_GROUPS):
            h = kvh * NUM_KV_GROUPS + g
            qh = qkv_bf[:, h * HEAD_DIM:(h + 1) * HEAD_DIM]             # (S, D) bf16
            # scores = (scale*q_rope) @ k_rope^T; scale pre-folded into wqkv.
            s = lax.dot_general(qh, kh, (((1,), (1,)), ((), ())),
                                preferred_element_type=jnp.float32)     # (S, S) f32
            s = s + mask_add                                            # causal (f32)
            m = jnp.max(s, axis=-1, keepdims=True)
            p = jnp.exp(s - m)                                          # f32 (EUP)
            l = jnp.sum(p, axis=-1, keepdims=True)
            pv = jnp.dot(p.astype(jnp.bfloat16), vh,
                         preferred_element_type=jnp.float32)            # (S, D) f32
            head_outs.append(pv * pl.reciprocal(l, approx=True))

    attn = jnp.concatenate(head_outs, axis=-1).astype(jnp.bfloat16)     # (S, 128)
    out = jnp.dot(attn, wo_ref[...],
                  preferred_element_type=jnp.float32) + bo_ref[...]     # (S, 128)
    o_ref[0] = out.astype(o_ref.dtype)


# ---------------------------------------------------------------------------
# Host-side helpers (tiny, computed once per call / per shape)
# ---------------------------------------------------------------------------
def rope_cos_sin(position_ids, dim, theta):
    inv_freq = 1.0 / (theta ** (jnp.arange(0, dim, 2, dtype=jnp.float32) / dim))
    freqs = position_ids[..., None].astype(jnp.float32) * inv_freq[None, None, :]
    emb = jnp.concatenate([freqs, freqs], axis=-1)        # (B, S, dim)
    return jnp.cos(emb), jnp.sin(emb)


def build_rope_tables(position_ids):
    """Packed-layout cos/sin covering all 256 qkv lanes (v lanes: cos=1, sin=0)."""
    cos, sin = rope_cos_sin(position_ids, HEAD_DIM, ROPE_THETA)   # (B, S, 32)
    b, s, _ = cos.shape
    ones = jnp.ones((b, s, KV_WIDTH), jnp.float32)
    zeros = jnp.zeros((b, s, KV_WIDTH), jnp.float32)
    cos_full = jnp.concatenate(
        [jnp.tile(cos, (1, 1, NUM_HEADS)), jnp.tile(cos, (1, 1, NUM_KV_HEADS)), ones],
        axis=-1)                                                  # (B, S, 256)
    sin_full = jnp.concatenate(
        [jnp.tile(sin, (1, 1, NUM_HEADS)), jnp.tile(sin, (1, 1, NUM_KV_HEADS)), zeros],
        axis=-1)                                                  # (B, S, 256)
    return cos_full, sin_full


def causal_additive_mask(seq):
    keep = jnp.tril(jnp.ones((seq, seq), dtype=bool))
    return jnp.where(keep, 0.0, MASK_VALUE).astype(jnp.float32)  # (S, S)


def rotate_half_matrix(d):
    """R such that x @ R == rotate_half(x) == concat(-x[d/2:], x[:d/2])."""
    half = d // 2
    eye = jnp.eye(half, dtype=jnp.float32)
    z = jnp.zeros((half, half), jnp.float32)
    top = jnp.concatenate([z, eye], axis=1)
    bot = jnp.concatenate([-eye, z], axis=1)
    return jnp.concatenate([top, bot], axis=0)                    # (d, d)


# ---------------------------------------------------------------------------
# Full Starcoder2FlashAttention2 forward (eval mode, no cache, no padding mask)
# ---------------------------------------------------------------------------
def starcoder2_flash_attn_forward(params, hidden_states, position_ids):
    B, S, H = hidden_states.shape
    cos_full, sin_full = build_rope_tables(position_ids)          # (B, S, 256) each
    mask_add = causal_additive_mask(S)                            # (S, S)

    return pl.pallas_call(
        fused_attn_kernel,
        out_shape=jax.ShapeDtypeStruct((B, S, H), hidden_states.dtype),
        grid_spec=pltpu.PrefetchScalarGridSpec(
            num_scalar_prefetch=0,
            grid=(B,),
            in_specs=[
                pl.BlockSpec((1, S, H), lambda b: (b, 0, 0)),           # x
                pl.BlockSpec((1, S, QKV_WIDTH), lambda b: (b, 0, 0)),   # cos_full
                pl.BlockSpec((1, S, QKV_WIDTH), lambda b: (b, 0, 0)),   # sin_full
                pl.BlockSpec((S, S), lambda b: (0, 0)),                 # causal mask
                pl.BlockSpec((H, QKV_WIDTH), lambda b: (0, 0)),         # wqkv (bf16)
                pl.BlockSpec((H, QKV_WIDTH), lambda b: (0, 0)),         # wqkv_rot (bf16)
                pl.BlockSpec((1, QKV_WIDTH), lambda b: (0, 0)),         # bqkv
                pl.BlockSpec((1, QKV_WIDTH), lambda b: (0, 0)),         # bqkv_rot
                pl.BlockSpec((Q_WIDTH, H), lambda b: (0, 0)),           # wo (bf16)
                pl.BlockSpec((1, H), lambda b: (0, 0)),                 # bo
            ],
            out_specs=pl.BlockSpec((1, S, H), lambda b: (b, 0, 0)),
        ),
        compiler_params=pltpu.CompilerParams(dimension_semantics=("parallel",)),
    )(hidden_states, cos_full, sin_full, mask_add,
      params["wqkv"], params["wqkv_rot"], params["bqkv"], params["bqkv_rot"],
      params["wo_kern"], params["bo_kern"])
    # attention_dropout / residual_dropout are 0.0 in eval mode -> identity.


# ---------------------------------------------------------------------------
# Pure-JAX f32 reference (vanilla softmax attention, canonical layout + repeat_kv)
# ---------------------------------------------------------------------------
def rotate_half(x):
    half = x.shape[-1] // 2
    return jnp.concatenate([-x[..., half:], x[..., :half]], axis=-1)


def reference_forward(params, hidden_states, position_ids):
    B, S, H = hidden_states.shape
    x2d = hidden_states.reshape(B * S, H)

    q = (x2d @ params["wq"] + params["bq"]).reshape(B, S, NUM_HEADS, HEAD_DIM)
    k = (x2d @ params["wk"] + params["bk"]).reshape(B, S, NUM_KV_HEADS, HEAD_DIM)
    v = (x2d @ params["wv"] + params["bv"]).reshape(B, S, NUM_KV_HEADS, HEAD_DIM)
    q, k, v = (t.transpose(0, 2, 1, 3) for t in (q, k, v))   # (B, H, S, D)

    cos, sin = rope_cos_sin(position_ids, HEAD_DIM, ROPE_THETA)
    cosb, sinb = cos[:, None], sin[:, None]
    q = q * cosb + rotate_half(q) * sinb
    k = k * cosb + rotate_half(k) * sinb
    k = jnp.repeat(k, NUM_KV_GROUPS, axis=1)
    v = jnp.repeat(v, NUM_KV_GROUPS, axis=1)

    scores = jnp.einsum("bhqd,bhkd->bhqk", q, k) / math.sqrt(HEAD_DIM)
    causal = jnp.tril(jnp.ones((S, S), dtype=bool))
    scores = jnp.where(causal[None, None], scores, MASK_VALUE)
    probs = jax.nn.softmax(scores.astype(jnp.float32), axis=-1)
    attn = jnp.einsum("bhqk,bhkd->bhqd", probs, v)
    attn = attn.transpose(0, 2, 1, 3).reshape(B * S, HIDDEN)
    out = (attn @ params["wo"] + params["bo"]).reshape(B, S, HIDDEN)
    return out


# ---------------------------------------------------------------------------
def init_params(key):
    ks = jax.random.split(key, 8)
    std = 0.02
    p = {
        # weights stored as (in_features, out_features), i.e. transposed
        # relative to torch nn.Linear.weight
        "wq": std * jax.random.normal(ks[0], (HIDDEN, Q_WIDTH), jnp.float32),
        "bq": std * jax.random.normal(ks[1], (Q_WIDTH,), jnp.float32),
        "wk": std * jax.random.normal(ks[2], (HIDDEN, KV_WIDTH), jnp.float32),
        "bk": std * jax.random.normal(ks[3], (KV_WIDTH,), jnp.float32),
        "wv": std * jax.random.normal(ks[4], (HIDDEN, KV_WIDTH), jnp.float32),
        "bv": std * jax.random.normal(ks[5], (KV_WIDTH,), jnp.float32),
        "wo": std * jax.random.normal(ks[6], (Q_WIDTH, HIDDEN), jnp.float32),
        "bo": std * jax.random.normal(ks[7], (HIDDEN,), jnp.float32),
    }

    # --- fused kernel weights ------------------------------------------------
    # Softmax scale folded into the q columns (valid: RoPE is a pure rotation,
    # scalar scaling commutes with it).
    scale = 1.0 / math.sqrt(HEAD_DIM)
    wq_s, bq_s = p["wq"] * scale, p["bq"] * scale

    # rotate_half as a per-head block-diagonal linear map.
    rh = rotate_half_matrix(HEAD_DIM)                                   # (32, 32)
    rq = jnp.kron(jnp.eye(NUM_HEADS, dtype=jnp.float32), rh)            # (128, 128)
    rk = jnp.kron(jnp.eye(NUM_KV_HEADS, dtype=jnp.float32), rh)         # (64, 64)

    wqkv = jnp.concatenate([wq_s, p["wk"], p["wv"]], axis=1)            # (128, 256)
    bqkv = jnp.concatenate([bq_s, p["bk"], p["bv"]], axis=0)            # (256,)
    wqkv_rot = jnp.concatenate(
        [wq_s @ rq, p["wk"] @ rk, jnp.zeros((HIDDEN, KV_WIDTH), jnp.float32)],
        axis=1)                                                         # (128, 256)
    bqkv_rot = jnp.concatenate(
        [bq_s @ rq, p["bk"] @ rk, jnp.zeros((KV_WIDTH,), jnp.float32)], axis=0)

    # bf16 MXU operands for the kernel; biases stay f32.
    p["wqkv"] = wqkv.astype(jnp.bfloat16)
    p["wqkv_rot"] = wqkv_rot.astype(jnp.bfloat16)
    p["wo_kern"] = p["wo"].astype(jnp.bfloat16)
    p["bqkv"] = bqkv.reshape(1, QKV_WIDTH)
    p["bqkv_rot"] = bqkv_rot.reshape(1, QKV_WIDTH)
    p["bo_kern"] = p["bo"].reshape(1, HIDDEN)
    return p


if __name__ == "__main__":
    root = jax.random.PRNGKey(0)
    k_params, k_x = jax.random.split(root)
    params = init_params(k_params)

    hidden_states = jax.random.normal(k_x, (BATCH, SEQ, HIDDEN), jnp.float32)
    position_ids = jnp.broadcast_to(
        jnp.arange(SEQ, dtype=jnp.int32)[None, :], (BATCH, SEQ)
    )

    fwd = jax.jit(starcoder2_flash_attn_forward)
    out = jax.block_until_ready(fwd(params, hidden_states, position_ids))

    ref = reference_forward(params, hidden_states, position_ids)
    max_err = float(jnp.max(jnp.abs(out - ref)))
    assert out.shape == (BATCH, SEQ, HIDDEN)
    # Kernel uses bf16 MXU operands (f32 accumulate), mirroring the module's
    # autocast-to-weight-dtype flash path, so compare against the pure-f32
    # reference with a correspondingly relaxed tolerance.
    assert max_err < 1e-2, f"mismatch vs reference: max_err={max_err}"

    print("KERNEL_OK")
</pallas_src>

<mosaic_0001>
module attributes {stable_mosaic.version = 11 : i64} {
  func.func @fused_attn_kernel(%arg0: i32, %arg1: memref<1x256x128xf32, #tpu.memory_space<vmem>>, %arg2: memref<1x256x256xf32, #tpu.memory_space<vmem>>, %arg3: memref<1x256x256xf32, #tpu.memory_space<vmem>>, %arg4: memref<256x256xf32, #tpu.memory_space<vmem>>, %arg5: memref<128x256xbf16, #tpu.memory_space<vmem>>, %arg6: memref<128x256xbf16, #tpu.memory_space<vmem>>, %arg7: memref<1x256xf32, #tpu.memory_space<vmem>>, %arg8: memref<1x256xf32, #tpu.memory_space<vmem>>, %arg9: memref<128x128xbf16, #tpu.memory_space<vmem>>, %arg10: memref<1x128xf32, #tpu.memory_space<vmem>>, %arg11: memref<1x256x128xf32, #tpu.memory_space<vmem>>) attributes {dimension_semantics = [#tpu.dimension_semantics<parallel>], iteration_bounds = array<i64: 2>, scalar_prefetch = 0 : i64, scratch_operands = 0 : i64, tpu.core_type = #tpu.core_type<tc>, window_params = [{transform_indices = @transform_0, window_bounds = array<i64: 1, 256, 128>}, {transform_indices = @transform_1, window_bounds = array<i64: 1, 256, 256>}, {transform_indices = @transform_2, window_bounds = array<i64: 1, 256, 256>}, {pipeline_mode = #tpu.pipeline_mode<synchronous>, transform_indices = @transform_3, window_bounds = array<i64: 256, 256>}, {pipeline_mode = #tpu.pipeline_mode<synchronous>, transform_indices = @transform_4, window_bounds = array<i64: 128, 256>}, {pipeline_mode = #tpu.pipeline_mode<synchronous>, transform_indices = @transform_5, window_bounds = array<i64: 128, 256>}, {pipeline_mode = #tpu.pipeline_mode<synchronous>, transform_indices = @transform_6, window_bounds = array<i64: 1, 256>}, {pipeline_mode = #tpu.pipeline_mode<synchronous>, transform_indices = @transform_7, window_bounds = array<i64: 1, 256>}, {pipeline_mode = #tpu.pipeline_mode<synchronous>, transform_indices = @transform_8, window_bounds = array<i64: 128, 128>}, {pipeline_mode = #tpu.pipeline_mode<synchronous>, transform_indices = @transform_9, window_bounds = array<i64: 1, 128>}, {transform_indices = @transform_10, window_bounds = array<i64: 1, 256, 128>}]} {
    %c0 = arith.constant 0 : index
    %c0_0 = arith.constant 0 : index
    %c0_1 = arith.constant 0 : index
    %0 = vector.load %arg1[%c0, %c0_0, %c0_1] : memref<1x256x128xf32, #tpu.memory_space<vmem>>, vector<1x256x128xf32>
    %1 = vector.shape_cast %0 : vector<1x256x128xf32> to vector<256x128xf32>
    %2 = arith.truncf %1 : vector<256x128xf32> to vector<256x128xbf16>
    %c0_2 = arith.constant 0 : index
    %c0_3 = arith.constant 0 : index
    %3 = vector.load %arg5[%c0_2, %c0_3] : memref<128x256xbf16, #tpu.memory_space<vmem>>, vector<128x256xbf16>
    %cst = arith.constant dense<0.000000e+00> : vector<256x256xf32>
    %4 = tpu.matmul %2, %3, %cst {dimension_numbers = #tpu.dot_dimension_numbers<[1], [0], [0], [1], [0, 0, 1, 1], [], []>} : vector<256x128xbf16>, vector<128x256xbf16>, vector<256x256xf32> -> vector<256x256xf32>
    %c0_4 = arith.constant 0 : index
    %c0_5 = arith.constant 0 : index
    %5 = vector.load %arg7[%c0_4, %c0_5] : memref<1x256xf32, #tpu.memory_space<vmem>>, vector<1x256xf32>
    %6 = vector.broadcast %5 : vector<1x256xf32> to vector<256x256xf32>
    %7 = arith.addf %4, %6 : vector<256x256xf32>
    %c0_6 = arith.constant 0 : index
    %c0_7 = arith.constant 0 : index
    %8 = vector.load %arg6[%c0_6, %c0_7] : memref<128x256xbf16, #tpu.memory_space<vmem>>, vector<128x256xbf16>
    %cst_8 = arith.constant dense<0.000000e+00> : vector<256x256xf32>
    %9 = tpu.matmul %2, %8, %cst_8 {dimension_numbers = #tpu.dot_dimension_numbers<[1], [0], [0], [1], [0, 0, 1, 1], [], []>} : vector<256x128xbf16>, vector<128x256xbf16>, vector<256x256xf32> -> vector<256x256xf32>
    %c0_9 = arith.constant 0 : index
    %c0_10 = arith.constant 0 : index
    %10 = vector.load %arg8[%c0_9, %c0_10] : memref<1x256xf32, #tpu.memory_space<vmem>>, vector<1x256xf32>
    %11 = vector.broadcast %10 : vector<1x256xf32> to vector<256x256xf32>
    %12 = arith.addf %9, %11 : vector<256x256xf32>
    %c0_11 = arith.constant 0 : index
    %c0_12 = arith.constant 0 : index
    %c0_13 = arith.constant 0 : index
    %13 = vector.load %arg2[%c0_11, %c0_12, %c0_13] : memref<1x256x256xf32, #tpu.memory_space<vmem>>, vector<1x256x256xf32>
    %14 = vector.shape_cast %13 : vector<1x256x256xf32> to vector<256x256xf32>
    %15 = arith.mulf %7, %14 : vector<256x256xf32>
    %c0_14 = arith.constant 0 : index
    %c0_15 = arith.constant 0 : index
    %c0_16 = arith.constant 0 : index
    %16 = vector.load %arg3[%c0_14, %c0_15, %c0_16] : memref<1x256x256xf32, #tpu.memory_space<vmem>>, vector<1x256x256xf32>
    %17 = vector.shape_cast %16 : vector<1x256x256xf32> to vector<256x256xf32>
    %18 = arith.mulf %12, %17 : vector<256x256xf32>
    %19 = arith.addf %15, %18 : vector<256x256xf32>
    %c0_17 = arith.constant 0 : index
    %c0_18 = arith.constant 0 : index
    %20 = vector.load %arg4[%c0_17, %c0_18] : memref<256x256xf32, #tpu.memory_space<vmem>>, vector<256x256xf32>
    %21 = arith.truncf %19 : vector<256x256xf32> to vector<256x256xbf16>
    %22 = vector.extract_strided_slice %21 {offsets = [0, 128], sizes = [256, 32], strides = [1, 1]} : vector<256x256xbf16> to vector<256x32xbf16>
    %23 = vector.extract_strided_slice %21 {offsets = [0, 192], sizes = [256, 32], strides = [1, 1]} : vector<256x256xbf16> to vector<256x32xbf16>
    %24 = vector.extract_strided_slice %21 {offsets = [0, 0], sizes = [256, 32], strides = [1, 1]} : vector<256x256xbf16> to vector<256x32xbf16>
    %cst_19 = arith.constant dense<0.000000e+00> : vector<256x256xf32>
    %25 = tpu.matmul %24, %22, %cst_19 {dimension_numbers = #tpu.dot_dimension_numbers<[1], [1], [0], [0], [0, 0, 1, 0], [], []>} : vector<256x32xbf16>, vector<256x32xbf16>, vector<256x256xf32> -> vector<256x256xf32>
    %26 = arith.addf %25, %20 : vector<256x256xf32>
    %cst_20 = arith.constant dense<0xFF800000> : vector<256xf32>
    %27 = vector.multi_reduction <maximumf>, %26, %cst_20 [1] : vector<256x256xf32> to vector<256xf32>
    %28 = vector.shape_cast %27 : vector<256xf32> to vector<256x1xf32>
    %29 = vector.broadcast %28 : vector<256x1xf32> to vector<256x256xf32>
    %30 = arith.subf %26, %29 : vector<256x256xf32>
    %31 = math.exp %30 : vector<256x256xf32>
    %cst_21 = arith.constant dense<0.000000e+00> : vector<256xf32>
    %32 = vector.multi_reduction <add>, %31, %cst_21 [1] : vector<256x256xf32> to vector<256xf32>
    %33 = vector.shape_cast %32 : vector<256xf32> to vector<256x1xf32>
    %34 = arith.truncf %31 : vector<256x256xf32> to vector<256x256xbf16>
    %cst_22 = arith.constant dense<0.000000e+00> : vector<256x32xf32>
    %35 = tpu.matmul %34, %23, %cst_22 {dimension_numbers = #tpu.dot_dimension_numbers<[1], [0], [0], [1], [0, 0, 1, 1], [], []>} : vector<256x256xbf16>, vector<256x32xbf16>, vector<256x32xf32> -> vector<256x32xf32>
    %36 = tpu.reciprocal %33 {approx = true} : vector<256x1xf32> -> vector<256x1xf32>
    %37 = vector.broadcast %36 : vector<256x1xf32> to vector<256x32xf32>
    %38 = arith.mulf %35, %37 : vector<256x32xf32>
    %39 = vector.extract_strided_slice %21 {offsets = [0, 32], sizes = [256, 32], strides = [1, 1]} : vector<256x256xbf16> to vector<256x32xbf16>
    %cst_23 = arith.constant dense<0.000000e+00> : vector<256x256xf32>
    %40 = tpu.matmul %39, %22, %cst_23 {dimension_numbers = #tpu.dot_dimension_numbers<[1], [1], [0], [0], [0, 0, 1, 0], [], []>} : vector<256x32xbf16>, vector<256x32xbf16>, vector<256x256xf32> -> vector<256x256xf32>
    %41 = arith.addf %40, %20 : vector<256x256xf32>
    %cst_24 = arith.constant dense<0xFF800000> : vector<256xf32>
    %42 = vector.multi_reduction <maximumf>, %41, %cst_24 [1] : vector<256x256xf32> to vector<256xf32>
    %43 = vector.shape_cast %42 : vector<256xf32> to vector<256x1xf32>
    %44 = vector.broadcast %43 : vector<256x1xf32> to vector<256x256xf32>
    %45 = arith.subf %41, %44 : vector<256x256xf32>
    %46 = math.exp %45 : vector<256x256xf32>
    %cst_25 = arith.constant dense<0.000000e+00> : vector<256xf32>
    %47 = vector.multi_reduction <add>, %46, %cst_25 [1] : vector<256x256xf32> to vector<256xf32>
    %48 = vector.shape_cast %47 : vector<256xf32> to vector<256x1xf32>
    %49 = arith.truncf %46 : vector<256x256xf32> to vector<256x256xbf16>
    %cst_26 = arith.constant dense<0.000000e+00> : vector<256x32xf32>
    %50 = tpu.matmul %49, %23, %cst_26 {dimension_numbers = #tpu.dot_dimension_numbers<[1], [0], [0], [1], [0, 0, 1, 1], [], []>} : vector<256x256xbf16>, vector<256x32xbf16>, vector<256x32xf32> -> vector<256x32xf32>
    %51 = tpu.reciprocal %48 {approx = true} : vector<256x1xf32> -> vector<256x1xf32>
    %52 = vector.broadcast %51 : vector<256x1xf32> to vector<256x32xf32>
    %53 = arith.mulf %50, %52 : vector<256x32xf32>
    %54 = vector.extract_strided_slice %21 {offsets = [0, 160], sizes = [256, 32], strides = [1, 1]} : vector<256x256xbf16> to vector<256x32xbf16>
    %55 = vector.extract_strided_slice %21 {offsets = [0, 224], sizes = [256, 32], strides = [1, 1]} : vector<256x256xbf16> to vector<256x32xbf16>
    %56 = vector.extract_strided_slice %21 {offsets = [0, 64], sizes = [256, 32], strides = [1, 1]} : vector<256x256xbf16> to vector<256x32xbf16>
    %cst_27 = arith.constant dense<0.000000e+00> : vector<256x256xf32>
    %57 = tpu.matmul %56, %54, %cst_27 {dimension_numbers = #tpu.dot_dimension_numbers<[1], [1], [0], [0], [0, 0, 1, 0], [], []>} : vector<256x32xbf16>, vector<256x32xbf16>, vector<256x256xf32> -> vector<256x256xf32>
    %58 = arith.addf %57, %20 : vector<256x256xf32>
    %cst_28 = arith.constant dense<0xFF800000> : vector<256xf32>
    %59 = vector.multi_reduction <maximumf>, %58, %cst_28 [1] : vector<256x256xf32> to vector<256xf32>
    %60 = vector.shape_cast %59 : vector<256xf32> to vector<256x1xf32>
    %61 = vector.broadcast %60 : vector<256x1xf32> to vector<256x256xf32>
    %62 = arith.subf %58, %61 : vector<256x256xf32>
    %63 = math.exp %62 : vector<256x256xf32>
    %cst_29 = arith.constant dense<0.000000e+00> : vector<256xf32>
    %64 = vector.multi_reduction <add>, %63, %cst_29 [1] : vector<256x256xf32> to vector<256xf32>
    %65 = vector.shape_cast %64 : vector<256xf32> to vector<256x1xf32>
    %66 = arith.truncf %63 : vector<256x256xf32> to vector<256x256xbf16>
    %cst_30 = arith.constant dense<0.000000e+00> : vector<256x32xf32>
    %67 = tpu.matmul %66, %55, %cst_30 {dimension_numbers = #tpu.dot_dimension_numbers<[1], [0], [0], [1], [0, 0, 1, 1], [], []>} : vector<256x256xbf16>, vector<256x32xbf16>, vector<256x32xf32> -> vector<256x32xf32>
    %68 = tpu.reciprocal %65 {approx = true} : vector<256x1xf32> -> vector<256x1xf32>
    %69 = vector.broadcast %68 : vector<256x1xf32> to vector<256x32xf32>
    %70 = arith.mulf %67, %69 : vector<256x32xf32>
    %71 = vector.extract_strided_slice %21 {offsets = [0, 96], sizes = [256, 32], strides = [1, 1]} : vector<256x256xbf16> to vector<256x32xbf16>
    %cst_31 = arith.constant dense<0.000000e+00> : vector<256x256xf32>
    %72 = tpu.matmul %71, %54, %cst_31 {dimension_numbers = #tpu.dot_dimension_numbers<[1], [1], [0], [0], [0, 0, 1, 0], [], []>} : vector<256x32xbf16>, vector<256x32xbf16>, vector<256x256xf32> -> vector<256x256xf32>
    %73 = arith.addf %72, %20 : vector<256x256xf32>
    %cst_32 = arith.constant dense<0xFF800000> : vector<256xf32>
    %74 = vector.multi_reduction <maximumf>, %73, %cst_32 [1] : vector<256x256xf32> to vector<256xf32>
    %75 = vector.shape_cast %74 : vector<256xf32> to vector<256x1xf32>
    %76 = vector.broadcast %75 : vector<256x1xf32> to vector<256x256xf32>
    %77 = arith.subf %73, %76 : vector<256x256xf32>
    %78 = math.exp %77 : vector<256x256xf32>
    %cst_33 = arith.constant dense<0.000000e+00> : vector<256xf32>
    %79 = vector.multi_reduction <add>, %78, %cst_33 [1] : vector<256x256xf32> to vector<256xf32>
    %80 = vector.shape_cast %79 : vector<256xf32> to vector<256x1xf32>
    %81 = arith.truncf %78 : vector<256x256xf32> to vector<256x256xbf16>
    %cst_34 = arith.constant dense<0.000000e+00> : vector<256x32xf32>
    %82 = tpu.matmul %81, %55, %cst_34 {dimension_numbers = #tpu.dot_dimension_numbers<[1], [0], [0], [1], [0, 0, 1, 1], [], []>} : vector<256x256xbf16>, vector<256x32xbf16>, vector<256x32xf32> -> vector<256x32xf32>
    %83 = tpu.reciprocal %80 {approx = true} : vector<256x1xf32> -> vector<256x1xf32>
    %84 = vector.broadcast %83 : vector<256x1xf32> to vector<256x32xf32>
    %85 = arith.mulf %82, %84 : vector<256x32xf32>
    %86 = tpu.concatenate %38, %53, %70, %85 in 1 : vector<256x32xf32>, vector<256x32xf32>, vector<256x32xf32>, vector<256x32xf32> -> vector<256x128xf32>
    %87 = arith.truncf %86 : vector<256x128xf32> to vector<256x128xbf16>
    %c0_35 = arith.constant 0 : index
    %c0_36 = arith.constant 0 : index
    %88 = vector.load %arg9[%c0_35, %c0_36] : memref<128x128xbf16, #tpu.memory_space<vmem>>, vector<128x128xbf16>
    %cst_37 = arith.constant dense<0.000000e+00> : vector<256x128xf32>
    %89 = tpu.matmul %87, %88, %cst_37 {dimension_numbers = #tpu.dot_dimension_numbers<[1], [0], [0], [1], [0, 0, 1, 1], [], []>} : vector<256x128xbf16>, vector<128x128xbf16>, vector<256x128xf32> -> vector<256x128xf32>
    %c0_38 = arith.constant 0 : index
    %c0_39 = arith.constant 0 : index
    %90 = vector.load %arg10[%c0_38, %c0_39] : memref<1x128xf32, #tpu.memory_space<vmem>>, vector<1x128xf32>
    %91 = vector.broadcast %90 : vector<1x128xf32> to vector<256x128xf32>
    %92 = arith.addf %89, %91 : vector<256x128xf32>
    %c0_40 = arith.constant 0 : index
    %c0_41 = arith.constant 0 : index
    %c0_42 = arith.constant 0 : index
    %93 = vector.load %arg11[%c0_40, %c0_41, %c0_42] : memref<1x256x128xf32, #tpu.memory_space<vmem>>, vector<1x256x128xf32>
    %94 = vector.shape_cast %93 : vector<1x256x128xf32> to vector<256x128xf32>
    %95 = vector.shape_cast %92 : vector<256x128xf32> to vector<1x256x128xf32>
    tpu.vector_store %arg11[%c0_40, %c0_41, %c0_42], %95 {strides = array<i32>} : memref<1x256x128xf32, #tpu.memory_space<vmem>>, vector<1x256x128xf32>,
    return
  }
  func.func @transform_0(%arg0: i32) -> (i32, i32, i32) {
    %c0_i32 = arith.constant 0 : i32
    %c0_i32_0 = arith.constant 0 : i32
    %c0_i32_1 = arith.constant 0 : i32
    return %arg0, %c0_i32, %c0_i32_0 : i32, i32, i32
  }
  func.func @transform_1(%arg0: i32) -> (i32, i32, i32) {
    %c0_i32 = arith.constant 0 : i32
    %c0_i32_0 = arith.constant 0 : i32
    %c0_i32_1 = arith.constant 0 : i32
    return %arg0, %c0_i32, %c0_i32_0 : i32, i32, i32
  }
  func.func @transform_2(%arg0: i32) -> (i32, i32, i32) {
    %c0_i32 = arith.constant 0 : i32
    %c0_i32_0 = arith.constant 0 : i32
    %c0_i32_1 = arith.constant 0 : i32
    return %arg0, %c0_i32, %c0_i32_0 : i32, i32, i32
  }
  func.func @transform_3(%arg0: i32) -> (i32, i32) {
    %c0_i32 = arith.constant 0 : i32
    %c0_i32_0 = arith.constant 0 : i32
    %c0_i32_1 = arith.constant 0 : i32
    return %c0_i32, %c0_i32_0 : i32, i32
  }
  func.func @transform_4(%arg0: i32) -> (i32, i32) {
    %c0_i32 = arith.constant 0 : i32
    %c0_i32_0 = arith.constant 0 : i32
    %c0_i32_1 = arith.constant 0 : i32
    return %c0_i32, %c0_i32_0 : i32, i32
  }
  func.func @transform_5(%arg0: i32) -> (i32, i32) {
    %c0_i32 = arith.constant 0 : i32
    %c0_i32_0 = arith.constant 0 : i32
    %c0_i32_1 = arith.constant 0 : i32
    return %c0_i32, %c0_i32_0 : i32, i32
  }
  func.func @transform_6(%arg0: i32) -> (i32, i32) {
    %c0_i32 = arith.constant 0 : i32
    %c0_i32_0 = arith.constant 0 : i32
    %c0_i32_1 = arith.constant 0 : i32
    return %c0_i32, %c0_i32_0 : i32, i32
  }
  func.func @transform_7(%arg0: i32) -> (i32, i32) {
    %c0_i32 = arith.constant 0 : i32
    %c0_i32_0 = arith.constant 0 : i32
    %c0_i32_1 = arith.constant 0 : i32
    return %c0_i32, %c0_i32_0 : i32, i32
  }
  func.func @transform_8(%arg0: i32) -> (i32, i32) {
    %c0_i32 = arith.constant 0 : i32
    %c0_i32_0 = arith.constant 0 : i32
    %c0_i32_1 = arith.constant 0 : i32
    return %c0_i32, %c0_i32_0 : i32, i32
  }
  func.func @transform_9(%arg0: i32) -> (i32, i32) {
    %c0_i32 = arith.constant 0 : i32
    %c0_i32_0 = arith.constant 0 : i32
    %c0_i32_1 = arith.constant 0 : i32
    return %c0_i32, %c0_i32_0 : i32, i32
  }
  func.func @transform_10(%arg0: i32) -> (i32, i32, i32) {
    %c0_i32 = arith.constant 0 : i32
    %c0_i32_0 = arith.constant 0 : i32
    %c0_i32_1 = arith.constant 0 : i32
    return %arg0, %c0_i32, %c0_i32_0 : i32, i32, i32
  }
}

</mosaic_0001>

<bundles_post_ra>
// kernel: starcoder2_flash_attn_forward.1
= control target key start
LH: loop header
LB: loop body
LE: loop exit
PB: predicated region body
PF: predicated region fallthrough
CT: control target
= control target key end

     0   :  { %s13423_s0 = inlined_call_operand.vmem [shape: f32[2,256,128], index: 0, kind: input, shape index: {}]   ;;  %s13424_s1 = inlined_call_operand.vmem [shape: f32[2,256,256], index: 1, kind: input, shape index: {}]   ;;  %s13425_s2 = inlined_call_operand.vmem [shape: f32[2,256,256], index: 2, kind: input, shape index: {}]   ;;  %s13426_s3 = inlined_call_operand.vmem [shape: f32[256,256], index: 3, kind: input, shape index: {}]   ;;  %s13427_s4 = inlined_call_operand.vmem [shape: bf16[128,256], index: 4, kind: input, shape index: {}]   ;;  %s13428_s5 = inlined_call_operand.vmem [shape: bf16[128,256], index: 5, kind: input, shape index: {}]   ;;  %s13429_s6 = inlined_call_operand.vmem [shape: f32[1,256], index: 6, kind: input, shape index: {}]   ;;  %s13430_s7 = inlined_call_operand.vmem [shape: f32[1,256], index: 7, kind: input, shape index: {}]   ;;  %s13431_s8 = inlined_call_operand.vmem [shape: bf16[128,128], index: 8, kind: input, shape index: {}]   ;;  %s13432_s9 = inlined_call_operand.vmem [shape: f32[1,128], index: 9, kind: input, shape index: {}]   ;;  %s13433_s10 = inlined_call_operand.hbm [shape: f32[2,256,128], index: 10, kind: output, shape index: {}]  }
   0x1   :  { %13552 = sst [smem:[#allocation157_spill]] %s13423_s0 }
   0x2   :  { %15 = vsyncpa [#allocation3], 0 }
   0x3   :  { %17 = vsyncpa [#allocation3 + $0x1], 0  ;;  %s7938_s13 = smov 0   ;;  %s7940_s14 = smov 0  }
   0x4   :  { %s7942_s15 = smov 0   ;;  %s7944_s16 = smov 0  }
   0x5 LB: > { %s7959_s17 = sadd.s32 4294967295, %s7876_s16   ;;  %s6196_s18 = sadd.s32 4294967294, %s7876_s16   ;;  %s7876_s16 = sphi %s7944_s16, %s14185_s16   ;;  %s7872_s15 = sphi %s7942_s15, %s14184_s15   ;;  %s7868_s14 = sphi %s7940_s14, %s14183_s14   ;;  %s7864_s13 = sphi %s7938_s13, %s14182_s13  }
   0x6   : > { %s7963_s19 = sadd.s32 1, %s7876_s16   ;;  %s255_s20 = sadd.s32 1, %s7872_s15 }
   0x7   : > { %s252_s21 = ssub.s32 %s7876_s16, %s7963_s19  ;;  %p265_p0 = scmp.ne.s32.totalorder %s7872_s15, %s7868_s14 }
   0x8   : > { %p253_p1 = scmp.eq.s32.totalorder %s252_s21, 0  ;;  %p266_p2 = scmp.eq.s32.totalorder %s7959_s17, 1 }
   0x9   : > { %p271_p3 = scmp.ne.s32.totalorder %s7868_s14, %s7864_s13  ;;  %p272_p4 = scmp.eq.s32.totalorder %s6196_s18, 1 }
   0xa   : > { %s7974_s22 = scalar_select %p253_p1, %s7872_s15, %s255_s20  }
   0xb   : > { %p7976_p5 = por %p266_p2, %p265_p0  ;;  %p7980_p6 = por %p272_p4, %p271_p3 }
   0xc   : > { %p6199_p7 = scmp.ge.s32.totalorder %s7876_s16, 1  ;;  %p335_p8 = scmp.lt.s32.totalorder %s7876_s16, 3 }
   0xe   : > { %p336_p9 = pnand %p6199_p7, %p335_p8 }
  0x10   : > { %339 = sbr.rel (%p336_p9) target bundleno = 2866 (0xb32), region = 60 }
  0x15   : > { %v6265_v0 = vld [vmem:[%s13427_s4 + $0x70] sm:$0xf]  ;;  %v6518_v1 = vld [vmem:[%s13427_s4 + $0x74] sm:$0xf0]  ;;  %v6257_v2 = vld [vmem:[%s13427_s4 + $0x60] sm:$0xf] }
  0x16   : > { %v6266_v3 = vor.u32 %v6518_v1, %v6265_v0  ;;  %v6516_v4 = vld [vmem:[%s13427_s4 + $0x64] sm:$0xf0]  ;;  %v6249_v6 = vld [vmem:[%s13427_s4 + $0x50] sm:$0xf]  ;;  %v6514_v7 = vld [vmem:[%s13427_s4 + $0x54] sm:$0xf0] }
  0x17   : > { %v6258_v5 = vor.u32 %v6516_v4, %v6257_v2  ;;  %v6250_v8 = vor.u32 %v6514_v7, %v6249_v6  ;;  %v6241_v9 = vld [vmem:[%s13427_s4 + $0x40] sm:$0xf]  ;;  %v6512_v10 = vld [vmem:[%s13427_s4 + $0x44] sm:$0xf0]  ;;  %v6233_v12 = vld [vmem:[%s13427_s4 + $0x30] sm:$0xf] }
  0x18   : > { %6544 = vmatpush.bf16.msra.mxu1 %v6266_v3  ;;  %6545 = vmatpush.bf16.msra.mxu2 %v6266_v3  ;;  %v6242_v11 = vor.u32 %v6512_v10, %v6241_v9  ;;  %v6510_v13 = vld [vmem:[%s13427_s4 + $0x34] sm:$0xf0]  ;;  %p383_p10 = scmp.lt.s32.totalorder %s7959_s17, 1  ;;  %v6225_v15 = vld [vmem:[%s13427_s4 + $0x20] sm:$0xf]  ;;  %s13555_s0 = sld [smem:[#allocation157_spill]] }
  0x19   : > { %6546 = vmatpush.bf16.msra.mxu3 %v6266_v3  ;;  %548 = vmatpush.bf16.msra.mxu0 %v6266_v3  ;;  %v6234_v14 = vor.u32 %v6510_v13, %v6233_v12  ;;  %v6508_v16 = vld [vmem:[%s13427_s4 + $0x24] sm:$0xf0]  ;;  %v6217_v18 = vld [vmem:[%s13427_s4 + $0x10] sm:$0xf]  ;;  %v6506_v19 = vld [vmem:[%s13427_s4 + $0x14] sm:$0xf0] }
  0x1a   : > { %s8024_s27 = scalar_select %p383_p10, %s7959_s17, 1  ;;  %v6226_v17 = vor.u32 %v6508_v16, %v6225_v15  ;;  %v6218_v20 = vor.u32 %v6506_v19, %v6217_v18  ;;  %v6209_v21 = vld [vmem:[%s13427_s4] sm:$0xf]  ;;  %v6504_v22 = vld [vmem:[%s13427_s4 + $0x4] sm:$0xf0]  ;;  %vm1550_vm0 = vcmask 261120  }
  0x1b   : > { %v6210_v24 = vor.u32 %v6504_v22, %v6209_v21  ;;  %v6517_v33 = vld [vmem:[%s13427_s4 + $0x74] sm:$0xf]  ;;  %v6267_v34 = vld [vmem:[%s13427_s4 + $0x78] sm:$0xf0]  ;;  %v6329_v36 = vld [vmem:[%s13428_s5 + $0x70] sm:$0xf] }
  0x1c   : > { %6547 = vmatpush.bf16.msra.mxu1 %v6258_v5  ;;  %6548 = vmatpush.bf16.msra.mxu2 %v6258_v5  ;;  %s6500_s12 = sshll.u32 %s8024_s27, 8  ;;  %v6270_v35 = vor.u32 %v6517_v33, %v6267_v34  ;;  %v6534_v37 = vld [vmem:[%s13428_s5 + $0x74] sm:$0xf0]  ;;  %v6533_v38 = vld [vmem:[%s13428_s5 + $0x74] sm:$0xf]  ;;  %s6501_s30 = sshll.u32 %s8024_s27, 9 }
  0x1d   : > { %6549 = vmatpush.bf16.msra.mxu3 %v6258_v5  ;;  %549 = vmatpush.bf16.msra.mxu0 %v6258_v5  ;;  %v6330_v39 = vor.u32 %v6534_v37, %v6329_v36  ;;  %v6331_v40 = vld [vmem:[%s13428_s5 + $0x78] sm:$0xf0]  ;;  %v6515_v41 = vld [vmem:[%s13427_s4 + $0x64] sm:$0xf]  ;;  %v6259_v42 = vld [vmem:[%s13427_s4 + $0x68] sm:$0xf0]  ;;  %s8336_s20 = scalar_lea.vmem %s13424_s1, %s6501_s30 }
  0x1e   : > { %s8036_s21 = scalar_lea.vmem %s13555_s0, %s6500_s12  ;;  %v6334_v43 = vor.u32 %v6533_v38, %v6331_v40  ;;  %v6262_v44 = vor.u32 %v6515_v41, %v6259_v42  ;;  %v6321_v45 = vld [vmem:[%s13428_s5 + $0x60] sm:$0xf]  ;;  %v6532_v46 = vld [vmem:[%s13428_s5 + $0x64] sm:$0xf0]  ;;  %v6531_v47 = vld [vmem:[%s13428_s5 + $0x64] sm:$0xf]  ;;  %s8329_s0 = scalar_lea.vmem %s13425_s2, %s6501_s30 }
  0x1f   : > { %v406_v23 = vld [vmem:[%s8036_s21 + $0x40] sm:$0xff]  ;;  %v407_v25 = vld [vmem:[%s8036_s21 + $0x48] sm:$0xff]  ;;  %v6322_v48 = vor.u32 %v6532_v46, %v6321_v45  ;;  %v6513_v50 = vld [vmem:[%s13427_s4 + $0x54] sm:$0xf]  ;;  %s7878_s25 = smov 32   ;;  %s7880_s26 = smov 64  }
  0x20   : > { %6550 = vmatpush.bf16.msra.mxu1 %v6250_v8  ;;  %6551 = vmatpush.bf16.msra.mxu2 %v6250_v8  ;;  %v414_v26 = vld [vmem:[%s8036_s21 + $0x80] sm:$0xff]  ;;  %v415_v27 = vld [vmem:[%s8036_s21 + $0x88] sm:$0xff]  ;;  %v8050_v30 = vpack.c.bf16 %v407_v25, %v406_v23  ;;  %v6251_v51 = vld [vmem:[%s13427_s4 + $0x58] sm:$0xf0]  ;;  %vm5823_vm1 = vcmask 523264   ;;  %vm5856_vm2 = vcmask 785408  }
  0x21   : > { %6552 = vmatpush.bf16.msra.mxu3 %v6250_v8  ;;  %550 = vmatpush.bf16.msra.mxu0 %v6250_v8  ;;  %v422_v28 = vld [vmem:[%s8036_s21 + $0xc0] sm:$0xff]  ;;  %v423_v29 = vld [vmem:[%s8036_s21 + $0xc8] sm:$0xff]  ;;  %v8052_v31 = vpack.c.bf16 %v415_v27, %v414_v26  ;;  %v6313_v53 = vld [vmem:[%s13428_s5 + $0x50] sm:$0xf]  ;;  %v6254_v57 = vor.u32 %v6513_v50, %v6251_v51  ;;  %s380_s27 = sand.u32 1, %s7868_s14  }
  0x22   : > { %v8054_v32 = vpack.c.bf16 %v423_v29, %v422_v28  ;;  %v6323_v49 = vld [vmem:[%s13428_s5 + $0x68] sm:$0xf0]  ;;  %v6530_v54 = vld [vmem:[%s13428_s5 + $0x54] sm:$0xf0]  ;;  %v6529_v55 = vld [vmem:[%s13428_s5 + $0x54] sm:$0xf] }
  0x23   : > { %v6326_v52 = vor.u32 %v6531_v47, %v6323_v49  ;;  %v6315_v56 = vld [vmem:[%s13428_s5 + $0x58] sm:$0xf0]  ;;  %v6314_v58 = vor.u32 %v6530_v54, %v6313_v53  ;;  %v6511_v59 = vld [vmem:[%s13427_s4 + $0x44] sm:$0xf]  ;;  %v6243_v60 = vld [vmem:[%s13427_s4 + $0x48] sm:$0xf0] }
  0x24   : > { %6553 = vmatpush.bf16.msra.mxu1 %v6242_v11  ;;  %6554 = vmatpush.bf16.msra.mxu2 %v6242_v11  ;;  %v408_v61 = vld [vmem:[%s8036_s21 + $0x50] sm:$0xff]  ;;  %v6318_v62 = vor.u32 %v6529_v55, %v6315_v56  ;;  %v6305_v63 = vld [vmem:[%s13428_s5 + $0x40] sm:$0xf]  ;;  %v6528_v0 = vld [vmem:[%s13428_s5 + $0x44] sm:$0xf0]  ;;  %v6246_v6 = vor.u32 %v6511_v59, %v6243_v60  ;;  %s6200_s18 = sshll.u32 %s380_s27, 8 }
  0x25   : > { %6555 = vmatpush.bf16.msra.mxu3 %v6242_v11  ;;  %551 = vmatpush.bf16.msra.mxu0 %v6242_v11  ;;  %v409_v1 = vld [vmem:[%s8036_s21 + $0x58] sm:$0xff]  ;;  %v416_v2 = vld [vmem:[%s8036_s21 + $0x90] sm:$0xff]  ;;  %v6306_v7 = vor.u32 %v6528_v0, %v6305_v63  ;;  %v6527_v8 = vld [vmem:[%s13428_s5 + $0x44] sm:$0xf]  ;;  %s13017_s29 = scalar_lea.vmem [#allocation2], %s6200_s18 }
  0x26   : > { %v417_v3 = vld [vmem:[%s8036_s21 + $0x98] sm:$0xff]  ;;  %v424_v4 = vld [vmem:[%s8036_s21 + $0xd0] sm:$0xff]  ;;  %v6307_v9 = vld [vmem:[%s13428_s5 + $0x48] sm:$0xf0]  ;;  %v8137_v10 = vpack.c.bf16 %v409_v1, %v408_v61 }
  0x27   : > { %v425_v5 = vld [vmem:[%s8036_s21 + $0xd8] sm:$0xff]  ;;  %v8139_v11 = vpack.c.bf16 %v417_v3, %v416_v2  ;;  %v6310_v13 = vor.u32 %v6527_v8, %v6307_v9  ;;  %v6525_v19 = vld [vmem:[%s13428_s5 + $0x34] sm:$0xf]  ;;  %v6507_v22 = vld [vmem:[%s13427_s4 + $0x24] sm:$0xf] }
  0x28   : > { %6556 = vmatpush.bf16.msra.mxu1 %v6234_v14  ;;  %6557 = vmatpush.bf16.msra.mxu2 %v6234_v14  ;;  %v8141_v12 = vpack.c.bf16 %v425_v5, %v424_v4  ;;  %v6235_v15 = vld [vmem:[%s13427_s4 + $0x38] sm:$0xf0]  ;;  %v6526_v18 = vld [vmem:[%s13428_s5 + $0x34] sm:$0xf0]  ;;  %v6227_v23 = vld [vmem:[%s13427_s4 + $0x28] sm:$0xf0] }
  0x29   : > { %6558 = vmatpush.bf16.msra.mxu3 %v6234_v14  ;;  %552 = vmatpush.bf16.msra.mxu0 %v6234_v14  ;;  %v6509_v14 = vld [vmem:[%s13427_s4 + $0x34] sm:$0xf]  ;;  %v6299_v21 = vld [vmem:[%s13428_s5 + $0x38] sm:$0xf0]  ;;  %v6230_v25 = vor.u32 %v6507_v22, %v6227_v23  ;;  %v6289_v26 = vld [vmem:[%s13428_s5 + $0x20] sm:$0xf] }
  0x2a   : > { %v6238_v16 = vor.u32 %v6509_v14, %v6235_v15  ;;  %v6524_v27 = vld [vmem:[%s13428_s5 + $0x24] sm:$0xf0]  ;;  %v6523_v28 = vld [vmem:[%s13428_s5 + $0x24] sm:$0xf]  ;;  %v6291_v33 = vld [vmem:[%s13428_s5 + $0x28] sm:$0xf0] }
  0x2b   : > { %v6290_v29 = vor.u32 %v6524_v27, %v6289_v26  ;;  %v6505_v34 = vld [vmem:[%s13427_s4 + $0x14] sm:$0xf]  ;;  %v6281_v36 = vld [vmem:[%s13428_s5 + $0x10] sm:$0xf]  ;;  %v6522_v37 = vld [vmem:[%s13428_s5 + $0x14] sm:$0xf0]  ;;  %v6294_v38 = vor.u32 %v6523_v28, %v6291_v33 }
  0x2c   : > { %6559 = vmatpush.bf16.msra.mxu1 %v6226_v17  ;;  %6560 = vmatpush.bf16.msra.mxu2 %v6226_v17  ;;  %v6521_v40 = vld [vmem:[%s13428_s5 + $0x14] sm:$0xf]  ;;  %v6283_v41 = vld [vmem:[%s13428_s5 + $0x18] sm:$0xf0]  ;;  %v6503_v42 = vld [vmem:[%s13427_s4 + $0x4] sm:$0xf] }
  0x2d   : > { %6561 = vmatpush.bf16.msra.mxu3 %v6226_v17  ;;  %553 = vmatpush.bf16.msra.mxu0 %v6226_v17  ;;  %v6297_v17 = vld [vmem:[%s13428_s5 + $0x30] sm:$0xf]  ;;  %v398_v45 = vld [vmem:[%s8036_s21] sm:$0xff]  ;;  %v399_v46 = vld [vmem:[%s8036_s21 + $0x8] sm:$0xff]  ;;  %v6286_v56 = vor.u32 %v6521_v40, %v6283_v41 }
  0x2e   : > { %v410_v47 = vld [vmem:[%s8036_s21 + $0x60] sm:$0xff]  ;;  %v6520_v49 = vld [vmem:[%s13428_s5 + $0x4] sm:$0xf0]  ;;  %v430_v53 = vpack.c.bf16 %v399_v46, %v398_v45  ;;  %v6275_v60 = vld [vmem:[%s13428_s5 + $0x8] sm:$0xf0] }
  0x2f   : > { %v411_v50 = vld [vmem:[%s8036_s21 + $0x68] sm:$0xff]  ;;  %v418_v51 = vld [vmem:[%s8036_s21 + $0xa0] sm:$0xff]  ;;  %v400_v1 = vld [vmem:[%s8036_s21 + $0x10] sm:$0xff] }
  0x30   : > { %6562 = vmatpush.bf16.msra.mxu1 %v6218_v20  ;;  %6563 = vmatpush.bf16.msra.mxu2 %v6218_v20  ;;  %v426_v54 = vld [vmem:[%s8036_s21 + $0xe0] sm:$0xff]  ;;  %v427_v55 = vld [vmem:[%s8036_s21 + $0xe8] sm:$0xff]  ;;  %v8226_v61 = vpack.c.bf16 %v411_v50, %v410_v47  ;;  %v401_v2 = vld [vmem:[%s8036_s21 + $0x18] sm:$0xff] }
  0x31   : > { %6564 = vmatpush.bf16.msra.mxu3 %v6218_v20  ;;  %554 = vmatpush.bf16.msra.mxu0 %v6218_v20  ;;  %v6298_v20 = vor.u32 %v6526_v18, %v6297_v17  ;;  %v6519_v59 = vld [vmem:[%s13428_s5 + $0x4] sm:$0xf]  ;;  %v8230_v63 = vpack.c.bf16 %v427_v55, %v426_v54  ;;  %v412_v3 = vld [vmem:[%s8036_s21 + $0x70] sm:$0xff]  ;;  %v413_v4 = vld [vmem:[%s8036_s21 + $0x78] sm:$0xff] }
  0x32   : > { %v6278_v0 = vor.u32 %v6519_v59, %v6275_v60  ;;  %v420_v5 = vld [vmem:[%s8036_s21 + $0xb0] sm:$0xff]  ;;  %v429_v9 = vld [vmem:[%s8036_s21 + $0xf8] sm:$0xff]  ;;  %v403_v17 = vld [vmem:[%s8036_s21 + $0x28] sm:$0xff] }
  0x33   : > { %v428_v8 = vld [vmem:[%s8036_s21 + $0xf0] sm:$0xff]  ;;  %v742_v50 = vld [vmem:[%s13430_s7] sm:$0x3]  ;;  %v1007_v59 = vld [vmem:[%s8336_s20 + $0x8] sm:$0xff] }
  0x34   : > { %6565 = vmatpush.bf16.msra.mxu1 %v6210_v24  ;;  %6566 = vmatpush.bf16.msra.mxu2 %v6210_v24  ;;  %v8245_v15 = vpack.c.bf16 %v429_v9, %v428_v8  ;;  %v8324_v54 = vperm.slane %v742_v50, 1 }
  0x35   : > { %6567 = vmatpush.bf16.msra.mxu3 %v6210_v24  ;;  %555 = vmatpush.bf16.msra.mxu0 %v6210_v24  ;;  %v6302_v24 = vor.u32 %v6525_v19, %v6299_v21  ;;  %v404_v19 = vld [vmem:[%s8036_s21 + $0x30] sm:$0xff] }
  0x37   : > { %576 = vmatmul.bf16.vlgmr.msra.gmra.mxu1 %v8050_v30  ;;  %596 = vmatmul.bf16.vlgmr.msra.gmra.mxu2 %v8052_v31 }
  0x38   : > { %616 = vmatmul.bf16.vlgmr.msra.gmra.mxu3 %v8054_v32  ;;  %637 = vmatpush.bf16.msrb.mxu1 %v6270_v35  ;;  %v6219_v35 = vld [vmem:[%s13427_s4 + $0x18] sm:$0xf0] }
  0x39   : > { %828 = vmatpush.bf16.msrb.mxu2 %v6330_v39  ;;  %917 = vmatpush.bf16.msrb.mxu3 %v6334_v43  ;;  %v6222_v39 = vor.u32 %v6505_v34, %v6219_v35  ;;  %v6282_v43 = vor.u32 %v6522_v37, %v6281_v36 }
  0x3a   : > { %556 = vmatmul.bf16.vlgmr.msra.gmra.mxu0 %v430_v53 }
  0x3c   : > { %638 = vmatpush.bf16.msrb.mxu1 %v6262_v44  ;;  %v6211_v44 = vld [vmem:[%s13427_s4 + $0x8] sm:$0xf0] }
  0x3d   : > { %829 = vmatpush.bf16.msrb.mxu2 %v6322_v48  ;;  %918 = vmatpush.bf16.msrb.mxu3 %v6326_v52  ;;  %v6273_v48 = vld [vmem:[%s13428_s5] sm:$0xf]  ;;  %v419_v52 = vld [vmem:[%s8036_s21 + $0xa8] sm:$0xff] }
  0x40   : > { %639 = vmatpush.bf16.msrb.mxu1 %v6254_v57  ;;  %v6214_v57 = vor.u32 %v6503_v42, %v6211_v44 }
  0x41   : > { %830 = vmatpush.bf16.msrb.mxu2 %v6314_v58  ;;  %919 = vmatpush.bf16.msrb.mxu3 %v6318_v62  ;;  %v6274_v58 = vor.u32 %v6520_v49, %v6273_v48  ;;  %v8228_v62 = vpack.c.bf16 %v419_v52, %v418_v51  ;;  %v462_v51 = vld [vmem:[%s13429_s6] sm:$0x3] }
  0x42   : > { %v8319_v52 = vperm.slane %v462_v51, 1  ;;  %v8331_v55 = vperm.slane %v462_v51, 0 }
  0x44   : > { %640 = vmatpush.bf16.msrb.mxu1 %v6246_v6  ;;  %v421_v6 = vld [vmem:[%s8036_s21 + $0xb8] sm:$0xff] }
  0x45   : > { %831 = vmatpush.bf16.msrb.mxu2 %v6306_v7  ;;  %920 = vmatpush.bf16.msrb.mxu3 %v6310_v13  ;;  %v431_v7 = vpack.c.bf16 %v401_v2, %v400_v1  ;;  %v437_v13 = vpack.c.bf16 %v413_v4, %v412_v3  ;;  %v8243_v14 = vpack.c.bf16 %v421_v6, %v420_v5  ;;  %v1006_v2 = vld [vmem:[%s8336_s20] sm:$0xff]  ;;  %v1135_v4 = vld [vmem:[%s8329_s0 + $0x8] sm:$0xff] }
  0x46   : > { %v1134_v3 = vld [vmem:[%s8329_s0] sm:$0xff] }
  0x47   : > { %581 = vmatmul.bf16.gmra.mxu1 %v8137_v10  ;;  %601 = vmatmul.bf16.gmra.mxu2 %v8139_v11 }
  0x48   : > { %621 = vmatmul.bf16.gmra.mxu3 %v8141_v12  ;;  %641 = vmatpush.bf16.msrb.mxu1 %v6238_v16  ;;  %v402_v16 = vld [vmem:[%s8036_s21 + $0x20] sm:$0xff] }
  0x49   : > { %832 = vmatpush.bf16.msrb.mxu2 %v6298_v20  ;;  %921 = vmatpush.bf16.msrb.mxu3 %v6302_v24  ;;  %v432_v18 = vpack.c.bf16 %v403_v17, %v402_v16  ;;  %v405_v20 = vld [vmem:[%s8036_s21 + $0x38] sm:$0xff]  ;;  %s7879_s21 = smov 96  }
  0x4a   : > { %561 = vmatmul.bf16.gmra.mxu0 %v431_v7  ;;  %v433_v21 = vpack.c.bf16 %v405_v20, %v404_v19  ;;  %v1009_v19 = vld [vmem:[%s8336_s20 + $0x18] sm:$0xff] }
  0x4c   : > { %642 = vmatpush.bf16.msrb.mxu1 %v6230_v25 }
  0x4d   : > { %833 = vmatpush.bf16.msrb.mxu2 %v6290_v29  ;;  %922 = vmatpush.bf16.msrb.mxu3 %v6294_v38 }
  0x50   : > { %643 = vmatpush.bf16.msrb.mxu1 %v6222_v39 }
  0x51   : > { %834 = vmatpush.bf16.msrb.mxu2 %v6282_v43  ;;  %923 = vmatpush.bf16.msrb.mxu3 %v6286_v56 }
  0x54   : > { %644 = vmatpush.bf16.msrb.mxu1 %v6214_v57 }
  0x55   : > { %835 = vmatpush.bf16.msrb.mxu2 %v6274_v58  ;;  %924 = vmatpush.bf16.msrb.mxu3 %v6278_v0 }
  0x57   : > { %586 = vmatmul.bf16.gmra.mxu1 %v8226_v61  ;;  %606 = vmatmul.bf16.gmra.mxu2 %v8228_v62 }
  0x58   : > { %626 = vmatmul.bf16.gmra.mxu3 %v8230_v63 }
  0x5a   : > { %566 = vmatmul.bf16.gmra.mxu0 %v432_v18 }
  0x67   : > { %591 = vmatmul.bf16.gmra.mxu1 %v437_v13  ;;  %611 = vmatmul.bf16.gmra.mxu2 %v8243_v14 }
  0x68   : > { %631 = vmatmul.bf16.gmra.mxu3 %v8245_v15 }
  0x6a   : > { %571 = vmatmul.bf16.gmra.mxu0 %v433_v21 }
  0x77   : > { %645 = vmatmul.bf16.vlgmr.msrb.gmra.mxu1 %v430_v53  ;;  %836 = vmatmul.bf16.vlgmr.msrb.gmra.mxu2 %v430_v53 }
  0x78   : > { %925 = vmatmul.bf16.vlgmr.msrb.gmra.mxu3 %v430_v53  ;;  %v8322_v53 = vperm.slane %v742_v50, 0 }
  0x87   : > { %650 = vmatmul.bf16.gmra.mxu1 %v431_v7  ;;  %841 = vmatmul.bf16.gmra.mxu2 %v431_v7 }
  0x88   : > { %930 = vmatmul.bf16.gmra.mxu3 %v431_v7 }
  0x97   : > { %655 = vmatmul.bf16.gmra.mxu1 %v432_v18  ;;  %846 = vmatmul.bf16.gmra.mxu2 %v432_v18 }
  0x98   : > { %935 = vmatmul.bf16.gmra.mxu3 %v432_v18  ;;  %v1136_v18 = vld [vmem:[%s8329_s0 + $0x10] sm:$0xff] }
  0xa7   : > { %660 = vmatmul.bf16.gmra.mxu1 %v433_v21  ;;  %851 = vmatmul.bf16.gmra.mxu2 %v433_v21 }
  0xa8   : > { %940 = vmatmul.bf16.gmra.mxu3 %v433_v21 }
  0xb4   : > { %v8253_v22 = vpop.f32.mrf.mxu1 }
  0xb7   : > { %665 = vmatmul.bf16.gmra.mxu1 %v8050_v30  ;;  %856 = vmatmul.bf16.gmra.mxu2 %v8050_v30  ;;  %v557_v42 = vpop.f32.mrf.mxu0 }
  0xb8   : > { %945 = vmatmul.bf16.gmra.mxu3 %v8050_v30  ;;  %v558_v60 = vadd.f32 %v557_v42, %v8331_v55 }
  0xba   : > { %v8258_v23 = vpop.f32.mrf.mxu2  ;;  %v1070_v7 = vmul.f32 %v1006_v2, %v558_v60 }
  0xbb   : > { %v8260_v24 = vpop.f32.mrf.mxu3 }
  0xbc   : > { %v8262_v25 = vpop.f32.mrf.mxu1 }
  0xbf   : > { %v559_v46 = vpop.f32.mrf.mxu0 }
  0xc0   : > { %v560_v5 = vadd.f32 %v559_v46, %v8331_v55 }
  0xc2   : > { %v8264_v26 = vpop.f32.mrf.mxu2 }
  0xc3   : > { %v8266_v27 = vpop.f32.mrf.mxu3 }
  0xc4   : > { %v8268_v28 = vpop.f32.mrf.mxu1 }
  0xc7   : > { %670 = vmatmul.bf16.gmra.mxu1 %v8137_v10  ;;  %861 = vmatmul.bf16.gmra.mxu2 %v8137_v10  ;;  %v562_v57 = vpop.f32.mrf.mxu0 }
  0xc8   : > { %950 = vmatmul.bf16.gmra.mxu3 %v8137_v10 }
  0xca   : > { %v8273_v29 = vpop.f32.mrf.mxu2 }
  0xcb   : > { %v8275_v30 = vpop.f32.mrf.mxu3 }
  0xcc   : > { %v8277_v33 = vpop.f32.mrf.mxu1 }
  0xd2   : > { %v8279_v34 = vpop.f32.mrf.mxu2 }
  0xd3   : > { %v8281_v35 = vpop.f32.mrf.mxu3 }
  0xd4   : > { %v8283_v36 = vpop.f32.mrf.mxu1 }
  0xd7   : > { %675 = vmatmul.bf16.gmra.mxu1 %v8226_v61  ;;  %866 = vmatmul.bf16.gmra.mxu2 %v8226_v61 }
  0xd8   : > { %955 = vmatmul.bf16.gmra.mxu3 %v8226_v61 }
  0xda   : > { %v8288_v37 = vpop.f32.mrf.mxu2 }
  0xdb   : > { %v8290_v10 = vpop.f32.mrf.mxu3 }
  0xdc   : > { %v8292_v38 = vpop.f32.mrf.mxu1 }
  0xe2   : > { %v8294_v39 = vpop.f32.mrf.mxu2 }
  0xe3   : > { %v8296_v40 = vpop.f32.mrf.mxu3 }
  0xe4   : > { %v8298_v41 = vpop.f32.mrf.mxu1 }
  0xe7   : > { %680 = vmatmul.bf16.gmra.mxu1 %v437_v13  ;;  %871 = vmatmul.bf16.gmra.mxu2 %v437_v13 }
  0xe8   : > { %960 = vmatmul.bf16.gmra.mxu3 %v437_v13  ;;  %v1008_v13 = vld [vmem:[%s8336_s20 + $0x10] sm:$0xff] }
  0xe9   : > { %v1072_v20 = vmul.f32 %v1008_v13, %v560_v5  ;;  %v1011_v13 = vld [vmem:[%s8336_s20 + $0x28] sm:$0xff] }
  0xea   : > { %v8300_v43 = vpop.f32.mrf.mxu2 }
  0xeb   : > { %v8302_v44 = vpop.f32.mrf.mxu3 }
  0xec   : > { %v8304_v45 = vpop.f32.mrf.mxu1 }
  0xf2   : > { %v8306_v47 = vpop.f32.mrf.mxu2 }
  0xf3   : > { %v8308_v48 = vpop.f32.mrf.mxu3 }
  0xf4   : > { %v646_v49 = vpop.f32.mrf.mxu1 }
  0xf5   : > { %v647_v58 = vadd.f32 %v646_v49, %v8319_v52  ;;  %v1137_v49 = vld [vmem:[%s8329_s0 + $0x18] sm:$0xff] }
  0xf7   : > { %685 = vmatmul.bf16.gmra.mxu1 %v8052_v31  ;;  %876 = vmatmul.bf16.gmra.mxu2 %v8052_v31  ;;  %v1071_v6 = vmul.f32 %v1007_v59, %v647_v58 }
  0xf8   : > { %965 = vmatmul.bf16.gmra.mxu3 %v8052_v31 }
  0xfa   : > { %v837_v56 = vpop.f32.mrf.mxu2 }
  0xfb   : > { %v926_v31 = vpop.f32.mrf.mxu3  ;;  %v838_v61 = vadd.f32 %v837_v56, %v8322_v53 }
  0xfc   : > { %v927_v0 = vadd.f32 %v926_v31, %v8324_v54  ;;  %v648_v1 = vpop.f32.mrf.mxu1  ;;  %v564_v31 = vpop.f32.mrf.mxu0 }
  0xfd   : > { %v1198_v8 = vmul.f32 %v1134_v3, %v838_v61  ;;  %v649_v16 = vadd.f32 %v648_v1, %v8319_v52  ;;  %v563_v3 = vadd.f32 %v562_v57, %v8331_v55 }
  0xfe   : > { %v1199_v9 = vmul.f32 %v1135_v4, %v927_v0 }
  0xff   : > { %v1262_v50 = vadd.f32 %v1198_v8, %v1070_v7  ;;  %v1073_v59 = vmul.f32 %v1009_v19, %v649_v16  ;;  %v1138_v16 = vld [vmem:[%s8329_s0 + $0x20] sm:$0xff] }
 0x100   : > { %v1263_v51 = vadd.f32 %v1199_v9, %v1071_v6  ;;  %v1010_v6 = vld [vmem:[%s8336_s20 + $0x20] sm:$0xff] }
 0x102   : > { %v839_v17 = vpop.f32.mrf.mxu2  ;;  %v1390_v0 = vpack.c.bf16 %v1263_v51, %v1262_v50  ;;  %v565_v51 = vadd.f32 %v564_v31, %v8331_v55 }
 0x103   : > { %v840_v21 = vadd.f32 %v839_v17, %v8322_v53  ;;  %v928_v42 = vpop.f32.mrf.mxu3 }
 0x104   : > { %v929_v56 = vadd.f32 %v928_v42, %v8324_v54  ;;  %v651_v46 = vpop.f32.mrf.mxu1  ;;  %v1502_v9 = vunpack.c.h.b16 %v1390_v0  ;;  %v567_v57 = vpop.f32.mrf.mxu0 }
 0x105   : > { %v1200_v58 = vmul.f32 %v1136_v18, %v840_v21  ;;  %v652_v5 = vadd.f32 %v651_v46, %v8319_v52  ;;  %v1139_v18 = vld [vmem:[%s8329_s0 + $0x28] sm:$0xff] }
 0x106   : > { %v1201_v60 = vmul.f32 %v1137_v49, %v929_v56  ;;  %v1012_v56 = vld [vmem:[%s8336_s20 + $0x30] sm:$0xff] }
 0x107   : > { %v1264_v61 = vadd.f32 %v1200_v58, %v1072_v20  ;;  %690 = vmatmul.bf16.gmra.mxu1 %v8139_v11  ;;  %881 = vmatmul.bf16.gmra.mxu2 %v8139_v11  ;;  %v1075_v42 = vmul.f32 %v1011_v13, %v652_v5 }
 0x108   : > { %v1265_v1 = vadd.f32 %v1201_v60, %v1073_v59  ;;  %970 = vmatmul.bf16.gmra.mxu3 %v8139_v11  ;;  %v1074_v11 = vmul.f32 %v1010_v6, %v563_v3  ;;  %v1140_v60 = vld [vmem:[%s8329_s0 + $0x30] sm:$0xff]  ;;  %v1076_v3 = vmul.f32 %v1012_v56, %v565_v51  ;;  %v1141_v6 = vld [vmem:[%s8329_s0 + $0x38] sm:$0xff] }
 0x10a   : > { %v1391_v2 = vpack.c.bf16 %v1265_v1, %v1264_v61  ;;  %v842_v4 = vpop.f32.mrf.mxu2  ;;  %v1013_v1 = vld [vmem:[%s8336_s20 + $0x38] sm:$0xff] }
 0x10b   : > { %v843_v7 = vadd.f32 %v842_v4, %v8322_v53  ;;  %v931_v8 = vpop.f32.mrf.mxu3 }
 0x10c   : > { %v932_v17 = vadd.f32 %v931_v8, %v8324_v54  ;;  %v653_v19 = vpop.f32.mrf.mxu1  ;;  %v1503_v20 = vunpack.c.h.b16 %v1391_v2  ;;  %v1455_v46 = vunpack.c.l.b16 %v1391_v2 }
 0x10d   : > { %v1202_v49 = vmul.f32 %v1138_v16, %v843_v7  ;;  %v654_v58 = vadd.f32 %v653_v19, %v8319_v52  ;;  %v1454_v7 = vunpack.c.l.b16 %v1390_v0  ;;  %v569_v0 = vpop.f32.mrf.mxu0 }
 0x10e   : > { %v8365_v21 = vpack.c.b16 %v1503_v20, %v1502_v9  ;;  %v1203_v50 = vmul.f32 %v1139_v18, %v932_v17 }
 0x10f   : > { %v1266_v31 = vadd.f32 %v1202_v49, %v1074_v11  ;;  %v8381_v16 = vpack.c.b16 %v1455_v46, %v1454_v7  ;;  %v1077_v2 = vmul.f32 %v1013_v1, %v654_v58  ;;  %v1143_v1 = vld [vmem:[%s8329_s0 + $0x48] sm:$0xff] }
 0x110   : > { %4201 = vrot.lane.b32.xlu1 %v8365_v21, %s7878_s25  ;;  %3479 = vrot.lane.b32.xlu2 %v8365_v21, %s7879_s21  ;;  %v1267_v61 = vadd.f32 %v1203_v50, %v1075_v42  ;;  %v568_v42 = vadd.f32 %v567_v57, %v8331_v55 }
 0x111   : > { %2241 = vrot.lane.b32.xlu0 %v8365_v21, %s7880_s26 }
 0x112   : > { %v844_v59 = vpop.f32.mrf.mxu2  ;;  %v1392_v18 = vpack.c.bf16 %v1267_v61, %v1266_v31  ;;  %v1142_v31 = vld [vmem:[%s8329_s0 + $0x40] sm:$0xff] }
 0x113   : > { %v845_v4 = vadd.f32 %v844_v59, %v8322_v53  ;;  %v933_v5 = vpop.f32.mrf.mxu3 }
 0x114   : > { %v934_v8 = vadd.f32 %v933_v5, %v8324_v54  ;;  %v656_v9 = vpop.f32.mrf.mxu1  ;;  %v1456_v50 = vunpack.c.l.b16 %v1392_v18  ;;  %v1504_v58 = vunpack.c.h.b16 %v1392_v18 }
 0x115   : > { %v1204_v13 = vmul.f32 %v1140_v60, %v845_v4  ;;  %v657_v51 = vadd.f32 %v656_v9, %v8319_v52  ;;  %v1015_v60 = vld [vmem:[%s8336_s20 + $0x48] sm:$0xff] }
 0x116   : > { %v1205_v17 = vmul.f32 %v1141_v6, %v934_v8 }
 0x117   : > { %v1268_v19 = vadd.f32 %v1204_v13, %v1076_v3  ;;  %695 = vmatmul.bf16.gmra.mxu1 %v8228_v62  ;;  %886 = vmatmul.bf16.gmra.mxu2 %v8228_v62  ;;  %v1079_v7 = vmul.f32 %v1015_v60, %v657_v51  ;;  %v570_v13 = vadd.f32 %v569_v0, %v8331_v55 }
 0x118   : > { %v1269_v20 = vadd.f32 %v1205_v17, %v1077_v2  ;;  %975 = vmatmul.bf16.gmra.mxu3 %v8228_v62  ;;  %4491 = vrot.lane.b32.xlu1 %v8381_v16, %s7878_s25  ;;  %v1014_v62 = vld [vmem:[%s8336_s20 + $0x40] sm:$0xff]  ;;  %v1016_v2 = vld [vmem:[%s8336_s20 + $0x50] sm:$0xff] }
 0x119   : > { %3447 = vrot.lane.b32.xlu2 %v8381_v16, %s7880_s26  ;;  %2531 = vrot.lane.b32.xlu0 %v8381_v16, %s7879_s21  ;;  %v1078_v5 = vmul.f32 %v1014_v62, %v568_v42  ;;  %v1145_v62 = vld [vmem:[%s8329_s0 + $0x58] sm:$0xff] }
 0x11a   : > { %v1393_v11 = vpack.c.bf16 %v1269_v20, %v1268_v19  ;;  %v847_v49 = vpop.f32.mrf.mxu2  ;;  %v1144_v19 = vld [vmem:[%s8329_s0 + $0x50] sm:$0xff]  ;;  %v572_v20 = vpop.f32.mrf.mxu0 }
 0x11b   : > { %v848_v56 = vadd.f32 %v847_v49, %v8322_v53  ;;  %v936_v46 = vpop.f32.mrf.mxu3  ;;  %v1017_v49 = vld [vmem:[%s8336_s20 + $0x58] sm:$0xff] }
 0x11c   : > { %v1457_v59 = vunpack.c.l.b16 %v1393_v11  ;;  %v937_v61 = vadd.f32 %v936_v46, %v8324_v54  ;;  %v658_v3 = vpop.f32.mrf.mxu1  ;;  %v1505_v4 = vunpack.c.h.b16 %v1393_v11 }
 0x11d   : > { %v1206_v8 = vmul.f32 %v1142_v31, %v848_v56  ;;  %v659_v17 = vadd.f32 %v658_v3, %v8319_v52 }
 0x11e   : > { %v8400_v57 = vpack.c.b16 %v1457_v59, %v1456_v50  ;;  %v8402_v6 = vpack.c.b16 %v1505_v4, %v1504_v58  ;;  %v1207_v9 = vmul.f32 %v1143_v1, %v937_v61  ;;  %v1080_v50 = vmul.f32 %v1016_v2, %v570_v13  ;;  %v1019_v2 = vld [vmem:[%s8336_s20 + $0x68] sm:$0xff] }
 0x11f   : > { %v1270_v11 = vadd.f32 %v1206_v8, %v1078_v5  ;;  %v1081_v59 = vmul.f32 %v1017_v49, %v659_v17  ;;  %v1147_v49 = vld [vmem:[%s8329_s0 + $0x68] sm:$0xff] }
 0x120   : > { %2533 = vrot.lane.b32.xlu1 %v8400_v57, %s7879_s21  ;;  %v1271_v42 = vadd.f32 %v1207_v9, %v1079_v7  ;;  %v573_v7 = vadd.f32 %v572_v20, %v8331_v55 }
 0x121   : > { %3449 = vrot.lane.b32.xlu2 %v8400_v57, %s7880_s26  ;;  %2243 = vrot.lane.b32.xlu0 %v8402_v6, %s7880_s26 }
 0x122   : > { %v849_v18 = vpop.f32.mrf.mxu2  ;;  %v1394_v31 = vpack.c.bf16 %v1271_v42, %v1270_v11  ;;  %v1018_v11 = vld [vmem:[%s8336_s20 + $0x60] sm:$0xff] }
 0x123   : > { %v850_v0 = vadd.f32 %v849_v18, %v8322_v53  ;;  %v938_v51 = vpop.f32.mrf.mxu3  ;;  %v1146_v42 = vld [vmem:[%s8329_s0 + $0x60] sm:$0xff] }
 0x124   : > { %v939_v56 = vadd.f32 %v938_v51, %v8324_v54  ;;  %v661_v46 = vpop.f32.mrf.mxu1  ;;  %v1458_v5 = vunpack.c.l.b16 %v1394_v31  ;;  %v1082_v51 = vmul.f32 %v1018_v11, %v573_v7 }
 0x125   : > { %v1208_v58 = vmul.f32 %v1144_v19, %v850_v0  ;;  %v662_v13 = vadd.f32 %v661_v46, %v8319_v52  ;;  %v574_v19 = vpop.f32.mrf.mxu0  ;;  %v1020_v46 = vld [vmem:[%s8336_s20 + $0x70] sm:$0xff] }
 0x126   : > { %v1209_v60 = vmul.f32 %v1145_v62, %v939_v56  ;;  %v575_v20 = vadd.f32 %v574_v19, %v8331_v55 }
 0x127   : > { %v1272_v61 = vadd.f32 %v1208_v58, %v1080_v50  ;;  %700 = vmatmul.bf16.gmra.mxu1 %v8243_v14  ;;  %891 = vmatmul.bf16.gmra.mxu2 %v8243_v14  ;;  %v1083_v0 = vmul.f32 %v1019_v2, %v662_v13 }
 0x128   : > { %v1273_v1 = vadd.f32 %v1209_v60, %v1081_v59  ;;  %980 = vmatmul.bf16.gmra.mxu3 %v8243_v14  ;;  %3481 = vrot.lane.b32.xlu1 %v8402_v6, %s7879_s21  ;;  %v1148_v60 = vld [vmem:[%s8329_s0 + $0x70] sm:$0xff] }
 0x129   : > { %4203 = vrot.lane.b32.xlu0 %v8402_v6, %s7878_s25 }
 0x12a   : > { %v1395_v3 = vpack.c.bf16 %v1273_v1, %v1272_v61  ;;  %v852_v4 = vpop.f32.mrf.mxu2  ;;  %v1021_v61 = vld [vmem:[%s8336_s20 + $0x78] sm:$0xff]  ;;  %v1084_v1 = vmul.f32 %v1020_v46, %v575_v20 }
 0x12b   : > { %v941_v8 = vpop.f32.mrf.mxu3  ;;  %v853_v14 = vadd.f32 %v852_v4, %v8322_v53 }
 0x12c   : > { %v1459_v9 = vunpack.c.l.b16 %v1395_v3  ;;  %v942_v17 = vadd.f32 %v941_v8, %v8324_v54  ;;  %v663_v18 = vpop.f32.mrf.mxu1  ;;  %v1149_v8 = vld [vmem:[%s8329_s0 + $0x78] sm:$0xff]  ;;  %v1507_v7 = vunpack.c.h.b16 %v1395_v3 }
 0x12d   : > { %v1210_v62 = vmul.f32 %v1146_v42, %v853_v14  ;;  %v664_v58 = vadd.f32 %v663_v18, %v8319_v52 }
 0x12e   : > { %v8433_v50 = vpack.c.b16 %v1459_v9, %v1458_v5  ;;  %v1211_v56 = vmul.f32 %v1147_v49, %v942_v17  ;;  %v1506_v17 = vunpack.c.h.b16 %v1394_v31 }
 0x12f   : > { %v1274_v9 = vadd.f32 %v1210_v62, %v1082_v51  ;;  %v1085_v11 = vmul.f32 %v1021_v61, %v664_v58  ;;  %v1023_v58 = vld [vmem:[%s8336_s20 + $0x88] sm:$0xff] }
 0x130   : > { %2535 = vrot.lane.b32.xlu2 %v8433_v50, %s7879_s21  ;;  %v1275_v13 = vadd.f32 %v1211_v56, %v1083_v0  ;;  %v8449_v49 = vpack.c.b16 %v1507_v7, %v1506_v17 }
 0x131   : > { %4493 = vrot.lane.b32.xlu0 %v8400_v57, %s7878_s25 }
 0x132   : > { %v854_v59 = vpop.f32.mrf.mxu2  ;;  %v1396_v3 = vpack.c.bf16 %v1275_v13, %v1274_v9 }
 0x133   : > { %v855_v4 = vadd.f32 %v854_v59, %v8322_v53  ;;  %v943_v5 = vpop.f32.mrf.mxu3  ;;  %v1150_v59 = vld [vmem:[%s8329_s0 + $0x80] sm:$0xff] }
 0x134   : > { %v944_v2 = vadd.f32 %v943_v5, %v8324_v54  ;;  %v666_v14 = vpop.f32.mrf.mxu1  ;;  %v1508_v46 = vunpack.c.h.b16 %v1396_v3  ;;  %v1022_v5 = vld [vmem:[%s8336_s20 + $0x80] sm:$0xff] }
 0x135   : > { %v1212_v19 = vmul.f32 %v1148_v60, %v855_v4  ;;  %v667_v51 = vadd.f32 %v666_v14, %v8319_v52  ;;  %v1151_v60 = vld [vmem:[%s8329_s0 + $0x88] sm:$0xff]  ;;  %v578_v4 = vadd.f32 %v8253_v22, %v8331_v55  ;;  %v580_v14 = vadd.f32 %v8262_v25, %v8331_v55  ;;  %v1024_v22 = vld [vmem:[%s8336_s20 + $0x90] sm:$0xff] }
 0x136   : > { %v1213_v42 = vmul.f32 %v1149_v8, %v944_v2 }
 0x137   : > { %v1276_v18 = vadd.f32 %v1212_v19, %v1084_v1  ;;  %705 = vmatmul.bf16.gmra.mxu1 %v8054_v32  ;;  %896 = vmatmul.bf16.gmra.mxu2 %v8054_v32  ;;  %v1087_v7 = vmul.f32 %v1023_v58, %v667_v51  ;;  %v1086_v2 = vmul.f32 %v1022_v5, %v578_v4 }
 0x138   : > { %v1277_v20 = vadd.f32 %v1213_v42, %v1085_v11  ;;  %985 = vmatmul.bf16.gmra.mxu3 %v8054_v32  ;;  %3451 = vrot.lane.b32.xlu2 %v8433_v50, %s7880_s26  ;;  %v1152_v42 = vld [vmem:[%s8329_s0 + $0x90] sm:$0xff] }
 0x139   : > { %2245 = vrot.lane.b32.xlu0 %v8449_v49, %s7880_s26 }
 0x13a   : > { %v1397_v31 = vpack.c.bf16 %v1277_v20, %v1276_v18  ;;  %v857_v0 = vpop.f32.mrf.mxu2 }
 0x13b   : > { %v858_v62 = vadd.f32 %v857_v0, %v8322_v53  ;;  %v946_v56 = vpop.f32.mrf.mxu3  ;;  %v1025_v0 = vld [vmem:[%s8336_s20 + $0x98] sm:$0xff] }
 0x13c   : > { %v947_v32 = vadd.f32 %v946_v56, %v8324_v54  ;;  %v668_v61 = vpop.f32.mrf.mxu1  ;;  %v1509_v1 = vunpack.c.h.b16 %v1397_v31  ;;  %v1461_v17 = vunpack.c.l.b16 %v1397_v31  ;;  %v1153_v56 = vld [vmem:[%s8329_s0 + $0x98] sm:$0xff] }
 0x13d   : > { %v1214_v9 = vmul.f32 %v1150_v59, %v858_v62  ;;  %v669_v19 = vadd.f32 %v668_v61, %v8319_v52  ;;  %v1088_v59 = vmul.f32 %v1024_v22, %v580_v14 }
 0x13e   : > { %v8465_v8 = vpack.c.b16 %v1509_v1, %v1508_v46  ;;  %v1215_v13 = vmul.f32 %v1151_v60, %v947_v32  ;;  %v1460_v46 = vunpack.c.l.b16 %v1396_v3 }
 0x13f   : > { %v1278_v18 = vadd.f32 %v1214_v9, %v1086_v2  ;;  %v1089_v31 = vmul.f32 %v1025_v0, %v669_v19  ;;  %v1154_v19 = vld [vmem:[%s8329_s0 + $0xa0] sm:$0xff]  ;;  %v583_v0 = vadd.f32 %v8268_v28, %v8331_v55  ;;  %v1028_v28 = vld [vmem:[%s8336_s20 + $0xb0] sm:$0xff] }
 0x140   : > { %3485 = vrot.lane.b32.xlu1 %v8465_v8, %s7879_s21  ;;  %4495 = vrot.lane.b32.xlu2 %v8433_v50, %s7878_s25  ;;  %v1279_v20 = vadd.f32 %v1215_v13, %v1087_v7  ;;  %v8482_v60 = vpack.c.b16 %v1461_v17, %v1460_v46  ;;  %v1027_v17 = vld [vmem:[%s8336_s20 + $0xa8] sm:$0xff] }
 0x141   : > { %3483 = vrot.lane.b32.xlu0 %v8449_v49, %s7879_s21 }
 0x142   : > { %v859_v11 = vpop.f32.mrf.mxu2  ;;  %v1398_v61 = vpack.c.bf16 %v1279_v20, %v1278_v18 }
 0x143   : > { %v860_v51 = vadd.f32 %v859_v11, %v8322_v53  ;;  %v948_v62 = vpop.f32.mrf.mxu3 }
 0x144   : > { %v949_v58 = vadd.f32 %v948_v62, %v8324_v54  ;;  %v671_v25 = vpop.f32.mrf.mxu1  ;;  %v1462_v9 = vunpack.c.l.b16 %v1398_v61  ;;  %v1510_v22 = vunpack.c.h.b16 %v1398_v61  ;;  %v1156_v61 = vld [vmem:[%s8329_s0 + $0xb0] sm:$0xff] }
 0x145   : > { %v1216_v32 = vmul.f32 %v1152_v42, %v860_v51  ;;  %v672_v13 = vadd.f32 %v671_v25, %v8319_v52  ;;  %v1155_v42 = vld [vmem:[%s8329_s0 + $0xa8] sm:$0xff]  ;;  %v1026_v51 = vld [vmem:[%s8336_s20 + $0xa0] sm:$0xff] }
 0x146   : > { %v1217_v1 = vmul.f32 %v1153_v56, %v949_v58 }
 0x147   : > { %v1280_v4 = vadd.f32 %v1216_v32, %v1088_v59  ;;  %710 = vmatmul.bf16.gmra.mxu1 %v8141_v12  ;;  %901 = vmatmul.bf16.gmra.mxu2 %v8141_v12  ;;  %v1091_v46 = vmul.f32 %v1027_v17, %v672_v13  ;;  %v1090_v59 = vmul.f32 %v1026_v51, %v583_v0  ;;  %v1157_v13 = vld [vmem:[%s8329_s0 + $0xb8] sm:$0xff] }
 0x148   : > { %v1281_v5 = vadd.f32 %v1217_v1, %v1089_v31  ;;  %990 = vmatmul.bf16.gmra.mxu3 %v8141_v12  ;;  %4497 = vrot.lane.b32.xlu1 %v8482_v60, %s7878_s25  ;;  %v585_v32 = vadd.f32 %v8277_v33, %v8331_v55 }
 0x149   : > { %2247 = vrot.lane.b32.xlu2 %v8465_v8, %s7880_s26  ;;  %4205 = vrot.lane.b32.xlu0 %v8449_v49, %s7878_s25 }
 0x14a   : > { %v1399_v3 = vpack.c.bf16 %v1281_v5, %v1280_v4  ;;  %v862_v7 = vpop.f32.mrf.mxu2 }
 0x14b   : > { %v863_v2 = vadd.f32 %v862_v7, %v8322_v53  ;;  %v951_v14 = vpop.f32.mrf.mxu3 }
 0x14c   : > { %v1463_v12 = vunpack.c.l.b16 %v1399_v3  ;;  %v952_v11 = vadd.f32 %v951_v14, %v8324_v54  ;;  %v673_v18 = vpop.f32.mrf.mxu1  ;;  %v1511_v20 = vunpack.c.h.b16 %v1399_v3  ;;  %v1029_v3 = vld [vmem:[%s8336_s20 + $0xb8] sm:$0xff]  ;;  %v1092_v14 = vmul.f32 %v1028_v28, %v585_v32  ;;  %v1031_v32 = vld [vmem:[%s8336_s20 + $0xc8] sm:$0xff]  ;;  %v1158_v28 = vld [vmem:[%s8329_s0 + $0xc0] sm:$0xff] }
 0x14d   : > { %v1218_v58 = vmul.f32 %v1154_v19, %v863_v2  ;;  %v674_v31 = vadd.f32 %v673_v18, %v8319_v52 }
 0x14e   : > { %v8502_v62 = vpack.c.b16 %v1463_v12, %v1462_v9  ;;  %v8504_v56 = vpack.c.b16 %v1511_v20, %v1510_v22  ;;  %v1219_v25 = vmul.f32 %v1155_v42, %v952_v11 }
 0x14f   : > { %v1282_v4 = vadd.f32 %v1218_v58, %v1090_v59  ;;  %v1093_v12 = vmul.f32 %v1029_v3, %v674_v31  ;;  %v1159_v31 = vld [vmem:[%s8329_s0 + $0xc8] sm:$0xff] }
 0x150   : > { %4209 = vrot.lane.b32.xlu1 %v8504_v56, %s7878_s25  ;;  %v1283_v5 = vadd.f32 %v1219_v25, %v1091_v46 }
 0x151   : > { %3453 = vrot.lane.b32.xlu2 %v8482_v60, %s7880_s26  ;;  %2537 = vrot.lane.b32.xlu0 %v8482_v60, %s7879_s21 }
 0x152   : > { %v864_v1 = vpop.f32.mrf.mxu2  ;;  %v1400_v19 = vpack.c.bf16 %v1283_v5, %v1282_v4  ;;  %v588_v4 = vadd.f32 %v8283_v36, %v8331_v55  ;;  %v1030_v5 = vld [vmem:[%s8336_s20 + $0xc0] sm:$0xff]  ;;  %v1032_v36 = vld [vmem:[%s8336_s20 + $0xd0] sm:$0xff] }
 0x153   : > { %v865_v7 = vadd.f32 %v864_v1, %v8322_v53  ;;  %v953_v9 = vpop.f32.mrf.mxu3 }
 0x154   : > { %v954_v33 = vadd.f32 %v953_v9, %v8324_v54  ;;  %v676_v2 = vpop.f32.mrf.mxu1  ;;  %v1464_v0 = vunpack.c.l.b16 %v1400_v19  ;;  %v1512_v25 = vunpack.c.h.b16 %v1400_v19 }
 0x155   : > { %v1220_v22 = vmul.f32 %v1156_v61, %v865_v7  ;;  %v677_v51 = vadd.f32 %v676_v2, %v8319_v52  ;;  %v1094_v2 = vmul.f32 %v1030_v5, %v588_v4 }
 0x156   : > { %v1221_v17 = vmul.f32 %v1157_v13, %v954_v33 }
 0x157   : > { %v1284_v11 = vadd.f32 %v1220_v22, %v1092_v14  ;;  %715 = vmatmul.bf16.gmra.mxu1 %v8230_v63  ;;  %906 = vmatmul.bf16.gmra.mxu2 %v8230_v63  ;;  %v1095_v9 = vmul.f32 %v1031_v32, %v677_v51  ;;  %v590_v14 = vadd.f32 %v8292_v38, %v8331_v55 }
 0x158   : > { %v1285_v42 = vadd.f32 %v1221_v17, %v1093_v12  ;;  %995 = vmatmul.bf16.gmra.mxu3 %v8230_v63  ;;  %v1160_v17 = vld [vmem:[%s8329_s0 + $0xd0] sm:$0xff] }
 0x159   : > { %2539 = vrot.lane.b32.xlu2 %v8502_v62, %s7879_s21  ;;  %4207 = vrot.lane.b32.xlu0 %v8465_v8, %s7878_s25 }
 0x15a   : > { %v1401_v18 = vpack.c.bf16 %v1285_v42, %v1284_v11  ;;  %v867_v20 = vpop.f32.mrf.mxu2  ;;  %v1033_v42 = vld [vmem:[%s8336_s20 + $0xd8] sm:$0xff] }
 0x15b   : > { %v868_v46 = vadd.f32 %v867_v20, %v8322_v53  ;;  %v956_v58 = vpop.f32.mrf.mxu3 }
 0x15c   : > { %v1465_v59 = vunpack.c.l.b16 %v1401_v18  ;;  %v957_v63 = vadd.f32 %v956_v58, %v8324_v54  ;;  %v678_v1 = vpop.f32.mrf.mxu1  ;;  %v1513_v61 = vunpack.c.h.b16 %v1401_v18 }
 0x15d   : > { %v1222_v13 = vmul.f32 %v1158_v28, %v868_v46  ;;  %v679_v22 = vadd.f32 %v678_v1, %v8319_v52  ;;  %v1096_v46 = vmul.f32 %v1032_v36, %v590_v14  ;;  %v1163_v36 = vld [vmem:[%s8329_s0 + $0xe8] sm:$0xff] }
 0x15e   : > { %v8537_v3 = vpack.c.b16 %v1465_v59, %v1464_v0  ;;  %v8539_v7 = vpack.c.b16 %v1513_v61, %v1512_v25  ;;  %v1223_v33 = vmul.f32 %v1159_v31, %v957_v63  ;;  %v1161_v0 = vld [vmem:[%s8329_s0 + $0xd8] sm:$0xff] }
 0x15f   : > { %v1286_v19 = vadd.f32 %v1222_v13, %v1094_v2  ;;  %v1097_v25 = vmul.f32 %v1033_v42, %v679_v22  ;;  %v1162_v2 = vld [vmem:[%s8329_s0 + $0xe0] sm:$0xff] }
 0x160   : > { %2541 = vrot.lane.b32.xlu1 %v8537_v3, %s7879_s21  ;;  %v1287_v11 = vadd.f32 %v1223_v33, %v1095_v9  ;;  %v1035_v33 = vld [vmem:[%s8336_s20 + $0xe8] sm:$0xff] }
 0x161   : > { %3487 = vrot.lane.b32.xlu2 %v8504_v56, %s7879_s21  ;;  %2249 = vrot.lane.b32.xlu0 %v8504_v56, %s7880_s26 }
 0x162   : > { %v869_v12 = vpop.f32.mrf.mxu2  ;;  %v1402_v32 = vpack.c.bf16 %v1287_v11, %v1286_v19  ;;  %v1034_v19 = vld [vmem:[%s8336_s20 + $0xe0] sm:$0xff] }
 0x163   : > { %v870_v18 = vadd.f32 %v869_v12, %v8322_v53  ;;  %v958_v20 = vpop.f32.mrf.mxu3 }
 0x164   : > { %v959_v38 = vadd.f32 %v958_v20, %v8324_v54  ;;  %v681_v51 = vpop.f32.mrf.mxu1  ;;  %v1466_v61 = vunpack.c.l.b16 %v1402_v32  ;;  %v1514_v13 = vunpack.c.h.b16 %v1402_v32 }
 0x165   : > { %v1224_v58 = vmul.f32 %v1160_v17, %v870_v18  ;;  %v682_v4 = vadd.f32 %v681_v51, %v8319_v52  ;;  %v593_v17 = vadd.f32 %v8298_v41, %v8331_v55  ;;  %v595_v41 = vadd.f32 %v8304_v45, %v8331_v55 }
 0x166   : > { %v1225_v59 = vmul.f32 %v1161_v0, %v959_v38 }
 0x167   : > { %v1288_v28 = vadd.f32 %v1224_v58, %v1096_v46  ;;  %720 = vmatmul.bf16.gmra.mxu1 %v8245_v15  ;;  %911 = vmatmul.bf16.gmra.mxu2 %v8245_v15  ;;  %v1099_v20 = vmul.f32 %v1035_v33, %v682_v4  ;;  %v1098_v51 = vmul.f32 %v1034_v19, %v593_v17  ;;  %v1036_v46 = vld [vmem:[%s8336_s20 + $0xf0] sm:$0xff] }
 0x168   : > { %v1289_v63 = vadd.f32 %v1225_v59, %v1097_v25  ;;  %1000 = vmatmul.bf16.gmra.mxu3 %v8245_v15  ;;  %3489 = vrot.lane.b32.xlu1 %v8539_v7, %s7879_s21  ;;  %v1164_v59 = vld [vmem:[%s8329_s0 + $0xf0] sm:$0xff] }
 0x169   : > { %3455 = vrot.lane.b32.xlu2 %v8502_v62, %s7880_s26  ;;  %4499 = vrot.lane.b32.xlu0 %v8502_v62, %s7878_s25 }
 0x16a   : > { %v1403_v31 = vpack.c.bf16 %v1289_v63, %v1288_v28  ;;  %v872_v1 = vpop.f32.mrf.mxu2  ;;  %v8576_v42 = vpop.permute.xlu2 %3479  ;;  %v1037_v63 = vld [vmem:[%s8336_s20 + $0xf8] sm:$0xff] }
 0x16b   : > { %v873_v5 = vadd.f32 %v872_v1, %v8322_v53  ;;  %v961_v9 = vpop.f32.mrf.mxu3 }
 0x16c   : > { %v1467_v15 = vunpack.c.l.b16 %v1403_v31  ;;  %v962_v14 = vadd.f32 %v961_v9, %v8324_v54  ;;  %v683_v22 = vpop.f32.mrf.mxu1  ;;  %v1515_v12 = vunpack.c.h.b16 %v1403_v31 }
 0x16d   : > { %v1226_v0 = vmul.f32 %v1162_v2, %v873_v5  ;;  %v684_v58 = vadd.f32 %v683_v22, %v8319_v52  ;;  %v1100_v5 = vmul.f32 %v1036_v46, %v595_v41  ;;  %v1039_v41 = vld [vmem:[%s8336_s20 + $0x108] sm:$0xff]  ;;  %v1166_v46 = vld [vmem:[%s8329_s0 + $0x100] sm:$0xff] }
 0x16e   : > { %v8574_v11 = vpack.c.b16 %v1467_v15, %v1466_v61  ;;  %v8578_v18 = vpack.c.b16 %v1515_v12, %v1514_v13  ;;  %v1227_v38 = vmul.f32 %v1163_v36, %v962_v14  ;;  %v1165_v61 = vld [vmem:[%s8329_s0 + $0xf8] sm:$0xff] }
 0x16f   : > { %v1290_v32 = vadd.f32 %v1226_v0, %v1098_v51  ;;  %v1101_v13 = vmul.f32 %v1037_v63, %v684_v58  ;;  %v1038_v63 = vld [vmem:[%s8336_s20 + $0x100] sm:$0xff] }
 0x170   : > { %4211 = vrot.lane.b32.xlu1 %v8539_v7, %s7878_s25  ;;  %v1291_v28 = vadd.f32 %v1227_v38, %v1099_v20 }
 0x171   : > { %2251 = vrot.lane.b32.xlu2 %v8539_v7, %s7880_s26  ;;  %2543 = vrot.lane.b32.xlu0 %v8574_v11, %s7879_s21 }
 0x172   : > { %v874_v25 = vpop.f32.mrf.mxu2  ;;  %v1404_v33 = vpack.c.bf16 %v1291_v28, %v1290_v32  ;;  %v598_v28 = vadd.f32 %v8258_v23, %v8331_v55  ;;  %v600_v23 = vadd.f32 %v8264_v26, %v8331_v55 }
 0x173   : > { %v875_v31 = vadd.f32 %v874_v25, %v8322_v53  ;;  %v963_v1 = vpop.f32.mrf.mxu3  ;;  %v8595_v14 = vpop.permute.xlu2 %3447  ;;  %v1167_v25 = vld [vmem:[%s8329_s0 + $0x108] sm:$0xff] }
 0x174   : > { %v964_v45 = vadd.f32 %v963_v1, %v8324_v54  ;;  %v686_v4 = vpop.f32.mrf.mxu1  ;;  %13556 = vst [vmem:[#allocation5_spill] sm:$0xff] %v8595_v14  ;;  %v1468_v17 = vunpack.c.l.b16 %v1404_v33  ;;  %v1516_v38 = vunpack.c.h.b16 %v1404_v33 }
 0x175   : > { %v1228_v9 = vmul.f32 %v1164_v59, %v875_v31  ;;  %v687_v19 = vadd.f32 %v686_v4, %v8319_v52 }
 0x176   : > { %v1229_v15 = vmul.f32 %v1165_v61, %v964_v45 }
 0x177   : > { %v1292_v2 = vadd.f32 %v1228_v9, %v1100_v5  ;;  %v1103_v61 = vmul.f32 %v1039_v41, %v687_v19  ;;  %v1102_v9 = vmul.f32 %v1038_v63, %v598_v28  ;;  %v8648_v63 = vsel %vm1550_vm0, %v8578_v18, 0 }
 0x178   : > { %v1293_v36 = vadd.f32 %v1229_v15, %v1101_v13  ;;  %2253 = vrot.lane.b32.xlu1 %v8578_v18, %s7880_s26  ;;  %v1040_v13 = vld [vmem:[%s8336_s20 + $0x110] sm:$0xff] }
 0x179   : > { %3457 = vrot.lane.b32.xlu2 %v8537_v3, %s7880_s26  ;;  %3491 = vrot.lane.b32.xlu0 %v8578_v18, %s7879_s21  ;;  %v1104_v41 = vmul.f32 %v1040_v13, %v600_v23 }
 0x17a   : > { %v1405_v22 = vpack.c.bf16 %v1293_v36, %v1292_v2  ;;  %v877_v12 = vpop.f32.mrf.mxu2  ;;  %v1168_v36 = vld [vmem:[%s8329_s0 + $0x110] sm:$0xff] }
 0x17b   : > { %v878_v20 = vadd.f32 %v877_v12, %v8322_v53  ;;  %v966_v0 = vpop.f32.mrf.mxu3  ;;  %v8629_v15 = vpop.permute.xlu2 %3449 }
 0x17c   : > { %v1469_v51 = vunpack.c.l.b16 %v1405_v22  ;;  %v967_v58 = vadd.f32 %v966_v0, %v8324_v54  ;;  %v688_v59 = vpop.f32.mrf.mxu1  ;;  %v1517_v32 = vunpack.c.h.b16 %v1405_v22  ;;  %13557 = vst [vmem:[#allocation6_spill] sm:$0xff] %v8629_v15  ;;  %v1169_v0 = vld [vmem:[%s8329_s0 + $0x118] sm:$0xff] }
 0x17d   : > { %v1230_v45 = vmul.f32 %v1166_v46, %v878_v20  ;;  %v689_v33 = vadd.f32 %v688_v59, %v8319_v52 }
 0x17e   : > { %v8612_v31 = vpack.c.b16 %v1469_v51, %v1468_v17  ;;  %v8614_v1 = vpack.c.b16 %v1517_v32, %v1516_v38  ;;  %v1231_v4 = vmul.f32 %v1167_v25, %v967_v58  ;;  %v1041_v17 = vld [vmem:[%s8336_s20 + $0x118] sm:$0xff] }
 0x17f   : > { %v1294_v22 = vadd.f32 %v1230_v45, %v1102_v9  ;;  %v1105_v58 = vmul.f32 %v1041_v17, %v689_v33  ;;  %v1043_v17 = vld [vmem:[%s8336_s20 + $0x128] sm:$0xff] }
 0x180   : > { %4213 = vrot.lane.b32.xlu1 %v8578_v18, %s7878_s25  ;;  %v8620_v5 = vsel %vm1550_vm0, %v8614_v1, 0  ;;  %v1295_v12 = vadd.f32 %v1231_v4, %v1103_v61 }
 0x181   : > { %4501 = vrot.lane.b32.xlu2 %v8537_v3, %s7878_s25  ;;  %2255 = vrot.lane.b32.xlu0 %v8614_v1, %s7880_s26 }
 0x182   : > { %1647 = vmatpush.bf16.xpose.msrb.mxu0 %v8620_v5  ;;  %v879_v2 = vpop.f32.mrf.mxu2  ;;  %v1406_v59 = vpack.c.bf16 %v1295_v12, %v1294_v22 }
 0x183   : > { %v8635_v19 = vpop.permute.xlu0 %2241  ;;  %v880_v26 = vadd.f32 %v879_v2, %v8322_v53  ;;  %v968_v20 = vpop.f32.mrf.mxu3 }
 0x184   : > { %v969_v38 = vadd.f32 %v968_v20, %v8324_v54  ;;  %v691_v51 = vpop.f32.mrf.mxu1  ;;  %v1470_v4 = vunpack.c.l.b16 %v1406_v59  ;;  %v1518_v9 = vunpack.c.h.b16 %v1406_v59 }
 0x185   : > { %v1232_v46 = vmul.f32 %v1168_v36, %v880_v26  ;;  %v692_v2 = vadd.f32 %v691_v51, %v8319_v52  ;;  %v1170_v26 = vld [vmem:[%s8329_s0 + $0x120] sm:$0xff] }
 0x186   : > { %v1233_v25 = vmul.f32 %v1169_v0, %v969_v38  ;;  %v1171_v0 = vld [vmem:[%s8329_s0 + $0x128] sm:$0xff]  ;;  %v603_v38 = vadd.f32 %v8273_v29, %v8331_v55  ;;  %v1042_v51 = vld [vmem:[%s8336_s20 + $0x120] sm:$0xff]  ;;  %v8678_v29 = vsel %vm1550_vm0, %v8539_v7, 0 }
 0x187   : > { %v1296_v32 = vadd.f32 %v1232_v46, %v1104_v41  ;;  %v8663_v41 = vpop.permute.xlu1 %4201 }
 0x188   : > { %v1297_v28 = vadd.f32 %v1233_v25, %v1105_v58  ;;  %4503 = vrot.lane.b32.xlu1 %v8574_v11, %s7878_s25  ;;  %13560 = vst [vmem:[#allocation9_spill] sm:$0xff] %v8663_v41  ;;  %v1107_v25 = vmul.f32 %v1043_v17, %v692_v2  ;;  %v1045_v17 = vld [vmem:[%s8336_s20 + $0x138] sm:$0xff] }
 0x189   : > { %3459 = vrot.lane.b32.xlu2 %v8574_v11, %s7880_s26  ;;  %4505 = vrot.lane.b32.xlu0 %v8612_v31, %s7878_s25 }
 0x18a   : > { %v1407_v61 = vpack.c.bf16 %v1297_v28, %v1296_v32  ;;  %1648 = vmatpush.bf16.xpose.msrb.mxu0 %v8648_v63  ;;  %v8651_v45 = vpop.permute.xlu2 %2535  ;;  %v882_v13 = vpop.f32.mrf.mxu2  ;;  %v1106_v28 = vmul.f32 %v1042_v51, %v603_v38 }
 0x18b   : > { %13558 = vst [vmem:[#allocation7_spill] sm:$0xff] %v8651_v45  ;;  %v8653_v23 = vpop.permute.xlu0 %2531  ;;  %v883_v36 = vadd.f32 %v882_v13, %v8322_v53  ;;  %v971_v22 = vpop.f32.mrf.mxu3 }
 0x18c   : > { %13559 = vst [vmem:[#allocation8_spill] sm:$0xff] %v8653_v23  ;;  %v1471_v33 = vunpack.c.l.b16 %v1407_v61  ;;  %v693_v18 = vpop.f32.mrf.mxu1  ;;  %v1519_v12 = vunpack.c.h.b16 %v1407_v61  ;;  %v972_v20 = vadd.f32 %v971_v22, %v8324_v54  ;;  %v605_v61 = vadd.f32 %v8279_v34, %v8331_v55 }
 0x18d   : > { %v1234_v59 = vmul.f32 %v1170_v26, %v883_v36  ;;  %v694_v13 = vadd.f32 %v693_v18, %v8319_v52  ;;  %v1172_v36 = vld [vmem:[%s8329_s0 + $0x130] sm:$0xff] }
 0x18e   : > { %v8665_v46 = vpack.c.b16 %v1471_v33, %v1470_v4  ;;  %v8667_v58 = vpack.c.b16 %v1519_v12, %v1518_v9  ;;  %v1235_v32 = vmul.f32 %v1171_v0, %v972_v20  ;;  %v1044_v9 = vld [vmem:[%s8336_s20 + $0x130] sm:$0xff]  ;;  %v1173_v20 = vld [vmem:[%s8329_s0 + $0x138] sm:$0xff] }
 0x18f   : > { %v1298_v22 = vadd.f32 %v1234_v59, %v1106_v28  ;;  %v1108_v38 = vmul.f32 %v1044_v9, %v605_v61  ;;  %v8694_v14 = vpop.permute.xlu1 %4491  ;;  %v8702_v59 = vsel %vm1550_vm0, %v8504_v56, 0 }
 0x190   : > { %3493 = vrot.lane.b32.xlu1 %v8614_v1, %s7879_s21  ;;  %v1299_v12 = vadd.f32 %v1235_v32, %v1107_v25  ;;  %13562 = vst [vmem:[#allocation11_spill] sm:$0xff] %v8694_v14 }
 0x191   : > { %2545 = vrot.lane.b32.xlu2 %v8612_v31, %s7879_s21  ;;  %4217 = vrot.lane.b32.xlu0 %v8667_v58, %s7878_s25 }
 0x192   : > { %1649 = vmatpush.bf16.xpose.msrb.mxu0 %v8678_v29  ;;  %v8683_v4 = vpop.permute.xlu2 %3451  ;;  %v884_v2 = vpop.f32.mrf.mxu2  ;;  %v1408_v18 = vpack.c.bf16 %v1299_v12, %v1298_v22  ;;  %v1047_v22 = vld [vmem:[%s8336_s20 + $0x148] sm:$0xff]  ;;  %v1174_v12 = vld [vmem:[%s8329_s0 + $0x140] sm:$0xff] }
 0x193   : > { %13561 = vst [vmem:[#allocation10_spill] sm:$0xff] %v8683_v4  ;;  %v8687_v33 = vpop.permute.xlu0 %2243  ;;  %v885_v7 = vadd.f32 %v884_v2, %v8322_v53  ;;  %v973_v26 = vpop.f32.mrf.mxu3  ;;  %v1109_v4 = vmul.f32 %v1045_v17, %v694_v13 }
 0x194   : > { %v696_v0 = vpop.f32.mrf.mxu1  ;;  %v974_v34 = vadd.f32 %v973_v26, %v8324_v54  ;;  %v1472_v9 = vunpack.c.l.b16 %v1408_v18 }
 0x195   : > { %v1236_v51 = vmul.f32 %v1172_v36, %v885_v7  ;;  %v1520_v36 = vunpack.c.h.b16 %v1408_v18  ;;  %v1175_v7 = vld [vmem:[%s8329_s0 + $0x148] sm:$0xff] }
 0x196   : > { %v1237_v15 = vmul.f32 %v1173_v20, %v974_v34  ;;  %v1046_v20 = vld [vmem:[%s8336_s20 + $0x140] sm:$0xff] }
 0x197   : > { %v1300_v41 = vadd.f32 %v1236_v51, %v1108_v38 }
 0x198   : > { %4215 = vrot.lane.b32.xlu1 %v8614_v1, %s7878_s25  ;;  %v1301_v25 = vadd.f32 %v1237_v15, %v1109_v4  ;;  %v697_v15 = vadd.f32 %v696_v0, %v8319_v52 }
 0x199   : > { %3461 = vrot.lane.b32.xlu2 %v8612_v31, %s7880_s26 }
 0x19a   : > { %1650 = vmatpush.bf16.xpose.msrb.mxu0 %v8702_v59  ;;  %v8705_v32 = vpop.permute.xlu2 %4495  ;;  %v1409_v28 = vpack.c.bf16 %v1301_v25, %v1300_v41  ;;  %v887_v1 = vpop.f32.mrf.mxu2  ;;  %v608_v41 = vadd.f32 %v8288_v37, %v8331_v55  ;;  %v1111_v38 = vmul.f32 %v1047_v22, %v697_v15  ;;  %v8730_v37 = vsel %vm1550_vm0, %v8465_v8, 0  ;;  %v1049_v22 = vld [vmem:[%s8336_s20 + $0x158] sm:$0xff] }
 0x19b   : > { %13563 = vst [vmem:[#allocation12_spill] sm:$0xff] %v8705_v32  ;;  %v8707_v61 = vpop.permute.xlu0 %4203  ;;  %v888_v4 = vadd.f32 %v887_v1, %v8322_v53  ;;  %v976_v13 = vpop.f32.mrf.mxu3  ;;  %v610_v1 = vadd.f32 %v8294_v39, %v8331_v55 }
 0x19c   : > { %13564 = vst [vmem:[#allocation13_spill] sm:$0xff] %v8707_v61  ;;  %v698_v2 = vpop.f32.mrf.mxu1  ;;  %v1473_v56 = vunpack.c.l.b16 %v1409_v28  ;;  %v977_v17 = vadd.f32 %v976_v13, %v8324_v54  ;;  %v1521_v26 = vunpack.c.h.b16 %v1409_v28  ;;  %v1110_v25 = vmul.f32 %v1046_v20, %v608_v41  ;;  %v8732_v28 = vpop.permute.xlu1 %2533 }
 0x19d   : > { %v1238_v51 = vmul.f32 %v1174_v12, %v888_v4  ;;  %13566 = vst [vmem:[#allocation15_spill] sm:$0xff] %v8732_v28  ;;  %v699_v15 = vadd.f32 %v698_v2, %v8319_v52  ;;  %v1176_v12 = vld [vmem:[%s8329_s0 + $0x150] sm:$0xff] }
 0x19e   : > { %v8718_v34 = vpack.c.b16 %v1473_v56, %v1472_v9  ;;  %v8720_v0 = vpack.c.b16 %v1521_v26, %v1520_v36  ;;  %v1239_v18 = vmul.f32 %v1175_v7, %v977_v17  ;;  %v1048_v9 = vld [vmem:[%s8336_s20 + $0x150] sm:$0xff]  ;;  %v1177_v7 = vld [vmem:[%s8329_s0 + $0x158] sm:$0xff] }
 0x19f   : > { %v1302_v36 = vadd.f32 %v1238_v51, %v1110_v25  ;;  %v1112_v39 = vmul.f32 %v1048_v9, %v610_v1  ;;  %v1113_v32 = vmul.f32 %v1049_v22, %v699_v15 }
 0x1a0   : > { %13565 = vst [vmem:[#allocation14_spill] sm:$0xff] %v8718_v34  ;;  %2547 = vrot.lane.b32.xlu1 %v8665_v46, %s7879_s21  ;;  %2259 = vrot.lane.b32.xlu0 %v8720_v0, %s7880_s26  ;;  %v1303_v56 = vadd.f32 %v1239_v18, %v1111_v38  ;;  %v8756_v18 = vsel %vm1550_vm0, %v8449_v49, 0  ;;  %v1178_v49 = vld [vmem:[%s8329_s0 + $0x160] sm:$0xff] }
 0x1a1   : > { %2257 = vrot.lane.b32.xlu2 %v8667_v58, %s7880_s26 }
 0x1a2   : > { %1651 = vmatpush.bf16.xpose.msrb.mxu0 %v8730_v37  ;;  %v889_v8 = vpop.f32.mrf.mxu2  ;;  %v1410_v61 = vpack.c.bf16 %v1303_v56, %v1302_v36 }
 0x1a3   : > { %v8739_v4 = vpop.permute.xlu2 %2247  ;;  %v8741_v13 = vpop.permute.xlu0 %4493  ;;  %v890_v26 = vadd.f32 %v889_v8, %v8322_v53  ;;  %v1051_v8 = vld [vmem:[%s8336_s20 + $0x168] sm:$0xff] }
 0x1a4   : > { %13567 = vst [vmem:[#allocation16_spill] sm:$0xff] %v8741_v13  ;;  %v978_v17 = vpop.f32.mrf.mxu3  ;;  %v701_v20 = vpop.f32.mrf.mxu1 }
 0x1a5   : > { %v979_v41 = vadd.f32 %v978_v17, %v8324_v54  ;;  %v1240_v14 = vmul.f32 %v1176_v12, %v890_v26  ;;  %v702_v15 = vadd.f32 %v701_v20, %v8319_v52 }
 0x1a7   : > { %v1241_v2 = vmul.f32 %v1177_v7, %v979_v41  ;;  %v1304_v38 = vadd.f32 %v1240_v14, %v1112_v39  ;;  %v1474_v14 = vunpack.c.l.b16 %v1410_v61  ;;  %v1179_v7 = vld [vmem:[%s8329_s0 + $0x168] sm:$0xff]  ;;  %v613_v39 = vadd.f32 %v8300_v43, %v8331_v55 }
 0x1a8   : > { %2549 = vrot.lane.b32.xlu1 %v8718_v34, %s7879_s21  ;;  %3497 = vrot.lane.b32.xlu0 %v8720_v0, %s7879_s21  ;;  %v8786_v43 = vsel %vm1550_vm0, %v8402_v6, 0 }
 0x1a9   : > { %v1305_v51 = vadd.f32 %v1241_v2, %v1113_v32  ;;  %3495 = vrot.lane.b32.xlu2 %v8667_v58, %s7879_s21  ;;  %v1522_v32 = vunpack.c.h.b16 %v1410_v61  ;;  %v8771_v2 = vpop.permute.xlu1 %3481  ;;  %v1050_v61 = vld [vmem:[%s8336_s20 + $0x160] sm:$0xff] }
 0x1aa   : > { %1652 = vmatpush.bf16.xpose.msrb.mxu0 %v8756_v18  ;;  %v892_v36 = vpop.f32.mrf.mxu2 }
 0x1ab   : > { %v1411_v25 = vpack.c.bf16 %v1305_v51, %v1304_v38  ;;  %v8759_v1 = vpop.permute.xlu2 %3453  ;;  %v8761_v9 = vpop.permute.xlu0 %2245  ;;  %v893_v12 = vadd.f32 %v892_v36, %v8322_v53  ;;  %v1115_v51 = vmul.f32 %v1051_v8, %v702_v15 }
 0x1ac   : > { %13568 = vst [vmem:[#allocation17_spill] sm:$0xff] %v8759_v1  ;;  %v981_v56 = vpop.f32.mrf.mxu3  ;;  %v703_v26 = vpop.f32.mrf.mxu1 }
 0x1ad   : > { %v1475_v22 = vunpack.c.l.b16 %v1411_v25  ;;  %v982_v17 = vadd.f32 %v981_v56, %v8324_v54  ;;  %v1523_v41 = vunpack.c.h.b16 %v1411_v25  ;;  %v1242_v36 = vmul.f32 %v1178_v49, %v893_v12  ;;  %v1053_v49 = vld [vmem:[%s8336_s20 + $0x178] sm:$0xff] }
 0x1ae   : > { %v1114_v25 = vmul.f32 %v1050_v61, %v613_v39  ;;  %v704_v15 = vadd.f32 %v703_v26, %v8319_v52 }
 0x1af   : > { %v8774_v20 = vpack.c.b16 %v1475_v22, %v1474_v14  ;;  %v8776_v38 = vpack.c.b16 %v1523_v41, %v1522_v32  ;;  %v1243_v13 = vmul.f32 %v1179_v7, %v982_v17  ;;  %v615_v14 = vadd.f32 %v8306_v47, %v8331_v55  ;;  %v1052_v32 = vld [vmem:[%s8336_s20 + $0x170] sm:$0xff]  ;;  %v1181_v41 = vld [vmem:[%s8329_s0 + $0x178] sm:$0xff] }
 0x1b0   : > { %4509 = vrot.lane.b32.xlu1 %v8718_v34, %s7878_s25  ;;  %4219 = vrot.lane.b32.xlu0 %v8720_v0, %s7878_s25  ;;  %v1306_v8 = vadd.f32 %v1242_v36, %v1114_v25  ;;  %v1180_v7 = vld [vmem:[%s8329_s0 + $0x170] sm:$0xff]  ;;  %v1117_v26 = vmul.f32 %v1053_v49, %v704_v15  ;;  %v8812_v36 = vsel %vm1550_vm0, %v8365_v21, 0  ;;  %v1055_v21 = vld [vmem:[%s8336_s20 + $0x188] sm:$0xff] }
 0x1b1   : > { %3463 = vrot.lane.b32.xlu2 %v8665_v46, %s7880_s26  ;;  %v1307_v12 = vadd.f32 %v1243_v13, %v1115_v51  ;;  %v1116_v45 = vmul.f32 %v1052_v32, %v615_v14 }
 0x1b2   : > { %1653 = vmatpush.bf16.xpose.msrb.mxu0 %v8786_v43  ;;  %v894_v17 = vpop.f32.mrf.mxu2  ;;  %v8802_v47 = vpop.permute.xlu1 %3485 }
 0x1b3   : > { %v8793_v56 = vpop.permute.xlu2 %2539  ;;  %v8795_v22 = vpop.permute.xlu0 %3483  ;;  %v895_v39 = vadd.f32 %v894_v17, %v8322_v53  ;;  %v1412_v23 = vpack.c.bf16 %v1307_v12, %v1306_v8  ;;  %v1182_v17 = vld [vmem:[%s8329_s0 + $0x180] sm:$0xff] }
 0x1b4   : > { %13569 = vst [vmem:[#allocation18_spill] sm:$0xff] %v8793_v56  ;;  %v983_v6 = vpop.f32.mrf.mxu3  ;;  %v706_v1 = vpop.f32.mrf.mxu1 }
 0x1b5   : > { %v984_v61 = vadd.f32 %v983_v6, %v8324_v54  ;;  %v1244_v28 = vmul.f32 %v1180_v7, %v895_v39  ;;  %v1476_v14 = vunpack.c.l.b16 %v1412_v23  ;;  %v1524_v32 = vunpack.c.h.b16 %v1412_v23  ;;  %v1183_v6 = vld [vmem:[%s8329_s0 + $0x188] sm:$0xff] }
 0x1b6   : > { %v707_v15 = vadd.f32 %v706_v1, %v8319_v52  ;;  %v618_v39 = vadd.f32 %v8260_v24, %v8331_v55 }
 0x1b7   : > { %v1245_v56 = vmul.f32 %v1181_v41, %v984_v61  ;;  %v1308_v13 = vadd.f32 %v1244_v28, %v1116_v45  ;;  %v1054_v61 = vld [vmem:[%s8336_s20 + $0x180] sm:$0xff] }
 0x1b8   : > { %3499 = vrot.lane.b32.xlu1 %v8776_v38, %s7879_s21  ;;  %2261 = vrot.lane.b32.xlu0 %v8776_v38, %s7880_s26  ;;  %v1118_v24 = vmul.f32 %v1054_v61, %v618_v39 }
 0x1b9   : > { %v1309_v51 = vadd.f32 %v1245_v56, %v1117_v26  ;;  %4507 = vrot.lane.b32.xlu2 %v8665_v46, %s7878_s25  ;;  %v1119_v26 = vmul.f32 %v1055_v21, %v707_v15 }
 0x1ba   : > { %1654 = vmatpush.bf16.xpose.msrb.mxu0 %v8812_v36  ;;  %v897_v56 = vpop.f32.mrf.mxu2 }
 0x1bb   : > { %v1413_v25 = vpack.c.bf16 %v1309_v51, %v1308_v13  ;;  %v8816_v45 = vpop.permute.xlu2 %3487  ;;  %v8818_v28 = vpop.permute.xlu0 %4205  ;;  %v898_v49 = vadd.f32 %v897_v56, %v8322_v53 }
 0x1bc   : > { %13570 = vst [vmem:[#allocation19_spill] sm:$0xff] %v8818_v28  ;;  %v986_v8 = vpop.f32.mrf.mxu3  ;;  %v8833_v13 = vpop.permute.xlu1 %4497 }
 0x1bd   : > { %v1477_v12 = vunpack.c.l.b16 %v1413_v25  ;;  %v987_v7 = vadd.f32 %v986_v8, %v8324_v54  ;;  %v1525_v41 = vunpack.c.h.b16 %v1413_v25  ;;  %13571 = vst [vmem:[#allocation20_spill] sm:$0xff] %v8833_v13  ;;  %v1246_v51 = vmul.f32 %v1182_v17, %v898_v49  ;;  %v1057_v49 = vld [vmem:[%s8336_s20 + $0x198] sm:$0xff] }
 0x1be   : > { %v620_v25 = vadd.f32 %v8266_v27, %v8331_v55 }
 0x1bf   : > { %v8829_v23 = vpack.c.b16 %v1477_v12, %v1476_v14  ;;  %v8831_v1 = vpack.c.b16 %v1525_v41, %v1524_v32  ;;  %v1247_v56 = vmul.f32 %v1183_v6, %v987_v7  ;;  %v1056_v14 = vld [vmem:[%s8336_s20 + $0x190] sm:$0xff]  ;;  %v1310_v12 = vadd.f32 %v1246_v51, %v1118_v24  ;;  %v1185_v41 = vld [vmem:[%s8329_s0 + $0x198] sm:$0xff] }
 0x1c0   : > { %2551 = vrot.lane.b32.xlu0 %v8774_v20, %s7879_s21  ;;  %v1184_v7 = vld [vmem:[%s8329_s0 + $0x190] sm:$0xff]  ;;  %v1120_v13 = vmul.f32 %v1056_v14, %v620_v25 }
 0x1c1   : > { %3469 = vrot.lane.b32.xlu1 %v8829_v23, %s7880_s26  ;;  %3465 = vrot.lane.b32.xlu2 %v8718_v34, %s7880_s26  ;;  %v1311_v21 = vadd.f32 %v1247_v56, %v1119_v26 }
 0x1c2   : > { %2611 = vmatpush.bf16.xpose.msra.mxu0 %v8620_v5  ;;  %v708_v5 = vpop.f32.mrf.mxu1  ;;  %v899_v17 = vpop.f32.mrf.mxu2 }
 0x1c3   : > { %6335 = vmatmul.msk.bf16.vlgmr.msrb.gmra.mxu0 %vm1550_vm0, %v8381_v16  ;;  %v709_v32 = vadd.f32 %v708_v5, %v8319_v52  ;;  %v8848_v15 = vpop.permute.xlu2 %3455  ;;  %v8850_v8 = vpop.permute.xlu0 %2537  ;;  %v900_v39 = vadd.f32 %v899_v17, %v8322_v53  ;;  %v1414_v34 = vpack.c.bf16 %v1311_v21, %v1310_v12  ;;  %v1059_v21 = vld [vmem:[%s8336_s20 + $0x1a8] sm:$0xff]  ;;  %v1186_v17 = vld [vmem:[%s8329_s0 + $0x1a0] sm:$0xff] }
 0x1c4   : > { %13572 = vst [vmem:[#allocation21_spill] sm:$0xff] %v8848_v15  ;;  %v988_v6 = vpop.f32.mrf.mxu3  ;;  %v8859_v26 = vpop.permute.xlu1 %4209 }
 0x1c5   : > { %13573 = vst [vmem:[#allocation22_spill] sm:$0xff] %v8850_v8  ;;  %v989_v27 = vadd.f32 %v988_v6, %v8324_v54  ;;  %v1121_v5 = vmul.f32 %v1057_v49, %v709_v32  ;;  %v1248_v28 = vmul.f32 %v1184_v7, %v900_v39  ;;  %v623_v6 = vadd.f32 %v8275_v30, %v8331_v55 }
 0x1c6   : > { %13574 = vst [vmem:[#allocation23_spill] sm:$0xff] %v8859_v26 }
 0x1c7   : > { %v1312_v15 = vadd.f32 %v1248_v28, %v1120_v13  ;;  %v1478_v28 = vunpack.c.l.b16 %v1414_v34  ;;  %v1526_v13 = vunpack.c.h.b16 %v1414_v34 }
 0x1c8   : > { %4221 = vrot.lane.b32.xlu0 %v8776_v38, %s7878_s25 }
 0x1c9   : > { %3467 = vrot.lane.b32.xlu2 %v8774_v20, %s7880_s26 }
 0x1ca   : > { %2612 = vmatpush.bf16.xpose.msra.mxu0 %v8648_v63  ;;  %v711_v61 = vpop.f32.mrf.mxu1  ;;  %v1249_v63 = vmul.f32 %v1185_v41, %v989_v27  ;;  %v902_v14 = vpop.f32.mrf.mxu2  ;;  %v1058_v41 = vld [vmem:[%s8336_s20 + $0x1a0] sm:$0xff] }
 0x1cb   : > { %v8864_v56 = vpop.permute.xlu2 %2251  ;;  %v8866_v24 = vpop.permute.xlu0 %4207  ;;  %v712_v25 = vadd.f32 %v711_v61, %v8319_v52  ;;  %v903_v49 = vadd.f32 %v902_v14, %v8322_v53 }
 0x1cc   : > { %v1313_v8 = vadd.f32 %v1249_v63, %v1121_v5  ;;  %13575 = vst [vmem:[#allocation24_spill] sm:$0xff] %v8866_v24  ;;  %v991_v32 = vpop.f32.mrf.mxu3  ;;  %v1122_v63 = vmul.f32 %v1058_v41, %v623_v6 }
 0x1cd   : > { %v1123_v27 = vmul.f32 %v1059_v21, %v712_v25  ;;  %v1250_v61 = vmul.f32 %v1186_v17, %v903_v49  ;;  %v1061_v21 = vld [vmem:[%s8336_s20 + $0x1b8] sm:$0xff]  ;;  %v1188_v17 = vld [vmem:[%s8329_s0 + $0x1b0] sm:$0xff] }
 0x1ce   : > { %v1415_v51 = vpack.c.bf16 %v1313_v8, %v1312_v15  ;;  %v992_v15 = vadd.f32 %v991_v32, %v8324_v54  ;;  %v1187_v8 = vld [vmem:[%s8329_s0 + $0x1a8] sm:$0xff] }
 0x1cf   : > { %v1314_v32 = vadd.f32 %v1250_v61, %v1122_v63 }
 0x1d0   : > { %v1479_v12 = vunpack.c.l.b16 %v1415_v51  ;;  %v1527_v7 = vunpack.c.h.b16 %v1415_v51  ;;  %v1251_v5 = vmul.f32 %v1187_v8, %v992_v15  ;;  %4511 = vrot.lane.b32.xlu0 %v8774_v20, %s7878_s25  ;;  %v625_v51 = vadd.f32 %v8281_v35, %v8331_v55  ;;  %v1189_v8 = vld [vmem:[%s8329_s0 + $0x1b8] sm:$0xff] }
 0x1d1   : > { %2553 = vrot.lane.b32.xlu2 %v8829_v23, %s7879_s21 }
 0x1d2   : > { %2613 = vmatpush.bf16.xpose.msra.mxu0 %v8678_v29  ;;  %v713_v29 = vpop.f32.mrf.mxu1  ;;  %v8877_v34 = vpack.c.b16 %v1479_v12, %v1478_v28  ;;  %v8879_v39 = vpack.c.b16 %v1527_v7, %v1526_v13  ;;  %v8889_v30 = vpop.permute.xlu1 %2541  ;;  %v1060_v28 = vld [vmem:[%s8336_s20 + $0x1b0] sm:$0xff]  ;;  %v1315_v12 = vadd.f32 %v1251_v5, %v1123_v27 }
 0x1d3   : > { %6336 = vmatmul.msk.bf16.gmra.mxu0 %vm1550_vm0, %v8400_v57  ;;  %13576 = vst [vmem:[#allocation25_spill] sm:$0xff] %v8889_v30  ;;  %v714_v13 = vadd.f32 %v713_v29, %v8319_v52  ;;  %v8896_v25 = vpop.permute.xlu2 %3457  ;;  %v8898_v14 = vpop.permute.xlu0 %2249  ;;  %v1124_v41 = vmul.f32 %v1060_v28, %v625_v51 }
 0x1d4   : > { %2265 = vrot.lane.b32.xlu1 %v8879_v39, %s7880_s26  ;;  %13577 = vst [vmem:[#allocation26_spill] sm:$0xff] %v8896_v25  ;;  %v904_v49 = vpop.f32.mrf.mxu2  ;;  %v993_v15 = vpop.f32.mrf.mxu3  ;;  %v1416_v26 = vpack.c.bf16 %v1315_v12, %v1314_v32 }
 0x1d5   : > { %v905_v7 = vadd.f32 %v904_v49, %v8322_v53  ;;  %v994_v35 = vadd.f32 %v993_v15, %v8324_v54  ;;  %v1125_v29 = vmul.f32 %v1061_v21, %v714_v13  ;;  %v1063_v21 = vld [vmem:[%s8336_s20 + $0x1c8] sm:$0xff] }
 0x1d6   : > { %v1480_v63 = vunpack.c.l.b16 %v1416_v26  ;;  %v1528_v51 = vunpack.c.h.b16 %v1416_v26 }
 0x1d7   : > { %v1252_v24 = vmul.f32 %v1188_v17, %v905_v7  ;;  %v1190_v17 = vld [vmem:[%s8329_s0 + $0x1c0] sm:$0xff] }
 0x1d8   : > { %2263 = vrot.lane.b32.xlu0 %v8831_v1, %s7880_s26  ;;  %v1062_v7 = vld [vmem:[%s8336_s20 + $0x1c0] sm:$0xff] }
 0x1d9   : > { %v1316_v25 = vadd.f32 %v1252_v24, %v1124_v41  ;;  %3501 = vrot.lane.b32.xlu2 %v8831_v1, %s7879_s21 }
 0x1da   : > { %2614 = vmatpush.bf16.xpose.msra.mxu0 %v8702_v59  ;;  %v716_v6 = vpop.f32.mrf.mxu1  ;;  %v1253_v59 = vmul.f32 %v1189_v8, %v994_v35  ;;  %v8911_v27 = vpop.permute.xlu1 %3489  ;;  %v628_v8 = vadd.f32 %v8290_v10, %v8331_v55 }
 0x1db   : > { %v8914_v5 = vpop.permute.xlu2 %4501  ;;  %v8916_v24 = vpop.permute.xlu0 %4499  ;;  %v717_v28 = vadd.f32 %v716_v6, %v8319_v52 }
 0x1dc   : > { %v1317_v30 = vadd.f32 %v1253_v59, %v1125_v29  ;;  %4225 = vrot.lane.b32.xlu1 %v8879_v39, %s7878_s25  ;;  %13578 = vst [vmem:[#allocation27_spill] sm:$0xff] %v8914_v5  ;;  %v907_v13 = vpop.f32.mrf.mxu2  ;;  %v996_v32 = vpop.f32.mrf.mxu3  ;;  %v1126_v59 = vmul.f32 %v1062_v7, %v628_v8 }
 0x1dd   : > { %13579 = vst [vmem:[#allocation28_spill] sm:$0xff] %v8916_v24  ;;  %v908_v49 = vadd.f32 %v907_v13, %v8322_v53  ;;  %v1127_v6 = vmul.f32 %v1063_v21, %v717_v28  ;;  %v1065_v21 = vld [vmem:[%s8336_s20 + $0x1d8] sm:$0xff] }
 0x1de   : > { %v1417_v61 = vpack.c.bf16 %v1317_v30, %v1316_v25  ;;  %v997_v30 = vadd.f32 %v996_v32, %v8324_v54  ;;  %v1191_v25 = vld [vmem:[%s8329_s0 + $0x1c8] sm:$0xff] }
 0x1df   : > { %v1254_v41 = vmul.f32 %v1190_v17, %v908_v49  ;;  %v1192_v17 = vld [vmem:[%s8329_s0 + $0x1d0] sm:$0xff] }
 0x1e0   : > { %v1481_v12 = vunpack.c.l.b16 %v1417_v61  ;;  %v1529_v15 = vunpack.c.h.b16 %v1417_v61  ;;  %v1255_v29 = vmul.f32 %v1191_v25, %v997_v30  ;;  %v630_v61 = vadd.f32 %v8296_v40, %v8331_v55  ;;  %v1193_v25 = vld [vmem:[%s8329_s0 + $0x1d8] sm:$0xff] }
 0x1e1   : > { %4223 = vrot.lane.b32.xlu2 %v8831_v1, %s7878_s25  ;;  %v1318_v32 = vadd.f32 %v1254_v41, %v1126_v59 }
 0x1e2   : > { %2615 = vmatpush.bf16.xpose.msra.mxu0 %v8730_v37  ;;  %v718_v37 = vpop.f32.mrf.mxu1  ;;  %v8927_v26 = vpack.c.b16 %v1481_v12, %v1480_v63  ;;  %v8929_v35 = vpack.c.b16 %v1529_v15, %v1528_v51  ;;  %v8939_v10 = vpop.permute.xlu1 %4211  ;;  %v1064_v63 = vld [vmem:[%s8336_s20 + $0x1d0] sm:$0xff]  ;;  %v1319_v12 = vadd.f32 %v1255_v29, %v1127_v6 }
 0x1e3   : > { %6337 = vmatmul.msk.bf16.gmra.mxu0 %vm1550_vm0, %v8433_v50  ;;  %13580 = vst [vmem:[#allocation29_spill] sm:$0xff] %v8939_v10  ;;  %v719_v51 = vadd.f32 %v718_v37, %v8319_v52  ;;  %v8946_v28 = vpop.permute.xlu2 %3459  ;;  %v8948_v13 = vpop.permute.xlu0 %2543  ;;  %v1128_v7 = vmul.f32 %v1064_v63, %v630_v61 }
 0x1e4   : > { %2557 = vrot.lane.b32.xlu1 %v8927_v26, %s7879_s21  ;;  %3505 = vrot.lane.b32.xlu0 %v8929_v35, %s7879_s21  ;;  %13581 = vst [vmem:[#allocation30_spill] sm:$0xff] %v8946_v28  ;;  %v909_v49 = vpop.f32.mrf.mxu2  ;;  %v998_v30 = vpop.f32.mrf.mxu3  ;;  %v1418_v24 = vpack.c.bf16 %v1319_v12, %v1318_v32 }
 0x1e5   : > { %13582 = vst [vmem:[#allocation31_spill] sm:$0xff] %v8948_v13  ;;  %v910_v15 = vadd.f32 %v909_v49, %v8322_v53  ;;  %v999_v40 = vadd.f32 %v998_v30, %v8324_v54  ;;  %v1129_v37 = vmul.f32 %v1065_v21, %v719_v51  ;;  %v633_v30 = vadd.f32 %v8302_v44, %v8331_v55 }
 0x1e6   : > { %v1482_v61 = vunpack.c.l.b16 %v1418_v24  ;;  %v1530_v63 = vunpack.c.h.b16 %v1418_v24 }
 0x1e7   : > { %v1256_v5 = vmul.f32 %v1192_v17, %v910_v15  ;;  %v1066_v15 = vld [vmem:[%s8336_s20 + $0x1e0] sm:$0xff] }
 0x1e9   : > { %v1320_v28 = vadd.f32 %v1256_v5, %v1128_v7  ;;  %2555 = vrot.lane.b32.xlu2 %v8877_v34, %s7879_s21 }
 0x1ea   : > { %2616 = vmatpush.bf16.xpose.msra.mxu0 %v8756_v18  ;;  %v721_v8 = vpop.f32.mrf.mxu1  ;;  %v1257_v18 = vmul.f32 %v1193_v25, %v999_v40  ;;  %v8957_v6 = vpop.permute.xlu1 %2253 }
 0x1eb   : > { %v8960_v29 = vpop.permute.xlu2 %2545  ;;  %v8962_v59 = vpop.permute.xlu0 %3491  ;;  %v722_v5 = vadd.f32 %v721_v8, %v8319_v52 }
 0x1ec   : > { %v1321_v10 = vadd.f32 %v1257_v18, %v1129_v37  ;;  %13583 = vst [vmem:[#allocation32_spill] sm:$0xff] %v8960_v29  ;;  %v912_v51 = vpop.f32.mrf.mxu2  ;;  %v1001_v32 = vpop.f32.mrf.mxu3  ;;  %v1130_v18 = vmul.f32 %v1066_v15, %v633_v30 }
 0x1ed   : > { %v913_v21 = vadd.f32 %v912_v51, %v8322_v53  ;;  %v1002_v49 = vadd.f32 %v1001_v32, %v8324_v54  ;;  %v1069_v32 = vld [vmem:[%s8336_s20 + $0x1f8] sm:$0xff] }
 0x1ee   : > { %v1419_v41 = vpack.c.bf16 %v1321_v10, %v1320_v28  ;;  %v1067_v10 = vld [vmem:[%s8336_s20 + $0x1e8] sm:$0xff]  ;;  %v1194_v28 = vld [vmem:[%s8329_s0 + $0x1e0] sm:$0xff] }
 0x1ef   : > { %v1131_v8 = vmul.f32 %v1067_v10, %v722_v5  ;;  %v1258_v7 = vmul.f32 %v1194_v28, %v913_v21  ;;  %v1196_v21 = vld [vmem:[%s8329_s0 + $0x1f0] sm:$0xff] }
 0x1f0   : > { %v1483_v12 = vunpack.c.l.b16 %v1419_v41  ;;  %v1531_v17 = vunpack.c.h.b16 %v1419_v41  ;;  %v635_v41 = vadd.f32 %v8308_v48, %v8331_v55 }
 0x1f1   : > { %3503 = vrot.lane.b32.xlu2 %v8879_v39, %s7879_s21  ;;  %v1322_v10 = vadd.f32 %v1258_v7, %v1130_v18 }
 0x1f2   : > { %2617 = vmatpush.bf16.xpose.msra.mxu0 %v8786_v43  ;;  %v1195_v43 = vld [vmem:[%s8329_s0 + $0x1e8] sm:$0xff]  ;;  %v8972_v25 = vpack.c.b16 %v1483_v12, %v1482_v61  ;;  %v8974_v24 = vpack.c.b16 %v1531_v17, %v1530_v63  ;;  %v723_v40 = vpop.f32.mrf.mxu1  ;;  %v8985_v44 = vpop.permute.xlu1 %4213  ;;  %v1068_v61 = vld [vmem:[%s8336_s20 + $0x1f0] sm:$0xff]  ;;  %v1197_v17 = vld [vmem:[%s8329_s0 + $0x1f8] sm:$0xff]  ;;  %s6107_s0 = sshll.u32 %s13017_s29, 4  ;;  %s6095_s20 = scalar_lea.sflag [#allocation3], %s380_s27  ;;  %s6108_s0 = int_to_ptr.vmem [resolvable:$true] %s6107_s0 }
 0x1f3   : > { %v1259_v37 = vmul.f32 %v1195_v43, %v1002_v49  ;;  %6338 = vmatmul.msk.bf16.gmra.mxu0 %vm1550_vm0, %v8482_v60  ;;  %13584 = vst [vmem:[#allocation33_spill] sm:$0xff] %v8985_v44  ;;  %v724_v63 = vadd.f32 %v723_v40, %v8319_v52  ;;  %v8992_v5 = vpop.permute.xlu2 %3461  ;;  %v2256_v51 = vpop.permute.xlu0 %2255  ;;  %v1132_v55 = vmul.f32 %v1068_v61, %v635_v41 }
 0x1f4   : > { %2269 = vrot.lane.b32.xlu1 %v8974_v24, %s7880_s26  ;;  %3475 = vrot.lane.b32.xlu0 %v8972_v25, %s7880_s26  ;;  %13585 = vst [vmem:[#allocation34_spill] sm:$0xff] %v8992_v5  ;;  %v914_v12 = vpop.f32.mrf.mxu2  ;;  %v1003_v49 = vpop.f32.mrf.mxu3 }
 0x1f5   : > { %2289 = vmatpush.bf16.msra.mxu2 %v2256_v51  ;;  %v1323_v28 = vadd.f32 %v1259_v37, %v1131_v8  ;;  %v915_v43 = vadd.f32 %v914_v12, %v8322_v53  ;;  %v1004_v48 = vadd.f32 %v1003_v49, %v8324_v54  ;;  %v1133_v30 = vmul.f32 %v1069_v32, %v724_v63 }
 0x1f7   : > { %v1260_v52 = vmul.f32 %v1196_v21, %v915_v43  ;;  %v1261_v15 = vmul.f32 %v1197_v17, %v1004_v48  ;;  %v9041_v17 = vsel %vm1550_vm0, %v8974_v24, 0  ;;  %v9071_v48 = vsel %vm1550_vm0, %v8911_v27, 0 }
 0x1f9   : > { %2290 = vmatpush.bf16.msra.mxu2 %v8957_v6  ;;  %v1324_v40 = vadd.f32 %v1260_v52, %v1132_v55  ;;  %v1325_v5 = vadd.f32 %v1261_v15, %v1133_v30  ;;  %3471 = vrot.lane.b32.xlu2 %v8877_v34, %s7880_s26  ;;  %v1624_v15 = vsel %vm1550_vm0, %v8667_v58, 0 }
 0x1fa   : > { %2618 = vmatpush.bf16.xpose.msra.mxu0 %v8812_v36  ;;  %v1420_v36 = vpack.c.bf16 %v1323_v28, %v1322_v10  ;;  %v9004_v8 = vpop.permute.xlu1 %4503  ;;  %v9048_v28 = vsel %vm1550_vm0, %v8962_v59, 0  ;;  %v9064_v59 = vsel %vm1550_vm0, %v8929_v35, 0 }
 0x1fb   : > { %13586 = vst [vmem:[#allocation35_spill] sm:$0xff] %v9004_v8  ;;  %v1421_v53 = vpack.c.bf16 %v1325_v5, %v1324_v40  ;;  %v9006_v7 = vpop.permute.xlu2 %2257  ;;  %v9019_v32 = vpop.permute.xlu0 %4505 }
 0x1fc   : > { %3507 = vrot.lane.b32.xlu1 %v8974_v24, %s7879_s21  ;;  %v1484_v54 = vunpack.c.l.b16 %v1420_v36  ;;  %v1532_v37 = vunpack.c.h.b16 %v1420_v36  ;;  %13587 = vst [vmem:[#allocation36_spill] sm:$0xff] %v9019_v32 }
 0x1fd   : > { %2291 = vmatpush.bf16.msra.mxu2 %v8864_v56  ;;  %v1485_v18 = vunpack.c.l.b16 %v1421_v53  ;;  %v1533_v41 = vunpack.c.h.b16 %v1421_v53 }
 0x1ff   : > { %v9009_v61 = vpack.c.b16 %v1485_v18, %v1484_v54  ;;  %v1549_v63 = vpack.c.b16 %v1533_v41, %v1532_v37 }
 0x201   : > { %2292 = vmatpush.bf16.msra.mxu2 %v8898_v14  ;;  %2267 = vrot.lane.b32.xlu2 %v8929_v35, %s7880_s26  ;;  %v9017_v5 = vsel %vm1550_vm0, %v1549_v63, 0 }
 0x202   : > { %2271 = vrot.lane.b32.xlu0 %v1549_v63, %s7880_s26  ;;  %v3494_v12 = vpop.permute.xlu1 %3493  ;;  %1736 = vmatpush.bf16.xpose.msra.mxu1 %v9017_v5 }
 0x203   : > { %6339 = vmatmul.msk.bf16.gmra.mxu0 %vm1550_vm0, %v8502_v62  ;;  %v9026_v21 = vsel %vm1550_vm0, %v3494_v12, 0  ;;  %v9028_v49 = vpop.permute.xlu2 %3495  ;;  %v9050_v43 = vpop.permute.xlu0 %4217 }
 0x204   : > { %4229 = vrot.lane.b32.xlu1 %v8974_v24, %s7878_s25  ;;  %3607 = vmatpush.bf16.xpose.msrb.mxu0 %v9026_v21  ;;  %13589 = vst [vmem:[#allocation38_spill] sm:$0xff] %v9050_v43  ;;  %v1339_v43 = vld [vmem:[%s13426_s3 + $0x68] sm:$0xff] }
 0x205   : > { %2293 = vmatpush.bf16.msra.mxu2 %v8739_v4 }
 0x209   : > { %2294 = vmatpush.bf16.msra.mxu2 %v8761_v9  ;;  %4227 = vrot.lane.b32.xlu2 %v8929_v35, %s7878_s25  ;;  %v1636_v35 = vsel %vm1550_vm0, %v8879_v39, 0  ;;  %v9106_v39 = vsel %vm1550_vm0, %v8802_v47, 0  ;;  %v9123_v47 = vsel %vm1550_vm0, %v8795_v22, 0  ;;  %v9139_v22 = vsel %vm1550_vm0, %v8771_v2, 0 }
 0x20a   : > { %2561 = vrot.lane.b32.xlu0 %v9009_v61, %s7879_s21  ;;  %1737 = vmatpush.bf16.xpose.msra.mxu1 %v9041_v17  ;;  %v9094_v30 = vpop.permute.xlu1 %4215 }
 0x20b   : > { %v9044_v10 = vpop.permute.xlu2 %3463  ;;  %13592 = vst [vmem:[#allocation41_spill] sm:$0xff] %v9094_v30 }
 0x20c   : > { %4515 = vrot.lane.b32.xlu1 %v8877_v34, %s7878_s25  ;;  %13588 = vst [vmem:[#allocation37_spill] sm:$0xff] %v9044_v10  ;;  %3608 = vmatpush.bf16.xpose.msrb.mxu0 %v9048_v28 }
 0x20d   : > { %2295 = vmatpush.bf16.msra.mxu2 %v8687_v33 }
 0x211   : > { %2296 = vmatpush.bf16.msra.mxu2 %v8635_v19  ;;  %3473 = vrot.lane.b32.xlu2 %v8927_v26, %s7880_s26 }
 0x212   : > { %4231 = vrot.lane.b32.xlu0 %v1549_v63, %s7878_s25  ;;  %1738 = vmatpush.bf16.xpose.msra.mxu1 %v9064_v59  ;;  %v9073_v55 = vpop.permute.xlu0 %2259 }
 0x213   : > { %6340 = vmatmul.msk.bf16.gmra.mxu0 %vm1550_vm0, %v8537_v3  ;;  %v9067_v24 = vpop.permute.xlu2 %4507 }
 0x214   : > { %4517 = vrot.lane.b32.xlu1 %v8927_v26, %s7878_s25  ;;  %13590 = vst [vmem:[#allocation39_spill] sm:$0xff] %v9067_v24  ;;  %3609 = vmatpush.bf16.xpose.msrb.mxu0 %v9071_v48 }
 0x215   : > { %3205 = vmatpush.bf16.msrb.mxu2 %v2256_v51  ;;  %v9088_v51 = vsel %vm1550_vm0, %v8816_v45, 0 }
 0x219   : > { %3206 = vmatpush.bf16.msrb.mxu2 %v8957_v6  ;;  %2559 = vrot.lane.b32.xlu2 %v8972_v25, %s7879_s21 }
 0x21a   : > { %4521 = vrot.lane.b32.xlu0 %v9009_v61, %s7878_s25  ;;  %1739 = vmatpush.bf16.xpose.msra.mxu1 %v1636_v35  ;;  %v9091_v6 = vpop.permute.xlu0 %3497 }
 0x21b   : > { %v9084_v27 = vpop.permute.xlu2 %3465 }
 0x21c   : > { %13591 = vst [vmem:[#allocation40_spill] sm:$0xff] %v9084_v27  ;;  %3610 = vmatpush.bf16.xpose.msrb.mxu0 %v9088_v51 }
 0x21d   : > { %3207 = vmatpush.bf16.msrb.mxu2 %v8864_v56  ;;  %v1633_v56 = vsel %vm1550_vm0, %v8831_v1, 0  ;;  %v1630_v1 = vsel %vm1550_vm0, %v8776_v38, 0 }
 0x221   : > { %3208 = vmatpush.bf16.msrb.mxu2 %v8898_v14  ;;  %3509 = vrot.lane.b32.xlu2 %v1549_v63, %s7879_s21 }
 0x222   : > { %1740 = vmatpush.bf16.xpose.msra.mxu1 %v1633_v56  ;;  %v9110_v14 = vpop.permute.xlu0 %4219 }
 0x223   : > { %6341 = vmatmul.msk.bf16.gmra.mxu0 %vm1550_vm0, %v8574_v11  ;;  %v9102_v45 = vpop.permute.xlu2 %3467  ;;  %13594 = vst [vmem:[#allocation43_spill] sm:$0xff] %v9110_v14 }
 0x224   : > { %13593 = vst [vmem:[#allocation42_spill] sm:$0xff] %v9102_v45  ;;  %3611 = vmatpush.bf16.xpose.msrb.mxu0 %v9106_v39 }
 0x225   : > { %3209 = vmatpush.bf16.msrb.mxu2 %v8739_v4  ;;  %v9116_v4 = vpop.permute.xlu1 %2547 }
 0x226   : > { %13595 = vst [vmem:[#allocation44_spill] sm:$0xff] %v9116_v4 }
 0x229   : > { %3210 = vmatpush.bf16.msrb.mxu2 %v8761_v9  ;;  %3477 = vrot.lane.b32.xlu2 %v9009_v61, %s7880_s26 }
 0x22a   : > { %1741 = vmatpush.bf16.xpose.msra.mxu1 %v1630_v1  ;;  %v9129_v9 = vpop.permute.xlu0 %2261 }
 0x22b   : > { %v9119_v52 = vpop.permute.xlu2 %2553 }
 0x22c   : > { %13596 = vst [vmem:[#allocation45_spill] sm:$0xff] %v9119_v52  ;;  %3612 = vmatpush.bf16.xpose.msrb.mxu0 %v9123_v47 }
 0x22d   : > { %3211 = vmatpush.bf16.msrb.mxu2 %v8687_v33  ;;  %v1627_v33 = vsel %vm1550_vm0, %v8720_v0, 0  ;;  %v9152_v0 = vsel %vm1550_vm0, %v8576_v42, 0 }
 0x231   : > { %3212 = vmatpush.bf16.msrb.mxu2 %v8635_v19  ;;  %4513 = vrot.lane.b32.xlu2 %v8829_v23, %s7878_s25  ;;  %v9142_v19 = vpop.permute.xlu1 %2549 }
 0x232   : > { %1742 = vmatpush.bf16.xpose.msra.mxu1 %v1627_v33  ;;  %v9154_v40 = vpop.permute.xlu0 %2551 }
 0x233   : > { %6342 = vmatmul.msk.bf16.gmra.mxu0 %vm1550_vm0, %v8612_v31  ;;  %v9135_v38 = vpop.permute.xlu2 %3501 }
 0x234   : > { %3613 = vmatpush.bf16.xpose.msrb.mxu0 %v9139_v22 }
 0x239   : > { %4519 = vrot.lane.b32.xlu2 %v8972_v25, %s7878_s25  ;;  %v9158_v2 = vpop.permute.xlu1 %4509 }
 0x23a   : > { %1743 = vmatpush.bf16.xpose.msra.mxu1 %v1624_v15  ;;  %13598 = vst [vmem:[#allocation47_spill] sm:$0xff] %v9158_v2  ;;  %v9169_v42 = vpop.permute.xlu0 %4221 }
 0x23b   : > { %v9148_v36 = vpop.permute.xlu2 %4223  ;;  %13600 = vst [vmem:[#allocation49_spill] sm:$0xff] %v9169_v42 }
 0x23c   : > { %13597 = vst [vmem:[#allocation46_spill] sm:$0xff] %v9148_v36  ;;  %3614 = vmatpush.bf16.xpose.msrb.mxu0 %v9152_v0 }
 0x240   : > { %v9160_v53 = vpop.f32.mrf.mxu0 }
 0x241   : > { %6351 = vmatmul.msk.bf16.vlgmr.msra.gmra.mxu1 %vm1550_vm0, %v8381_v16  ;;  %v9173_v37 = vpop.permute.xlu1 %3499 }
 0x242   : > { %2700 = vmatpush.bf16.xpose.msrb.mxu1 %v9017_v5  ;;  %v9178_v63 = vpop.permute.xlu0 %4511  ;;  %v13602_v5 = vld [vmem:[#allocation14_spill] sm:$0xff] }
 0x243   : > { %6343 = vmatmul.msk.bf16.gmra.mxu0 %vm1550_vm0, %v8665_v46  ;;  %v9166_v58 = vpop.permute.xlu2 %2555  ;;  %13601 = vst [vmem:[#allocation50_spill] sm:$0xff] %v9178_v63 }
 0x244   : > { %13599 = vst [vmem:[#allocation48_spill] sm:$0xff] %v9166_v58 }
 0x248   : > { %v9171_v54 = vpop.f32.mrf.mxu0 }
 0x249   : > { %v9184_v16 = vpop.permute.xlu1 %3469 }
 0x24a   : > { %2701 = vmatpush.bf16.xpose.msrb.mxu1 %v9041_v17  ;;  %13603 = vst [vmem:[#allocation14_spill] sm:$0xff] %v9184_v16  ;;  %v2264_v2 = vpop.permute.xlu0 %2263 }
 0x24b   : > { %v3504_v18 = vpop.permute.xlu2 %3503 }
 0x250   : > { %v9176_v41 = vpop.f32.mrf.mxu0 }
 0x251   : > { %6352 = vmatmul.msk.bf16.gmra.mxu1 %vm1550_vm0, %v8400_v57  ;;  %v2266_v24 = vpop.permute.xlu1 %2265 }
 0x252   : > { %2702 = vmatpush.bf16.xpose.msrb.mxu1 %v9064_v59 }
 0x253   : > { %6344 = vmatmul.msk.bf16.gmra.mxu0 %vm1550_vm0, %v13602_v5  ;;  %v9186_v12 = vpop.permute.xlu2 %3471 }
 0x254   : > { %13604 = vst [vmem:[#allocation51_spill] sm:$0xff] %v9186_v12 }
 0x256   : > { %v3506_v63 = vpop.permute.xlu0 %3505 }
 0x258   : > { %v9188_v17 = vpop.f32.mrf.mxu0 }
 0x259   : > { %v9198_v8 = vpop.permute.xlu1 %4225 }
 0x25a   : > { %2703 = vmatpush.bf16.xpose.msrb.mxu1 %v1636_v35  ;;  %13606 = vst [vmem:[#allocation53_spill] sm:$0xff] %v9198_v8 }
 0x25b   : > { %v2268_v59 = vpop.permute.xlu2 %2267 }
 0x260   : > { %v9190_v32 = vpop.f32.mrf.mxu0 }
 0x261   : > { %6353 = vmatmul.msk.bf16.gmra.mxu1 %vm1550_vm0, %v8433_v50 }
 0x262   : > { %2704 = vmatpush.bf16.xpose.msrb.mxu1 %v1633_v56  ;;  %v9206_v56 = vpop.permute.xlu1 %2557 }
 0x263   : > { %6345 = vmatmul.msk.bf16.gmra.mxu0 %vm1550_vm0, %v8774_v20  ;;  %v9196_v57 = vpop.permute.xlu2 %4227  ;;  %13609 = vst [vmem:[#allocation56_spill] sm:$0xff] %v9206_v56 }
 0x264   : > { %13605 = vst [vmem:[#allocation52_spill] sm:$0xff] %v9196_v57 }
 0x266   : > { %v9204_v16 = vpop.permute.xlu0 %3475 }
 0x267   : > { %13608 = vst [vmem:[#allocation55_spill] sm:$0xff] %v9204_v16 }
 0x268   : > { %v9200_v35 = vpop.f32.mrf.mxu0 }
 0x26a   : > { %2705 = vmatpush.bf16.xpose.msrb.mxu1 %v1630_v1  ;;  %v2270_v27 = vpop.permute.xlu1 %2269 }
 0x26b   : > { %v9202_v12 = vpop.permute.xlu2 %3473 }
 0x26c   : > { %13607 = vst [vmem:[#allocation54_spill] sm:$0xff] %v9202_v12 }
 0x270   : > { %v9208_v45 = vpop.f32.mrf.mxu0 }
 0x271   : > { %6354 = vmatmul.msk.bf16.gmra.mxu1 %vm1550_vm0, %v8482_v60 }
 0x272   : > { %2706 = vmatpush.bf16.xpose.msrb.mxu1 %v1627_v33  ;;  %v3508_v56 = vpop.permute.xlu1 %3507 }
 0x273   : > { %6346 = vmatmul.msk.bf16.gmra.mxu0 %vm1550_vm0, %v8829_v23  ;;  %v9214_v50 = vpop.permute.xlu2 %2559  ;;  %v9229_v60 = vsel %vm1550_vm0, %v3508_v56, 0  ;;  %v9255_v56 = vsel %vm1550_vm0, %v9135_v38, 0 }
 0x274   : > { %13610 = vst [vmem:[#allocation57_spill] sm:$0xff] %v9214_v50  ;;  %v2272_v1 = vpop.permute.xlu0 %2271 }
 0x275   : > { %2378 = vmatpush.bf16.msra.mxu3 %v2272_v1 }
 0x278   : > { %v9216_v12 = vpop.f32.mrf.mxu0 }
 0x279   : > { %2379 = vmatpush.bf16.msra.mxu3 %v2270_v27 }
 0x27a   : > { %2707 = vmatpush.bf16.xpose.msrb.mxu1 %v1624_v15 }
 0x27b   : > { %v3510_v33 = vpop.permute.xlu2 %3509 }
 0x27c   : > { %v9219_v16 = vsel %vm1550_vm0, %v3510_v33, 0  ;;  %v9236_v33 = vsel %vm1550_vm0, %v3506_v63, 0 }
 0x27d   : > { %2380 = vmatpush.bf16.msra.mxu3 %v2268_v59 }
 0x280   : > { %v9222_v10 = vpop.f32.mrf.mxu0 }
 0x281   : > { %2381 = vmatpush.bf16.msra.mxu3 %v2266_v24  ;;  %6355 = vmatmul.msk.bf16.gmra.mxu1 %vm1550_vm0, %v8502_v62  ;;  %v9248_v62 = vsel %vm1550_vm0, %v3504_v18, 0 }
 0x282   : > { %3696 = vmatpush.bf16.xpose.msra.mxu1 %v9219_v16 }
 0x283   : > { %6347 = vmatmul.msk.bf16.gmra.mxu0 %vm1550_vm0, %v8877_v34 }
 0x285   : > { %2382 = vmatpush.bf16.msra.mxu3 %v2264_v2 }
 0x288   : > { %v9232_v15 = vpop.f32.mrf.mxu0 }
 0x289   : > { %2383 = vmatpush.bf16.msra.mxu3 %v9129_v9 }
 0x28a   : > { %3697 = vmatpush.bf16.xpose.msra.mxu1 %v9229_v60 }
 0x28d   : > { %2384 = vmatpush.bf16.msra.mxu3 %v9073_v55 }
 0x290   : > { %v9240_v50 = vpop.f32.mrf.mxu0 }
 0x291   : > { %2385 = vmatpush.bf16.msra.mxu3 %v9006_v7  ;;  %6356 = vmatmul.msk.bf16.gmra.mxu1 %vm1550_vm0, %v8537_v3  ;;  %v9266_v3 = vsel %vm1550_vm0, %v9173_v37, 0  ;;  %v13614_v37 = vld [vmem:[#allocation8_spill] sm:$0xff] }
 0x292   : > { %3698 = vmatpush.bf16.xpose.msra.mxu1 %v9236_v33  ;;  %13611 = vst [vmem:[#allocation58_spill] sm:$0xff] %v9266_v3 }
 0x293   : > { %6348 = vmatmul.msk.bf16.gmra.mxu0 %vm1550_vm0, %v8927_v26 }
 0x295   : > { %3294 = vmatpush.bf16.msrb.mxu3 %v2272_v1 }
 0x298   : > { %v9251_v63 = vpop.f32.mrf.mxu0 }
 0x299   : > { %3295 = vmatpush.bf16.msrb.mxu3 %v2270_v27 }
 0x29a   : > { %3699 = vmatpush.bf16.xpose.msra.mxu1 %v9248_v62 }
 0x29d   : > { %3296 = vmatpush.bf16.msrb.mxu3 %v2268_v59  ;;  %v1328_v59 = vld [vmem:[%s13426_s3 + $0x10] sm:$0xff] }
 0x2a0   : > { %v9258_v58 = vpop.f32.mrf.mxu0 }
 0x2a1   : > { %3297 = vmatpush.bf16.msrb.mxu3 %v2266_v24  ;;  %6357 = vmatmul.msk.bf16.gmra.mxu1 %vm1550_vm0, %v8574_v11  ;;  %v9275_v24 = vsel %vm1550_vm0, %v9091_v6, 0  ;;  %v1327_v6 = vld [vmem:[%s13426_s3 + $0x8] sm:$0xff] }
 0x2a2   : > { %3700 = vmatpush.bf16.xpose.msra.mxu1 %v9255_v56  ;;  %13612 = vst [vmem:[#allocation59_spill] sm:$0xff] %v9275_v24 }
 0x2a3   : > { %6349 = vmatmul.msk.bf16.gmra.mxu0 %vm1550_vm0, %v8972_v25 }
 0x2a5   : > { %3298 = vmatpush.bf16.msrb.mxu3 %v2264_v2 }
 0x2a8   : > { %v9270_v27 = vpop.f32.mrf.mxu0 }
 0x2a9   : > { %3299 = vmatpush.bf16.msrb.mxu3 %v9129_v9  ;;  %v9287_v9 = vsel %vm1550_vm0, %v9028_v49, 0 }
 0x2aa   : > { %3701 = vmatpush.bf16.xpose.msra.mxu1 %v9266_v3  ;;  %13613 = vst [vmem:[#allocation60_spill] sm:$0xff] %v9287_v9 }
 0x2ad   : > { %3300 = vmatpush.bf16.msrb.mxu3 %v9073_v55 }
 0x2b0   : > { %v9279_v11 = vpop.f32.mrf.mxu0 }
 0x2b1   : > { %3301 = vmatpush.bf16.msrb.mxu3 %v9006_v7  ;;  %6358 = vmatmul.msk.bf16.gmra.mxu1 %vm1550_vm0, %v8612_v31  ;;  %v1326_v7 = vld [vmem:[%s13426_s3] sm:$0xff] }
 0x2b2   : > { %3702 = vmatpush.bf16.xpose.msra.mxu1 %v9275_v24  ;;  %v9301_v31 = vadd.f32 %v9160_v53, %v1326_v7  ;;  %v1329_v53 = vld [vmem:[%s13426_s3 + $0x18] sm:$0xff]  ;;  %v9321_v7 = vadd.f32 %v9171_v54, %v1328_v59  ;;  %v1335_v24 = vld [vmem:[%s13426_s3 + $0x48] sm:$0xff] }
 0x2b3   : > { %6350 = vmatmul.msk.bf16.gmra.mxu0 %vm1550_vm0, %v9009_v61 }
 0x2b8   : > { %v9290_v55 = vpop.f32.mrf.mxu0 }
 0x2ba   : > { %3703 = vmatpush.bf16.xpose.msra.mxu1 %v9287_v9 }
 0x2be   : > { %v1745_v2 = vpop.f32.mrf.mxu1 }
 0x2bf   : > { %v9303_v49 = vadd.f32 %v1745_v2, %v1327_v6  ;;  %v1330_v2 = vld [vmem:[%s13426_s3 + $0x20] sm:$0xff] }
 0x2c0   : > { %v9298_v38 = vpop.f32.mrf.mxu0  ;;  %v9337_v59 = vadd.f32 %v9176_v41, %v1330_v2  ;;  %v1333_v41 = vld [vmem:[%s13426_s3 + $0x38] sm:$0xff] }
 0x2c1   : > { %6359 = vmatmul.msk.bf16.gmra.mxu1 %vm1550_vm0, %v8665_v46  ;;  %v1825_v18 = vmax.f32 %v9301_v31, %v9303_v49 }
 0x2c3   : > { %6367 = vmatmul.msk.bf16.vlgmr.msra.gmra.mxu0 %vm1550_vm0, %v13614_v37  ;;  %1826 = vmax.xlane.f32.xlu1 %v1825_v18  ;;  %v1331_v18 = vld [vmem:[%s13426_s3 + $0x28] sm:$0xff] }
 0x2c4   : > { %4571 = vmatpush.bf16.xpose.msra.mxu0 %v9026_v21 }
 0x2c6   : > { %v1747_v46 = vpop.f32.mrf.mxu1 }
 0x2c7   : > { %v9323_v6 = vadd.f32 %v1747_v46, %v1329_v53 }
 0x2c8   : > { %v9318_v1 = vpop.f32.mrf.mxu0 }
 0x2c9   : > { %v1828_v21 = vmax.f32 %v9321_v7, %v9323_v6 }
 0x2cb   : > { %1829 = vmax.xlane.f32.xlu2 %v1828_v21  ;;  %v1332_v21 = vld [vmem:[%s13426_s3 + $0x30] sm:$0xff] }
 0x2cc   : > { %4572 = vmatpush.bf16.xpose.msra.mxu0 %v9048_v28  ;;  %v13615_v28 = vld [vmem:[#allocation15_spill] sm:$0xff] }
 0x2ce   : > { %v1750_v54 = vpop.f32.mrf.mxu1 }
 0x2cf   : > { %v9339_v53 = vadd.f32 %v1750_v54, %v1331_v18  ;;  %v9357_v18 = vadd.f32 %v9188_v17, %v1332_v21 }
 0x2d0   : > { %v9334_v9 = vpop.f32.mrf.mxu0 }
 0x2d1   : > { %6360 = vmatmul.msk.bf16.gmra.mxu1 %vm1550_vm0, %v13602_v5  ;;  %v1831_v46 = vmax.f32 %v9337_v59, %v9339_v53 }
 0x2d3   : > { %6368 = vmatmul.msk.bf16.gmra.mxu0 %vm1550_vm0, %v13615_v28  ;;  %1832 = vmax.xlane.f32.xlu1 %v1831_v46  ;;  %v1334_v46 = vld [vmem:[%s13426_s3 + $0x40] sm:$0xff] }
 0x2d4   : > { %4573 = vmatpush.bf16.xpose.msra.mxu0 %v9071_v48  ;;  %v9373_v21 = vadd.f32 %v9190_v32, %v1334_v46  ;;  %v1337_v32 = vld [vmem:[%s13426_s3 + $0x58] sm:$0xff] }
 0x2d6   : > { %v1752_v5 = vpop.f32.mrf.mxu1 }
 0x2d7   : > { %v9359_v54 = vadd.f32 %v1752_v5, %v1333_v41 }
 0x2d8   : > { %v9354_v2 = vpop.f32.mrf.mxu0 }
 0x2d9   : > { %v1834_v48 = vmax.f32 %v9357_v18, %v9359_v54 }
 0x2db   : > { %1835 = vmax.xlane.f32.xlu0 %v1834_v48  ;;  %v1336_v48 = vld [vmem:[%s13426_s3 + $0x50] sm:$0xff] }
 0x2dc   : > { %4574 = vmatpush.bf16.xpose.msra.mxu0 %v9088_v51  ;;  %v13616_v51 = vld [vmem:[#allocation7_spill] sm:$0xff]  ;;  %v9393_v46 = vadd.f32 %v9200_v35, %v1336_v48 }
 0x2de   : > { %v1755_v17 = vpop.f32.mrf.mxu1 }
 0x2df   : > { %v9375_v41 = vadd.f32 %v1755_v17, %v1335_v24 }
 0x2e0   : > { %v9370_v52 = vpop.f32.mrf.mxu0 }
 0x2e1   : > { %6361 = vmatmul.msk.bf16.gmra.mxu1 %vm1550_vm0, %v8774_v20  ;;  %v1837_v5 = vmax.f32 %v9373_v21, %v9375_v41 }
 0x2e3   : > { %6369 = vmatmul.msk.bf16.gmra.mxu0 %vm1550_vm0, %v13616_v51  ;;  %1838 = vmax.xlane.f32.xlu1 %v1837_v5  ;;  %v1338_v5 = vld [vmem:[%s13426_s3 + $0x60] sm:$0xff] }
 0x2e4   : > { %4575 = vmatpush.bf16.xpose.msra.mxu0 %v9106_v39  ;;  %v9409_v48 = vadd.f32 %v9208_v45, %v1338_v5 }
 0x2e6   : > { %v1757_v20 = vpop.f32.mrf.mxu1 }
 0x2e7   : > { %v9395_v17 = vadd.f32 %v1757_v20, %v1337_v32 }
 0x2e8   : > { %v9390_v24 = vpop.f32.mrf.mxu0 }
 0x2e9   : > { %v1840_v39 = vmax.f32 %v9393_v46, %v9395_v17 }
 0x2eb   : > { %1841 = vmax.xlane.f32.xlu1 %v1840_v39  ;;  %v1340_v39 = vld [vmem:[%s13426_s3 + $0x70] sm:$0xff] }
 0x2ec   : > { %4576 = vmatpush.bf16.xpose.msra.mxu0 %v9123_v47  ;;  %v13618_v47 = vld [vmem:[#allocation22_spill] sm:$0xff]  ;;  %v9429_v5 = vadd.f32 %v9216_v12, %v1340_v39 }
 0x2ee   : > { %v1760_v35 = vpop.f32.mrf.mxu1 }
 0x2ef   : > { %v9411_v32 = vadd.f32 %v1760_v35, %v1339_v43  ;;  %v1341_v43 = vld [vmem:[%s13426_s3 + $0x78] sm:$0xff] }
 0x2f0   : > { %v9406_v3 = vpop.f32.mrf.mxu0 }
 0x2f1   : > { %13617 = vst [vmem:[#allocation8_spill] sm:$0xff] %v9406_v3  ;;  %6362 = vmatmul.msk.bf16.gmra.mxu1 %vm1550_vm0, %v8829_v23  ;;  %v1843_v20 = vmax.f32 %v9409_v48, %v9411_v32 }
 0x2f3   : > { %6370 = vmatmul.msk.bf16.gmra.mxu0 %vm1550_vm0, %v13618_v47  ;;  %1844 = vmax.xlane.f32.xlu2 %v1843_v20  ;;  %v1342_v20 = vld [vmem:[%s13426_s3 + $0x80] sm:$0xff] }
 0x2f4   : > { %4577 = vmatpush.bf16.xpose.msra.mxu0 %v9139_v22  ;;  %v9445_v39 = vadd.f32 %v9222_v10, %v1342_v20  ;;  %v1345_v10 = vld [vmem:[%s13426_s3 + $0x98] sm:$0xff] }
 0x2f6   : > { %v1762_v23 = vpop.f32.mrf.mxu1 }
 0x2f7   : > { %v9431_v35 = vadd.f32 %v1762_v23, %v1341_v43 }
 0x2f8   : > { %v9426_v45 = vpop.f32.mrf.mxu0 }
 0x2f9   : > { %13619 = vst [vmem:[#allocation15_spill] sm:$0xff] %v9426_v45  ;;  %v1846_v22 = vmax.f32 %v9429_v5, %v9431_v35  ;;  %v1343_v45 = vld [vmem:[%s13426_s3 + $0x88] sm:$0xff] }
 0x2fb   : > { %1847 = vmax.xlane.f32.xlu1 %v1846_v22  ;;  %v1344_v22 = vld [vmem:[%s13426_s3 + $0x90] sm:$0xff] }
 0x2fc   : > { %4578 = vmatpush.bf16.xpose.msra.mxu0 %v9152_v0  ;;  %v13622_v0 = vld [vmem:[#allocation18_spill] sm:$0xff] }
 0x2fe   : > { %v1765_v12 = vpop.f32.mrf.mxu1 }
 0x2ff   : > { %v9447_v43 = vadd.f32 %v1765_v12, %v1343_v45 }
 0x300   : > { %v9442_v3 = vpop.f32.mrf.mxu0 }
 0x301   : > { %13620 = vst [vmem:[#allocation7_spill] sm:$0xff] %v9442_v3  ;;  %6363 = vmatmul.msk.bf16.gmra.mxu1 %vm1550_vm0, %v8877_v34  ;;  %v1849_v23 = vmax.f32 %v9445_v39, %v9447_v43  ;;  %v9464_v34 = vadd.f32 %v9232_v15, %v1344_v22 }
 0x302   : > { %13621 = vst [vmem:[#allocation22_spill] sm:$0xff] %v9447_v43 }
 0x303   : > { %6371 = vmatmul.msk.bf16.gmra.mxu0 %vm1550_vm0, %v13622_v0  ;;  %1850 = vmax.xlane.f32.xlu1 %v1849_v23  ;;  %v1346_v23 = vld [vmem:[%s13426_s3 + $0xa0] sm:$0xff]  ;;  %v1347_v0 = vld [vmem:[%s13426_s3 + $0xa8] sm:$0xff] }
 0x304   : > { %v9479_v15 = vadd.f32 %v9240_v50, %v1346_v23  ;;  %v1349_v50 = vld [vmem:[%s13426_s3 + $0xb8] sm:$0xff] }
 0x306   : > { %v1767_v20 = vpop.f32.mrf.mxu1 }
 0x307   : > { %v9466_v12 = vadd.f32 %v1767_v20, %v1345_v10  ;;  %v1348_v20 = vld [vmem:[%s13426_s3 + $0xb0] sm:$0xff] }
 0x308   : > { %v9461_v45 = vpop.f32.mrf.mxu0 }
 0x309   : > { %13623 = vst [vmem:[#allocation61_spill] sm:$0xff] %v9461_v45  ;;  %v1852_v3 = vmax.f32 %v9464_v34, %v9466_v12 }
 0x30b   : > { %1853 = vmax.xlane.f32.xlu1 %v1852_v3  ;;  %v13626_v3 = vld [vmem:[#allocation25_spill] sm:$0xff] }
 0x30e   : > { %v1770_v45 = vpop.f32.mrf.mxu1 }
 0x30f   : > { %v9481_v22 = vadd.f32 %v1770_v45, %v1347_v0 }
 0x310   : > { %v9476_v43 = vpop.f32.mrf.mxu0 }
 0x311   : > { %13624 = vst [vmem:[#allocation62_spill] sm:$0xff] %v9476_v43  ;;  %6364 = vmatmul.msk.bf16.gmra.mxu1 %vm1550_vm0, %v8927_v26  ;;  %v1855_v10 = vmax.f32 %v9479_v15, %v9481_v22  ;;  %v9498_v26 = vadd.f32 %v9251_v63, %v1348_v20  ;;  %v1350_v43 = vld [vmem:[%s13426_s3 + $0xc0] sm:$0xff] }
 0x312   : > { %13625 = vst [vmem:[#allocation63_spill] sm:$0xff] %v9481_v22  ;;  %v9515_v20 = vadd.f32 %v9258_v58, %v1350_v43  ;;  %v1353_v58 = vld [vmem:[%s13426_s3 + $0xd8] sm:$0xff] }
 0x313   : > { %6372 = vmatmul.msk.bf16.gmra.mxu0 %vm1550_vm0, %v13626_v3  ;;  %1856 = vmax.xlane.f32.xlu1 %v1855_v10  ;;  %v9504_v10 = vpop.permute.xlu1 %4229 }
 0x314   : > { %13628 = vst [vmem:[#allocation65_spill] sm:$0xff] %v9504_v10 }
 0x316   : > { %v1772_v45 = vpop.f32.mrf.mxu1 }
 0x317   : > { %v9500_v23 = vadd.f32 %v1772_v45, %v1349_v50  ;;  %v9525_v45 = vpop.permute.xlu2 %3477 }
 0x318   : > { %v9495_v0 = vpop.f32.mrf.mxu0  ;;  %13631 = vst [vmem:[#allocation68_spill] sm:$0xff] %v9525_v45  ;;  %v1354_v45 = vld [vmem:[%s13426_s3 + $0xe0] sm:$0xff] }
 0x319   : > { %13627 = vst [vmem:[#allocation64_spill] sm:$0xff] %v9495_v0  ;;  %v1858_v3 = vmax.f32 %v9498_v26, %v9500_v23  ;;  %v1351_v0 = vld [vmem:[%s13426_s3 + $0xc8] sm:$0xff] }
 0x31b   : > { %1859 = vmax.xlane.f32.xlu1 %v1858_v3  ;;  %v9533_v43 = vpop.permute.xlu1 %4515 }
 0x31c   : > { %13632 = vst [vmem:[#allocation69_spill] sm:$0xff] %v9533_v43  ;;  %v1355_v43 = vld [vmem:[%s13426_s3 + $0xe8] sm:$0xff] }
 0x31e   : > { %v1775_v63 = vpop.f32.mrf.mxu1 }
 0x31f   : > { %v9517_v50 = vadd.f32 %v1775_v63, %v1351_v0 }
 0x320   : > { %v9512_v22 = vpop.f32.mrf.mxu0 }
 0x321   : > { %13629 = vst [vmem:[#allocation66_spill] sm:$0xff] %v9512_v22  ;;  %6365 = vmatmul.msk.bf16.gmra.mxu1 %vm1550_vm0, %v8972_v25  ;;  %v1861_v3 = vmax.f32 %v9515_v20, %v9517_v50  ;;  %v1352_v22 = vld [vmem:[%s13426_s3 + $0xd0] sm:$0xff] }
 0x322   : > { %13630 = vst [vmem:[#allocation67_spill] sm:$0xff] %v9517_v50  ;;  %v9538_v63 = vadd.f32 %v9270_v27, %v1352_v22  ;;  %v9550_v50 = vpop.permute.xlu2 %4513 }
 0x323   : > { %6373 = vmatmul.msk.bf16.gmra.mxu0 %vm1550_vm0, %v8948_v13  ;;  %1862 = vmax.xlane.f32.xlu2 %v1861_v3  ;;  %13635 = vst [vmem:[#allocation72_spill] sm:$0xff] %v9550_v50  ;;  %v9554_v22 = vpop.permute.xlu1 %4517  ;;  %v9567_v50 = vpop.permute.xlu0 %2561 }
 0x324   : > { %13637 = vst [vmem:[#allocation74_spill] sm:$0xff] %v9554_v22  ;;  %v1356_v22 = vld [vmem:[%s13426_s3 + $0xf0] sm:$0xff] }
 0x325   : > { %13640 = vst [vmem:[#allocation77_spill] sm:$0xff] %v9567_v50 }
 0x326   : > { %v1777_v0 = vpop.f32.mrf.mxu1 }
 0x327   : > { %v9540_v13 = vadd.f32 %v1777_v0, %v1353_v58  ;;  %v9557_v58 = vadd.f32 %v9279_v11, %v1354_v45  ;;  %v1357_v11 = vld [vmem:[%s13426_s3 + $0xf8] sm:$0xff] }
 0x328   : > { %v9535_v25 = vpop.f32.mrf.mxu0 }
 0x329   : > { %13633 = vst [vmem:[#allocation70_spill] sm:$0xff] %v9535_v25  ;;  %v1864_v3 = vmax.f32 %v9538_v63, %v9540_v13 }
 0x32a   : > { %13634 = vst [vmem:[#allocation71_spill] sm:$0xff] %v9540_v13 }
 0x32b   : > { %1865 = vmax.xlane.f32.xlu0 %v1864_v3  ;;  %13638 = vst [vmem:[#allocation75_spill] sm:$0xff] %v9557_v58 }
 0x32e   : > { %v1780_v27 = vpop.f32.mrf.mxu1 }
 0x32f   : > { %v9559_v0 = vadd.f32 %v1780_v27, %v1355_v43  ;;  %v9577_v43 = vpop.permute.xlu2 %4519  ;;  %v9580_v27 = vadd.f32 %v9290_v55, %v1356_v22  ;;  %v1359_v55 = vld [vmem:[%s13426_s3 + $0x108] sm:$0xff]  ;;  %v9594_v22 = vpop.permute.xlu0 %4231 }
 0x330   : > { %v9552_v25 = vpop.f32.mrf.mxu0  ;;  %13641 = vst [vmem:[#allocation78_spill] sm:$0xff] %v9577_v43  ;;  %v1358_v43 = vld [vmem:[%s13426_s3 + $0x100] sm:$0xff] }
 0x331   : > { %13636 = vst [vmem:[#allocation73_spill] sm:$0xff] %v9552_v25  ;;  %6366 = vmatmul.msk.bf16.gmra.mxu1 %vm1550_vm0, %v9009_v61  ;;  %v1867_v3 = vmax.f32 %v9557_v58, %v9559_v0 }
 0x332   : > { %13639 = vst [vmem:[#allocation76_spill] sm:$0xff] %v9559_v0 }
 0x333   : > { %6374 = vmatmul.msk.bf16.gmra.mxu0 %vm1550_vm0, %v8960_v29  ;;  %1868 = vmax.xlane.f32.xlu1 %v1867_v3  ;;  %13642 = vst [vmem:[#allocation79_spill] sm:$0xff] %v9594_v22 }
 0x336   : > { %v1782_v61 = vpop.f32.mrf.mxu1  ;;  %v1827_v50 = vpop.xlane.xlu1 %1826 }
 0x337   : > { %v9582_v29 = vadd.f32 %v1782_v61, %v1357_v11  ;;  %v1921_v3 = vsub.f32 %v9301_v31, %v1827_v50  ;;  %v1922_v25 = vsub.f32 %v9303_v49, %v1827_v50  ;;  %v9599_v50 = vadd.f32 %v9298_v38, %v1358_v43 }
 0x338   : > { %v9575_v45 = vpop.f32.mrf.mxu0 }
 0x339   : > { %v1870_v0 = vmax.f32 %v9580_v27, %v9582_v29  ;;  %v1985_v58 = vmul.f32 1.442695, %v1921_v3  ;;  %v1987_v13 = vmul.f32 1.442695, %v1922_v25 }
 0x33b   : > { %1871 = vmax.xlane.f32.xlu2 %v1870_v0  ;;  %6853 = vpow2.f32 %v1985_v58 }
 0x33c   : > { %6855 = vpow2.f32 %v1987_v13 }
 0x33e   : > { %v1785_v31 = vpop.f32.mrf.mxu1  ;;  %v1830_v0 = vpop.xlane.xlu2 %1829 }
 0x33f   : > { %v9601_v25 = vadd.f32 %v1785_v31, %v1359_v55  ;;  %v1923_v11 = vsub.f32 %v9321_v7, %v1830_v0  ;;  %v1924_v58 = vsub.f32 %v9323_v6, %v1830_v0  ;;  %v1361_v6 = vld [vmem:[%s13426_s3 + $0x118] sm:$0xff]  ;;  %v9617_v31 = vpop.permute.xlu0 %4521  ;;  %v1360_v0 = vld [vmem:[%s13426_s3 + $0x110] sm:$0xff] }
 0x340   : > { %v9596_v49 = vpop.f32.mrf.mxu0  ;;  %13646 = vst [vmem:[#allocation83_spill] sm:$0xff] %v9617_v31 }
 0x341   : > { %13643 = vst [vmem:[#allocation80_spill] sm:$0xff] %v9596_v49  ;;  %6383 = vmatmul.msk.bf16.vlgmr.msrb.gmra.mxu1 %vm1550_vm0, %v13614_v37  ;;  %v1873_v13 = vmax.f32 %v9599_v50, %v9601_v25  ;;  %v6854_v61 = vpop.eup %6853  ;;  %v1989_v3 = vmul.f32 1.442695, %v1923_v11  ;;  %v1991_v38 = vmul.f32 1.442695, %v1924_v58 }
 0x342   : > { %13644 = vst [vmem:[#allocation81_spill] sm:$0xff] %v9601_v25  ;;  %4660 = vmatpush.bf16.xpose.msrb.mxu1 %v9219_v16  ;;  %v6856_v43 = vpop.eup %6855 }
 0x343   : > { %6375 = vmatmul.msk.bf16.gmra.mxu0 %vm1550_vm0, %v9116_v4  ;;  %1874 = vmax.xlane.f32.xlu0 %v1873_v13  ;;  %6857 = vpow2.f32 %v1989_v3  ;;  %v2113_v7 = vadd.f32 %v6856_v43, %v6854_v61 }
 0x344   : > { %6859 = vpow2.f32 %v1991_v38  ;;  %v9627_v38 = vadd.f32 %v9318_v1, %v1360_v0 }
 0x345   : > { %2114 = vadd.xlane.f32.xlu1 %v2113_v7 }
 0x346   : > { %v1787_v55 = vpop.f32.mrf.mxu1  ;;  %v1833_v16 = vpop.xlane.xlu1 %1832 }
 0x347   : > { %v9622_v11 = vadd.f32 %v1787_v55, %v1361_v6  ;;  %v1925_v58 = vsub.f32 %v9337_v59, %v1833_v16  ;;  %v1926_v13 = vsub.f32 %v9339_v53, %v1833_v16  ;;  %v1363_v59 = vld [vmem:[%s13426_s3 + $0x128] sm:$0xff] }
 0x348   : > { %v9615_v37 = vpop.f32.mrf.mxu0 }
 0x349   : > { %13645 = vst [vmem:[#allocation82_spill] sm:$0xff] %v9615_v37  ;;  %v6858_v3 = vpop.eup %6857  ;;  %v1993_v7 = vmul.f32 1.442695, %v1925_v58  ;;  %v1995_v4 = vmul.f32 1.442695, %v1926_v13  ;;  %v1876_v6 = vmax.f32 %v9627_v38, %v9622_v11  ;;  %v13647_v58 = vld [vmem:[#allocation29_spill] sm:$0xff] }
 0x34a   : > { %4661 = vmatpush.bf16.xpose.msrb.mxu1 %v9229_v60  ;;  %v6860_v31 = vpop.eup %6859  ;;  %v2209_v37 = vpack.c.bf16 %v6858_v3, %v6854_v61  ;;  %v1362_v60 = vld [vmem:[%s13426_s3 + $0x120] sm:$0xff] }
 0x34b   : > { %v2210_v49 = vpack.c.bf16 %v6860_v31, %v6856_v43  ;;  %6861 = vpow2.f32 %v1993_v7  ;;  %v2116_v25 = vadd.f32 %v6860_v31, %v6858_v3  ;;  %v9651_v55 = vadd.f32 %v9334_v9, %v1362_v60  ;;  %v1365_v9 = vld [vmem:[%s13426_s3 + $0x138] sm:$0xff] }
 0x34c   : > { %6863 = vpow2.f32 %v1995_v4  ;;  %2297 = vmatmul.bf16.vlgmr.msra.gmra.mxu2 %v2209_v37 }
 0x34d   : > { %2117 = vadd.xlane.f32.xlu2 %v2116_v25  ;;  %2386 = vmatmul.bf16.vlgmr.msra.gmra.mxu3 %v2210_v49 }
 0x34e   : > { %v1790_v1 = vpop.f32.mrf.mxu1  ;;  %4249 = vmatpush.bf16.msra.mxu2 %v9094_v30  ;;  %4338 = vmatpush.bf16.msra.mxu3 %v9594_v22  ;;  %v1836_v61 = vpop.xlane.xlu0 %1835 }
 0x34f   : > { %1877 = vmax.xlane.f32.xlu1 %v1876_v6  ;;  %v9642_v4 = vadd.f32 %v1790_v1, %v1363_v59  ;;  %v1927_v43 = vsub.f32 %v9357_v18, %v1836_v61  ;;  %v1928_v25 = vsub.f32 %v9359_v54, %v1836_v61  ;;  %v13648_v61 = vld [vmem:[#allocation23_spill] sm:$0xff] }
 0x350   : > { %v9635_v53 = vpop.f32.mrf.mxu0 }
 0x351   : > { %6384 = vmatmul.msk.bf16.gmra.mxu1 %vm1550_vm0, %v13615_v28  ;;  %v6862_v49 = vpop.eup %6861  ;;  %v1997_v37 = vmul.f32 1.442695, %v1927_v43  ;;  %v1999_v31 = vmul.f32 1.442695, %v1928_v25  ;;  %v1879_v18 = vmax.f32 %v9651_v55, %v9642_v4  ;;  %v1366_v25 = vld [vmem:[%s13426_s3 + $0x140] sm:$0xff] }
 0x352   : > { %4662 = vmatpush.bf16.xpose.msrb.mxu1 %v9236_v33  ;;  %v6864_v0 = vpop.eup %6863  ;;  %4250 = vmatpush.bf16.msra.mxu2 %v8985_v44  ;;  %v1364_v33 = vld [vmem:[%s13426_s3 + $0x130] sm:$0xff] }
 0x353   : > { %6376 = vmatmul.msk.bf16.gmra.mxu0 %vm1550_vm0, %v9142_v19  ;;  %4339 = vmatpush.bf16.msra.mxu3 %v9504_v10  ;;  %6865 = vpow2.f32 %v1997_v37  ;;  %v2119_v54 = vadd.f32 %v6864_v0, %v6862_v49  ;;  %v9671_v6 = vadd.f32 %v9354_v2, %v1364_v33  ;;  %v13682_v10 = vld [vmem:[#allocation76_spill] sm:$0xff] }
 0x354   : > { %6867 = vpow2.f32 %v1999_v31 }
 0x355   : > { %2120 = vadd.xlane.f32.xlu0 %v2119_v54  ;;  %v13649_v54 = vld [vmem:[#allocation24_spill] sm:$0xff] }
 0x356   : > { %v1792_v28 = vpop.f32.mrf.mxu1  ;;  %4251 = vmatpush.bf16.msra.mxu2 %v13647_v58  ;;  %v1839_v13 = vpop.xlane.xlu1 %1838  ;;  %v13677_v58 = vld [vmem:[#allocation57_spill] sm:$0xff] }
 0x357   : > { %4340 = vmatpush.bf16.msra.mxu3 %v9196_v57  ;;  %1880 = vmax.xlane.f32.xlu1 %v1879_v18  ;;  %v9668_v3 = vadd.f32 %v1792_v28, %v1365_v9  ;;  %v1929_v59 = vsub.f32 %v9373_v21, %v1839_v13  ;;  %v1930_v60 = vsub.f32 %v9375_v41, %v1839_v13 }
 0x358   : > { %v9661_v16 = vpop.f32.mrf.mxu0 }
 0x359   : > { %v6866_v7 = vpop.eup %6865  ;;  %v1882_v2 = vmax.f32 %v9671_v6, %v9668_v3  ;;  %v2001_v21 = vmul.f32 1.442695, %v1929_v59  ;;  %v2003_v18 = vmul.f32 1.442695, %v1930_v60  ;;  %v13650_v60 = vld [vmem:[#allocation19_spill] sm:$0xff] }
 0x35a   : > { %4663 = vmatpush.bf16.xpose.msrb.mxu1 %v9248_v62  ;;  %v6868_v1 = vpop.eup %6867  ;;  %4252 = vmatpush.bf16.msra.mxu2 %v13648_v61  ;;  %v2211_v43 = vpack.c.bf16 %v6866_v7, %v6862_v49  ;;  %v1367_v62 = vld [vmem:[%s13426_s3 + $0x148] sm:$0xff]  ;;  %v9689_v49 = vadd.f32 %v9370_v52, %v1366_v25 }
 0x35b   : > { %4341 = vmatpush.bf16.msra.mxu3 %v9198_v8  ;;  %v2212_v37 = vpack.c.bf16 %v6868_v1, %v6864_v0  ;;  %6869 = vpow2.f32 %v2001_v21 }
 0x35c   : > { %2302 = vmatmul.bf16.gmra.mxu2 %v2211_v43  ;;  %6871 = vpow2.f32 %v2003_v18 }
 0x35d   : > { %2391 = vmatmul.bf16.gmra.mxu3 %v2212_v37 }
 0x35e   : > { %v1795_v41 = vpop.f32.mrf.mxu1  ;;  %4253 = vmatpush.bf16.msra.mxu2 %v13649_v54  ;;  %v1842_v0 = vpop.xlane.xlu1 %1841 }
 0x35f   : > { %4342 = vmatpush.bf16.msra.mxu3 %v9148_v36  ;;  %v9693_v9 = vadd.f32 %v1795_v41, %v1367_v62  ;;  %1883 = vmax.xlane.f32.xlu1 %v1882_v2  ;;  %v1931_v28 = vsub.f32 %v9393_v46, %v1842_v0  ;;  %v1932_v33 = vsub.f32 %v9395_v17, %v1842_v0  ;;  %v1368_v46 = vld [vmem:[%s13426_s3 + $0x150] sm:$0xff]  ;;  %v13651_v2 = vld [vmem:[#allocation13_spill] sm:$0xff] }
 0x360   : > { %v9686_v31 = vpop.f32.mrf.mxu0  ;;  %v2122_v17 = vadd.f32 %v6868_v1, %v6866_v7 }
 0x361   : > { %6385 = vmatmul.msk.bf16.gmra.mxu1 %vm1550_vm0, %v13616_v51  ;;  %v1885_v52 = vmax.f32 %v9689_v49, %v9693_v9  ;;  %v2005_v13 = vmul.f32 1.442695, %v1931_v28  ;;  %v2007_v59 = vmul.f32 1.442695, %v1932_v33  ;;  %v1369_v51 = vld [vmem:[%s13426_s3 + $0x158] sm:$0xff]  ;;  %v6870_v21 = vpop.eup %6869  ;;  %v13652_v33 = vld [vmem:[#allocation58_spill] sm:$0xff] }
 0x362   : > { %4664 = vmatpush.bf16.xpose.msrb.mxu1 %v9255_v56  ;;  %4254 = vmatpush.bf16.msra.mxu2 %v13650_v60  ;;  %v9715_v56 = vadd.f32 %v9390_v24, %v1368_v46  ;;  %v6872_v7 = vpop.eup %6871 }
 0x363   : > { %6377 = vmatmul.msk.bf16.gmra.mxu0 %vm1550_vm0, %v9154_v40  ;;  %4343 = vmatpush.bf16.msra.mxu3 %v9169_v42  ;;  %6873 = vpow2.f32 %v2005_v13  ;;  %v13653_v13 = vld [vmem:[#allocation9_spill] sm:$0xff] }
 0x364   : > { %1886 = vmax.xlane.f32.xlu2 %v1885_v52  ;;  %6875 = vpow2.f32 %v2007_v59  ;;  %v13654_v59 = vld [vmem:[#allocation38_spill] sm:$0xff] }
 0x366   : > { %v1797_v43 = vpop.f32.mrf.mxu1  ;;  %4255 = vmatpush.bf16.msra.mxu2 %v13651_v2  ;;  %v1845_v62 = vpop.xlane.xlu2 %1844 }
 0x367   : > { %4344 = vmatpush.bf16.msra.mxu3 %v9110_v14  ;;  %v9719_v37 = vadd.f32 %v1797_v43, %v1369_v51  ;;  %2123 = vadd.xlane.f32.xlu1 %v2122_v17  ;;  %v1933_v41 = vsub.f32 %v9409_v48, %v1845_v62  ;;  %v1934_v18 = vsub.f32 %v9411_v32, %v1845_v62  ;;  %v1371_v32 = vld [vmem:[%s13426_s3 + $0x168] sm:$0xff]  ;;  %v1370_v62 = vld [vmem:[%s13426_s3 + $0x160] sm:$0xff]  ;;  %v13660_v14 = vld [vmem:[#allocation60_spill] sm:$0xff] }
 0x368   : > { %v9712_v25 = vpop.f32.mrf.mxu0  ;;  %v2125_v51 = vadd.f32 %v6872_v7, %v6870_v21 }
 0x369   : > { %v1888_v1 = vmax.f32 %v9715_v56, %v9719_v37  ;;  %v6874_v0 = vpop.eup %6873  ;;  %v2009_v24 = vmul.f32 1.442695, %v1933_v41  ;;  %v2011_v28 = vmul.f32 1.442695, %v1934_v18 }
 0x36a   : > { %4665 = vmatpush.bf16.xpose.msrb.mxu1 %v13652_v33  ;;  %v6876_v52 = vpop.eup %6875  ;;  %4256 = vmatpush.bf16.msra.mxu2 %v13653_v13  ;;  %v2213_v46 = vpack.c.bf16 %v6874_v0, %v6870_v21 }
 0x36b   : > { %4345 = vmatpush.bf16.msra.mxu3 %v13654_v59  ;;  %6877 = vpow2.f32 %v2009_v24  ;;  %1889 = vmax.xlane.f32.xlu0 %v1888_v1  ;;  %v2214_v48 = vpack.c.bf16 %v6876_v52, %v6872_v7  ;;  %v13656_v7 = vld [vmem:[#allocation8_spill] sm:$0xff]  ;;  %v13657_v59 = vld [vmem:[#allocation59_spill] sm:$0xff] }
 0x36c   : > { %6879 = vpow2.f32 %v2011_v28  ;;  %2307 = vmatmul.bf16.gmra.mxu2 %v2213_v46  ;;  %v13655_v28 = vld [vmem:[#allocation45_spill] sm:$0xff]  ;;  %v9745_v33 = vadd.f32 %v13656_v7, %v1370_v62  ;;  %v13659_v7 = vld [vmem:[#allocation22_spill] sm:$0xff] }
 0x36d   : > { %2396 = vmatmul.bf16.gmra.mxu3 %v2214_v48 }
 0x36e   : > { %v1800_v17 = vpop.f32.mrf.mxu1  ;;  %v1848_v41 = vpop.xlane.xlu1 %1847 }
 0x36f   : > { %2126 = vadd.xlane.f32.xlu1 %v2125_v51  ;;  %v9736_v18 = vadd.f32 %v1800_v17, %v1371_v32  ;;  %v1935_v1 = vsub.f32 %v9429_v5, %v1848_v41  ;;  %v1936_v24 = vsub.f32 %v9431_v35, %v1848_v41  ;;  %v2128_v32 = vadd.f32 %v6876_v52, %v6874_v0  ;;  %v1372_v5 = vld [vmem:[%s13426_s3 + $0x170] sm:$0xff]  ;;  %v1373_v17 = vld [vmem:[%s13426_s3 + $0x178] sm:$0xff] }
 0x370   : > { %v9731_v43 = vpop.f32.mrf.mxu0  ;;  %v13658_v0 = vld [vmem:[#allocation15_spill] sm:$0xff] }
 0x371   : > { %6386 = vmatmul.msk.bf16.gmra.mxu1 %vm1550_vm0, %v13618_v47  ;;  %v6878_v21 = vpop.eup %6877  ;;  %v2013_v46 = vmul.f32 1.442695, %v1935_v1  ;;  %v2015_v48 = vmul.f32 1.442695, %v1936_v24  ;;  %v1891_v47 = vmax.f32 %v9745_v33, %v9736_v18  ;;  %v9759_v52 = vadd.f32 %v13658_v0, %v1372_v5 }
 0x372   : > { %4666 = vmatpush.bf16.xpose.msrb.mxu1 %v13657_v59  ;;  %v6880_v51 = vpop.eup %6879 }
 0x373   : > { %6378 = vmatmul.msk.bf16.gmra.mxu0 %vm1550_vm0, %v13655_v28  ;;  %6881 = vpow2.f32 %v2013_v46  ;;  %2129 = vadd.xlane.f32.xlu0 %v2128_v32  ;;  %v2131_v35 = vadd.f32 %v6880_v51, %v6878_v21 }
 0x374   : > { %6883 = vpow2.f32 %v2015_v48 }
 0x375   : > { %2132 = vadd.xlane.f32.xlu2 %v2131_v35 }
 0x376   : > { %v1802_v62 = vpop.f32.mrf.mxu1  ;;  %v1851_v1 = vpop.xlane.xlu1 %1850 }
 0x377   : > { %v9761_v41 = vadd.f32 %v1802_v62, %v1373_v17  ;;  %1892 = vmax.xlane.f32.xlu1 %v1891_v47  ;;  %v1937_v24 = vsub.f32 %v9445_v39, %v1851_v1  ;;  %v1938_v46 = vsub.f32 %v13659_v7, %v1851_v1  ;;  %v1375_v39 = vld [vmem:[%s13426_s3 + $0x188] sm:$0xff] }
 0x378   : > { %v9756_v59 = vpop.f32.mrf.mxu0 }
 0x379   : > { %v1894_v32 = vmax.f32 %v9759_v52, %v9761_v41  ;;  %v6882_v13 = vpop.eup %6881  ;;  %v2017_v48 = vmul.f32 1.442695, %v1937_v24  ;;  %v2019_v35 = vmul.f32 1.442695, %v1938_v46  ;;  %v13663_v24 = vld [vmem:[#allocation7_spill] sm:$0xff] }
 0x37a   : > { %4667 = vmatpush.bf16.xpose.msrb.mxu1 %v13660_v14  ;;  %v6884_v2 = vpop.eup %6883  ;;  %v2215_v42 = vpack.c.bf16 %v6882_v13, %v6878_v21  ;;  %v1374_v14 = vld [vmem:[%s13426_s3 + $0x180] sm:$0xff] }
 0x37b   : > { %6885 = vpow2.f32 %v2017_v48  ;;  %1895 = vmax.xlane.f32.xlu0 %v1894_v32  ;;  %v2216_v5 = vpack.c.bf16 %v6884_v2, %v6880_v51  ;;  %v2134_v17 = vadd.f32 %v6884_v2, %v6882_v13  ;;  %v13661_v13 = vld [vmem:[#allocation48_spill] sm:$0xff]  ;;  %v13662_v51 = vld [vmem:[#allocation18_spill] sm:$0xff]  ;;  %v9785_v7 = vadd.f32 %v13663_v24, %v1374_v14 }
 0x37c   : > { %6887 = vpow2.f32 %v2019_v35  ;;  %2312 = vmatmul.bf16.gmra.mxu2 %v2215_v42  ;;  %v1376_v35 = vld [vmem:[%s13426_s3 + $0x190] sm:$0xff] }
 0x37d   : > { %2401 = vmatmul.bf16.gmra.mxu3 %v2216_v5 }
 0x37e   : > { %v1805_v47 = vpop.f32.mrf.mxu1  ;;  %v1854_v0 = vpop.xlane.xlu1 %1853 }
 0x37f   : > { %2135 = vadd.xlane.f32.xlu1 %v2134_v17  ;;  %v9776_v21 = vadd.f32 %v1805_v47, %v1375_v39  ;;  %v1939_v2 = vsub.f32 %v9464_v34, %v1854_v0  ;;  %v1940_v42 = vsub.f32 %v9466_v12, %v1854_v0  ;;  %v1377_v12 = vld [vmem:[%s13426_s3 + $0x198] sm:$0xff]  ;;  %v13665_v47 = vld [vmem:[#allocation61_spill] sm:$0xff] }
 0x380   : > { %v9771_v62 = vpop.f32.mrf.mxu0  ;;  %v9800_v14 = vadd.f32 %v13665_v47, %v1376_v35  ;;  %v1378_v35 = vld [vmem:[%s13426_s3 + $0x1a0] sm:$0xff] }
 0x381   : > { %6387 = vmatmul.msk.bf16.gmra.mxu1 %vm1550_vm0, %v13662_v51  ;;  %v6886_v1 = vpop.eup %6885  ;;  %v2021_v46 = vmul.f32 1.442695, %v1939_v2  ;;  %v2023_v32 = vmul.f32 1.442695, %v1940_v42  ;;  %v1897_v34 = vmax.f32 %v9785_v7, %v9776_v21  ;;  %v13666_v51 = vld [vmem:[#allocation63_spill] sm:$0xff] }
 0x382   : > { %v6888_v48 = vpop.eup %6887 }
 0x383   : > { %6379 = vmatmul.msk.bf16.gmra.mxu0 %vm1550_vm0, %v13661_v13  ;;  %6889 = vpow2.f32 %v2021_v46  ;;  %v9795_v5 = vadd.f32 %v6888_v48, %v6886_v1 }
 0x384   : > { %6891 = vpow2.f32 %v2023_v32 }
 0x385   : > { %13664 = vst [vmem:[#allocation58_spill] sm:$0xff] %v9795_v5 }
 0x386   : > { %v1807_v17 = vpop.f32.mrf.mxu1  ;;  %v1857_v2 = vpop.xlane.xlu1 %1856 }
 0x387   : > { %v9802_v0 = vadd.f32 %v1807_v17, %v1377_v12  ;;  %1898 = vmax.xlane.f32.xlu1 %v1897_v34  ;;  %v1941_v42 = vsub.f32 %v9479_v15, %v1857_v2  ;;  %v1942_v24 = vsub.f32 %v13666_v51, %v1857_v2  ;;  %v1379_v15 = vld [vmem:[%s13426_s3 + $0x1a8] sm:$0xff] }
 0x388   : > { %v9797_v39 = vpop.f32.mrf.mxu0  ;;  %v13668_v2 = vld [vmem:[#allocation62_spill] sm:$0xff] }
 0x389   : > { %v1900_v46 = vmax.f32 %v9800_v14, %v9802_v0  ;;  %v6890_v60 = vpop.eup %6889  ;;  %v2025_v5 = vmul.f32 1.442695, %v1941_v42  ;;  %v2027_v32 = vmul.f32 1.442695, %v1942_v24  ;;  %v13669_v24 = vld [vmem:[#allocation56_spill] sm:$0xff] }
 0x38a   : > { %v6892_v36 = vpop.eup %6891  ;;  %v2217_v54 = vpack.c.bf16 %v6890_v60, %v6886_v1  ;;  %v9819_v1 = vadd.f32 %v13668_v2, %v1378_v35  ;;  %v13672_v2 = vld [vmem:[#allocation64_spill] sm:$0xff] }
 0x38b   : > { %1901 = vmax.xlane.f32.xlu2 %v1900_v46  ;;  %6893 = vpow2.f32 %v2025_v5  ;;  %v2218_v12 = vpack.c.bf16 %v6892_v36, %v6888_v48  ;;  %v9814_v34 = vadd.f32 %v6892_v36, %v6890_v60  ;;  %v13670_v36 = vld [vmem:[#allocation25_spill] sm:$0xff] }
 0x38c   : > { %6895 = vpow2.f32 %v2027_v32  ;;  %2317 = vmatmul.bf16.gmra.mxu2 %v2217_v54 }
 0x38d   : > { %13667 = vst [vmem:[#allocation45_spill] sm:$0xff] %v9814_v34  ;;  %2406 = vmatmul.bf16.gmra.mxu3 %v2218_v12 }
 0x38e   : > { %v1810_v17 = vpop.f32.mrf.mxu1  ;;  %v1860_v51 = vpop.xlane.xlu1 %1859 }
 0x38f   : > { %v9821_v42 = vadd.f32 %v1810_v17, %v1379_v15  ;;  %v1943_v48 = vsub.f32 %v9498_v26, %v1860_v51  ;;  %v1944_v5 = vsub.f32 %v9500_v23, %v1860_v51  ;;  %v1380_v26 = vld [vmem:[%s13426_s3 + $0x1b0] sm:$0xff]  ;;  %v1381_v23 = vld [vmem:[%s13426_s3 + $0x1b8] sm:$0xff] }
 0x390   : > { %v9816_v47 = vpop.f32.mrf.mxu0  ;;  %v9842_v51 = vadd.f32 %v13672_v2, %v1380_v26  ;;  %v1382_v26 = vld [vmem:[%s13426_s3 + $0x1c0] sm:$0xff] }
 0x391   : > { %6388 = vmatmul.msk.bf16.gmra.mxu1 %vm1550_vm0, %v13670_v36  ;;  %v1903_v54 = vmax.f32 %v9819_v1, %v9821_v42  ;;  %v6894_v60 = vpop.eup %6893  ;;  %v2029_v46 = vmul.f32 1.442695, %v1943_v48  ;;  %v2031_v32 = vmul.f32 1.442695, %v1944_v5 }
 0x392   : > { %v6896_v35 = vpop.eup %6895 }
 0x393   : > { %6380 = vmatmul.msk.bf16.gmra.mxu0 %vm1550_vm0, %v13669_v24  ;;  %1904 = vmax.xlane.f32.xlu0 %v1903_v54  ;;  %6897 = vpow2.f32 %v2029_v46  ;;  %v9837_v12 = vadd.f32 %v6896_v35, %v6894_v60  ;;  %v13673_v54 = vld [vmem:[#allocation67_spill] sm:$0xff] }
 0x394   : > { %6899 = vpow2.f32 %v2031_v32 }
 0x395   : > { %13671 = vst [vmem:[#allocation8_spill] sm:$0xff] %v9837_v12 }
 0x396   : > { %v1812_v15 = vpop.f32.mrf.mxu1  ;;  %v1863_v5 = vpop.xlane.xlu2 %1862 }
 0x397   : > { %v9844_v48 = vadd.f32 %v1812_v15, %v1381_v23  ;;  %v1945_v36 = vsub.f32 %v9515_v20, %v1863_v5  ;;  %v1946_v46 = vsub.f32 %v13673_v54, %v1863_v5  ;;  %v1383_v20 = vld [vmem:[%s13426_s3 + $0x1c8] sm:$0xff] }
 0x398   : > { %v9839_v17 = vpop.f32.mrf.mxu0 }
 0x399   : > { %v1906_v34 = vmax.f32 %v9842_v51, %v9844_v48  ;;  %v6898_v8 = vpop.eup %6897  ;;  %v2033_v61 = vmul.f32 1.442695, %v1945_v36  ;;  %v2035_v12 = vmul.f32 1.442695, %v1946_v46 }
 0x39a   : > { %v6900_v32 = vpop.eup %6899  ;;  %v2219_v57 = vpack.c.bf16 %v6898_v8, %v6894_v60 }
 0x39b   : > { %1907 = vmax.xlane.f32.xlu0 %v1906_v34  ;;  %6901 = vpow2.f32 %v2033_v61  ;;  %v2220_v23 = vpack.c.bf16 %v6900_v32, %v6896_v35  ;;  %v9856_v15 = vadd.f32 %v6900_v32, %v6898_v8  ;;  %v13675_v34 = vld [vmem:[#allocation66_spill] sm:$0xff]  ;;  %v13676_v35 = vld [vmem:[#allocation71_spill] sm:$0xff] }
 0x39c   : > { %6903 = vpow2.f32 %v2035_v12  ;;  %2322 = vmatmul.bf16.gmra.mxu2 %v2219_v57  ;;  %v9861_v60 = vadd.f32 %v13675_v34, %v1382_v26  ;;  %v13678_v8 = vld [vmem:[#allocation31_spill] sm:$0xff] }
 0x39d   : > { %13674 = vst [vmem:[#allocation59_spill] sm:$0xff] %v9856_v15  ;;  %2411 = vmatmul.bf16.gmra.mxu3 %v2220_v23 }
 0x39e   : > { %v1815_v2 = vpop.f32.mrf.mxu1  ;;  %v1866_v54 = vpop.xlane.xlu0 %1865 }
 0x39f   : > { %v9863_v36 = vadd.f32 %v1815_v2, %v1383_v20  ;;  %v1947_v61 = vsub.f32 %v9538_v63, %v1866_v54  ;;  %v1948_v46 = vsub.f32 %v13676_v35, %v1866_v54  ;;  %v1384_v63 = vld [vmem:[%s13426_s3 + $0x1d0] sm:$0xff]  ;;  %v1385_v20 = vld [vmem:[%s13426_s3 + $0x1d8] sm:$0xff]  ;;  %v13680_v35 = vld [vmem:[#allocation70_spill] sm:$0xff] }
 0x3a0   : > { %v9858_v5 = vpop.f32.mrf.mxu0 }
 0x3a1   : > { %6389 = vmatmul.msk.bf16.gmra.mxu1 %vm1550_vm0, %v13678_v8  ;;  %v1909_v57 = vmax.f32 %v9861_v60, %v9863_v36  ;;  %v6902_v12 = vpop.eup %6901  ;;  %v2037_v32 = vmul.f32 1.442695, %v1947_v61  ;;  %v2039_v26 = vmul.f32 1.442695, %v1948_v46  ;;  %v9884_v61 = vadd.f32 %v13680_v35, %v1384_v63  ;;  %v1386_v63 = vld [vmem:[%s13426_s3 + $0x1e0] sm:$0xff] }
 0x3a2   : > { %v6904_v23 = vpop.eup %6903 }
 0x3a3   : > { %6381 = vmatmul.msk.bf16.gmra.mxu0 %vm1550_vm0, %v13677_v58  ;;  %1910 = vmax.xlane.f32.xlu0 %v1909_v57  ;;  %6905 = vpow2.f32 %v2037_v32  ;;  %v9879_v2 = vadd.f32 %v6904_v23, %v6902_v12  ;;  %v13681_v57 = vld [vmem:[#allocation75_spill] sm:$0xff] }
 0x3a4   : > { %6907 = vpow2.f32 %v2039_v26 }
 0x3a5   : > { %13679 = vst [vmem:[#allocation15_spill] sm:$0xff] %v9879_v2 }
 0x3a6   : > { %v1817_v34 = vpop.f32.mrf.mxu1  ;;  %v1869_v8 = vpop.xlane.xlu1 %1868 }
 0x3a7   : > { %v9886_v46 = vadd.f32 %v1817_v34, %v1385_v20  ;;  %v1949_v15 = vsub.f32 %v13681_v57, %v1869_v8  ;;  %v1950_v32 = vsub.f32 %v13682_v10, %v1869_v8  ;;  %v1387_v34 = vld [vmem:[%s13426_s3 + $0x1e8] sm:$0xff] }
 0x3a8   : > { %v9881_v54 = vpop.f32.mrf.mxu0 }
 0x3a9   : > { %v1912_v44 = vmax.f32 %v9884_v61, %v9886_v46  ;;  %v6906_v22 = vpop.eup %6905  ;;  %v2041_v30 = vmul.f32 1.442695, %v1949_v15  ;;  %v2043_v2 = vmul.f32 1.442695, %v1950_v32  ;;  %v13687_v32 = vld [vmem:[#allocation77_spill] sm:$0xff] }
 0x3aa   : > { %v6908_v26 = vpop.eup %6907  ;;  %v2221_v58 = vpack.c.bf16 %v6906_v22, %v6902_v12 }
 0x3ab   : > { %1913 = vmax.xlane.f32.xlu1 %v1912_v44  ;;  %6909 = vpow2.f32 %v2041_v30  ;;  %v2222_v20 = vpack.c.bf16 %v6908_v26, %v6904_v23  ;;  %v9898_v10 = vadd.f32 %v6908_v26, %v6906_v22  ;;  %v13685_v44 = vld [vmem:[#allocation73_spill] sm:$0xff]  ;;  %v13688_v22 = vld [vmem:[#allocation32_spill] sm:$0xff] }
 0x3ac   : > { %6911 = vpow2.f32 %v2043_v2  ;;  %2327 = vmatmul.bf16.gmra.mxu2 %v2221_v58  ;;  %v9903_v12 = vadd.f32 %v13685_v44, %v1386_v63 }
 0x3ad   : > { %13683 = vst [vmem:[#allocation22_spill] sm:$0xff] %v9898_v10  ;;  %2416 = vmatmul.bf16.gmra.mxu3 %v2222_v20 }
 0x3ae   : > { %v1820_v15 = vpop.f32.mrf.mxu1  ;;  %v1872_v57 = vpop.xlane.xlu2 %1871 }
 0x3af   : > { %v9905_v8 = vadd.f32 %v1820_v15, %v1387_v34  ;;  %v1951_v30 = vsub.f32 %v9580_v27, %v1872_v57  ;;  %v1952_v23 = vsub.f32 %v9582_v29, %v1872_v57  ;;  %v1388_v27 = vld [vmem:[%s13426_s3 + $0x1f0] sm:$0xff]  ;;  %v1389_v29 = vld [vmem:[%s13426_s3 + $0x1f8] sm:$0xff] }
 0x3b0   : > { %v9900_v35 = vpop.f32.mrf.mxu0  ;;  %v9926_v57 = vadd.f32 %v9575_v45, %v1388_v27 }
 0x3b1   : > { %13684 = vst [vmem:[#allocation60_spill] sm:$0xff] %v9900_v35  ;;  %6390 = vmatmul.msk.bf16.gmra.mxu1 %vm1550_vm0, %v13688_v22  ;;  %v1915_v58 = vmax.f32 %v9903_v12, %v9905_v8  ;;  %v6910_v2 = vpop.eup %6909  ;;  %v2045_v26 = vmul.f32 1.442695, %v1951_v30  ;;  %v2047_v63 = vmul.f32 1.442695, %v1952_v23 }
 0x3b2   : > { %13686 = vst [vmem:[#allocation48_spill] sm:$0xff] %v9905_v8  ;;  %v6912_v20 = vpop.eup %6911 }
 0x3b3   : > { %6382 = vmatmul.msk.bf16.gmra.mxu0 %vm1550_vm0, %v13687_v32  ;;  %1916 = vmax.xlane.f32.xlu2 %v1915_v58  ;;  %6913 = vpow2.f32 %v2045_v26  ;;  %v9921_v34 = vadd.f32 %v6912_v20, %v6910_v2  ;;  %v13691_v58 = vld [vmem:[#allocation81_spill] sm:$0xff] }
 0x3b4   : > { %6915 = vpow2.f32 %v2047_v63 }
 0x3b5   : > { %13689 = vst [vmem:[#allocation18_spill] sm:$0xff] %v9921_v34 }
 0x3b6   : > { %v1822_v15 = vpop.f32.mrf.mxu1  ;;  %v1875_v23 = vpop.xlane.xlu0 %1874 }
 0x3b7   : > { %v9928_v30 = vadd.f32 %v1822_v15, %v1389_v29  ;;  %v1953_v22 = vsub.f32 %v9599_v50, %v1875_v23  ;;  %v1954_v26 = vsub.f32 %v13691_v58, %v1875_v23  ;;  %v7621_v15 = vld [vmem:[%s13426_s3] sm:$0xff]  ;;  %v13695_v23 = vld [vmem:[#allocation80_spill] sm:$0xff] }
 0x3b8   : > { %v9923_v44 = vpop.f32.mrf.mxu0  ;;  %v9932_v10 = vpop.xlane.xlu1 %2114 }
 0x3b9   : > { %13690 = vst [vmem:[#allocation7_spill] sm:$0xff] %v9923_v44  ;;  %v1918_v32 = vmax.f32 %v9926_v57, %v9928_v30  ;;  %v6914_v34 = vpop.eup %6913  ;;  %v2049_v63 = vmul.f32 1.442695, %v1953_v22  ;;  %v2051_v35 = vmul.f32 1.442695, %v1954_v26  ;;  %v9944_v22 = vadd.f32 %v7621_v15, %v13695_v23 }
 0x3ba   : > { %13692 = vst [vmem:[#allocation61_spill] sm:$0xff] %v9932_v10  ;;  %v6916_v8 = vpop.eup %6915  ;;  %v2223_v44 = vpack.c.bf16 %v6914_v34, %v6910_v2 }
 0x3bb   : > { %1919 = vmax.xlane.f32.xlu2 %v1918_v32  ;;  %6917 = vpow2.f32 %v2049_v63  ;;  %v2224_v45 = vpack.c.bf16 %v6916_v8, %v6912_v20  ;;  %v9936_v27 = vadd.f32 %v6916_v8, %v6914_v34  ;;  %v7622_v32 = vld [vmem:[%s13426_s3 + $0x8] sm:$0xff]  ;;  %v13696_v8 = vld [vmem:[#allocation44_spill] sm:$0xff] }
 0x3bc   : > { %6919 = vpow2.f32 %v2051_v35  ;;  %2332 = vmatmul.bf16.gmra.mxu2 %v2223_v44  ;;  %v13697_v35 = vld [vmem:[#allocation5_spill] sm:$0xff] }
 0x3bd   : > { %13693 = vst [vmem:[#allocation63_spill] sm:$0xff] %v9936_v27  ;;  %2421 = vmatmul.bf16.gmra.mxu3 %v2224_v45  ;;  %v13700_v27 = vld [vmem:[#allocation82_spill] sm:$0xff] }
 0x3be   : > { %v2709_v29 = vpop.f32.mrf.mxu1 }
 0x3bf   : > { %v9949_v2 = vadd.f32 %v7622_v32, %v2709_v29 }
 0x3c0   : > { %v9938_v50 = vpop.f32.mrf.mxu0 }
 0x3c1   : > { %13694 = vst [vmem:[#allocation62_spill] sm:$0xff] %v9938_v50  ;;  %6391 = vmatmul.msk.bf16.gmra.mxu1 %vm1550_vm0, %v13696_v8  ;;  %v2789_v20 = vmax.f32 %v9944_v22, %v9949_v2  ;;  %v6918_v34 = vpop.eup %6917  ;;  %v7623_v8 = vld [vmem:[%s13426_s3 + $0x10] sm:$0xff] }
 0x3c2   : > { %v6920_v44 = vpop.eup %6919  ;;  %v1878_v58 = vpop.xlane.xlu1 %1877  ;;  %v9967_v10 = vadd.f32 %v7623_v8, %v13700_v27 }
 0x3c3   : > { %6399 = vmatmul.msk.bf16.vlgmr.msrb.gmra.mxu0 %vm1550_vm0, %v13697_v35  ;;  %2790 = vmax.xlane.f32.xlu0 %v2789_v20  ;;  %v1955_v26 = vsub.f32 %v9627_v38, %v1878_v58  ;;  %v1956_v63 = vsub.f32 %v9622_v11, %v1878_v58  ;;  %v9959_v45 = vadd.f32 %v6920_v44, %v6918_v34  ;;  %v7624_v38 = vld [vmem:[%s13426_s3 + $0x18] sm:$0xff] }
 0x3c5   : > { %13698 = vst [vmem:[#allocation56_spill] sm:$0xff] %v9959_v45  ;;  %v2053_v29 = vmul.f32 1.442695, %v1955_v26  ;;  %v2055_v15 = vmul.f32 1.442695, %v1956_v63 }
 0x3c6   : > { %v2711_v32 = vpop.f32.mrf.mxu1 }
 0x3c7   : > { %v9972_v20 = vadd.f32 %v7624_v38, %v2711_v32  ;;  %6921 = vpow2.f32 %v2053_v29  ;;  %v7625_v29 = vld [vmem:[%s13426_s3 + $0x20] sm:$0xff]  ;;  %v9986_v32 = vpop.xlane.xlu2 %2117 }
 0x3c8   : > { %v9961_v23 = vpop.f32.mrf.mxu0  ;;  %6923 = vpow2.f32 %v2055_v15  ;;  %v9984_v15 = vadd.f32 %v7625_v29, %v9635_v53  ;;  %13701 = vst [vmem:[#allocation64_spill] sm:$0xff] %v9986_v32  ;;  %v13704_v29 = vld [vmem:[#allocation6_spill] sm:$0xff] }
 0x3c9   : > { %13699 = vst [vmem:[#allocation25_spill] sm:$0xff] %v9961_v23  ;;  %v2792_v11 = vmax.f32 %v9967_v10, %v9972_v20 }
 0x3ca   : > { %v1881_v58 = vpop.xlane.xlu1 %1880 }
 0x3cb   : > { %2793 = vmax.xlane.f32.xlu1 %v2792_v11  ;;  %v1957_v26 = vsub.f32 %v9651_v55, %v1881_v58  ;;  %v1958_v63 = vsub.f32 %v9642_v4, %v1881_v58  ;;  %v7626_v4 = vld [vmem:[%s13426_s3 + $0x28] sm:$0xff] }
 0x3cd   : > { %v6922_v45 = vpop.eup %6921  ;;  %v2057_v27 = vmul.f32 1.442695, %v1957_v26  ;;  %v2059_v8 = vmul.f32 1.442695, %v1958_v63 }
 0x3ce   : > { %v2714_v35 = vpop.f32.mrf.mxu1  ;;  %v6924_v50 = vpop.eup %6923  ;;  %v2225_v38 = vpack.c.bf16 %v6922_v45, %v6918_v34 }
 0x3cf   : > { %v9991_v55 = vadd.f32 %v7626_v4, %v2714_v35  ;;  %6925 = vpow2.f32 %v2057_v27  ;;  %v2226_v11 = vpack.c.bf16 %v6924_v50, %v6920_v44  ;;  %v2298_v58 = vpop.f32.mrf.mxu2  ;;  %v9993_v26 = vadd.f32 %v6924_v50, %v6922_v45 }
 0x3d0   : > { %v9978_v23 = vpop.f32.mrf.mxu0  ;;  %6927 = vpow2.f32 %v2059_v8  ;;  %2337 = vmatmul.bf16.gmra.mxu2 %v2225_v38  ;;  %v2387_v63 = vpop.f32.mrf.mxu3 }
 0x3d1   : > { %13702 = vst [vmem:[#allocation67_spill] sm:$0xff] %v9993_v26  ;;  %6392 = vmatmul.msk.bf16.gmra.mxu1 %vm1550_vm0, %v9142_v19  ;;  %v2795_v53 = vmax.f32 %v9984_v15, %v9991_v55  ;;  %2426 = vmatmul.bf16.gmra.mxu3 %v2226_v11  ;;  %v9999_v34 = vadd.f32 %v2387_v63, %v2298_v58  ;;  %v7627_v11 = vld [vmem:[%s13426_s3 + $0x30] sm:$0xff]  ;;  %v10013_v63 = vpop.xlane.xlu0 %2120 }
 0x3d2   : > { %v1884_v35 = vpop.xlane.xlu1 %1883  ;;  %v10011_v58 = vadd.f32 %v7627_v11, %v9661_v16  ;;  %13705 = vst [vmem:[#allocation71_spill] sm:$0xff] %v10013_v63 }
 0x3d3   : > { %13703 = vst [vmem:[#allocation66_spill] sm:$0xff] %v9999_v34  ;;  %6400 = vmatmul.msk.bf16.gmra.mxu0 %vm1550_vm0, %v13704_v29  ;;  %2796 = vmax.xlane.f32.xlu2 %v2795_v53  ;;  %v1959_v50 = vsub.f32 %v9671_v6, %v1884_v35  ;;  %v1960_v44 = vsub.f32 %v9668_v3, %v1884_v35  ;;  %v7628_v3 = vld [vmem:[%s13426_s3 + $0x38] sm:$0xff] }
 0x3d5   : > { %v6926_v45 = vpop.eup %6925  ;;  %v2061_v27 = vmul.f32 1.442695, %v1959_v50  ;;  %v2063_v8 = vmul.f32 1.442695, %v1960_v44 }
 0x3d6   : > { %v2716_v19 = vpop.f32.mrf.mxu1  ;;  %v6928_v4 = vpop.eup %6927 }
 0x3d7   : > { %v10018_v6 = vadd.f32 %v7628_v3, %v2716_v19  ;;  %v1887_v53 = vpop.xlane.xlu2 %1886  ;;  %6929 = vpow2.f32 %v2061_v27  ;;  %v2300_v44 = vpop.f32.mrf.mxu2  ;;  %v10022_v26 = vadd.f32 %v6928_v4, %v6926_v45 }
 0x3d8   : > { %v10005_v38 = vpop.f32.mrf.mxu0  ;;  %v1961_v35 = vsub.f32 %v9689_v49, %v1887_v53  ;;  %v1962_v50 = vsub.f32 %v9693_v9, %v1887_v53  ;;  %6931 = vpow2.f32 %v2063_v8  ;;  %v2389_v16 = vpop.f32.mrf.mxu3  ;;  %v7629_v8 = vld [vmem:[%s13426_s3 + $0x40] sm:$0xff] }
 0x3d9   : > { %13706 = vst [vmem:[#allocation31_spill] sm:$0xff] %v10022_v26  ;;  %v2798_v11 = vmax.f32 %v10011_v58, %v10018_v6  ;;  %v10026_v32 = vadd.f32 %v2389_v16, %v2300_v44  ;;  %v10036_v53 = vadd.f32 %v7629_v8, %v9686_v31 }
 0x3da   : > { %v2065_v63 = vmul.f32 1.442695, %v1961_v35  ;;  %v2067_v34 = vmul.f32 1.442695, %v1962_v50  ;;  %v10028_v19 = vpop.xlane.xlu1 %2123  ;;  %v7630_v50 = vld [vmem:[%s13426_s3 + $0x48] sm:$0xff] }
 0x3db   : > { %13707 = vst [vmem:[#allocation70_spill] sm:$0xff] %v10026_v32  ;;  %2799 = vmax.xlane.f32.xlu0 %v2798_v11 }
 0x3dc   : > { %13708 = vst [vmem:[#allocation75_spill] sm:$0xff] %v10028_v19  ;;  %6933 = vpow2.f32 %v2065_v63 }
 0x3dd   : > { %6935 = vpow2.f32 %v2067_v34  ;;  %v6930_v49 = vpop.eup %6929 }
 0x3de   : > { %v2719_v9 = vpop.f32.mrf.mxu1  ;;  %v6932_v3 = vpop.eup %6931  ;;  %v2227_v35 = vpack.c.bf16 %v6930_v49, %v6926_v45 }
 0x3df   : > { %v10041_v44 = vadd.f32 %v7630_v50, %v2719_v9  ;;  %v1890_v34 = vpop.xlane.xlu0 %1889  ;;  %v2228_v63 = vpack.c.bf16 %v6932_v3, %v6928_v4  ;;  %v2303_v26 = vpop.f32.mrf.mxu2  ;;  %v10045_v19 = vadd.f32 %v6932_v3, %v6930_v49 }
 0x3e0   : > { %v10030_v27 = vpop.f32.mrf.mxu0  ;;  %v1963_v16 = vsub.f32 %v9715_v56, %v1890_v34  ;;  %v1964_v11 = vsub.f32 %v9719_v37, %v1890_v34  ;;  %2342 = vmatmul.bf16.gmra.mxu2 %v2227_v35  ;;  %v2392_v45 = vpop.f32.mrf.mxu3  ;;  %v13711_v56 = vld [vmem:[#allocation10_spill] sm:$0xff]  ;;  %v7631_v34 = vld [vmem:[%s13426_s3 + $0x50] sm:$0xff] }
 0x3e1   : > { %13709 = vst [vmem:[#allocation76_spill] sm:$0xff] %v10045_v19  ;;  %v2801_v31 = vmax.f32 %v10036_v53, %v10041_v44  ;;  %6393 = vmatmul.msk.bf16.gmra.mxu1 %vm1550_vm0, %v9154_v40  ;;  %2431 = vmatmul.bf16.gmra.mxu3 %v2228_v63  ;;  %v10051_v4 = vadd.f32 %v2392_v45, %v2303_v26  ;;  %v7632_v63 = vld [vmem:[%s13426_s3 + $0x58] sm:$0xff] }
 0x3e2   : > { %v6934_v8 = vpop.eup %6933  ;;  %v2069_v9 = vmul.f32 1.442695, %v1963_v16  ;;  %v2071_v50 = vmul.f32 1.442695, %v1964_v11  ;;  %v10055_v49 = vpop.xlane.xlu1 %2126  ;;  %v10065_v26 = vadd.f32 %v7631_v34, %v9712_v25 }
 0x3e3   : > { %13710 = vst [vmem:[#allocation73_spill] sm:$0xff] %v10051_v4  ;;  %6401 = vmatmul.msk.bf16.gmra.mxu0 %vm1550_vm0, %v13711_v56  ;;  %v6936_v37 = vpop.eup %6935  ;;  %2802 = vmax.xlane.f32.xlu1 %v2801_v31 }
 0x3e4   : > { %13712 = vst [vmem:[#allocation32_spill] sm:$0xff] %v10055_v49  ;;  %6937 = vpow2.f32 %v2069_v9  ;;  %v10057_v3 = vadd.f32 %v6936_v37, %v6934_v8 }
 0x3e5   : > { %6939 = vpow2.f32 %v2071_v50 }
 0x3e6   : > { %13713 = vst [vmem:[#allocation81_spill] sm:$0xff] %v10057_v3  ;;  %v2721_v40 = vpop.f32.mrf.mxu1 }
 0x3e7   : > { %v10070_v16 = vadd.f32 %v7632_v63, %v2721_v40  ;;  %v10072_v11 = vpop.xlane.xlu0 %2129  ;;  %v2305_v31 = vpop.f32.mrf.mxu2 }
 0x3e8   : > { %v10059_v35 = vpop.f32.mrf.mxu0  ;;  %13715 = vst [vmem:[#allocation44_spill] sm:$0xff] %v10072_v11  ;;  %v2394_v45 = vpop.f32.mrf.mxu3 }
 0x3e9   : > { %13714 = vst [vmem:[#allocation80_spill] sm:$0xff] %v10059_v35  ;;  %v2804_v9 = vmax.f32 %v10065_v26, %v10070_v16  ;;  %v10076_v3 = vadd.f32 %v2394_v45, %v2305_v31  ;;  %v7633_v31 = vld [vmem:[%s13426_s3 + $0x60] sm:$0xff] }
 0x3ea   : > { %v6938_v50 = vpop.eup %6937  ;;  %v1893_v4 = vpop.xlane.xlu1 %1892  ;;  %v10088_v45 = vadd.f32 %v7633_v31, %v9731_v43 }
 0x3eb   : > { %13716 = vst [vmem:[#allocation82_spill] sm:$0xff] %v10076_v3  ;;  %v6940_v19 = vpop.eup %6939  ;;  %2805 = vmax.xlane.f32.xlu0 %v2804_v9  ;;  %v1965_v25 = vsub.f32 %v9745_v33, %v1893_v4  ;;  %v1966_v34 = vsub.f32 %v9736_v18, %v1893_v4  ;;  %v2229_v49 = vpack.c.bf16 %v6938_v50, %v6934_v8  ;;  %v7634_v18 = vld [vmem:[%s13426_s3 + $0x68] sm:$0xff]  ;;  %v10115_v31 = vpop.xlane.xlu2 %2132 }
 0x3ec   : > { %v10080_v40 = vadd.f32 %v6940_v19, %v6938_v50  ;;  %v2230_v32 = vpack.c.bf16 %v6940_v19, %v6936_v37  ;;  %13721 = vst [vmem:[#allocation85_spill] sm:$0xff] %v10115_v31 }
 0x3ed   : > { %v2073_v63 = vmul.f32 1.442695, %v1965_v25  ;;  %v2075_v11 = vmul.f32 1.442695, %v1966_v34  ;;  %v13719_v34 = vld [vmem:[#allocation17_spill] sm:$0xff] }
 0x3ee   : > { %13717 = vst [vmem:[#allocation6_spill] sm:$0xff] %v10080_v40  ;;  %v2724_v56 = vpop.f32.mrf.mxu1 }
 0x3ef   : > { %v10093_v33 = vadd.f32 %v7634_v18, %v2724_v56  ;;  %v1896_v8 = vpop.xlane.xlu0 %1895  ;;  %6941 = vpow2.f32 %v2073_v63  ;;  %v2308_v37 = vpop.f32.mrf.mxu2  ;;  %v7636_v18 = vld [vmem:[%s13426_s3 + $0x78] sm:$0xff] }
 0x3f0   : > { %v10082_v35 = vpop.f32.mrf.mxu0  ;;  %v1967_v19 = vsub.f32 %v9759_v52, %v1896_v8  ;;  %v1968_v4 = vsub.f32 %v9761_v41, %v1896_v8  ;;  %6943 = vpow2.f32 %v2075_v11  ;;  %2347 = vmatmul.bf16.gmra.mxu2 %v2229_v49  ;;  %v2397_v9 = vpop.f32.mrf.mxu3 }
 0x3f1   : > { %6394 = vmatmul.msk.bf16.gmra.mxu1 %vm1550_vm0, %v13655_v28  ;;  %v2807_v43 = vmax.f32 %v10088_v45, %v10093_v33  ;;  %2436 = vmatmul.bf16.gmra.mxu3 %v2230_v32  ;;  %v10101_v25 = vadd.f32 %v2397_v9, %v2308_v37  ;;  %v7635_v32 = vld [vmem:[%s13426_s3 + $0x70] sm:$0xff] }
 0x3f2   : > { %v2077_v50 = vmul.f32 1.442695, %v1967_v19  ;;  %v2079_v56 = vmul.f32 1.442695, %v1968_v4  ;;  %v10105_v52 = vpop.xlane.xlu1 %2135  ;;  %v10113_v63 = vadd.f32 %v7635_v32, %v9756_v59 }
 0x3f3   : > { %13718 = vst [vmem:[#allocation84_spill] sm:$0xff] %v10101_v25  ;;  %6402 = vmatmul.msk.bf16.gmra.mxu0 %vm1550_vm0, %v13719_v34  ;;  %2808 = vmax.xlane.f32.xlu0 %v2807_v43 }
 0x3f4   : > { %13720 = vst [vmem:[#allocation17_spill] sm:$0xff] %v10105_v52  ;;  %6945 = vpow2.f32 %v2077_v50 }
 0x3f5   : > { %6947 = vpow2.f32 %v2079_v56  ;;  %v6942_v41 = vpop.eup %6941 }
 0x3f6   : > { %v2726_v28 = vpop.f32.mrf.mxu1  ;;  %v6944_v11 = vpop.eup %6943 }
 0x3f7   : > { %v10120_v8 = vadd.f32 %v7636_v18, %v2726_v28  ;;  %v2310_v19 = vpop.f32.mrf.mxu2  ;;  %v10122_v4 = vadd.f32 %v6944_v11, %v6942_v41 }
 0x3f8   : > { %v10107_v49 = vpop.f32.mrf.mxu0  ;;  %v2399_v37 = vpop.f32.mrf.mxu3 }
 0x3f9   : > { %13722 = vst [vmem:[#allocation86_spill] sm:$0xff] %v10122_v4  ;;  %v2810_v9 = vmax.f32 %v10113_v63, %v10120_v8  ;;  %v10126_v50 = vadd.f32 %v2399_v37, %v2310_v19  ;;  %v7637_v19 = vld [vmem:[%s13426_s3 + $0x80] sm:$0xff] }
 0x3fa   : > { %v6946_v43 = vpop.eup %6945  ;;  %v1899_v56 = vpop.xlane.xlu1 %1898  ;;  %v10138_v37 = vadd.f32 %v7637_v19, %v9771_v62 }
 0x3fb   : > { %13723 = vst [vmem:[#allocation87_spill] sm:$0xff] %v10126_v50  ;;  %v6948_v59 = vpop.eup %6947  ;;  %2811 = vmax.xlane.f32.xlu2 %v2810_v9  ;;  %v1969_v32 = vsub.f32 %v9785_v7, %v1899_v56  ;;  %v1970_v40 = vsub.f32 %v9776_v21, %v1899_v56  ;;  %v2231_v25 = vpack.c.bf16 %v6946_v43, %v6942_v41  ;;  %v7638_v21 = vld [vmem:[%s13426_s3 + $0x88] sm:$0xff] }
 0x3fc   : > { %v10130_v28 = vadd.f32 %v6948_v59, %v6946_v43  ;;  %v2232_v4 = vpack.c.bf16 %v6948_v59, %v6944_v11 }
 0x3fd   : > { %v2081_v18 = vmul.f32 1.442695, %v1969_v32  ;;  %v2083_v3 = vmul.f32 1.442695, %v1970_v40  ;;  %v13726_v32 = vld [vmem:[#allocation21_spill] sm:$0xff] }
 0x3fe   : > { %13724 = vst [vmem:[#allocation88_spill] sm:$0xff] %v10130_v28  ;;  %v2729_v31 = vpop.f32.mrf.mxu1  ;;  %v1902_v41 = vpop.xlane.xlu2 %1901 }
 0x3ff   : > { %v10143_v7 = vadd.f32 %v7638_v21, %v2729_v31  ;;  %6949 = vpow2.f32 %v2081_v18  ;;  %v1971_v40 = vsub.f32 %v9800_v14, %v1902_v41  ;;  %v1972_v11 = vsub.f32 %v9802_v0, %v1902_v41  ;;  %v2313_v9 = vpop.f32.mrf.mxu2  ;;  %v7640_v18 = vld [vmem:[%s13426_s3 + $0x98] sm:$0xff] }
 0x400   : > { %v10132_v52 = vpop.f32.mrf.mxu0  ;;  %6951 = vpow2.f32 %v2083_v3  ;;  %2352 = vmatmul.bf16.gmra.mxu2 %v2231_v25  ;;  %v2402_v62 = vpop.f32.mrf.mxu3 }
 0x401   : > { %v2813_v43 = vmax.f32 %v10138_v37, %v10143_v7  ;;  %6395 = vmatmul.msk.bf16.gmra.mxu1 %vm1550_vm0, %v13661_v13  ;;  %2441 = vmatmul.bf16.gmra.mxu3 %v2232_v4  ;;  %v2085_v59 = vmul.f32 1.442695, %v1971_v40  ;;  %v2087_v31 = vmul.f32 1.442695, %v1972_v11  ;;  %v10151_v56 = vadd.f32 %v2402_v62, %v2313_v9  ;;  %v7639_v13 = vld [vmem:[%s13426_s3 + $0x90] sm:$0xff] }
 0x402   : > { %v10161_v4 = vadd.f32 %v7639_v13, %v9797_v39 }
 0x403   : > { %13725 = vst [vmem:[#allocation89_spill] sm:$0xff] %v10151_v56  ;;  %6403 = vmatmul.msk.bf16.gmra.mxu0 %vm1550_vm0, %v13726_v32  ;;  %2814 = vmax.xlane.f32.xlu1 %v2813_v43  ;;  %6953 = vpow2.f32 %v2085_v59 }
 0x404   : > { %6955 = vpow2.f32 %v2087_v31 }
 0x405   : > { %v6950_v14 = vpop.eup %6949 }
 0x406   : > { %v2731_v3 = vpop.f32.mrf.mxu1  ;;  %v6952_v25 = vpop.eup %6951 }
 0x407   : > { %v10166_v19 = vadd.f32 %v7640_v18, %v2731_v3  ;;  %v1905_v21 = vpop.xlane.xlu0 %1904  ;;  %v2315_v11 = vpop.f32.mrf.mxu2  ;;  %v10170_v9 = vadd.f32 %v6952_v25, %v6950_v14 }
 0x408   : > { %v10155_v0 = vpop.f32.mrf.mxu0  ;;  %v1973_v41 = vsub.f32 %v9819_v1, %v1905_v21  ;;  %v1974_v40 = vsub.f32 %v9821_v42, %v1905_v21  ;;  %v2404_v43 = vpop.f32.mrf.mxu3 }
 0x409   : > { %13727 = vst [vmem:[#allocation21_spill] sm:$0xff] %v10170_v9  ;;  %v2816_v62 = vmax.f32 %v10161_v4, %v10166_v19  ;;  %v6954_v39 = vpop.eup %6953  ;;  %v10174_v13 = vadd.f32 %v2404_v43, %v2315_v11  ;;  %v7641_v9 = vld [vmem:[%s13426_s3 + $0xa0] sm:$0xff] }
 0x40a   : > { %v2089_v59 = vmul.f32 1.442695, %v1973_v41  ;;  %v2091_v31 = vmul.f32 1.442695, %v1974_v40  ;;  %v6956_v28 = vpop.eup %6955  ;;  %v2233_v1 = vpack.c.bf16 %v6954_v39, %v6950_v14  ;;  %v10184_v41 = vadd.f32 %v7641_v9, %v9816_v47  ;;  %v7642_v40 = vld [vmem:[%s13426_s3 + $0xa8] sm:$0xff] }
 0x40b   : > { %13728 = vst [vmem:[#allocation90_spill] sm:$0xff] %v10174_v13  ;;  %2817 = vmax.xlane.f32.xlu0 %v2816_v62  ;;  %v10176_v3 = vadd.f32 %v6956_v28, %v6954_v39  ;;  %v2234_v42 = vpack.c.bf16 %v6956_v28, %v6952_v25 }
 0x40c   : > { %6957 = vpow2.f32 %v2089_v59 }
 0x40d   : > { %13729 = vst [vmem:[#allocation91_spill] sm:$0xff] %v10176_v3  ;;  %6959 = vpow2.f32 %v2091_v31 }
 0x40e   : > { %v2734_v21 = vpop.f32.mrf.mxu1 }
 0x40f   : > { %v10189_v11 = vadd.f32 %v7642_v40, %v2734_v21  ;;  %v1908_v43 = vpop.xlane.xlu0 %1907  ;;  %v2318_v25 = vpop.f32.mrf.mxu2  ;;  %v13731_v21 = vld [vmem:[#allocation26_spill] sm:$0xff] }
 0x410   : > { %v10178_v18 = vpop.f32.mrf.mxu0  ;;  %v1975_v14 = vsub.f32 %v9842_v51, %v1908_v43  ;;  %v1976_v28 = vsub.f32 %v9844_v48, %v1908_v43  ;;  %2357 = vmatmul.bf16.gmra.mxu2 %v2233_v1  ;;  %v2407_v39 = vpop.f32.mrf.mxu3  ;;  %v7644_v43 = vld [vmem:[%s13426_s3 + $0xb8] sm:$0xff] }
 0x411   : > { %v2819_v62 = vmax.f32 %v10184_v41, %v10189_v11  ;;  %6396 = vmatmul.msk.bf16.gmra.mxu1 %vm1550_vm0, %v13669_v24  ;;  %2446 = vmatmul.bf16.gmra.mxu3 %v2234_v42  ;;  %v10197_v31 = vadd.f32 %v2407_v39, %v2318_v25  ;;  %v7643_v24 = vld [vmem:[%s13426_s3 + $0xb0] sm:$0xff] }
 0x412   : > { %v6958_v47 = vpop.eup %6957  ;;  %v2093_v9 = vmul.f32 1.442695, %v1975_v14  ;;  %v2095_v59 = vmul.f32 1.442695, %v1976_v28  ;;  %v10209_v42 = vadd.f32 %v7643_v24, %v9839_v17 }
 0x413   : > { %13730 = vst [vmem:[#allocation92_spill] sm:$0xff] %v10197_v31  ;;  %6404 = vmatmul.msk.bf16.gmra.mxu0 %vm1550_vm0, %v13731_v21  ;;  %v6960_v51 = vpop.eup %6959  ;;  %2820 = vmax.xlane.f32.xlu1 %v2819_v62 }
 0x414   : > { %6961 = vpow2.f32 %v2093_v9  ;;  %v10201_v48 = vadd.f32 %v6960_v51, %v6958_v47 }
 0x415   : > { %6963 = vpow2.f32 %v2095_v59 }
 0x416   : > { %13732 = vst [vmem:[#allocation26_spill] sm:$0xff] %v10201_v48  ;;  %v2736_v40 = vpop.f32.mrf.mxu1 }
 0x417   : > { %v10214_v14 = vadd.f32 %v7644_v43, %v2736_v40  ;;  %v1911_v28 = vpop.xlane.xlu0 %1910  ;;  %v2320_v39 = vpop.f32.mrf.mxu2 }
 0x418   : > { %v10203_v1 = vpop.f32.mrf.mxu0  ;;  %v1977_v25 = vsub.f32 %v9861_v60, %v1911_v28  ;;  %v1978_v62 = vsub.f32 %v9863_v36, %v1911_v28  ;;  %v2409_v9 = vpop.f32.mrf.mxu3  ;;  %v7645_v28 = vld [vmem:[%s13426_s3 + $0xc0] sm:$0xff] }
 0x419   : > { %v2822_v59 = vmax.f32 %v10209_v42, %v10214_v14  ;;  %v10220_v24 = vadd.f32 %v2409_v9, %v2320_v39 }
 0x41a   : > { %v6962_v48 = vpop.eup %6961  ;;  %v2097_v3 = vmul.f32 1.442695, %v1977_v25  ;;  %v2099_v17 = vmul.f32 1.442695, %v1978_v62  ;;  %v10230_v25 = vadd.f32 %v7645_v28, %v9858_v5  ;;  %v7646_v62 = vld [vmem:[%s13426_s3 + $0xc8] sm:$0xff] }
 0x41b   : > { %13733 = vst [vmem:[#allocation93_spill] sm:$0xff] %v10220_v24  ;;  %v6964_v50 = vpop.eup %6963  ;;  %2823 = vmax.xlane.f32.xlu0 %v2822_v59  ;;  %v2235_v43 = vpack.c.bf16 %v6962_v48, %v6958_v47  ;;  %v13735_v59 = vld [vmem:[#allocation57_spill] sm:$0xff] }
 0x41c   : > { %6965 = vpow2.f32 %v2097_v3  ;;  %v10222_v40 = vadd.f32 %v6964_v50, %v6962_v48  ;;  %v2236_v60 = vpack.c.bf16 %v6964_v50, %v6960_v51 }
 0x41d   : > { %6967 = vpow2.f32 %v2099_v17 }
 0x41e   : > { %13734 = vst [vmem:[#allocation94_spill] sm:$0xff] %v10222_v40  ;;  %v2739_v36 = vpop.f32.mrf.mxu1  ;;  %v1914_v39 = vpop.xlane.xlu1 %1913 }
 0x41f   : > { %v10235_v3 = vadd.f32 %v7646_v62, %v2739_v36  ;;  %v1979_v47 = vsub.f32 %v9884_v61, %v1914_v39  ;;  %v1980_v50 = vsub.f32 %v9886_v46, %v1914_v39  ;;  %v2323_v51 = vpop.f32.mrf.mxu2  ;;  %v13737_v62 = vld [vmem:[#allocation30_spill] sm:$0xff] }
 0x420   : > { %v10224_v13 = vpop.f32.mrf.mxu0  ;;  %2362 = vmatmul.bf16.gmra.mxu2 %v2235_v43  ;;  %v2412_v9 = vpop.f32.mrf.mxu3 }
 0x421   : > { %v2825_v48 = vmax.f32 %v10230_v25, %v10235_v3  ;;  %6397 = vmatmul.msk.bf16.gmra.mxu1 %vm1550_vm0, %v13735_v59  ;;  %2451 = vmatmul.bf16.gmra.mxu3 %v2236_v60  ;;  %v2101_v17 = vmul.f32 1.442695, %v1979_v47  ;;  %v2103_v28 = vmul.f32 1.442695, %v1980_v50  ;;  %v10243_v36 = vadd.f32 %v2412_v9, %v2323_v51  ;;  %v7647_v60 = vld [vmem:[%s13426_s3 + $0xd0] sm:$0xff]  ;;  %v7648_v50 = vld [vmem:[%s13426_s3 + $0xd8] sm:$0xff] }
 0x422   : > { %v6966_v5 = vpop.eup %6965  ;;  %v10255_v47 = vadd.f32 %v7647_v60, %v9881_v54  ;;  %v13740_v59 = vld [vmem:[#allocation48_spill] sm:$0xff] }
 0x423   : > { %13736 = vst [vmem:[#allocation57_spill] sm:$0xff] %v10243_v36  ;;  %6405 = vmatmul.msk.bf16.gmra.mxu0 %vm1550_vm0, %v13737_v62  ;;  %v6968_v61 = vpop.eup %6967  ;;  %2826 = vmax.xlane.f32.xlu1 %v2825_v48  ;;  %6969 = vpow2.f32 %v2101_v17 }
 0x424   : > { %v10247_v46 = vadd.f32 %v6968_v61, %v6966_v5  ;;  %6971 = vpow2.f32 %v2103_v28 }
 0x426   : > { %13738 = vst [vmem:[#allocation30_spill] sm:$0xff] %v10247_v46  ;;  %v2741_v39 = vpop.f32.mrf.mxu1  ;;  %v1917_v48 = vpop.xlane.xlu2 %1916 }
 0x427   : > { %v10260_v51 = vadd.f32 %v7648_v50, %v2741_v39  ;;  %v1981_v9 = vsub.f32 %v9903_v12, %v1917_v48  ;;  %v1982_v17 = vsub.f32 %v13740_v59, %v1917_v48  ;;  %v2325_v28 = vpop.f32.mrf.mxu2  ;;  %v7649_v59 = vld [vmem:[%s13426_s3 + $0xe0] sm:$0xff] }
 0x428   : > { %v10249_v43 = vpop.f32.mrf.mxu0  ;;  %v2414_v46 = vpop.f32.mrf.mxu3 }
 0x429   : > { %13739 = vst [vmem:[#allocation95_spill] sm:$0xff] %v10249_v43  ;;  %v2828_v40 = vmax.f32 %v10255_v47, %v10260_v51  ;;  %v6970_v56 = vpop.eup %6969  ;;  %v2105_v36 = vmul.f32 1.442695, %v1981_v9  ;;  %v2107_v54 = vmul.f32 1.442695, %v1982_v17  ;;  %v10266_v60 = vadd.f32 %v2414_v46, %v2325_v28  ;;  %v13743_v43 = vld [vmem:[#allocation60_spill] sm:$0xff] }
 0x42a   : > { %v6972_v24 = vpop.eup %6971  ;;  %v2237_v50 = vpack.c.bf16 %v6970_v56, %v6966_v5  ;;  %v10276_v9 = vadd.f32 %v7649_v59, %v13743_v43  ;;  %v13744_v28 = vld [vmem:[#allocation77_spill] sm:$0xff] }
 0x42b   : > { %13741 = vst [vmem:[#allocation48_spill] sm:$0xff] %v10266_v60  ;;  %2829 = vmax.xlane.f32.xlu0 %v2828_v40  ;;  %6973 = vpow2.f32 %v2105_v36  ;;  %v10268_v39 = vadd.f32 %v6972_v24, %v6970_v56  ;;  %v2238_v12 = vpack.c.bf16 %v6972_v24, %v6968_v61  ;;  %v7650_v40 = vld [vmem:[%s13426_s3 + $0xe8] sm:$0xff] }
 0x42c   : > { %6975 = vpow2.f32 %v2107_v54 }
 0x42d   : > { %13742 = vst [vmem:[#allocation96_spill] sm:$0xff] %v10268_v39 }
 0x42e   : > { %v2744_v48 = vpop.f32.mrf.mxu1  ;;  %v1920_v46 = vpop.xlane.xlu2 %1919 }
 0x42f   : > { %v10281_v36 = vadd.f32 %v7650_v40, %v2744_v48  ;;  %v1983_v56 = vsub.f32 %v9926_v57, %v1920_v46  ;;  %v1984_v24 = vsub.f32 %v9928_v30, %v1920_v46  ;;  %v2328_v5 = vpop.f32.mrf.mxu2  ;;  %v13746_v40 = vld [vmem:[#allocation34_spill] sm:$0xff] }
 0x430   : > { %v10270_v31 = vpop.f32.mrf.mxu0  ;;  %2367 = vmatmul.bf16.gmra.mxu2 %v2237_v50  ;;  %v2417_v17 = vpop.f32.mrf.mxu3 }
 0x431   : > { %v2831_v61 = vmax.f32 %v10276_v9, %v10281_v36  ;;  %6398 = vmatmul.msk.bf16.gmra.mxu1 %vm1550_vm0, %v13744_v28  ;;  %v6974_v43 = vpop.eup %6973  ;;  %2456 = vmatmul.bf16.gmra.mxu3 %v2238_v12  ;;  %v2109_v54 = vmul.f32 1.442695, %v1983_v56  ;;  %v2111_v59 = vmul.f32 1.442695, %v1984_v24  ;;  %v10289_v48 = vadd.f32 %v2417_v17, %v2328_v5  ;;  %v7651_v12 = vld [vmem:[%s13426_s3 + $0xf0] sm:$0xff]  ;;  %v7652_v5 = vld [vmem:[%s13426_s3 + $0xf8] sm:$0xff] }
 0x432   : > { %v6976_v57 = vpop.eup %6975  ;;  %v13749_v56 = vld [vmem:[#allocation7_spill] sm:$0xff] }
 0x433   : > { %13745 = vst [vmem:[#allocation60_spill] sm:$0xff] %v10289_v48  ;;  %6406 = vmatmul.msk.bf16.gmra.mxu0 %vm1550_vm0, %v13746_v40  ;;  %2832 = vmax.xlane.f32.xlu1 %v2831_v61  ;;  %6977 = vpow2.f32 %v2109_v54  ;;  %v10293_v30 = vadd.f32 %v6976_v57, %v6974_v43  ;;  %v10301_v24 = vadd.f32 %v7651_v12, %v13749_v56 }
 0x434   : > { %6979 = vpow2.f32 %v2111_v59 }
 0x435   : > { %13747 = vst [vmem:[#allocation77_spill] sm:$0xff] %v10293_v30 }
 0x436   : > { %v2746_v46 = vpop.f32.mrf.mxu1  ;;  %v2791_v61 = vpop.xlane.xlu0 %2790 }
 0x437   : > { %v10306_v17 = vadd.f32 %v7652_v5, %v2746_v46  ;;  %v2885_v28 = vsub.f32 %v9944_v22, %v2791_v61  ;;  %v2886_v54 = vsub.f32 %v9949_v2, %v2791_v61  ;;  %v2330_v59 = vpop.f32.mrf.mxu2  ;;  %v7653_v61 = vld [vmem:[%s13426_s3 + $0x100] sm:$0xff] }
 0x438   : > { %v10295_v50 = vpop.f32.mrf.mxu0  ;;  %v2419_v30 = vpop.f32.mrf.mxu3 }
 0x439   : > { %13748 = vst [vmem:[#allocation97_spill] sm:$0xff] %v10295_v50  ;;  %v2834_v39 = vmax.f32 %v10301_v24, %v10306_v17  ;;  %v6978_v48 = vpop.eup %6977  ;;  %v2949_v60 = vmul.f32 1.442695, %v2885_v28  ;;  %v2951_v12 = vmul.f32 1.442695, %v2886_v54  ;;  %v10312_v56 = vadd.f32 %v2419_v30, %v2330_v59  ;;  %v13755_v59 = vld [vmem:[#allocation5_spill] sm:$0xff] }
 0x43a   : > { %13750 = vst [vmem:[#allocation7_spill] sm:$0xff] %v10306_v17  ;;  %v6980_v50 = vpop.eup %6979  ;;  %v2239_v5 = vpack.c.bf16 %v6978_v48, %v6974_v43  ;;  %v13754_v17 = vld [vmem:[#allocation62_spill] sm:$0xff] }
 0x43b   : > { %13751 = vst [vmem:[#allocation98_spill] sm:$0xff] %v10312_v56  ;;  %2835 = vmax.xlane.f32.xlu0 %v2834_v39  ;;  %6981 = vpow2.f32 %v2949_v60  ;;  %v10314_v46 = vadd.f32 %v6980_v50, %v6978_v48  ;;  %v2240_v22 = vpack.c.bf16 %v6980_v50, %v6976_v57  ;;  %v10322_v28 = vadd.f32 %v7653_v61, %v13754_v17  ;;  %v7654_v39 = vld [vmem:[%s13426_s3 + $0x108] sm:$0xff] }
 0x43c   : > { %6983 = vpow2.f32 %v2951_v12 }
 0x43d   : > { %13752 = vst [vmem:[#allocation99_spill] sm:$0xff] %v10314_v46 }
 0x43e   : > { %v2749_v40 = vpop.f32.mrf.mxu1  ;;  %v2794_v30 = vpop.xlane.xlu1 %2793 }
 0x43f   : > { %v10327_v60 = vadd.f32 %v7654_v39, %v2749_v40  ;;  %v2887_v43 = vsub.f32 %v9967_v10, %v2794_v30  ;;  %v2888_v48 = vsub.f32 %v9972_v20, %v2794_v30  ;;  %v2333_v57 = vpop.f32.mrf.mxu2  ;;  %v13757_v39 = vld [vmem:[#allocation37_spill] sm:$0xff] }
 0x440   : > { %v10316_v2 = vpop.f32.mrf.mxu0  ;;  %2372 = vmatmul.bf16.gmra.mxu2 %v2239_v5  ;;  %v2422_v54 = vpop.f32.mrf.mxu3 }
 0x441   : > { %13753 = vst [vmem:[#allocation100_spill] sm:$0xff] %v10316_v2  ;;  %v2837_v50 = vmax.f32 %v10322_v28, %v10327_v60  ;;  %6415 = vmatmul.msk.bf16.vlgmr.msra.gmra.mxu1 %vm1550_vm0, %v13755_v59  ;;  %v6982_v17 = vpop.eup %6981  ;;  %2461 = vmatmul.bf16.gmra.mxu3 %v2240_v22  ;;  %v2953_v12 = vmul.f32 1.442695, %v2887_v43  ;;  %v2955_v61 = vmul.f32 1.442695, %v2888_v48  ;;  %v10335_v40 = vadd.f32 %v2422_v54, %v2333_v57  ;;  %v7655_v22 = vld [vmem:[%s13426_s3 + $0x118] sm:$0xff] }
 0x442   : > { %v6984_v10 = vpop.eup %6983  ;;  %v7656_v57 = vld [vmem:[%s13426_s3 + $0x110] sm:$0xff]  ;;  %v13759_v54 = vld [vmem:[#allocation25_spill] sm:$0xff] }
 0x443   : > { %13756 = vst [vmem:[#allocation62_spill] sm:$0xff] %v10335_v40  ;;  %6407 = vmatmul.msk.bf16.gmra.mxu0 %vm1550_vm0, %v13757_v39  ;;  %2838 = vmax.xlane.f32.xlu1 %v2837_v50  ;;  %6985 = vpow2.f32 %v2953_v12  ;;  %v3077_v20 = vadd.f32 %v6984_v10, %v6982_v17  ;;  %v10350_v50 = vadd.f32 %v7656_v57, %v13759_v54 }
 0x444   : > { %6987 = vpow2.f32 %v2955_v61 }
 0x445   : > { %3078 = vadd.xlane.f32.xlu0 %v3077_v20 }
 0x446   : > { %v2751_v5 = vpop.f32.mrf.mxu1  ;;  %v2797_v48 = vpop.xlane.xlu2 %2796 }
 0x447   : > { %v10344_v43 = vadd.f32 %v7655_v22, %v2751_v5  ;;  %v2889_v59 = vsub.f32 %v9984_v15, %v2797_v48  ;;  %v2890_v12 = vsub.f32 %v9991_v55, %v2797_v48  ;;  %v2335_v61 = vpop.f32.mrf.mxu2  ;;  %v7657_v48 = vld [vmem:[%s13426_s3 + $0x128] sm:$0xff] }
 0x448   : > { %v10339_v30 = vpop.f32.mrf.mxu0  ;;  %v2424_v20 = vpop.f32.mrf.mxu3 }
 0x449   : > { %13758 = vst [vmem:[#allocation5_spill] sm:$0xff] %v10339_v30  ;;  %v6986_v46 = vpop.eup %6985  ;;  %v2840_v40 = vmax.f32 %v10350_v50, %v10344_v43  ;;  %v2957_v5 = vmul.f32 1.442695, %v2889_v59  ;;  %v2959_v22 = vmul.f32 1.442695, %v2890_v12  ;;  %v10356_v56 = vadd.f32 %v2424_v20, %v2335_v61  ;;  %v13762_v20 = vld [vmem:[#allocation79_spill] sm:$0xff] }
 0x44a   : > { %v6988_v30 = vpop.eup %6987  ;;  %v3173_v2 = vpack.c.bf16 %v6986_v46, %v6982_v17 }
 0x44b   : > { %13760 = vst [vmem:[#allocation25_spill] sm:$0xff] %v10356_v56  ;;  %6989 = vpow2.f32 %v2957_v5  ;;  %v3080_v39 = vadd.f32 %v6988_v30, %v6986_v46  ;;  %v3174_v57 = vpack.c.bf16 %v6988_v30, %v6984_v10  ;;  %v7658_v46 = vld [vmem:[%s13426_s3 + $0x120] sm:$0xff]  ;;  %v13763_v5 = vld [vmem:[#allocation40_spill] sm:$0xff] }
 0x44c   : > { %6991 = vpow2.f32 %v2959_v22  ;;  %v10371_v17 = vadd.f32 %v7658_v46, %v9978_v23  ;;  %v13761_v30 = vld [vmem:[#allocation41_spill] sm:$0xff]  ;;  %v7660_v46 = vld [vmem:[%s13426_s3 + $0x138] sm:$0xff] }
 0x44d   : > { %2841 = vmax.xlane.f32.xlu0 %v2840_v40  ;;  %3081 = vadd.xlane.f32.xlu1 %v3080_v39 }
 0x44e   : > { %v2754_v15 = vpop.f32.mrf.mxu1  ;;  %v2800_v55 = vpop.xlane.xlu0 %2799 }
 0x44f   : > { %v10361_v54 = vadd.f32 %v7657_v48, %v2754_v15  ;;  %v2891_v12 = vsub.f32 %v10011_v58, %v2800_v55  ;;  %v2892_v61 = vsub.f32 %v10018_v6, %v2800_v55  ;;  %v7659_v48 = vld [vmem:[%s13426_s3 + $0x130] sm:$0xff] }
 0x450   : > { %v10363_v59 = vpop.f32.mrf.mxu0  ;;  %3213 = vmatmul.bf16.vlgmr.msrb.gmra.mxu2 %v3173_v2 }
 0x451   : > { %v2961_v40 = vmul.f32 1.442695, %v2891_v12  ;;  %v2963_v39 = vmul.f32 1.442695, %v2892_v61  ;;  %6416 = vmatmul.msk.bf16.gmra.mxu1 %vm1550_vm0, %v13704_v29  ;;  %v6990_v10 = vpop.eup %6989  ;;  %3302 = vmatmul.bf16.vlgmr.msrb.gmra.mxu3 %v3174_v57  ;;  %v2843_v6 = vmax.f32 %v10371_v17, %v10361_v54  ;;  %v13765_v29 = vld [vmem:[#allocation33_spill] sm:$0xff]  ;;  %v10388_v12 = vadd.f32 %v7659_v48, %v10005_v38 }
 0x452   : > { %5165 = vmatpush.bf16.msrb.mxu2 %v13761_v30  ;;  %v6992_v58 = vpop.eup %6991  ;;  %5254 = vmatpush.bf16.msrb.mxu3 %v13762_v20  ;;  %v13766_v61 = vld [vmem:[#allocation65_spill] sm:$0xff] }
 0x453   : > { %6408 = vmatmul.msk.bf16.gmra.mxu0 %vm1550_vm0, %v13763_v5  ;;  %6993 = vpow2.f32 %v2961_v40  ;;  %v2338_v23 = vpop.f32.mrf.mxu2  ;;  %v3083_v2 = vadd.f32 %v6992_v58, %v6990_v10 }
 0x454   : > { %6995 = vpow2.f32 %v2963_v39  ;;  %v2427_v22 = vpop.f32.mrf.mxu3 }
 0x455   : > { %v10381_v15 = vadd.f32 %v2427_v22, %v2338_v23  ;;  %3084 = vadd.xlane.f32.xlu2 %v3083_v2  ;;  %2844 = vmax.xlane.f32.xlu1 %v2843_v6  ;;  %v13768_v2 = vld [vmem:[#allocation29_spill] sm:$0xff]  ;;  %v13769_v6 = vld [vmem:[#allocation52_spill] sm:$0xff] }
 0x456   : > { %5166 = vmatpush.bf16.msrb.mxu2 %v13765_v29  ;;  %v2756_v57 = vpop.f32.mrf.mxu1  ;;  %v2803_v55 = vpop.xlane.xlu1 %2802  ;;  %5255 = vmatpush.bf16.msrb.mxu3 %v13766_v61 }
 0x457   : > { %13764 = vst [vmem:[#allocation41_spill] sm:$0xff] %v10381_v15  ;;  %v10394_v40 = vadd.f32 %v7660_v46, %v2756_v57  ;;  %v2893_v30 = vsub.f32 %v10036_v53, %v2803_v55  ;;  %v2894_v23 = vsub.f32 %v10041_v44, %v2803_v55  ;;  %v13771_v53 = vld [vmem:[#allocation23_spill] sm:$0xff]  ;;  %v7661_v44 = vld [vmem:[%s13426_s3 + $0x140] sm:$0xff] }
 0x458   : > { %v10396_v39 = vpop.f32.mrf.mxu0  ;;  %v10411_v55 = vadd.f32 %v7661_v44, %v10030_v27  ;;  %v13775_v44 = vld [vmem:[#allocation46_spill] sm:$0xff] }
 0x459   : > { %13767 = vst [vmem:[#allocation79_spill] sm:$0xff] %v10396_v39  ;;  %v2846_v20 = vmax.f32 %v10388_v12, %v10394_v40  ;;  %v6994_v38 = vpop.eup %6993  ;;  %v2965_v29 = vmul.f32 1.442695, %v2893_v30  ;;  %v2967_v57 = vmul.f32 1.442695, %v2894_v23 }
 0x45a   : > { %5167 = vmatpush.bf16.msrb.mxu2 %v13768_v2  ;;  %v6996_v22 = vpop.eup %6995  ;;  %5256 = vmatpush.bf16.msrb.mxu3 %v13769_v6  ;;  %v3175_v46 = vpack.c.bf16 %v6994_v38, %v6990_v10  ;;  %v7662_v10 = vld [vmem:[%s13426_s3 + $0x148] sm:$0xff] }
 0x45b   : > { %2847 = vmax.xlane.f32.xlu0 %v2846_v20  ;;  %v2340_v48 = vpop.f32.mrf.mxu2  ;;  %v3176_v56 = vpack.c.bf16 %v6996_v22, %v6992_v58  ;;  %v13772_v20 = vld [vmem:[#allocation53_spill] sm:$0xff]  ;;  %6997 = vpow2.f32 %v2965_v29 }
 0x45c   : > { %v2429_v61 = vpop.f32.mrf.mxu3  ;;  %6999 = vpow2.f32 %v2967_v57 }
 0x45d   : > { %v10404_v15 = vadd.f32 %v2429_v61, %v2340_v48  ;;  %v13773_v61 = vld [vmem:[#allocation10_spill] sm:$0xff] }
 0x45e   : > { %5168 = vmatpush.bf16.msrb.mxu2 %v13771_v53  ;;  %v2759_v39 = vpop.f32.mrf.mxu1  ;;  %v2806_v5 = vpop.xlane.xlu0 %2805  ;;  %5257 = vmatpush.bf16.msrb.mxu3 %v13772_v20  ;;  %v3086_v53 = vadd.f32 %v6996_v22, %v6994_v38  ;;  %v7663_v38 = vld [vmem:[%s13426_s3 + $0x150] sm:$0xff]  ;;  %v13779_v22 = vld [vmem:[#allocation80_spill] sm:$0xff] }
 0x45f   : > { %13770 = vst [vmem:[#allocation33_spill] sm:$0xff] %v10404_v15  ;;  %v10417_v30 = vadd.f32 %v7662_v10, %v2759_v39  ;;  %v2895_v58 = vsub.f32 %v10065_v26, %v2806_v5  ;;  %v2896_v2 = vsub.f32 %v10070_v16, %v2806_v5  ;;  %v13774_v39 = vld [vmem:[#allocation24_spill] sm:$0xff]  ;;  %v13776_v26 = vld [vmem:[#allocation42_spill] sm:$0xff] }
 0x460   : > { %v10419_v23 = vpop.f32.mrf.mxu0  ;;  %3218 = vmatmul.bf16.gmra.mxu2 %v3175_v46  ;;  %v13778_v46 = vld [vmem:[#allocation19_spill] sm:$0xff] }
 0x461   : > { %v2849_v27 = vmax.f32 %v10411_v55, %v10417_v30  ;;  %v2969_v6 = vmul.f32 1.442695, %v2895_v58  ;;  %v2971_v48 = vmul.f32 1.442695, %v2896_v2  ;;  %6417 = vmatmul.msk.bf16.gmra.mxu1 %vm1550_vm0, %v13773_v61  ;;  %3307 = vmatmul.bf16.gmra.mxu3 %v3176_v56  ;;  %v6998_v29 = vpop.eup %6997  ;;  %v10438_v58 = vadd.f32 %v7663_v38, %v13779_v22  ;;  %v13780_v2 = vld [vmem:[#allocation49_spill] sm:$0xff] }
 0x462   : > { %5169 = vmatpush.bf16.msrb.mxu2 %v13774_v39  ;;  %5258 = vmatpush.bf16.msrb.mxu3 %v13775_v44  ;;  %v7000_v10 = vpop.eup %6999  ;;  %v13781_v38 = vld [vmem:[#allocation13_spill] sm:$0xff] }
 0x463   : > { %7001 = vpow2.f32 %v2969_v6  ;;  %6409 = vmatmul.msk.bf16.gmra.mxu0 %vm1550_vm0, %v13776_v26  ;;  %v2343_v16 = vpop.f32.mrf.mxu2  ;;  %3087 = vadd.xlane.f32.xlu0 %v3086_v53  ;;  %v3089_v22 = vadd.f32 %v7000_v10, %v6998_v29 }
 0x464   : > { %7003 = vpow2.f32 %v2971_v48  ;;  %2850 = vmax.xlane.f32.xlu1 %v2849_v27  ;;  %v2432_v5 = vpop.f32.mrf.mxu3  ;;  %v7664_v27 = vld [vmem:[%s13426_s3 + $0x158] sm:$0xff] }
 0x465   : > { %v10431_v57 = vadd.f32 %v2432_v5, %v2343_v16 }
 0x466   : > { %5170 = vmatpush.bf16.msrb.mxu2 %v13778_v46  ;;  %v2761_v56 = vpop.f32.mrf.mxu1  ;;  %v2809_v20 = vpop.xlane.xlu0 %2808  ;;  %5259 = vmatpush.bf16.msrb.mxu3 %v13780_v2  ;;  %v13782_v2 = vld [vmem:[#allocation43_spill] sm:$0xff] }
 0x467   : > { %13777 = vst [vmem:[#allocation65_spill] sm:$0xff] %v10431_v57  ;;  %v10444_v6 = vadd.f32 %v7664_v27, %v2761_v56  ;;  %v2897_v61 = vsub.f32 %v10088_v45, %v2809_v20  ;;  %v2898_v39 = vsub.f32 %v10093_v33, %v2809_v20  ;;  %v13784_v57 = vld [vmem:[#allocation9_spill] sm:$0xff] }
 0x468   : > { %v10446_v48 = vpop.f32.mrf.mxu0 }
 0x469   : > { %v7002_v53 = vpop.eup %7001  ;;  %v2852_v44 = vmax.f32 %v10438_v58, %v10444_v6  ;;  %v2973_v16 = vmul.f32 1.442695, %v2897_v61  ;;  %v2975_v5 = vmul.f32 1.442695, %v2898_v39 }
 0x46a   : > { %v7004_v46 = vpop.eup %7003  ;;  %5171 = vmatpush.bf16.msrb.mxu2 %v13781_v38  ;;  %5260 = vmatpush.bf16.msrb.mxu3 %v13782_v2  ;;  %v3177_v33 = vpack.c.bf16 %v7002_v53, %v6998_v29  ;;  %v7665_v38 = vld [vmem:[%s13426_s3 + $0x160] sm:$0xff]  ;;  %v7666_v29 = vld [vmem:[%s13426_s3 + $0x168] sm:$0xff] }
 0x46b   : > { %7005 = vpow2.f32 %v2973_v16  ;;  %v3092_v56 = vadd.f32 %v7004_v46, %v7002_v53  ;;  %v2345_v27 = vpop.f32.mrf.mxu2  ;;  %2853 = vmax.xlane.f32.xlu0 %v2852_v44  ;;  %v3178_v61 = vpack.c.bf16 %v7004_v46, %v7000_v10  ;;  %v10461_v16 = vadd.f32 %v7665_v38, %v10082_v35  ;;  %v7668_v38 = vld [vmem:[%s13426_s3 + $0x178] sm:$0xff] }
 0x46c   : > { %7007 = vpow2.f32 %v2975_v5  ;;  %3090 = vadd.xlane.f32.xlu1 %v3089_v22  ;;  %v2434_v45 = vpop.f32.mrf.mxu3  ;;  %v13785_v5 = vld [vmem:[#allocation38_spill] sm:$0xff] }
 0x46d   : > { %3093 = vadd.xlane.f32.xlu2 %v3092_v56  ;;  %v10454_v20 = vadd.f32 %v2434_v45, %v2345_v27  ;;  %v13786_v27 = vld [vmem:[#allocation14_spill] sm:$0xff] }
 0x46e   : > { %5172 = vmatpush.bf16.msrb.mxu2 %v13784_v57  ;;  %v2764_v39 = vpop.f32.mrf.mxu1  ;;  %v2812_v15 = vpop.xlane.xlu2 %2811  ;;  %5261 = vmatpush.bf16.msrb.mxu3 %v13785_v5 }
 0x46f   : > { %13783 = vst [vmem:[#allocation29_spill] sm:$0xff] %v10454_v20  ;;  %v10467_v53 = vadd.f32 %v7666_v29, %v2764_v39  ;;  %v2899_v57 = vsub.f32 %v10113_v63, %v2812_v15  ;;  %v2900_v10 = vsub.f32 %v10120_v8, %v2812_v15 }
 0x470   : > { %v10469_v44 = vpop.f32.mrf.mxu0  ;;  %3223 = vmatmul.bf16.gmra.mxu2 %v3177_v33 }
 0x471   : > { %v7006_v46 = vpop.eup %7005  ;;  %v2855_v35 = vmax.f32 %v10461_v16, %v10467_v53  ;;  %v2977_v22 = vmul.f32 1.442695, %v2899_v57  ;;  %v2979_v2 = vmul.f32 1.442695, %v2900_v10  ;;  %6418 = vmatmul.msk.bf16.gmra.mxu1 %vm1550_vm0, %v13719_v34  ;;  %3312 = vmatmul.bf16.gmra.mxu3 %v3178_v61  ;;  %v7667_v34 = vld [vmem:[%s13426_s3 + $0x170] sm:$0xff] }
 0x472   : > { %v7008_v56 = vpop.eup %7007  ;;  %v10485_v61 = vadd.f32 %v7667_v34, %v10107_v49 }
 0x473   : > { %6410 = vmatmul.msk.bf16.gmra.mxu0 %vm1550_vm0, %v13786_v27  ;;  %v3095_v45 = vadd.f32 %v7008_v56, %v7006_v46  ;;  %7009 = vpow2.f32 %v2977_v22  ;;  %v2348_v63 = vpop.f32.mrf.mxu2 }
 0x474   : > { %2856 = vmax.xlane.f32.xlu1 %v2855_v35  ;;  %7011 = vpow2.f32 %v2979_v2  ;;  %v2437_v8 = vpop.f32.mrf.mxu3 }
 0x475   : > { %3096 = vadd.xlane.f32.xlu2 %v3095_v45  ;;  %v10479_v15 = vadd.f32 %v2437_v8, %v2348_v63 }
 0x476   : > { %v2766_v33 = vpop.f32.mrf.mxu1  ;;  %v2815_v39 = vpop.xlane.xlu1 %2814 }
 0x477   : > { %13787 = vst [vmem:[#allocation52_spill] sm:$0xff] %v10479_v15  ;;  %v10490_v5 = vadd.f32 %v7668_v38, %v2766_v33  ;;  %v2901_v57 = vsub.f32 %v10138_v37, %v2815_v39  ;;  %v2902_v10 = vsub.f32 %v10143_v7, %v2815_v39  ;;  %v7669_v33 = vld [vmem:[%s13426_s3 + $0x180] sm:$0xff] }
 0x478   : > { %v10492_v29 = vpop.f32.mrf.mxu0  ;;  %v10502_v38 = vadd.f32 %v7669_v33, %v10132_v52 }
 0x479   : > { %v2858_v35 = vmax.f32 %v10485_v61, %v10490_v5  ;;  %v7010_v22 = vpop.eup %7009  ;;  %v2981_v45 = vmul.f32 1.442695, %v2901_v57  ;;  %v2983_v49 = vmul.f32 1.442695, %v2902_v10  ;;  %v7670_v57 = vld [vmem:[%s13426_s3 + $0x188] sm:$0xff] }
 0x47a   : > { %v7012_v2 = vpop.eup %7011  ;;  %v3179_v34 = vpack.c.bf16 %v7010_v22, %v7006_v46 }
 0x47b   : > { %2859 = vmax.xlane.f32.xlu0 %v2858_v35  ;;  %v2350_v63 = vpop.f32.mrf.mxu2  ;;  %v3180_v7 = vpack.c.bf16 %v7012_v2, %v7008_v56  ;;  %7013 = vpow2.f32 %v2981_v45  ;;  %v3098_v45 = vadd.f32 %v7012_v2, %v7010_v22 }
 0x47c   : > { %v2439_v8 = vpop.f32.mrf.mxu3  ;;  %7015 = vpow2.f32 %v2983_v49 }
 0x47d   : > { %v10504_v37 = vadd.f32 %v2439_v8, %v2350_v63  ;;  %v13789_v8 = vld [vmem:[#allocation51_spill] sm:$0xff] }
 0x47e   : > { %v2769_v39 = vpop.f32.mrf.mxu1  ;;  %v2818_v15 = vpop.xlane.xlu0 %2817 }
 0x47f   : > { %13788 = vst [vmem:[#allocation23_spill] sm:$0xff] %v10504_v37  ;;  %v10509_v10 = vadd.f32 %v7670_v57, %v2769_v39  ;;  %v2903_v35 = vsub.f32 %v10161_v4, %v2818_v15  ;;  %v2904_v20 = vsub.f32 %v10166_v19, %v2818_v15 }
 0x480   : > { %v10511_v46 = vpop.f32.mrf.mxu0  ;;  %3228 = vmatmul.bf16.gmra.mxu2 %v3179_v34 }
 0x481   : > { %v2861_v52 = vmax.f32 %v10502_v38, %v10509_v10  ;;  %v2985_v56 = vmul.f32 1.442695, %v2903_v35  ;;  %v2987_v63 = vmul.f32 1.442695, %v2904_v20  ;;  %6419 = vmatmul.msk.bf16.gmra.mxu1 %vm1550_vm0, %v13726_v32  ;;  %3317 = vmatmul.bf16.gmra.mxu3 %v3180_v7  ;;  %v7014_v19 = vpop.eup %7013 }
 0x482   : > { %v7016_v49 = vpop.eup %7015 }
 0x483   : > { %7017 = vpow2.f32 %v2985_v56  ;;  %6411 = vmatmul.msk.bf16.gmra.mxu0 %vm1550_vm0, %v13789_v8  ;;  %3099 = vadd.xlane.f32.xlu0 %v3098_v45  ;;  %v2353_v4 = vpop.f32.mrf.mxu2  ;;  %v3101_v7 = vadd.f32 %v7016_v49, %v7014_v19  ;;  %v7671_v45 = vld [vmem:[%s13426_s3 + $0x198] sm:$0xff] }
 0x484   : > { %7019 = vpow2.f32 %v2987_v63  ;;  %2862 = vmax.xlane.f32.xlu1 %v2861_v52  ;;  %v2442_v15 = vpop.f32.mrf.mxu3 }
 0x485   : > { %v10521_v34 = vadd.f32 %v2442_v15, %v2353_v4 }
 0x486   : > { %v2771_v33 = vpop.f32.mrf.mxu1  ;;  %v2821_v20 = vpop.xlane.xlu1 %2820 }
 0x487   : > { %13790 = vst [vmem:[#allocation53_spill] sm:$0xff] %v10521_v34  ;;  %v2905_v32 = vsub.f32 %v10184_v41, %v2821_v20  ;;  %v2906_v22 = vsub.f32 %v10189_v11, %v2821_v20  ;;  %v10530_v4 = vadd.f32 %v7671_v45, %v2771_v33  ;;  %v7672_v41 = vld [vmem:[%s13426_s3 + $0x190] sm:$0xff]  ;;  %v7673_v20 = vld [vmem:[%s13426_s3 + $0x1a0] sm:$0xff] }
 0x488   : > { %v10523_v39 = vpop.f32.mrf.mxu0  ;;  %v10536_v11 = vadd.f32 %v7672_v41, %v10155_v0 }
 0x489   : > { %v7018_v2 = vpop.eup %7017  ;;  %v2989_v35 = vmul.f32 1.442695, %v2905_v32  ;;  %v2991_v52 = vmul.f32 1.442695, %v2906_v22  ;;  %v10542_v32 = vadd.f32 %v7673_v20, %v10178_v18 }
 0x48a   : > { %v7020_v57 = vpop.eup %7019  ;;  %v3181_v34 = vpack.c.bf16 %v7018_v2, %v7014_v19  ;;  %v7674_v19 = vld [vmem:[%s13426_s3 + $0x1a8] sm:$0xff]  ;;  %v2864_v18 = vmax.f32 %v10536_v11, %v10530_v4 }
 0x48b   : > { %3102 = vadd.xlane.f32.xlu0 %v3101_v7  ;;  %v3104_v56 = vadd.f32 %v7020_v57, %v7018_v2  ;;  %v2355_v63 = vpop.f32.mrf.mxu2  ;;  %v3182_v33 = vpack.c.bf16 %v7020_v57, %v7016_v49  ;;  %7021 = vpow2.f32 %v2989_v35 }
 0x48c   : > { %v2444_v15 = vpop.f32.mrf.mxu3  ;;  %7023 = vpow2.f32 %v2991_v52 }
 0x48d   : > { %3105 = vadd.xlane.f32.xlu1 %v3104_v56  ;;  %v10544_v22 = vadd.f32 %v2444_v15, %v2355_v63  ;;  %v13792_v63 = vld [vmem:[#allocation54_spill] sm:$0xff] }
 0x48e   : > { %v2774_v7 = vpop.f32.mrf.mxu1  ;;  %v2824_v56 = vpop.xlane.xlu0 %2823 }
 0x48f   : > { %13791 = vst [vmem:[#allocation10_spill] sm:$0xff] %v10544_v22  ;;  %v10549_v2 = vadd.f32 %v7674_v19, %v2774_v7  ;;  %v2907_v45 = vsub.f32 %v10209_v42, %v2824_v56  ;;  %v2908_v41 = vsub.f32 %v10214_v14, %v2824_v56 }
 0x490   : > { %v10551_v0 = vpop.f32.mrf.mxu0  ;;  %3233 = vmatmul.bf16.gmra.mxu2 %v3181_v34 }
 0x491   : > { %v2867_v49 = vmax.f32 %v10542_v32, %v10549_v2  ;;  %v2993_v57 = vmul.f32 1.442695, %v2907_v45  ;;  %v2995_v35 = vmul.f32 1.442695, %v2908_v41  ;;  %6420 = vmatmul.msk.bf16.gmra.mxu1 %vm1550_vm0, %v13731_v21  ;;  %3322 = vmatmul.bf16.gmra.mxu3 %v3182_v33  ;;  %v7022_v14 = vpop.eup %7021 }
 0x492   : > { %v7024_v34 = vpop.eup %7023 }
 0x493   : > { %7025 = vpow2.f32 %v2993_v57  ;;  %6412 = vmatmul.msk.bf16.gmra.mxu0 %vm1550_vm0, %v13792_v63  ;;  %2865 = vmax.xlane.f32.xlu0 %v2864_v18  ;;  %v2358_v42 = vpop.f32.mrf.mxu2  ;;  %v3107_v18 = vadd.f32 %v7024_v34, %v7022_v14 }
 0x494   : > { %7027 = vpow2.f32 %v2995_v35  ;;  %v2447_v52 = vpop.f32.mrf.mxu3 }
 0x495   : > { %2868 = vmax.xlane.f32.xlu1 %v2867_v49  ;;  %v10563_v15 = vadd.f32 %v2447_v52, %v2358_v42 }
 0x496   : > { %v2776_v20 = vpop.f32.mrf.mxu1  ;;  %v2827_v7 = vpop.xlane.xlu1 %2826 }
 0x497   : > { %13793 = vst [vmem:[#allocation24_spill] sm:$0xff] %v10563_v15  ;;  %v2909_v21 = vsub.f32 %v10230_v25, %v2827_v7  ;;  %v2910_v33 = vsub.f32 %v10235_v3, %v2827_v7  ;;  %v7675_v15 = vld [vmem:[%s13426_s3 + $0x1b8] sm:$0xff] }
 0x498   : > { %v10565_v56 = vpop.f32.mrf.mxu0  ;;  %v10572_v25 = vadd.f32 %v7675_v15, %v2776_v20 }
 0x499   : > { %13794 = vst [vmem:[#allocation46_spill] sm:$0xff] %v10565_v56  ;;  %v7026_v19 = vpop.eup %7025  ;;  %v2997_v45 = vmul.f32 1.442695, %v2909_v21  ;;  %v2999_v41 = vmul.f32 1.442695, %v2910_v33 }
 0x49a   : > { %v7028_v57 = vpop.eup %7027  ;;  %v3183_v52 = vpack.c.bf16 %v7026_v19, %v7022_v14  ;;  %v7677_v14 = vld [vmem:[%s13426_s3 + $0x1c8] sm:$0xff] }
 0x49b   : > { %7029 = vpow2.f32 %v2997_v45  ;;  %3108 = vadd.xlane.f32.xlu0 %v3107_v18  ;;  %v3110_v35 = vadd.f32 %v7028_v57, %v7026_v19  ;;  %v2360_v49 = vpop.f32.mrf.mxu2  ;;  %v3184_v7 = vpack.c.bf16 %v7028_v57, %v7024_v34  ;;  %v7676_v45 = vld [vmem:[%s13426_s3 + $0x1c0] sm:$0xff]  ;;  %v7678_v34 = vld [vmem:[%s13426_s3 + $0x1b0] sm:$0xff] }
 0x49c   : > { %7031 = vpow2.f32 %v2999_v41  ;;  %v2449_v42 = vpop.f32.mrf.mxu3  ;;  %v10580_v41 = vadd.f32 %v7676_v45, %v10224_v13  ;;  %v10593_v18 = vadd.f32 %v7678_v34, %v10203_v1  ;;  %v13796_v1 = vld [vmem:[#allocation55_spill] sm:$0xff]  ;;  %v7680_v34 = vld [vmem:[%s13426_s3 + $0x1d8] sm:$0xff] }
 0x49d   : > { %3111 = vadd.xlane.f32.xlu2 %v3110_v35  ;;  %v10574_v3 = vadd.f32 %v2449_v42, %v2360_v49 }
 0x49e   : > { %v2779_v21 = vpop.f32.mrf.mxu1  ;;  %v2830_v33 = vpop.xlane.xlu0 %2829 }
 0x49f   : > { %13795 = vst [vmem:[#allocation42_spill] sm:$0xff] %v10574_v3  ;;  %v10585_v19 = vadd.f32 %v7677_v14, %v2779_v21  ;;  %v2911_v15 = vsub.f32 %v10255_v47, %v2830_v33  ;;  %v2912_v20 = vsub.f32 %v10260_v51, %v2830_v33  ;;  %v2870_v51 = vmax.f32 %v10593_v18, %v10572_v25 }
 0x4a0   : > { %3238 = vmatmul.bf16.gmra.mxu2 %v3183_v52  ;;  %v10597_v35 = vpop.f32.mrf.mxu0 }
 0x4a1   : > { %v7030_v57 = vpop.eup %7029  ;;  %v2873_v13 = vmax.f32 %v10580_v41, %v10585_v19  ;;  %v3001_v49 = vmul.f32 1.442695, %v2911_v15  ;;  %v3003_v42 = vmul.f32 1.442695, %v2912_v20  ;;  %6421 = vmatmul.msk.bf16.gmra.mxu1 %vm1550_vm0, %v13737_v62  ;;  %3327 = vmatmul.bf16.gmra.mxu3 %v3184_v7  ;;  %v7679_v15 = vld [vmem:[%s13426_s3 + $0x1d0] sm:$0xff] }
 0x4a2   : > { %v7032_v47 = vpop.eup %7031  ;;  %v13798_v7 = vld [vmem:[#allocation95_spill] sm:$0xff] }
 0x4a3   : > { %7033 = vpow2.f32 %v3001_v49  ;;  %6413 = vmatmul.msk.bf16.gmra.mxu0 %vm1550_vm0, %v13796_v1  ;;  %2874 = vmax.xlane.f32.xlu1 %v2873_v13  ;;  %v3113_v52 = vadd.f32 %v7032_v47, %v7030_v57  ;;  %v2363_v21 = vpop.f32.mrf.mxu2  ;;  %v10611_v20 = vadd.f32 %v7679_v15, %v13798_v7 }
 0x4a4   : > { %7035 = vpow2.f32 %v3003_v42  ;;  %2871 = vmax.xlane.f32.xlu0 %v2870_v51  ;;  %v2452_v33 = vpop.f32.mrf.mxu3 }
 0x4a5   : > { %3114 = vadd.xlane.f32.xlu2 %v3113_v52  ;;  %v10605_v45 = vadd.f32 %v2452_v33, %v2363_v21 }
 0x4a6   : > { %v2781_v14 = vpop.f32.mrf.mxu1  ;;  %v2833_v62 = vpop.xlane.xlu1 %2832 }
 0x4a7   : > { %13797 = vst [vmem:[#allocation19_spill] sm:$0xff] %v10605_v45  ;;  %v10616_v13 = vadd.f32 %v7680_v34, %v2781_v14  ;;  %v2913_v49 = vsub.f32 %v10276_v9, %v2833_v62  ;;  %v2914_v42 = vsub.f32 %v10281_v36, %v2833_v62 }
 0x4a8   : > { %v10622_v3 = vpop.f32.mrf.mxu0 }
 0x4a9   : > { %v7034_v51 = vpop.eup %7033  ;;  %v2876_v52 = vmax.f32 %v10611_v20, %v10616_v13  ;;  %v3005_v21 = vmul.f32 1.442695, %v2913_v49  ;;  %v3007_v33 = vmul.f32 1.442695, %v2914_v42  ;;  %v7681_v49 = vld [vmem:[%s13426_s3 + $0x1e0] sm:$0xff] }
 0x4aa   : > { %v7036_v45 = vpop.eup %7035  ;;  %v3185_v34 = vpack.c.bf16 %v7034_v51, %v7030_v57  ;;  %v10630_v42 = vadd.f32 %v7681_v49, %v10270_v31  ;;  %v13802_v49 = vld [vmem:[#allocation68_spill] sm:$0xff] }
 0x4ab   : > { %7037 = vpow2.f32 %v3005_v21  ;;  %v3116_v15 = vadd.f32 %v7036_v45, %v7034_v51  ;;  %v2365_v7 = vpop.f32.mrf.mxu2  ;;  %v3186_v36 = vpack.c.bf16 %v7036_v45, %v7032_v47  ;;  %v7682_v21 = vld [vmem:[%s13426_s3 + $0x1e8] sm:$0xff]  ;;  %v13800_v51 = vld [vmem:[#allocation7_spill] sm:$0xff] }
 0x4ac   : > { %7039 = vpow2.f32 %v3007_v33  ;;  %2877 = vmax.xlane.f32.xlu0 %v2876_v52  ;;  %v2454_v14 = vpop.f32.mrf.mxu3 }
 0x4ad   : > { %3117 = vadd.xlane.f32.xlu1 %v3116_v15  ;;  %v10624_v9 = vadd.f32 %v2454_v14, %v2365_v7  ;;  %v13801_v14 = vld [vmem:[#allocation34_spill] sm:$0xff] }
 0x4ae   : > { %v2784_v62 = vpop.f32.mrf.mxu1  ;;  %v2836_v22 = vpop.xlane.xlu0 %2835 }
 0x4af   : > { %13799 = vst [vmem:[#allocation80_spill] sm:$0xff] %v10624_v9  ;;  %v10635_v52 = vadd.f32 %v7682_v21, %v2784_v62  ;;  %v2915_v57 = vsub.f32 %v10301_v24, %v2836_v22  ;;  %v2916_v33 = vsub.f32 %v13800_v51, %v2836_v22 }
 0x4b0   : > { %3243 = vmatmul.bf16.gmra.mxu2 %v3185_v34  ;;  %v10647_v34 = vpop.f32.mrf.mxu0 }
 0x4b1   : > { %v7038_v47 = vpop.eup %7037  ;;  %v2879_v45 = vmax.f32 %v10630_v42, %v10635_v52  ;;  %v3009_v15 = vmul.f32 1.442695, %v2915_v57  ;;  %v3011_v7 = vmul.f32 1.442695, %v2916_v33  ;;  %6422 = vmatmul.msk.bf16.gmra.mxu1 %vm1550_vm0, %v13801_v14  ;;  %3332 = vmatmul.bf16.gmra.mxu3 %v3186_v36  ;;  %13804 = vst [vmem:[#allocation13_spill] sm:$0xff] %v10647_v34  ;;  %v7683_v36 = vld [vmem:[%s13426_s3 + $0x1f0] sm:$0xff] }
 0x4b2   : > { %v7040_v31 = vpop.eup %7039  ;;  %v13806_v33 = vld [vmem:[#allocation97_spill] sm:$0xff] }
 0x4b3   : > { %7041 = vpow2.f32 %v3009_v15  ;;  %6414 = vmatmul.msk.bf16.gmra.mxu0 %vm1550_vm0, %v13802_v49  ;;  %2880 = vmax.xlane.f32.xlu2 %v2879_v45  ;;  %v10645_v24 = vadd.f32 %v7040_v31, %v7038_v47  ;;  %v2368_v22 = vpop.f32.mrf.mxu2  ;;  %v10655_v15 = vadd.f32 %v7683_v36, %v13806_v33  ;;  %v7684_v45 = vld [vmem:[%s13426_s3 + $0x1f8] sm:$0xff] }
 0x4b4   : > { %7043 = vpow2.f32 %v3011_v7  ;;  %v2457_v62 = vpop.f32.mrf.mxu3 }
 0x4b5   : > { %13803 = vst [vmem:[#allocation49_spill] sm:$0xff] %v10645_v24  ;;  %v10649_v21 = vadd.f32 %v2457_v62, %v2368_v22 }
 0x4b6   : > { %v2786_v57 = vpop.f32.mrf.mxu1  ;;  %v2839_v51 = vpop.xlane.xlu1 %2838 }
 0x4b7   : > { %13805 = vst [vmem:[#allocation43_spill] sm:$0xff] %v10649_v21  ;;  %v10660_v7 = vadd.f32 %v7684_v45, %v2786_v57  ;;  %v2917_v14 = vsub.f32 %v10322_v28, %v2839_v51  ;;  %v2918_v22 = vsub.f32 %v10327_v60, %v2839_v51 }
 0x4b8   : > { %v10666_v24 = vpop.xlane.xlu0 %3078 }
 0x4b9   : > { %v7042_v62 = vpop.eup %7041  ;;  %v2882_v21 = vmax.f32 %v10655_v15, %v10660_v7  ;;  %v3013_v9 = vmul.f32 1.442695, %v2917_v14  ;;  %v3015_v37 = vmul.f32 1.442695, %v2918_v22  ;;  %v7685_v14 = vld [vmem:[%s13426_s3] sm:$0xff]  ;;  %v13809_v22 = vld [vmem:[#allocation100_spill] sm:$0xff] }
 0x4ba   : > { %v7044_v36 = vpop.eup %7043  ;;  %v3187_v34 = vpack.c.bf16 %v7042_v62, %v7038_v47  ;;  %v10676_v56 = vadd.f32 %v7685_v14, %v13809_v22  ;;  %v13814_v22 = vld [vmem:[#allocation11_spill] sm:$0xff] }
 0x4bb   : > { %7045 = vpow2.f32 %v3013_v9  ;;  %2883 = vmax.xlane.f32.xlu0 %v2882_v21  ;;  %v10668_v33 = vadd.f32 %v7044_v36, %v7042_v62  ;;  %v2370_v57 = vpop.f32.mrf.mxu2  ;;  %v3188_v60 = vpack.c.bf16 %v7044_v36, %v7040_v31  ;;  %v7686_v9 = vld [vmem:[%s13426_s3 + $0x8] sm:$0xff] }
 0x4bc   : > { %7047 = vpow2.f32 %v3015_v37  ;;  %v2459_v45 = vpop.f32.mrf.mxu3  ;;  %13810 = vst [vmem:[#allocation14_spill] sm:$0xff] %v10676_v56  ;;  %v10683_v37 = vpop.f32.mrf.mxu0 }
 0x4bd   : > { %13807 = vst [vmem:[#allocation9_spill] sm:$0xff] %v10668_v33  ;;  %v10670_v28 = vadd.f32 %v2459_v45, %v2370_v57  ;;  %v13813_v57 = vld [vmem:[#allocation37_spill] sm:$0xff] }
 0x4be   : > { %v3705_v51 = vpop.f32.mrf.mxu1  ;;  %13812 = vst [vmem:[#allocation54_spill] sm:$0xff] %v10683_v37 }
 0x4bf   : > { %13808 = vst [vmem:[#allocation38_spill] sm:$0xff] %v10670_v28  ;;  %v10681_v21 = vadd.f32 %v7686_v9, %v3705_v51 }
 0x4c0   : > { %3248 = vmatmul.bf16.gmra.mxu2 %v3187_v34  ;;  %v2842_v62 = vpop.xlane.xlu0 %2841  ;;  %v10687_v36 = vpop.xlane.xlu1 %3081 }
 0x4c1   : > { %13811 = vst [vmem:[#allocation51_spill] sm:$0xff] %v10681_v21  ;;  %v7046_v47 = vpop.eup %7045  ;;  %v3785_v31 = vmax.f32 %v10676_v56, %v10681_v21  ;;  %6423 = vmatmul.msk.bf16.gmra.mxu1 %vm1550_vm0, %v13813_v57  ;;  %3337 = vmatmul.bf16.gmra.mxu3 %v3188_v60  ;;  %v2919_v14 = vsub.f32 %v10350_v50, %v2842_v62  ;;  %v7687_v50 = vld [vmem:[%s13426_s3 + $0x10] sm:$0xff]  ;;  %v13817_v60 = vld [vmem:[#allocation5_spill] sm:$0xff] }
 0x4c2   : > { %v7048_v45 = vpop.eup %7047  ;;  %v2920_v51 = vsub.f32 %v10344_v43, %v2842_v62  ;;  %v10703_v43 = vadd.f32 %v7687_v50, %v13817_v60 }
 0x4c3   : > { %6431 = vmatmul.msk.bf16.vlgmr.msra.gmra.mxu0 %vm1550_vm0, %v13814_v22  ;;  %3786 = vmax.xlane.f32.xlu1 %v3785_v31  ;;  %v10695_v34 = vadd.f32 %v7048_v45, %v7046_v47  ;;  %v3017_v9 = vmul.f32 1.442695, %v2919_v14  ;;  %v2373_v33 = vpop.f32.mrf.mxu2  ;;  %v7688_v31 = vld [vmem:[%s13426_s3 + $0x18] sm:$0xff] }
 0x4c4   : > { %v3019_v28 = vmul.f32 1.442695, %v2920_v51  ;;  %v2462_v37 = vpop.f32.mrf.mxu3  ;;  %13818 = vst [vmem:[#allocation7_spill] sm:$0xff] %v10703_v43 }
 0x4c5   : > { %13815 = vst [vmem:[#allocation55_spill] sm:$0xff] %v10695_v34  ;;  %7049 = vpow2.f32 %v3017_v9  ;;  %v10697_v21 = vadd.f32 %v2462_v37, %v2373_v33  ;;  %v10712_v33 = vpop.f32.mrf.mxu0 }
 0x4c6   : > { %v3707_v57 = vpop.f32.mrf.mxu1  ;;  %7051 = vpow2.f32 %v3019_v28 }
 0x4c7   : > { %13816 = vst [vmem:[#allocation95_spill] sm:$0xff] %v10697_v21  ;;  %v10708_v62 = vadd.f32 %v7688_v31, %v3707_v57  ;;  %v7689_v57 = vld [vmem:[%s13426_s3 + $0x20] sm:$0xff] }
 0x4c8   : > { %v2845_v37 = vpop.xlane.xlu1 %2844  ;;  %v10720_v31 = vadd.f32 %v7689_v57, %v10363_v59  ;;  %v13826_v57 = vld [vmem:[#allocation79_spill] sm:$0xff] }
 0x4c9   : > { %13819 = vst [vmem:[#allocation34_spill] sm:$0xff] %v10708_v62  ;;  %v3788_v14 = vmax.f32 %v10703_v43, %v10708_v62  ;;  %v2921_v51 = vsub.f32 %v10371_v17, %v2845_v37  ;;  %v2922_v9 = vsub.f32 %v10361_v54, %v2845_v37  ;;  %v7690_v37 = vld [vmem:[%s13426_s3 + $0x28] sm:$0xff] }
 0x4ca   : > { %13820 = vst [vmem:[#allocation68_spill] sm:$0xff] %v10720_v31 }
 0x4cb   : > { %3789 = vmax.xlane.f32.xlu2 %v3788_v14  ;;  %v7050_v50 = vpop.eup %7049  ;;  %v2375_v60 = vpop.f32.mrf.mxu2  ;;  %v3021_v21 = vmul.f32 1.442695, %v2921_v51  ;;  %v3023_v34 = vmul.f32 1.442695, %v2922_v9 }
 0x4cc   : > { %v7052_v28 = vpop.eup %7051  ;;  %v2464_v22 = vpop.f32.mrf.mxu3  ;;  %v3189_v56 = vpack.c.bf16 %v7050_v50, %v7046_v47 }
 0x4cd   : > { %v10722_v62 = vadd.f32 %v2464_v22, %v2375_v60  ;;  %v3190_v17 = vpack.c.bf16 %v7052_v28, %v7048_v45  ;;  %v10724_v14 = vadd.f32 %v7052_v28, %v7050_v50  ;;  %7053 = vpow2.f32 %v3021_v21  ;;  %v13824_v50 = vld [vmem:[#allocation40_spill] sm:$0xff]  ;;  %v7691_v28 = vld [vmem:[%s13426_s3 + $0x30] sm:$0xff] }
 0x4ce   : > { %v3710_v43 = vpop.f32.mrf.mxu1  ;;  %v2848_v54 = vpop.xlane.xlu0 %2847  ;;  %7055 = vpow2.f32 %v3023_v34  ;;  %v13825_v21 = vld [vmem:[#allocation16_spill] sm:$0xff] }
 0x4cf   : > { %13821 = vst [vmem:[#allocation97_spill] sm:$0xff] %v10722_v62  ;;  %v10729_v47 = vadd.f32 %v7690_v37, %v3710_v43  ;;  %v2923_v51 = vsub.f32 %v10388_v12, %v2848_v54  ;;  %v2924_v9 = vsub.f32 %v10394_v40, %v2848_v54  ;;  %v10739_v43 = vpop.f32.mrf.mxu0  ;;  %v10745_v54 = vadd.f32 %v7691_v28, %v13826_v57 }
 0x4d0   : > { %13822 = vst [vmem:[#allocation100_spill] sm:$0xff] %v10724_v14  ;;  %3253 = vmatmul.bf16.gmra.mxu2 %v3189_v56 }
 0x4d1   : > { %13823 = vst [vmem:[#allocation37_spill] sm:$0xff] %v10729_v47  ;;  %v3791_v59 = vmax.f32 %v10720_v31, %v10729_v47  ;;  %v3025_v45 = vmul.f32 1.442695, %v2923_v51  ;;  %v3027_v22 = vmul.f32 1.442695, %v2924_v9  ;;  %6424 = vmatmul.msk.bf16.gmra.mxu1 %vm1550_vm0, %v13824_v50  ;;  %3342 = vmatmul.bf16.gmra.mxu3 %v3190_v17  ;;  %v7692_v17 = vld [vmem:[%s13426_s3 + $0x38] sm:$0xff] }
 0x4d3   : > { %7057 = vpow2.f32 %v3025_v45  ;;  %6432 = vmatmul.msk.bf16.gmra.mxu0 %vm1550_vm0, %v13825_v21  ;;  %3792 = vmax.xlane.f32.xlu0 %v3791_v59  ;;  %v3214_v12 = vpop.f32.mrf.mxu2  ;;  %v7054_v40 = vpop.eup %7053 }
 0x4d4   : > { %7059 = vpow2.f32 %v3027_v22  ;;  %v3303_v56 = vpop.f32.mrf.mxu3  ;;  %v7056_v34 = vpop.eup %7055 }
 0x4d5   : > { %v10752_v59 = vadd.f32 %v7056_v34, %v7054_v40  ;;  %7061 = vrcp.f32 %v10687_v36  ;;  %v7693_v36 = vld [vmem:[%s13426_s3 + $0x40] sm:$0xff] }
 0x4d6   : > { %v3712_v60 = vpop.f32.mrf.mxu1  ;;  %v3088_v51 = vpop.xlane.xlu0 %3087  ;;  %7063 = vrcp.f32 %v10666_v24  ;;  %v3304_v24 = vadd.f32 %v3303_v56, %v3214_v12 }
 0x4d7   : > { %v10750_v37 = vadd.f32 %v7692_v17, %v3712_v60  ;;  %v2851_v9 = vpop.xlane.xlu1 %2850  ;;  %13827 = vst [vmem:[#allocation5_spill] sm:$0xff] %v10752_v59 }
 0x4d8   : > { %v2925_v45 = vsub.f32 %v10411_v55, %v2851_v9  ;;  %v2926_v22 = vsub.f32 %v10417_v30, %v2851_v9  ;;  %v10762_v30 = vpop.f32.mrf.mxu0 }
 0x4d9   : > { %v7058_v50 = vpop.eup %7057  ;;  %v3794_v62 = vmax.f32 %v10745_v54, %v10750_v37  ;;  %13829 = vst [vmem:[#allocation16_spill] sm:$0xff] %v10762_v30 }
 0x4da   : > { %v7060_v28 = vpop.eup %7059  ;;  %v3029_v57 = vmul.f32 1.442695, %v2925_v45  ;;  %v3031_v14 = vmul.f32 1.442695, %v2926_v22  ;;  %v3191_v59 = vpack.c.bf16 %v7058_v50, %v7054_v40  ;;  %v10768_v45 = vadd.f32 %v7693_v36, %v10419_v23 }
 0x4db   : > { %3795 = vmax.xlane.f32.xlu1 %v3794_v62  ;;  %v10760_v60 = vadd.f32 %v7060_v28, %v7058_v50  ;;  %v3216_v17 = vpop.f32.mrf.mxu2  ;;  %v3192_v47 = vpack.c.bf16 %v7060_v28, %v7056_v34  ;;  %v7694_v62 = vld [vmem:[%s13426_s3 + $0x48] sm:$0xff]  ;;  %v7062_v50 = vpop.eup %7061 }
 0x4dc   : > { %7065 = vpow2.f32 %v3029_v57  ;;  %v3305_v55 = vpop.f32.mrf.mxu3  ;;  %v7064_v57 = vpop.eup %7063 }
 0x4dd   : > { %13828 = vst [vmem:[#allocation40_spill] sm:$0xff] %v10760_v60  ;;  %7067 = vpow2.f32 %v3031_v14  ;;  %v3306_v9 = vadd.f32 %v3305_v55, %v3216_v17  ;;  %v3415_v36 = vmul.f32 %v7064_v57, %v3304_v24 }
 0x4de   : > { %v3715_v31 = vpop.f32.mrf.mxu1  ;;  %v2854_v40 = vpop.xlane.xlu0 %2853 }
 0x4df   : > { %v10773_v14 = vadd.f32 %v7694_v62, %v3715_v31  ;;  %v10775_v22 = vpop.xlane.xlu1 %3090  ;;  %v2927_v34 = vsub.f32 %v10438_v58, %v2854_v40  ;;  %v2928_v28 = vsub.f32 %v10444_v6, %v2854_v40  ;;  %v3416_v17 = vmul.f32 %v7062_v50, %v3306_v9  ;;  %v13830_v62 = vld [vmem:[#allocation12_spill] sm:$0xff] }
 0x4e0   : > { %3258 = vmatmul.bf16.gmra.mxu2 %v3191_v59  ;;  %v3085_v59 = vpop.xlane.xlu2 %3084 }
 0x4e1   : > { %v3797_v23 = vmax.f32 %v10768_v45, %v10773_v14  ;;  %6425 = vmatmul.msk.bf16.gmra.mxu1 %vm1550_vm0, %v13776_v26  ;;  %3347 = vmatmul.bf16.gmra.mxu3 %v3192_v47  ;;  %v3033_v31 = vmul.f32 1.442695, %v2927_v34  ;;  %v3035_v56 = vmul.f32 1.442695, %v2928_v28  ;;  %v6612_v9 = vpack.i.bf16 %v3416_v17, %v3415_v36  ;;  %v10792_v34 = vpop.f32.mrf.mxu0 }
 0x4e2   : > { %v7066_v12 = vpop.eup %7065 }
 0x4e3   : > { %v7068_v55 = vpop.eup %7067  ;;  %6433 = vmatmul.msk.bf16.gmra.mxu0 %vm1550_vm0, %v13830_v62  ;;  %3798 = vmax.xlane.f32.xlu2 %v3797_v23  ;;  %7069 = vpow2.f32 %v3033_v31  ;;  %v3219_v58 = vpop.f32.mrf.mxu2 }
 0x4e4   : > { %v10785_v6 = vadd.f32 %v7068_v55, %v7066_v12  ;;  %7071 = vpow2.f32 %v3035_v56  ;;  %v3308_v40 = vpop.f32.mrf.mxu3 }
 0x4e5   : > { %7073 = vrcp.f32 %v3085_v59  ;;  %v3309_v17 = vadd.f32 %v3308_v40, %v3219_v58 }
 0x4e6   : > { %13831 = vst [vmem:[#allocation79_spill] sm:$0xff] %v10785_v6  ;;  %v10787_v50 = vpop.f32.mrf.mxu1  ;;  %7075 = vrcp.f32 %v3088_v51 }
 0x4e7   : > { %v2857_v26 = vpop.xlane.xlu1 %2856  ;;  %6613 = vrot.lane.b32.xlu0 %v6612_v9, %s7878_s25 }
 0x4e8   : > { %v2929_v47 = vsub.f32 %v10461_v16, %v2857_v26  ;;  %v2930_v24 = vsub.f32 %v10467_v53, %v2857_v26 }
 0x4e9   : > { %v7070_v28 = vpop.eup %7069 }
 0x4ea   : > { %v3037_v57 = vmul.f32 1.442695, %v2929_v47  ;;  %v3039_v23 = vmul.f32 1.442695, %v2930_v24  ;;  %v7072_v31 = vpop.eup %7071  ;;  %v3193_v9 = vpack.c.bf16 %v7070_v28, %v7066_v12 }
 0x4eb   : > { %v3221_v56 = vpop.f32.mrf.mxu2  ;;  %v10794_v36 = vadd.f32 %v7072_v31, %v7070_v28  ;;  %v7074_v59 = vpop.eup %7073  ;;  %v3194_v16 = vpack.c.bf16 %v7072_v31, %v7068_v55 }
 0x4ec   : > { %7077 = vpow2.f32 %v3037_v57  ;;  %v3310_v6 = vpop.f32.mrf.mxu3  ;;  %v7076_v26 = vpop.eup %7075  ;;  %v3417_v24 = vmul.f32 %v7074_v59, %v3309_v17 }
 0x4ed   : > { %13832 = vst [vmem:[#allocation12_spill] sm:$0xff] %v10794_v36  ;;  %7079 = vpow2.f32 %v3039_v23  ;;  %v3311_v60 = vadd.f32 %v3310_v6, %v3221_v56  ;;  %v10802_v6 = vpop.f32.mrf.mxu0  ;;  %v13833_v23 = vld [vmem:[#allocation20_spill] sm:$0xff] }
 0x4ee   : > { %v10796_v30 = vpop.f32.mrf.mxu1  ;;  %v2860_v53 = vpop.xlane.xlu0 %2859 }
 0x4ef   : > { %v2931_v51 = vsub.f32 %v10485_v61, %v2860_v53  ;;  %v2932_v47 = vsub.f32 %v10490_v5, %v2860_v53  ;;  %v3418_v58 = vmul.f32 %v7076_v26, %v3311_v60  ;;  %v3094_v60 = vpop.xlane.xlu2 %3093 }
 0x4f0   : > { %3263 = vmatmul.bf16.gmra.mxu2 %v3193_v9 }
 0x4f1   : > { %v3041_v40 = vmul.f32 1.442695, %v2931_v51  ;;  %v3043_v57 = vmul.f32 1.442695, %v2932_v47  ;;  %6426 = vmatmul.msk.bf16.gmra.mxu1 %vm1550_vm0, %v13786_v27  ;;  %v6617_v28 = vpack.i.bf16 %v3418_v58, %v3417_v24  ;;  %3352 = vmatmul.bf16.gmra.mxu3 %v3194_v16 }
 0x4f2   : > { %v7078_v12 = vpop.eup %7077 }
 0x4f3   : > { %v7080_v55 = vpop.eup %7079  ;;  %7081 = vpow2.f32 %v3041_v40  ;;  %6434 = vmatmul.msk.bf16.gmra.mxu0 %vm1550_vm0, %v13833_v23  ;;  %v3224_v61 = vpop.f32.mrf.mxu2 }
 0x4f4   : > { %7083 = vpow2.f32 %v3043_v57  ;;  %6618 = vrot.lane.b32.xlu1 %v6617_v28, %s7878_s25  ;;  %v10807_v5 = vadd.f32 %v7080_v55, %v7078_v12  ;;  %v3313_v31 = vpop.f32.mrf.mxu3 }
 0x4f5   : > { %7085 = vrcp.f32 %v10775_v22  ;;  %v3314_v24 = vadd.f32 %v3313_v31, %v3224_v61  ;;  %v10818_v40 = vpop.f32.mrf.mxu0 }
 0x4f6   : > { %13834 = vst [vmem:[#allocation20_spill] sm:$0xff] %v10807_v5  ;;  %v10809_v17 = vpop.f32.mrf.mxu1  ;;  %v10811_v27 = vpop.xlane.xlu0 %3099  ;;  %7087 = vrcp.f32 %v3094_v60 }
 0x4f7   : > { %v2863_v56 = vpop.xlane.xlu1 %2862  ;;  %13836 = vst [vmem:[#allocation102_spill] sm:$0xff] %v10818_v40 }
 0x4f8   : > { %v2933_v9 = vsub.f32 %v10502_v38, %v2863_v56  ;;  %v2934_v59 = vsub.f32 %v10509_v10, %v2863_v56 }
 0x4f9   : > { %v7082_v16 = vpop.eup %7081 }
 0x4fa   : > { %v7084_v53 = vpop.eup %7083  ;;  %v3045_v26 = vmul.f32 1.442695, %v2933_v9  ;;  %v3047_v51 = vmul.f32 1.442695, %v2934_v59  ;;  %v3195_v28 = vpack.c.bf16 %v7082_v16, %v7078_v12  ;;  %v13837_v12 = vld [vmem:[#allocation28_spill] sm:$0xff] }
 0x4fb   : > { %v10816_v47 = vadd.f32 %v7084_v53, %v7082_v16  ;;  %v3226_v58 = vpop.f32.mrf.mxu2  ;;  %v7086_v22 = vpop.eup %7085  ;;  %v3196_v38 = vpack.c.bf16 %v7084_v53, %v7080_v55 }
 0x4fc   : > { %7089 = vpow2.f32 %v3045_v26  ;;  %v3315_v57 = vpop.f32.mrf.mxu3  ;;  %v7088_v60 = vpop.eup %7087  ;;  %v3419_v56 = vmul.f32 %v7086_v22, %v3314_v24 }
 0x4fd   : > { %13835 = vst [vmem:[#allocation101_spill] sm:$0xff] %v10816_v47  ;;  %7091 = vpow2.f32 %v3047_v51  ;;  %v3316_v5 = vadd.f32 %v3315_v57, %v3226_v58  ;;  %v10837_v24 = vpop.f32.mrf.mxu0 }
 0x4fe   : > { %v3725_v36 = vpop.f32.mrf.mxu1  ;;  %v10820_v10 = vpop.xlane.xlu0 %3102 }
 0x4ff   : > { %v3420_v9 = vmul.f32 %v7088_v60, %v3316_v5 }
 0x500   : > { %v10822_v59 = vpop.xlane.xlu1 %3105  ;;  %3268 = vmatmul.bf16.gmra.mxu2 %v3195_v28 }
 0x501   : > { %6427 = vmatmul.msk.bf16.gmra.mxu1 %vm1550_vm0, %v13789_v8  ;;  %v6622_v31 = vpack.i.bf16 %v3420_v9, %v3419_v56  ;;  %3357 = vmatmul.bf16.gmra.mxu3 %v3196_v38  ;;  %v7695_v56 = vld [vmem:[%s13426_s3 + $0x58] sm:$0xff] }
 0x502   : > { %v7090_v61 = vpop.eup %7089  ;;  %v10847_v9 = vadd.f32 %v7695_v56, %v10787_v50 }
 0x503   : > { %v7092_v26 = vpop.eup %7091  ;;  %6435 = vmatmul.msk.bf16.gmra.mxu0 %vm1550_vm0, %v13837_v12  ;;  %6623 = vrot.lane.b32.xlu2 %v6622_v31, %s7878_s25  ;;  %v10829_v55 = vpop.f32.mrf.mxu2 }
 0x504   : > { %v10831_v16 = vadd.f32 %v7092_v26, %v7090_v61  ;;  %v10833_v5 = vpop.f32.mrf.mxu3  ;;  %13839 = vst [vmem:[#allocation103_spill] sm:$0xff] %v10847_v9  ;;  %v10849_v31 = vpop.xlane.xlu2 %3096 }
 0x506   : > { %13838 = vst [vmem:[#allocation28_spill] sm:$0xff] %v10831_v16  ;;  %v10835_v53 = vpop.f32.mrf.mxu1  ;;  %v2866_v51 = vpop.xlane.xlu0 %2865 }
 0x507   : > { %v2935_v8 = vsub.f32 %v10536_v11, %v2866_v51  ;;  %v2936_v58 = vsub.f32 %v10530_v4, %v2866_v51 }
 0x508   : > { %v2869_v57 = vpop.xlane.xlu1 %2868 }
 0x509   : > { %v3049_v28 = vmul.f32 1.442695, %v2935_v8  ;;  %v3051_v22 = vmul.f32 1.442695, %v2936_v58  ;;  %v2937_v38 = vsub.f32 %v10542_v32, %v2869_v57  ;;  %v2938_v60 = vsub.f32 %v10549_v2, %v2869_v57  ;;  %v7696_v32 = vld [vmem:[%s13426_s3 + $0x50] sm:$0xff] }
 0x50a   : > { %v10857_v2 = vadd.f32 %v7696_v32, %v10446_v48 }
 0x50b   : > { %7093 = vpow2.f32 %v3049_v28  ;;  %v3053_v11 = vmul.f32 1.442695, %v2937_v38  ;;  %v3055_v4 = vmul.f32 1.442695, %v2938_v60  ;;  %v10851_v51 = vpop.f32.mrf.mxu2  ;;  %v7697_v60 = vld [vmem:[%s13426_s3 + $0x88] sm:$0xff] }
 0x50c   : > { %7095 = vpow2.f32 %v3051_v22  ;;  %v10859_v8 = vpop.f32.mrf.mxu3  ;;  %v3800_v57 = vmax.f32 %v10857_v2, %v10847_v9  ;;  %v10867_v22 = vpop.f32.mrf.mxu0  ;;  %v10874_v56 = vadd.f32 %v7697_v60, %v3725_v36 }
 0x50d   : > { %7097 = vpow2.f32 %v3053_v11  ;;  %v13840_v11 = vld [vmem:[#allocation27_spill] sm:$0xff] }
 0x50e   : > { %v10861_v50 = vpop.f32.mrf.mxu1  ;;  %v10863_v58 = vpop.xlane.xlu0 %3108  ;;  %7099 = vpow2.f32 %v3055_v4 }
 0x50f   : > { %7101 = vrcp.f32 %v10820_v10 }
 0x510   : > { %v10882_v47 = vpop.xlane.xlu2 %3111  ;;  %7103 = vrcp.f32 %v10822_v59 }
 0x511   : > { %v7094_v28 = vpop.eup %7093  ;;  %6428 = vmatmul.msk.bf16.gmra.mxu1 %vm1550_vm0, %v13792_v63  ;;  %3801 = vmax.xlane.f32.xlu0 %v3800_v57 }
 0x512   : > { %v7096_v48 = vpop.eup %7095  ;;  %v3197_v38 = vpack.c.bf16 %v7094_v28, %v7090_v61  ;;  %v7698_v61 = vld [vmem:[%s13426_s3 + $0x80] sm:$0xff] }
 0x513   : > { %6436 = vmatmul.msk.bf16.gmra.mxu0 %vm1550_vm0, %v13840_v11  ;;  %v3198_v32 = vpack.c.bf16 %v7096_v48, %v7092_v26  ;;  %v10878_v4 = vadd.f32 %v7096_v48, %v7094_v28  ;;  %v10880_v16 = vpop.eup %7097  ;;  %v3234_v63 = vpop.f32.mrf.mxu2  ;;  %v10890_v36 = vadd.f32 %v7698_v61, %v10511_v46  ;;  %v7699_v46 = vld [vmem:[%s13426_s3 + $0x68] sm:$0xff] }
 0x514   : > { %3273 = vmatmul.bf16.gmra.mxu2 %v3197_v38  ;;  %v10884_v57 = vpop.eup %7099  ;;  %v3323_v60 = vpop.f32.mrf.mxu3 }
 0x515   : > { %13841 = vst [vmem:[#allocation104_spill] sm:$0xff] %v10878_v4  ;;  %3362 = vmatmul.bf16.gmra.mxu3 %v3198_v32  ;;  %v3324_v26 = vadd.f32 %v3323_v60, %v3234_v63  ;;  %v10896_v4 = vadd.f32 %v10884_v57, %v10880_v16  ;;  %v3809_v38 = vmax.f32 %v10890_v36, %v10874_v56  ;;  %v7102_v10 = vpop.eup %7101 }
 0x516   : > { %v10892_v28 = vpop.f32.mrf.mxu1  ;;  %v2875_v48 = vpop.xlane.xlu1 %2874  ;;  %v10906_v32 = vadd.f32 %v7699_v46, %v10796_v30 }
 0x517   : > { %13842 = vst [vmem:[#allocation105_spill] sm:$0xff] %v10896_v4  ;;  %v2872_v40 = vpop.xlane.xlu0 %2871  ;;  %v2941_v11 = vsub.f32 %v10580_v41, %v2875_v48  ;;  %v2942_v9 = vsub.f32 %v10585_v19, %v2875_v48  ;;  %v7700_v41 = vld [vmem:[%s13426_s3 + $0x60] sm:$0xff]  ;;  %v10918_v4 = vpop.f32.mrf.mxu0 }
 0x518   : > { %v2939_v63 = vsub.f32 %v10593_v18, %v2872_v40  ;;  %v2940_v61 = vsub.f32 %v10572_v25, %v2872_v40  ;;  %v10916_v19 = vadd.f32 %v7700_v41, %v10469_v44  ;;  %v10922_v59 = vpop.xlane.xlu2 %3114 }
 0x519   : > { %v3061_v60 = vmul.f32 1.442695, %v2941_v11  ;;  %3810 = vmax.xlane.f32.xlu0 %v3809_v38  ;;  %v3063_v46 = vmul.f32 1.442695, %v2942_v9  ;;  %13843 = vst [vmem:[#allocation106_spill] sm:$0xff] %v10922_v59  ;;  %v7104_v38 = vpop.eup %7103  ;;  %v7701_v9 = vld [vmem:[%s13426_s3 + $0x78] sm:$0xff] }
 0x51a   : > { %v3057_v48 = vmul.f32 1.442695, %v2939_v63  ;;  %v3059_v30 = vmul.f32 1.442695, %v2940_v61  ;;  %v3803_v25 = vmax.f32 %v10916_v19, %v10906_v32  ;;  %v10930_v63 = vadd.f32 %v7701_v9, %v10809_v17  ;;  %v7702_v17 = vld [vmem:[%s13426_s3 + $0x70] sm:$0xff] }
 0x51b   : > { %7105 = vpow2.f32 %v3061_v60  ;;  %v3236_v18 = vpop.f32.mrf.mxu2  ;;  %v10932_v60 = vmul.f32 %v7102_v10, %v3324_v26 }
 0x51c   : > { %7107 = vpow2.f32 %v3057_v48  ;;  %v3325_v40 = vpop.f32.mrf.mxu3 }
 0x51d   : > { %7109 = vpow2.f32 %v3059_v30  ;;  %v3326_v11 = vadd.f32 %v3325_v40, %v3236_v18  ;;  %13844 = vst [vmem:[#allocation107_spill] sm:$0xff] %v10932_v60  ;;  %v10946_v18 = vadd.f32 %v7702_v17, %v10492_v29 }
 0x51e   : > { %7111 = vpow2.f32 %v3063_v46  ;;  %v10924_v44 = vpop.f32.mrf.mxu1  ;;  %3804 = vmax.xlane.f32.xlu1 %v3803_v25 }
 0x51f   : > { %v2878_v61 = vpop.xlane.xlu0 %2877  ;;  %v10934_v41 = vmul.f32 %v7104_v38, %v3326_v11  ;;  %v3806_v38 = vmax.f32 %v10946_v18, %v10930_v63  ;;  %v10960_v17 = vpop.f32.mrf.mxu0 }
 0x520   : > { %v2943_v48 = vsub.f32 %v10611_v20, %v2878_v61  ;;  %v2944_v30 = vsub.f32 %v10616_v13, %v2878_v61  ;;  %v13846_v13 = vld [vmem:[#allocation35_spill] sm:$0xff] }
 0x521   : > { %13845 = vst [vmem:[#allocation108_spill] sm:$0xff] %v10934_v41  ;;  %v10938_v46 = vpop.eup %7105  ;;  %6429 = vmatmul.msk.bf16.gmra.mxu1 %vm1550_vm0, %v13796_v1 }
 0x522   : > { %v7108_v25 = vpop.eup %7107  ;;  %v3065_v40 = vmul.f32 1.442695, %v2943_v48  ;;  %v3067_v20 = vmul.f32 1.442695, %v2944_v30 }
 0x523   : > { %v7110_v10 = vpop.eup %7109  ;;  %6437 = vmatmul.msk.bf16.gmra.mxu0 %vm1550_vm0, %v13846_v13  ;;  %v3199_v11 = vpack.c.bf16 %v7108_v25, %v10880_v16  ;;  %v3239_v9 = vpop.f32.mrf.mxu2  ;;  %v7703_v16 = vld [vmem:[%s13426_s3 + $0xd0] sm:$0xff] }
 0x524   : > { %v10953_v1 = vpop.eup %7111  ;;  %7113 = vpow2.f32 %v3065_v40  ;;  %v3200_v29 = vpack.c.bf16 %v7110_v10, %v10884_v57  ;;  %v10958_v61 = vadd.f32 %v7110_v10, %v7108_v25  ;;  %v3328_v48 = vpop.f32.mrf.mxu3  ;;  %v10970_v40 = vadd.f32 %v7703_v16, %v10622_v3 }
 0x525   : > { %7115 = vpow2.f32 %v3067_v20  ;;  %3278 = vmatmul.bf16.gmra.mxu2 %v3199_v11  ;;  %v10964_v30 = vadd.f32 %v10953_v1, %v10938_v46  ;;  %v3329_v26 = vadd.f32 %v3328_v48, %v3239_v9  ;;  %v7704_v20 = vld [vmem:[%s13426_s3 + $0xa8] sm:$0xff]  ;;  %v7705_v11 = vld [vmem:[%s13426_s3 + $0xd8] sm:$0xff] }
 0x526   : > { %13847 = vst [vmem:[#allocation35_spill] sm:$0xff] %v10958_v61  ;;  %3367 = vmatmul.bf16.gmra.mxu3 %v3200_v29  ;;  %v3737_v57 = vpop.f32.mrf.mxu1  ;;  %3807 = vmax.xlane.f32.xlu1 %v3806_v38  ;;  %v2881_v25 = vpop.xlane.xlu2 %2880  ;;  %v10976_v10 = vadd.f32 %v7704_v20, %v10861_v50  ;;  %v7706_v38 = vld [vmem:[%s13426_s3 + $0xa0] sm:$0xff]  ;;  %v7707_v50 = vld [vmem:[%s13426_s3 + $0x98] sm:$0xff]  ;;  %7117 = vrcp.f32 %v10863_v58 }
 0x527   : > { %13848 = vst [vmem:[#allocation109_spill] sm:$0xff] %v10964_v30  ;;  %v10981_v30 = vadd.f32 %v7705_v11, %v3737_v57  ;;  %v2945_v3 = vsub.f32 %v10630_v42, %v2881_v25  ;;  %v2946_v9 = vsub.f32 %v10635_v52, %v2881_v25  ;;  %v10989_v29 = vadd.f32 %v7706_v38, %v10551_v0  ;;  %v7708_v0 = vld [vmem:[%s13426_s3 + $0x90] sm:$0xff] }
 0x528   : > { %v10995_v48 = vadd.f32 %v7707_v50, %v10835_v53  ;;  %7119 = vrcp.f32 %v10882_v47  ;;  %v11005_v25 = vadd.f32 %v7708_v0, %v10523_v39 }
 0x529   : > { %v3824_v42 = vmax.f32 %v10970_v40, %v10981_v30  ;;  %v3069_v52 = vmul.f32 1.442695, %v2945_v3  ;;  %v3071_v16 = vmul.f32 1.442695, %v2946_v9  ;;  %v3815_v53 = vmax.f32 %v10989_v29, %v10976_v10  ;;  %v11013_v3 = vpop.xlane.xlu1 %3117 }
 0x52a   : > { %v7114_v57 = vpop.eup %7113  ;;  %v3812_v47 = vmax.f32 %v11005_v25, %v10995_v48  ;;  %13850 = vst [vmem:[#allocation111_spill] sm:$0xff] %v11013_v3 }
 0x52b   : > { %v7116_v20 = vpop.eup %7115  ;;  %7121 = vpow2.f32 %v3069_v52  ;;  %3825 = vmax.xlane.f32.xlu0 %v3824_v42  ;;  %v3241_v58 = vpop.f32.mrf.mxu2  ;;  %v7709_v42 = vld [vmem:[%s13426_s3 + $0xc8] sm:$0xff] }
 0x52c   : > { %7123 = vpow2.f32 %v3071_v16  ;;  %v11011_v11 = vadd.f32 %v7116_v20, %v7114_v57  ;;  %v3330_v9 = vpop.f32.mrf.mxu3  ;;  %3816 = vmax.xlane.f32.xlu2 %v3815_v53  ;;  %v7118_v38 = vpop.eup %7117  ;;  %v11023_v16 = vadd.f32 %v7709_v42, %v10924_v44 }
 0x52d   : > { %v3331_v39 = vadd.f32 %v3330_v9, %v3241_v58  ;;  %v11017_v52 = vpop.f32.mrf.mxu0  ;;  %v11027_v59 = vmul.f32 %v7118_v38, %v3329_v26  ;;  %v7710_v9 = vld [vmem:[%s13426_s3 + $0xc0] sm:$0xff]  ;;  %v3201_v38 = vpack.c.bf16 %v7114_v57, %v10938_v46 }
 0x52e   : > { %13849 = vst [vmem:[#allocation110_spill] sm:$0xff] %v11011_v11  ;;  %v11015_v50 = vpop.f32.mrf.mxu1  ;;  %3813 = vmax.xlane.f32.xlu1 %v3812_v47  ;;  %v2884_v0 = vpop.xlane.xlu0 %2883  ;;  %v11037_v3 = vadd.f32 %v7710_v9, %v10597_v35 }
 0x52f   : > { %v7120_v61 = vpop.eup %7119  ;;  %13851 = vst [vmem:[#allocation112_spill] sm:$0xff] %v11023_v16  ;;  %v2947_v11 = vsub.f32 %v10655_v15, %v2884_v0  ;;  %v2948_v53 = vsub.f32 %v10660_v7, %v2884_v0  ;;  %v13858_v7 = vld [vmem:[#allocation51_spill] sm:$0xff] }
 0x530   : > { %13852 = vst [vmem:[#allocation113_spill] sm:$0xff] %v11027_v59  ;;  %v11029_v58 = vmul.f32 %v7120_v61, %v3331_v39  ;;  %v3821_v26 = vmax.f32 %v11037_v3, %v11023_v16  ;;  %v13854_v61 = vld [vmem:[#allocation36_spill] sm:$0xff] }
 0x531   : > { %v11031_v47 = vpop.eup %7121  ;;  %v3073_v60 = vmul.f32 1.442695, %v2947_v11  ;;  %v3075_v44 = vmul.f32 1.442695, %v2948_v53  ;;  %6430 = vmatmul.msk.bf16.gmra.mxu1 %vm1550_vm0, %v13802_v49  ;;  %v3202_v49 = vpack.c.bf16 %v7116_v20, %v10953_v1  ;;  %v13857_v53 = vld [vmem:[#allocation14_spill] sm:$0xff] }
 0x532   : > { %13853 = vst [vmem:[#allocation114_spill] sm:$0xff] %v11029_v58  ;;  %v7124_v15 = vpop.eup %7123 }
 0x533   : > { %7125 = vpow2.f32 %v3073_v60  ;;  %6438 = vmatmul.msk.bf16.gmra.mxu0 %vm1550_vm0, %v13854_v61  ;;  %v11049_v35 = vadd.f32 %v7124_v15, %v11031_v47  ;;  %v3244_v11 = vpop.f32.mrf.mxu2 }
 0x534   : > { %7127 = vpow2.f32 %v3075_v44  ;;  %v3333_v39 = vpop.f32.mrf.mxu3  ;;  %3822 = vmax.xlane.f32.xlu2 %v3821_v26 }
 0x535   : > { %13855 = vst [vmem:[#allocation36_spill] sm:$0xff] %v11049_v35  ;;  %3283 = vmatmul.bf16.gmra.mxu2 %v3201_v38  ;;  %v11052_v0 = vadd.f32 %v3333_v39, %v3244_v11  ;;  %v11058_v59 = vpop.f32.mrf.mxu0  ;;  %7129 = vrcp.f32 %v10811_v27  ;;  %v3321_v11 = vadd.f32 %v10859_v8, %v10851_v51  ;;  %v13862_v8 = vld [vmem:[#allocation7_spill] sm:$0xff]  ;;  %v13863_v35 = vld [vmem:[#allocation34_spill] sm:$0xff] }
 0x536   : > { %3372 = vmatmul.bf16.gmra.mxu3 %v3202_v49  ;;  %v11054_v42 = vpop.f32.mrf.mxu1  ;;  %v3787_v60 = vpop.xlane.xlu1 %3786  ;;  %7131 = vrcp.f32 %v10849_v31  ;;  %v3319_v31 = vadd.f32 %v10833_v5, %v10829_v55 }
 0x537   : > { %13856 = vst [vmem:[#allocation115_spill] sm:$0xff] %v11052_v0  ;;  %v3881_v9 = vsub.f32 %v13857_v53, %v3787_v60  ;;  %v3882_v46 = vsub.f32 %v13858_v7, %v3787_v60  ;;  %v7711_v7 = vld [vmem:[%s13426_s3 + $0x100] sm:$0xff]  ;;  %v7712_v53 = vld [vmem:[%s13426_s3 + $0x108] sm:$0xff]  ;;  %v13864_v0 = vld [vmem:[#allocation11_spill] sm:$0xff] }
 0x538   : > { %v11074_v39 = vadd.f32 %v7711_v7, %v10712_v33 }
 0x539   : > { %v7126_v57 = vpop.eup %7125  ;;  %v3945_v1 = vmul.f32 1.442695, %v3881_v9  ;;  %v3947_v26 = vmul.f32 1.442695, %v3882_v46 }
 0x53a   : > { %v7128_v44 = vpop.eup %7127 }
 0x53b   : > { %v11061_v20 = vadd.f32 %v7128_v44, %v7126_v57  ;;  %v11064_v38 = vpop.f32.mrf.mxu2  ;;  %7133 = vpow2.f32 %v3945_v1  ;;  %v7130_v46 = vpop.eup %7129 }
 0x53c   : > { %13860 = vst [vmem:[#allocation51_spill] sm:$0xff] %v11064_v38  ;;  %v11068_v49 = vpop.f32.mrf.mxu3  ;;  %7135 = vpow2.f32 %v3947_v26  ;;  %v3422_v33 = vmul.f32 %v7130_v46, %v3321_v11  ;;  %v7132_v55 = vpop.eup %7131  ;;  %v3203_v26 = vpack.c.bf16 %v7126_v57, %v11031_v47  ;;  %v3204_v11 = vpack.c.bf16 %v7128_v44, %v7124_v15  ;;  %v7714_v47 = vld [vmem:[%s13426_s3 + $0x118] sm:$0xff] }
 0x53d   : > { %13859 = vst [vmem:[#allocation14_spill] sm:$0xff] %v11061_v20  ;;  %v3421_v5 = vmul.f32 %v7132_v55, %v3319_v31  ;;  %v11089_v1 = vpop.f32.mrf.mxu0 }
 0x53e   : > { %13861 = vst [vmem:[#allocation116_spill] sm:$0xff] %v11068_v49  ;;  %v3745_v27 = vpop.f32.mrf.mxu1  ;;  %v3790_v60 = vpop.xlane.xlu2 %3789 }
 0x53f   : > { %v11081_v51 = vadd.f32 %v7712_v53, %v3745_v27  ;;  %v3883_v9 = vsub.f32 %v13862_v8, %v3790_v60  ;;  %v3884_v20 = vsub.f32 %v13863_v35, %v3790_v60  ;;  %13865 = vst [vmem:[#allocation7_spill] sm:$0xff] %v11089_v1  ;;  %v13866_v27 = vld [vmem:[#allocation39_spill] sm:$0xff]  ;;  %v6627_v8 = vpack.i.bf16 %v3422_v33, %v3421_v5 }
 0x541   : > { %v3833_v7 = vmax.f32 %v11074_v39, %v11081_v51  ;;  %6447 = vmatmul.msk.bf16.vlgmr.msrb.gmra.mxu1 %vm1550_vm0, %v13864_v0  ;;  %v3949_v49 = vmul.f32 1.442695, %v3883_v9  ;;  %v3951_v53 = vmul.f32 1.442695, %v3884_v20  ;;  %v7134_v60 = vpop.eup %7133  ;;  %v7713_v9 = vld [vmem:[%s13426_s3 + $0x110] sm:$0xff] }
 0x542   : > { %v7136_v38 = vpop.eup %7135 }
 0x543   : > { %6439 = vmatmul.msk.bf16.gmra.mxu0 %vm1550_vm0, %v13866_v27  ;;  %3834 = vmax.xlane.f32.xlu2 %v3833_v7  ;;  %v3249_v35 = vpop.f32.mrf.mxu2  ;;  %v11100_v7 = vadd.f32 %v7713_v9, %v10739_v43  ;;  %7137 = vpow2.f32 %v3949_v49  ;;  %v4073_v44 = vadd.f32 %v7136_v38, %v7134_v60  ;;  %v13870_v9 = vld [vmem:[#allocation68_spill] sm:$0xff] }
 0x544   : > { %v3338_v46 = vpop.f32.mrf.mxu3  ;;  %7139 = vpow2.f32 %v3951_v53 }
 0x545   : > { %3288 = vmatmul.bf16.gmra.mxu2 %v3203_v26  ;;  %v11094_v0 = vadd.f32 %v3338_v46, %v3249_v35  ;;  %v11112_v33 = vpop.f32.mrf.mxu0 }
 0x546   : > { %3377 = vmatmul.bf16.gmra.mxu3 %v3204_v11  ;;  %v3747_v31 = vpop.f32.mrf.mxu1  ;;  %v3793_v35 = vpop.xlane.xlu0 %3792 }
 0x547   : > { %13867 = vst [vmem:[#allocation34_spill] sm:$0xff] %v11094_v0  ;;  %v11105_v15 = vadd.f32 %v7714_v47, %v3747_v31  ;;  %6628 = vrot.lane.b32.xlu1 %v6627_v8, %s7878_s25  ;;  %v3885_v47 = vsub.f32 %v13870_v9, %v3793_v35 }
 0x549   : > { %v3836_v57 = vmax.f32 %v11100_v7, %v11105_v15  ;;  %v7138_v43 = vpop.eup %7137 }
 0x54a   : > { %v7140_v55 = vpop.eup %7139 }
 0x54b   : > { %3837 = vmax.xlane.f32.xlu0 %v3836_v57  ;;  %4074 = vadd.xlane.f32.xlu2 %v4073_v44  ;;  %v11110_v20 = vpop.f32.mrf.mxu2  ;;  %v4076_v31 = vadd.f32 %v7140_v55, %v7138_v43  ;;  %v4169_v57 = vpack.c.bf16 %v7138_v43, %v7134_v60  ;;  %v13871_v44 = vld [vmem:[#allocation47_spill] sm:$0xff]  ;;  %v4170_v58 = vpack.c.bf16 %v7140_v55, %v7136_v38  ;;  %v7716_v38 = vld [vmem:[%s13426_s3 + $0x138] sm:$0xff] }
 0x54c   : > { %13868 = vst [vmem:[#allocation11_spill] sm:$0xff] %v11110_v20  ;;  %v11114_v49 = vpop.f32.mrf.mxu3  ;;  %v7715_v60 = vld [vmem:[%s13426_s3 + $0x130] sm:$0xff] }
 0x54d   : > { %13869 = vst [vmem:[#allocation39_spill] sm:$0xff] %v11114_v49  ;;  %v11132_v43 = vadd.f32 %v7715_v60, %v10792_v34 }
 0x54e   : > { %v11116_v5 = vpop.f32.mrf.mxu1  ;;  %v3796_v26 = vpop.xlane.xlu1 %3795 }
 0x54f   : > { %v3887_v53 = vsub.f32 %v10745_v54, %v3796_v26  ;;  %v3888_v11 = vsub.f32 %v10750_v37, %v3796_v26  ;;  %v13872_v54 = vld [vmem:[#allocation37_spill] sm:$0xff]  ;;  %v3953_v26 = vmul.f32 1.442695, %v3885_v47 }
 0x550   : > { %v3886_v20 = vsub.f32 %v13872_v54, %v3793_v35 }
 0x551   : > { %v3957_v8 = vmul.f32 1.442695, %v3887_v53  ;;  %v3959_v46 = vmul.f32 1.442695, %v3888_v11  ;;  %6448 = vmatmul.msk.bf16.gmra.mxu1 %vm1550_vm0, %v13825_v21 }
 0x553   : > { %7141 = vpow2.f32 %v3957_v8  ;;  %6440 = vmatmul.msk.bf16.gmra.mxu0 %vm1550_vm0, %v13871_v44  ;;  %4077 = vadd.xlane.f32.xlu0 %v4076_v31  ;;  %v3254_v49 = vpop.f32.mrf.mxu2 }
 0x554   : > { %7143 = vpow2.f32 %v3959_v46  ;;  %v3343_v37 = vpop.f32.mrf.mxu3  ;;  %v3955_v46 = vmul.f32 1.442695, %v3886_v20  ;;  %v7717_v20 = vld [vmem:[%s13426_s3 + $0x148] sm:$0xff] }
 0x555   : > { %4257 = vmatmul.bf16.vlgmr.msra.gmra.mxu2 %v4169_v57  ;;  %v11126_v53 = vadd.f32 %v3343_v37, %v3254_v49  ;;  %7145 = vpow2.f32 %v3953_v26  ;;  %v7718_v26 = vld [vmem:[%s13426_s3 + $0x140] sm:$0xff] }
 0x556   : > { %4346 = vmatmul.bf16.vlgmr.msra.gmra.mxu3 %v4170_v58  ;;  %v3752_v21 = vpop.f32.mrf.mxu1  ;;  %v3799_v11 = vpop.xlane.xlu2 %3798 }
 0x557   : > { %13873 = vst [vmem:[#allocation68_spill] sm:$0xff] %v11126_v53  ;;  %v11137_v55 = vadd.f32 %v7716_v38, %v3752_v21  ;;  %v3889_v35 = vsub.f32 %v10768_v45, %v3799_v11  ;;  %v3890_v49 = vsub.f32 %v10773_v14, %v3799_v11  ;;  %v11141_v58 = vpop.f32.mrf.mxu0  ;;  %v11160_v11 = vadd.f32 %v7718_v26, %v10802_v6  ;;  %v7719_v26 = vld [vmem:[%s13426_s3 + $0xb8] sm:$0xff] }
 0x559   : > { %v7142_v8 = vpop.eup %7141  ;;  %v3842_v31 = vmax.f32 %v11132_v43, %v11137_v55  ;;  %v3961_v9 = vmul.f32 1.442695, %v3889_v35  ;;  %v3963_v34 = vmul.f32 1.442695, %v3890_v49 }
 0x55a   : > { %v7144_v47 = vpop.eup %7143 }
 0x55b   : > { %7147 = vpow2.f32 %v3961_v9  ;;  %3843 = vmax.xlane.f32.xlu0 %v3842_v31  ;;  %v4082_v57 = vadd.f32 %v7144_v47, %v7142_v8  ;;  %v11145_v54 = vpop.f32.mrf.mxu2  ;;  %v11154_v21 = vpop.eup %7145  ;;  %v13877_v31 = vld [vmem:[#allocation50_spill] sm:$0xff] }
 0x55c   : > { %7149 = vpow2.f32 %v3963_v34  ;;  %13874 = vst [vmem:[#allocation47_spill] sm:$0xff] %v11145_v54  ;;  %v11147_v45 = vpop.f32.mrf.mxu3  ;;  %v4171_v9 = vpack.c.bf16 %v7142_v8, %v11154_v21 }
 0x55d   : > { %7151 = vpow2.f32 %v3955_v46  ;;  %13875 = vst [vmem:[#allocation37_spill] sm:$0xff] %v11147_v45  ;;  %4083 = vadd.xlane.f32.xlu2 %v4082_v57  ;;  %v11188_v45 = vadd.f32 %v7719_v26, %v10892_v28  ;;  %v7722_v26 = vld [vmem:[%s13426_s3 + $0x168] sm:$0xff] }
 0x55e   : > { %v3755_v14 = vpop.f32.mrf.mxu1 }
 0x55f   : > { %v11152_v37 = vadd.f32 %v7717_v20, %v3755_v14  ;;  %v11168_v35 = vpop.f32.mrf.mxu0 }
 0x560   : > { %13876 = vst [vmem:[#allocation117_spill] sm:$0xff] %v11168_v35 }
 0x561   : > { %v11162_v60 = vpop.eup %7147  ;;  %6449 = vmatmul.msk.bf16.gmra.mxu1 %vm1550_vm0, %v13830_v62  ;;  %v3845_v49 = vmax.f32 %v11160_v11, %v11152_v37 }
 0x562   : > { %v11166_v38 = vpop.eup %7149 }
 0x563   : > { %v11172_v46 = vpop.eup %7151  ;;  %6441 = vmatmul.msk.bf16.gmra.mxu0 %vm1550_vm0, %v13877_v31  ;;  %v4085_v6 = vadd.f32 %v11166_v38, %v11162_v60  ;;  %v3259_v34 = vpop.f32.mrf.mxu2 }
 0x564   : > { %v4172_v62 = vpack.c.bf16 %v7144_v47, %v11172_v46  ;;  %v3348_v57 = vpop.f32.mrf.mxu3  ;;  %v7720_v47 = vld [vmem:[%s13426_s3 + $0xb0] sm:$0xff] }
 0x565   : > { %4086 = vadd.xlane.f32.xlu0 %v4085_v6  ;;  %4262 = vmatmul.bf16.gmra.mxu2 %v4171_v9  ;;  %v11180_v14 = vadd.f32 %v3348_v57, %v3259_v34  ;;  %v13880_v6 = vld [vmem:[#allocation46_spill] sm:$0xff] }
 0x566   : > { %4351 = vmatmul.bf16.gmra.mxu3 %v4172_v62  ;;  %3846 = vmax.xlane.f32.xlu2 %v3845_v49  ;;  %v11182_v20 = vpop.f32.mrf.mxu1  ;;  %v11198_v9 = vadd.f32 %v7720_v47, %v13880_v6  ;;  %v7721_v62 = vld [vmem:[%s13426_s3 + $0x160] sm:$0xff]  ;;  %v11300_v16 = vpop.permute.xlu1 %6618 }
 0x567   : > { %13878 = vst [vmem:[#allocation50_spill] sm:$0xff] %v11180_v14  ;;  %v11190_v8 = vpop.f32.mrf.mxu0  ;;  %v11206_v28 = vadd.f32 %v7721_v62, %v10837_v24  ;;  %v7723_v24 = vld [vmem:[%s13426_s3 + $0xe8] sm:$0xff]  ;;  %v13882_v62 = vld [vmem:[#allocation72_spill] sm:$0xff] }
 0x568   : > { %v3818_v57 = vmax.f32 %v11198_v9, %v11188_v45  ;;  %v11223_v6 = vadd.f32 %v7723_v24, %v11015_v50  ;;  %v7725_v50 = vld [vmem:[%s13426_s3 + $0x170] sm:$0xff] }
 0x56b   : > { %v11192_v54 = vpop.f32.mrf.mxu2 }
 0x56c   : > { %13879 = vst [vmem:[#allocation118_spill] sm:$0xff] %v11192_v54  ;;  %v11200_v49 = vpop.f32.mrf.mxu3 }
 0x56d   : > { %13881 = vst [vmem:[#allocation46_spill] sm:$0xff] %v11200_v49  ;;  %v13883_v49 = vld [vmem:[#allocation13_spill] sm:$0xff] }
 0x56e   : > { %v3760_v34 = vpop.f32.mrf.mxu1 }
 0x56f   : > { %v11213_v14 = vadd.f32 %v7722_v26, %v3760_v34  ;;  %v7724_v26 = vld [vmem:[%s13426_s3 + $0xe0] sm:$0xff] }
 0x570   : > { %v11231_v54 = vadd.f32 %v7724_v26, %v13883_v49  ;;  %v7726_v49 = vld [vmem:[%s13426_s3 + $0x178] sm:$0xff] }
 0x571   : > { %v3851_v47 = vmax.f32 %v11206_v28, %v11213_v14  ;;  %6450 = vmatmul.msk.bf16.gmra.mxu1 %vm1550_vm0, %v13833_v23  ;;  %3819 = vmax.xlane.f32.xlu1 %v3818_v57  ;;  %v11233_v57 = vpop.f32.mrf.mxu0 }
 0x572   : > { %v3827_v24 = vmax.f32 %v11231_v54, %v11223_v6 }
 0x573   : > { %6442 = vmatmul.msk.bf16.gmra.mxu0 %vm1550_vm0, %v13882_v62  ;;  %3852 = vmax.xlane.f32.xlu0 %v3851_v47  ;;  %v3264_v34 = vpop.f32.mrf.mxu2  ;;  %v11241_v47 = vadd.f32 %v7725_v50, %v10867_v22  ;;  %v11258_v50 = vpop.permute.xlu0 %6613 }
 0x574   : > { %v3353_v23 = vpop.f32.mrf.mxu3  ;;  %13887 = vst [vmem:[#allocation121_spill] sm:$0xff] %v11258_v50  ;;  %v7730_v50 = vld [vmem:[%s13426_s3 + $0x120] sm:$0xff] }
 0x575   : > { %v11235_v53 = vadd.f32 %v3353_v23, %v3264_v34  ;;  %v7727_v23 = vld [vmem:[%s13426_s3 + $0xf8] sm:$0xff] }
 0x576   : > { %v3762_v0 = vpop.f32.mrf.mxu1  ;;  %v11256_v22 = vadd.f32 %v7727_v23, %v11054_v42 }
 0x577   : > { %13884 = vst [vmem:[#allocation13_spill] sm:$0xff] %v11235_v53  ;;  %v11248_v26 = vadd.f32 %v7726_v49, %v3762_v0  ;;  %v7728_v0 = vld [vmem:[%s13426_s3 + $0xf0] sm:$0xff]  ;;  %v13889_v49 = vld [vmem:[#allocation54_spill] sm:$0xff] }
 0x578   : > { %13886 = vst [vmem:[#allocation120_spill] sm:$0xff] %v11256_v22  ;;  %v11266_v41 = vadd.f32 %v7728_v0, %v13889_v49  ;;  %v13893_v49 = vld [vmem:[#allocation69_spill] sm:$0xff] }
 0x579   : > { %13885 = vst [vmem:[#allocation119_spill] sm:$0xff] %v11248_v26  ;;  %v3854_v34 = vmax.f32 %v11241_v47, %v11248_v26  ;;  %3828 = vmax.xlane.f32.xlu1 %v3827_v24  ;;  %v11274_v23 = vpop.f32.mrf.mxu0 }
 0x57a   : > { %13890 = vst [vmem:[#allocation54_spill] sm:$0xff] %v11266_v41  ;;  %v3830_v42 = vmax.f32 %v11266_v41, %v11256_v22  ;;  %v13895_v22 = vld [vmem:[#allocation103_spill] sm:$0xff] }
 0x57b   : > { %3855 = vmax.xlane.f32.xlu0 %v3854_v34  ;;  %v11260_v53 = vpop.f32.mrf.mxu2  ;;  %13892 = vst [vmem:[#allocation124_spill] sm:$0xff] %v11274_v23  ;;  %v7729_v34 = vld [vmem:[%s13426_s3 + $0x128] sm:$0xff]  ;;  %v13894_v23 = vld [vmem:[#allocation16_spill] sm:$0xff] }
 0x57c   : > { %13888 = vst [vmem:[#allocation122_spill] sm:$0xff] %v11260_v53  ;;  %v11268_v24 = vpop.f32.mrf.mxu3  ;;  %v11282_v0 = vadd.f32 %v7729_v34, %v11116_v5  ;;  %v11290_v1 = vadd.f32 %v7730_v50, %v13894_v23 }
 0x57d   : > { %13891 = vst [vmem:[#allocation123_spill] sm:$0xff] %v11268_v24 }
 0x57e   : > { %v11270_v35 = vpop.f32.mrf.mxu1  ;;  %v3839_v34 = vmax.f32 %v11290_v1, %v11282_v0  ;;  %13897 = vst [vmem:[#allocation103_spill] sm:$0xff] %v11300_v16 }
 0x581   : > { %6451 = vmatmul.msk.bf16.gmra.mxu1 %vm1550_vm0, %v13837_v12  ;;  %3831 = vmax.xlane.f32.xlu1 %v3830_v42  ;;  %v11302_v50 = vpop.f32.mrf.mxu0 }
 0x582   : > { %13898 = vst [vmem:[#allocation125_spill] sm:$0xff] %v11302_v50 }
 0x583   : > { %6443 = vmatmul.msk.bf16.gmra.mxu0 %vm1550_vm0, %v13893_v49  ;;  %v3269_v24 = vpop.f32.mrf.mxu2 }
 0x584   : > { %v3802_v53 = vpop.xlane.xlu0 %3801  ;;  %v3358_v12 = vpop.f32.mrf.mxu3 }
 0x585   : > { %v3891_v42 = vsub.f32 %v10857_v2, %v3802_v53  ;;  %v3892_v41 = vsub.f32 %v13895_v22, %v3802_v53  ;;  %v11294_v62 = vadd.f32 %v3358_v12, %v3269_v24  ;;  %v4079_v22 = vadd.f32 %v11172_v46, %v11154_v21  ;;  %v13903_v21 = vld [vmem:[#allocation74_spill] sm:$0xff] }
 0x586   : > { %v11296_v5 = vpop.f32.mrf.mxu1 }
 0x587   : > { %13896 = vst [vmem:[#allocation16_spill] sm:$0xff] %v11294_v62  ;;  %v3965_v49 = vmul.f32 1.442695, %v3891_v42  ;;  %v3967_v26 = vmul.f32 1.442695, %v3892_v41  ;;  %v13901_v42 = vld [vmem:[#allocation27_spill] sm:$0xff] }
 0x589   : > { %7153 = vpow2.f32 %v3965_v49  ;;  %3840 = vmax.xlane.f32.xlu1 %v3839_v34  ;;  %v7731_v34 = vld [vmem:[%s13426_s3 + $0x158] sm:$0xff] }
 0x58a   : > { %7155 = vpow2.f32 %v3967_v26 }
 0x58b   : > { %v11306_v53 = vpop.f32.mrf.mxu2 }
 0x58c   : > { %13899 = vst [vmem:[#allocation126_spill] sm:$0xff] %v11306_v53  ;;  %v11310_v12 = vpop.f32.mrf.mxu3  ;;  %v11320_v53 = vadd.f32 %v7731_v34, %v11182_v20  ;;  %v3811_v16 = vpop.xlane.xlu0 %3810 }
 0x58d   : > { %13900 = vst [vmem:[#allocation127_spill] sm:$0xff] %v11310_v12 }
 0x58e   : > { %v11304_v23 = vpop.f32.mrf.mxu1  ;;  %13902 = vst [vmem:[#allocation27_spill] sm:$0xff] %v11320_v53 }
 0x58f   : > { %v7154_v2 = vpop.eup %7153 }
 0x590   : > { %v7156_v24 = vpop.eup %7155  ;;  %v4173_v41 = vpack.c.bf16 %v7154_v2, %v11162_v60  ;;  %v11324_v60 = vpop.f32.mrf.mxu0 }
 0x591   : > { %6452 = vmatmul.msk.bf16.gmra.mxu1 %vm1550_vm0, %v13901_v42  ;;  %4080 = vadd.xlane.f32.xlu1 %v4079_v22  ;;  %v3805_v49 = vpop.xlane.xlu1 %3804  ;;  %v4174_v26 = vpack.c.bf16 %v7156_v24, %v11166_v38  ;;  %13904 = vst [vmem:[#allocation128_spill] sm:$0xff] %v11324_v60  ;;  %v7732_v38 = vld [vmem:[%s13426_s3 + $0x150] sm:$0xff]  ;;  %v13905_v22 = vld [vmem:[#allocation102_spill] sm:$0xff] }
 0x592   : > { %4267 = vmatmul.bf16.gmra.mxu2 %v4173_v41  ;;  %v3893_v46 = vsub.f32 %v10916_v19, %v3805_v49  ;;  %v11331_v41 = vadd.f32 %v7732_v38, %v13905_v22  ;;  %v3894_v42 = vsub.f32 %v10906_v32, %v3805_v49  ;;  %v11342_v22 = vpop.permute.xlu2 %6623  ;;  %v3897_v32 = vsub.f32 %v10890_v36, %v3811_v16 }
 0x593   : > { %6444 = vmatmul.msk.bf16.gmra.mxu0 %vm1550_vm0, %v13903_v21  ;;  %4356 = vmatmul.bf16.gmra.mxu3 %v4174_v26  ;;  %13908 = vst [vmem:[#allocation130_spill] sm:$0xff] %v11342_v22 }
 0x594   : > { %13906 = vst [vmem:[#allocation102_spill] sm:$0xff] %v11331_v41  ;;  %v3848_v20 = vmax.f32 %v11331_v41, %v11320_v53  ;;  %v3969_v26 = vmul.f32 1.442695, %v3893_v46  ;;  %v3971_v60 = vmul.f32 1.442695, %v3894_v42  ;;  %v3898_v46 = vsub.f32 %v10874_v56, %v3811_v16 }
 0x596   : > { %v11334_v12 = vpop.f32.mrf.mxu1  ;;  %7157 = vpow2.f32 %v3969_v26 }
 0x597   : > { %v3274_v34 = vpop.f32.mrf.mxu2  ;;  %7159 = vpow2.f32 %v3971_v60 }
 0x598   : > { %v3363_v62 = vpop.f32.mrf.mxu3  ;;  %v11346_v41 = vpop.f32.mrf.mxu0 }
 0x599   : > { %v11338_v19 = vadd.f32 %v3363_v62, %v3274_v34  ;;  %3849 = vmax.xlane.f32.xlu1 %v3848_v20  ;;  %v3808_v50 = vpop.xlane.xlu1 %3807  ;;  %v13911_v34 = vld [vmem:[#allocation78_spill] sm:$0xff] }
 0x59a   : > { %v3895_v21 = vsub.f32 %v10946_v18, %v3808_v50  ;;  %v3896_v38 = vsub.f32 %v10930_v63, %v3808_v50  ;;  %v3977_v18 = vmul.f32 1.442695, %v3897_v32  ;;  %v4088_v63 = vadd.f32 %v7156_v24, %v7154_v2 }
 0x59b   : > { %13907 = vst [vmem:[#allocation129_spill] sm:$0xff] %v11338_v19  ;;  %v3979_v50 = vmul.f32 1.442695, %v3898_v46 }
 0x59c   : > { %v3973_v49 = vmul.f32 1.442695, %v3895_v21  ;;  %v3975_v53 = vmul.f32 1.442695, %v3896_v38  ;;  %v7158_v21 = vpop.eup %7157 }
 0x59d   : > { %v7160_v16 = vpop.eup %7159 }
 0x59e   : > { %7161 = vpow2.f32 %v3973_v49  ;;  %v11348_v62 = vpop.f32.mrf.mxu1 }
 0x59f   : > { %7163 = vpow2.f32 %v3975_v53  ;;  %v11350_v42 = vpop.f32.mrf.mxu2  ;;  %v3817_v60 = vpop.xlane.xlu2 %3816 }
 0x5a0   : > { %13909 = vst [vmem:[#allocation131_spill] sm:$0xff] %v11350_v42  ;;  %v11352_v20 = vpop.f32.mrf.mxu3  ;;  %7165 = vpow2.f32 %v3977_v18  ;;  %v11364_v19 = vpop.f32.mrf.mxu0 }
 0x5a1   : > { %13910 = vst [vmem:[#allocation132_spill] sm:$0xff] %v11352_v20  ;;  %6453 = vmatmul.msk.bf16.gmra.mxu1 %vm1550_vm0, %v13846_v13  ;;  %v3814_v36 = vpop.xlane.xlu1 %3813  ;;  %4089 = vadd.xlane.f32.xlu1 %v4088_v63  ;;  %7167 = vpow2.f32 %v3979_v50  ;;  %v3901_v13 = vsub.f32 %v10989_v29, %v3817_v60  ;;  %v3902_v63 = vsub.f32 %v10976_v10, %v3817_v60  ;;  %v7733_v10 = vld [vmem:[%s13426_s3 + $0x188] sm:$0xff] }
 0x5a2   : > { %v3899_v56 = vsub.f32 %v11005_v25, %v3814_v36  ;;  %v3900_v53 = vsub.f32 %v10995_v48, %v3814_v36  ;;  %v4091_v48 = vadd.f32 %v7160_v16, %v7158_v21  ;;  %v11372_v60 = vadd.f32 %v7733_v10, %v11270_v35 }
 0x5a3   : > { %6445 = vmatmul.msk.bf16.gmra.mxu0 %vm1550_vm0, %v13911_v34  ;;  %v3987_v20 = vmul.f32 1.442695, %v3902_v63 }
 0x5a4   : > { %v7162_v26 = vpop.eup %7161  ;;  %v3981_v2 = vmul.f32 1.442695, %v3899_v56  ;;  %v3983_v38 = vmul.f32 1.442695, %v3900_v53  ;;  %v3985_v56 = vmul.f32 1.442695, %v3901_v13  ;;  %v3826_v13 = vpop.xlane.xlu0 %3825 }
 0x5a5   : > { %v7164_v24 = vpop.eup %7163  ;;  %v4175_v32 = vpack.c.bf16 %v7162_v26, %v7158_v21  ;;  %v7734_v21 = vld [vmem:[%s13426_s3 + $0x180] sm:$0xff] }
 0x5a6   : > { %v11361_v49 = vpop.f32.mrf.mxu1  ;;  %v4176_v46 = vpack.c.bf16 %v7164_v24, %v7160_v16  ;;  %v4094_v25 = vadd.f32 %v7164_v24, %v7162_v26  ;;  %7169 = vpow2.f32 %v3981_v2  ;;  %v7166_v36 = vpop.eup %7165  ;;  %v11378_v16 = vadd.f32 %v7734_v21, %v10918_v4  ;;  %v7735_v4 = vld [vmem:[%s13426_s3 + $0x198] sm:$0xff] }
 0x5a7   : > { %4272 = vmatmul.bf16.gmra.mxu2 %v4175_v32  ;;  %7171 = vpow2.f32 %v3983_v38  ;;  %v7168_v29 = vpop.eup %7167  ;;  %v11380_v2 = vpop.xlane.xlu2 %3822 }
 0x5a8   : > { %4361 = vmatmul.bf16.gmra.mxu3 %v4176_v46  ;;  %4095 = vadd.xlane.f32.xlu2 %v4094_v25  ;;  %v3279_v18 = vpop.f32.mrf.mxu2  ;;  %7173 = vpow2.f32 %v3985_v56  ;;  %v4097_v38 = vadd.f32 %v7168_v29, %v7166_v36  ;;  %v3857_v35 = vmax.f32 %v11378_v16, %v11372_v60 }
 0x5a9   : > { %v3368_v50 = vpop.f32.mrf.mxu3  ;;  %4092 = vadd.xlane.f32.xlu1 %v4091_v48  ;;  %7175 = vpow2.f32 %v3987_v20  ;;  %v11396_v48 = vadd.f32 %v7735_v4, %v11296_v5  ;;  %v3907_v20 = vsub.f32 %v10970_v40, %v3826_v13  ;;  %v7737_v40 = vld [vmem:[%s13426_s3 + $0x1a8] sm:$0xff] }
 0x5aa   : > { %v11366_v53 = vadd.f32 %v3368_v50, %v3279_v18  ;;  %v11399_v18 = vpop.f32.mrf.mxu0  ;;  %v13915_v50 = vld [vmem:[#allocation83_spill] sm:$0xff]  ;;  %v11415_v5 = vadd.f32 %v7737_v40, %v11304_v23 }
 0x5ac   : > { %13912 = vst [vmem:[#allocation78_spill] sm:$0xff] %v11366_v53  ;;  %v7170_v26 = vpop.eup %7169 }
 0x5ad   : > { %v7172_v32 = vpop.eup %7171 }
 0x5ae   : > { %v11382_v24 = vpop.f32.mrf.mxu1  ;;  %v4100_v46 = vadd.f32 %v7172_v32, %v7170_v26  ;;  %v11403_v56 = vpop.eup %7173  ;;  %v4178_v40 = vpack.c.bf16 %v7172_v32, %v7168_v29  ;;  %v7740_v32 = vld [vmem:[%s13426_s3 + $0x1b0] sm:$0xff] }
 0x5af   : > { %v11417_v21 = vpop.eup %7175 }
 0x5b0   : > { %4098 = vadd.xlane.f32.xlu2 %v4097_v38  ;;  %v11386_v25 = vpop.f32.mrf.mxu2  ;;  %4101 = vadd.xlane.f32.xlu0 %v4100_v46  ;;  %v3908_v38 = vsub.f32 %v10981_v30, %v3826_v13  ;;  %v7738_v46 = vld [vmem:[%s13426_s3 + $0x1a0] sm:$0xff] }
 0x5b1   : > { %13913 = vst [vmem:[#allocation133_spill] sm:$0xff] %v11386_v25  ;;  %v11388_v63 = vpop.f32.mrf.mxu3  ;;  %6454 = vmatmul.msk.bf16.gmra.mxu1 %vm1550_vm0, %v13854_v61  ;;  %3858 = vmax.xlane.f32.xlu1 %v3857_v35  ;;  %v7736_v61 = vld [vmem:[%s13426_s3 + $0x190] sm:$0xff]  ;;  %v4177_v35 = vpack.c.bf16 %v7170_v26, %v7166_v36  ;;  %v11424_v4 = vadd.f32 %v7738_v46, %v11017_v52 }
 0x5b2   : > { %13914 = vst [vmem:[#allocation134_spill] sm:$0xff] %v11388_v63  ;;  %v11409_v10 = vadd.f32 %v7736_v61, %v10960_v17  ;;  %v3997_v61 = vmul.f32 1.442695, %v3907_v20  ;;  %v4103_v52 = vadd.f32 %v11417_v21, %v11403_v56  ;;  %v3999_v26 = vmul.f32 1.442695, %v3908_v38  ;;  %v7741_v38 = vld [vmem:[%s13426_s3 + $0x1d8] sm:$0xff] }
 0x5b3   : > { %6446 = vmatmul.msk.bf16.gmra.mxu0 %vm1550_vm0, %v13915_v50  ;;  %v3863_v36 = vmax.f32 %v11424_v4, %v11415_v5 }
 0x5b4   : > { %v3860_v17 = vmax.f32 %v11409_v10, %v11396_v48  ;;  %7177 = vpow2.f32 %v3997_v61 }
 0x5b6   : > { %v11428_v53 = vpop.f32.mrf.mxu1  ;;  %v3835_v23 = vpop.xlane.xlu2 %3834 }
 0x5b7   : > { %v3913_v63 = vsub.f32 %v11074_v39, %v3835_v23  ;;  %v3914_v30 = vsub.f32 %v11081_v51, %v3835_v23  ;;  %4277 = vmatmul.bf16.gmra.mxu2 %v4177_v35  ;;  %v7739_v39 = vld [vmem:[%s13426_s3 + $0x1b8] sm:$0xff] }
 0x5b8   : > { %3861 = vmax.xlane.f32.xlu2 %v3860_v17  ;;  %4366 = vmatmul.bf16.gmra.mxu3 %v4178_v40  ;;  %v3284_v46 = vpop.f32.mrf.mxu2  ;;  %v11440_v51 = vadd.f32 %v7739_v39, %v11334_v12  ;;  %v11454_v12 = vadd.f32 %v7741_v38, %v11361_v49 }
 0x5b9   : > { %v4009_v13 = vmul.f32 1.442695, %v3913_v63  ;;  %v4011_v20 = vmul.f32 1.442695, %v3914_v30  ;;  %v3373_v25 = vpop.f32.mrf.mxu3  ;;  %3864 = vmax.xlane.f32.xlu0 %v3863_v36  ;;  %4104 = vadd.xlane.f32.xlu1 %v4103_v52  ;;  %v11448_v63 = vadd.f32 %v7740_v32, %v11058_v59 }
 0x5ba   : > { %v11442_v29 = vadd.f32 %v3373_v25, %v3284_v46  ;;  %v7742_v25 = vld [vmem:[%s13426_s3 + $0x1d0] sm:$0xff]  ;;  %v11466_v49 = vpop.eup %7177  ;;  %v7743_v46 = vld [vmem:[%s13426_s3 + $0x8] sm:$0xff] }
 0x5bb   : > { %7179 = vpow2.f32 %v4009_v13  ;;  %v11460_v35 = vadd.f32 %v7742_v25, %v11112_v33  ;;  %v3866_v59 = vmax.f32 %v11448_v63, %v11440_v51 }
 0x5bc   : > { %13916 = vst [vmem:[#allocation83_spill] sm:$0xff] %v11442_v29  ;;  %7181 = vpow2.f32 %v4011_v20 }
 0x5bd   : > { %7183 = vpow2.f32 %v3999_v26  ;;  %v3872_v30 = vmax.f32 %v11460_v35, %v11454_v12 }
 0x5be   : > { %v4669_v17 = vpop.f32.mrf.mxu1  ;;  %v3838_v61 = vpop.xlane.xlu0 %3837 }
 0x5bf   : > { %v3915_v23 = vsub.f32 %v11100_v7, %v3838_v61  ;;  %v3916_v40 = vsub.f32 %v11105_v15, %v3838_v61  ;;  %v11489_v39 = vadd.f32 %v7743_v46, %v4669_v17 }
 0x5c0   : > { %3867 = vmax.xlane.f32.xlu2 %v3866_v59  ;;  %v11472_v26 = vpop.f32.mrf.mxu2 }
 0x5c1   : > { %v11470_v36 = vpop.eup %7179  ;;  %v4013_v52 = vmul.f32 1.442695, %v3915_v23  ;;  %v4015_v33 = vmul.f32 1.442695, %v3916_v40  ;;  %13917 = vst [vmem:[#allocation135_spill] sm:$0xff] %v11472_v26  ;;  %v11474_v13 = vpop.f32.mrf.mxu3  ;;  %6455 = vmatmul.msk.bf16.gmra.mxu1 %vm1550_vm0, %v13866_v27  ;;  %3873 = vmax.xlane.f32.xlu1 %v3872_v30  ;;  %v7744_v27 = vld [vmem:[%s13426_s3] sm:$0xff] }
 0x5c2   : > { %13918 = vst [vmem:[#allocation136_spill] sm:$0xff] %v11474_v13  ;;  %v11478_v7 = vpop.eup %7181  ;;  %v11495_v32 = vadd.f32 %v7744_v27, %v11190_v8  ;;  %v4075_v23 = vpop.xlane.xlu2 %4074  ;;  %v7745_v8 = vld [vmem:[%s13426_s3 + $0x1e8] sm:$0xff] }
 0x5c3   : > { %v11480_v15 = vpop.eup %7183  ;;  %7185 = vpow2.f32 %v4013_v52  ;;  %v11484_v20 = vadd.f32 %v11478_v7, %v11470_v36  ;;  %13920 = vst [vmem:[#allocation138_spill] sm:$0xff] %v11489_v39 }
 0x5c4   : > { %7187 = vpow2.f32 %v4015_v33  ;;  %13921 = vst [vmem:[#allocation139_spill] sm:$0xff] %v11495_v32  ;;  %v4112_v59 = vadd.f32 %v11480_v15, %v11466_v49  ;;  %v4749_v61 = vmax.f32 %v11495_v32, %v11489_v39  ;;  %v11509_v33 = vadd.f32 %v7745_v8, %v11382_v24 }
 0x5c5   : > { %13919 = vst [vmem:[#allocation137_spill] sm:$0xff] %v11484_v20 }
 0x5c6   : > { %v4671_v38 = vpop.f32.mrf.mxu1  ;;  %v4078_v25 = vpop.xlane.xlu0 %4077 }
 0x5c8   : > { %4113 = vadd.xlane.f32.xlu2 %v4112_v59  ;;  %v3289_v40 = vpop.f32.mrf.mxu2  ;;  %v7746_v59 = vld [vmem:[%s13426_s3 + $0x1e0] sm:$0xff] }
 0x5c9   : > { %v11501_v17 = vpop.eup %7185  ;;  %v3378_v30 = vpop.f32.mrf.mxu3  ;;  %4750 = vmax.xlane.f32.xlu1 %v4749_v61  ;;  %v11521_v29 = vadd.f32 %v7746_v59, %v11141_v58  ;;  %v7747_v58 = vld [vmem:[%s13426_s3 + $0x18] sm:$0xff] }
 0x5ca   : > { %v11503_v52 = vpop.eup %7187  ;;  %v11511_v46 = vadd.f32 %v3378_v30, %v3289_v40  ;;  %v11540_v59 = vadd.f32 %v7747_v58, %v4671_v38 }
 0x5cb   : > { %v11515_v27 = vadd.f32 %v11503_v52, %v11501_v17  ;;  %v3875_v13 = vmax.f32 %v11521_v29, %v11509_v33 }
 0x5cc   : > { %13922 = vst [vmem:[#allocation140_spill] sm:$0xff] %v11511_v46 }
 0x5cd   : > { %13923 = vst [vmem:[#allocation141_spill] sm:$0xff] %v11515_v27 }
 0x5ce   : > { %v11525_v26 = vpop.f32.mrf.mxu1  ;;  %v3844_v24 = vpop.xlane.xlu0 %3843  ;;  %13926 = vst [vmem:[#allocation144_spill] sm:$0xff] %v11540_v59 }
 0x5cf   : > { %v3919_v40 = vsub.f32 %v11132_v43, %v3844_v24  ;;  %v3920_v61 = vsub.f32 %v11137_v55, %v3844_v24  ;;  %v7748_v43 = vld [vmem:[%s13426_s3 + $0x10] sm:$0xff] }
 0x5d0   : > { %v11529_v30 = vpop.xlane.xlu2 %4083  ;;  %3876 = vmax.xlane.f32.xlu2 %v3875_v13  ;;  %v11531_v42 = vpop.f32.mrf.mxu2  ;;  %v11546_v55 = vadd.f32 %v7748_v43, %v11233_v57 }
 0x5d1   : > { %v4021_v8 = vmul.f32 1.442695, %v3919_v40  ;;  %v4023_v46 = vmul.f32 1.442695, %v3920_v61  ;;  %13924 = vst [vmem:[#allocation142_spill] sm:$0xff] %v11531_v42  ;;  %v11533_v22 = vpop.f32.mrf.mxu3  ;;  %6456 = vmatmul.msk.bf16.gmra.mxu1 %vm1550_vm0, %v13871_v44 }
 0x5d2   : > { %13925 = vst [vmem:[#allocation143_spill] sm:$0xff] %v11533_v22  ;;  %v4752_v13 = vmax.f32 %v11546_v55, %v11540_v59 }
 0x5d3   : > { %7189 = vpow2.f32 %v4021_v8 }
 0x5d4   : > { %7191 = vpow2.f32 %v4023_v46  ;;  %v11562_v46 = vpop.permute.xlu1 %6628 }
 0x5d5   : > { %13928 = vst [vmem:[#allocation146_spill] sm:$0xff] %v11562_v46  ;;  %7193 = vrcp.f32 %v4075_v23 }
 0x5d6   : > { %v11550_v24 = vpop.f32.mrf.mxu1  ;;  %7195 = vrcp.f32 %v4078_v25 }
 0x5d8   : > { %4753 = vmax.xlane.f32.xlu2 %v4752_v13  ;;  %v4258_v40 = vpop.f32.mrf.mxu2  ;;  %v11564_v42 = vpop.xlane.xlu0 %4086 }
 0x5d9   : > { %v11552_v44 = vpop.eup %7189  ;;  %v4347_v38 = vpop.f32.mrf.mxu3 }
 0x5da   : > { %v11554_v61 = vpop.eup %7191  ;;  %v3847_v8 = vpop.xlane.xlu2 %3846  ;;  %v4348_v27 = vadd.f32 %v4347_v38, %v4258_v40 }
 0x5db   : > { %v3921_v58 = vsub.f32 %v11160_v11, %v3847_v8  ;;  %v3922_v22 = vsub.f32 %v11152_v37, %v3847_v8  ;;  %v11560_v57 = vadd.f32 %v11554_v61, %v11552_v44  ;;  %v7194_v37 = vpop.eup %7193 }
 0x5dc   : > { %v4459_v46 = vmul.f32 %v7194_v37, %v4348_v27 }
 0x5dd   : > { %13927 = vst [vmem:[#allocation145_spill] sm:$0xff] %v11560_v57  ;;  %v4025_v43 = vmul.f32 1.442695, %v3921_v58  ;;  %v4027_v13 = vmul.f32 1.442695, %v3922_v22  ;;  %v7196_v57 = vpop.eup %7195 }
 0x5de   : > { %v11566_v20 = vpop.f32.mrf.mxu1 }
 0x5df   : > { %7197 = vpow2.f32 %v4025_v43 }
 0x5e0   : > { %7199 = vpow2.f32 %v4027_v13  ;;  %v4260_v11 = vpop.f32.mrf.mxu2 }
 0x5e1   : > { %v4349_v39 = vpop.f32.mrf.mxu3  ;;  %6457 = vmatmul.msk.bf16.gmra.mxu1 %vm1550_vm0, %v13877_v31 }
 0x5e2   : > { %v4350_v8 = vadd.f32 %v4349_v39, %v4260_v11 }
 0x5e4   : > { %v4460_v23 = vmul.f32 %v7196_v57, %v4350_v8  ;;  %v3820_v25 = vpop.xlane.xlu1 %3819 }
 0x5e5   : > { %v11570_v58 = vpop.eup %7197  ;;  %v3903_v22 = vsub.f32 %v11198_v9, %v3820_v25  ;;  %v3904_v32 = vsub.f32 %v11188_v45, %v3820_v25  ;;  %v11585_v9 = vpop.f32.mrf.mxu0 }
 0x5e6   : > { %v11574_v43 = vpop.eup %7199  ;;  %v6632_v40 = vpack.i.bf16 %v4460_v23, %v4459_v46  ;;  %v11576_v38 = vpop.f32.mrf.mxu1  ;;  %v3905_v23 = vsub.f32 %v11037_v3, %v11380_v2 }
 0x5e7   : > { %v3853_v13 = vpop.xlane.xlu0 %3852  ;;  %v3989_v59 = vmul.f32 1.442695, %v3903_v22  ;;  %v3991_v31 = vmul.f32 1.442695, %v3904_v32  ;;  %v11583_v57 = vadd.f32 %v11574_v43, %v11570_v58 }
 0x5e8   : > { %v3925_v39 = vsub.f32 %v11206_v28, %v3853_v13  ;;  %v3926_v27 = vsub.f32 %v11213_v14, %v3853_v13  ;;  %6633 = vrot.lane.b32.xlu1 %v6632_v40, %s7880_s26  ;;  %v13930_v13 = vld [vmem:[#allocation112_spill] sm:$0xff] }
 0x5e9   : > { %13929 = vst [vmem:[#allocation147_spill] sm:$0xff] %v11583_v57  ;;  %7201 = vpow2.f32 %v3989_v59 }
 0x5ea   : > { %v4033_v45 = vmul.f32 1.442695, %v3925_v39  ;;  %7203 = vpow2.f32 %v3991_v31  ;;  %v4035_v46 = vmul.f32 1.442695, %v3926_v27  ;;  %v3906_v31 = vsub.f32 %v13930_v13, %v11380_v2  ;;  %v13931_v39 = vld [vmem:[#allocation119_spill] sm:$0xff]  ;;  %v13936_v13 = vld [vmem:[#allocation120_spill] sm:$0xff] }
 0x5ec   : > { %7205 = vpow2.f32 %v4033_v45  ;;  %v3829_v11 = vpop.xlane.xlu1 %3828 }
 0x5ed   : > { %7207 = vpow2.f32 %v4035_v46  ;;  %v3909_v32 = vsub.f32 %v11231_v54, %v3829_v11  ;;  %v3910_v28 = vsub.f32 %v11223_v6, %v3829_v11  ;;  %v13932_v46 = vld [vmem:[#allocation72_spill] sm:$0xff] }
 0x5ee   : > { %v11589_v14 = vpop.f32.mrf.mxu1 }
 0x5ef   : > { %v3856_v37 = vpop.xlane.xlu0 %3855  ;;  %v7202_v8 = vpop.eup %7201  ;;  %v4001_v59 = vmul.f32 1.442695, %v3909_v32  ;;  %v4003_v25 = vmul.f32 1.442695, %v3910_v28  ;;  %v3993_v32 = vmul.f32 1.442695, %v3905_v23 }
 0x5f0   : > { %v3927_v22 = vsub.f32 %v11241_v47, %v3856_v37  ;;  %v7204_v40 = vpop.eup %7203  ;;  %v3928_v27 = vsub.f32 %v13931_v39, %v3856_v37  ;;  %v4179_v54 = vpack.c.bf16 %v7202_v8, %v11403_v56  ;;  %v11609_v28 = vpop.f32.mrf.mxu0  ;;  %v3995_v37 = vmul.f32 1.442695, %v3906_v31 }
 0x5f1   : > { %7209 = vpow2.f32 %v4001_v59  ;;  %6458 = vmatmul.msk.bf16.gmra.mxu1 %vm1550_vm0, %v13932_v46  ;;  %v4180_v47 = vpack.c.bf16 %v7204_v40, %v11417_v21  ;;  %v4106_v2 = vadd.f32 %v7204_v40, %v7202_v8  ;;  %v7749_v8 = vld [vmem:[%s13426_s3 + $0x1c8] sm:$0xff]  ;;  %v7750_v46 = vld [vmem:[%s13426_s3 + $0x1c0] sm:$0xff] }
 0x5f2   : > { %v11598_v6 = vpop.eup %7205  ;;  %v4037_v45 = vmul.f32 1.442695, %v3927_v22  ;;  %7211 = vpow2.f32 %v4003_v25  ;;  %v4039_v11 = vmul.f32 1.442695, %v3928_v27  ;;  %4282 = vmatmul.bf16.gmra.mxu2 %v4179_v54  ;;  %v13935_v22 = vld [vmem:[#allocation54_spill] sm:$0xff]  ;;  %v11621_v23 = vadd.f32 %v7749_v8, %v11348_v62 }
 0x5f3   : > { %v11602_v3 = vpop.eup %7207  ;;  %4371 = vmatmul.bf16.gmra.mxu3 %v4180_v47  ;;  %4107 = vadd.xlane.f32.xlu0 %v4106_v2 }
 0x5f4   : > { %13933 = vst [vmem:[#allocation112_spill] sm:$0xff] %v11602_v3  ;;  %7213 = vpow2.f32 %v4037_v45  ;;  %v11607_v56 = vadd.f32 %v11602_v3, %v11598_v6  ;;  %v3832_v59 = vpop.xlane.xlu1 %3831 }
 0x5f5   : > { %7215 = vpow2.f32 %v4039_v11  ;;  %v3911_v25 = vsub.f32 %v13935_v22, %v3832_v59  ;;  %v3912_v39 = vsub.f32 %v13936_v13, %v3832_v59  ;;  %13937 = vst [vmem:[#allocation72_spill] sm:$0xff] %v11621_v23  ;;  %v13938_v11 = vld [vmem:[#allocation7_spill] sm:$0xff]  ;;  %v4352_v59 = vpop.f32.mrf.mxu3 }
 0x5f6   : > { %13934 = vst [vmem:[#allocation119_spill] sm:$0xff] %v11607_v56  ;;  %v11613_v27 = vpop.f32.mrf.mxu1  ;;  %7217 = vpow2.f32 %v3993_v32  ;;  %v11631_v47 = vadd.f32 %v7750_v46, %v13938_v11 }
 0x5f7   : > { %v11615_v21 = vpop.eup %7209  ;;  %v4005_v40 = vmul.f32 1.442695, %v3911_v25  ;;  %v4007_v31 = vmul.f32 1.442695, %v3912_v39  ;;  %7219 = vpow2.f32 %v3995_v37  ;;  %v4263_v37 = vpop.f32.mrf.mxu2 }
 0x5f8   : > { %v11623_v54 = vpop.eup %7211  ;;  %13939 = vst [vmem:[#allocation54_spill] sm:$0xff] %v11631_v47  ;;  %v3869_v2 = vmax.f32 %v11631_v47, %v11621_v23  ;;  %v11647_v46 = vpop.f32.mrf.mxu0 }
 0x5f9   : > { %7221 = vpow2.f32 %v4005_v40  ;;  %v11635_v62 = vadd.f32 %v11623_v54, %v11615_v21 }
 0x5fa   : > { %v11625_v45 = vpop.eup %7213  ;;  %7223 = vpow2.f32 %v4007_v31 }
 0x5fb   : > { %13940 = vst [vmem:[#allocation120_spill] sm:$0xff] %v11635_v62  ;;  %v11637_v32 = vpop.eup %7215  ;;  %3870 = vmax.xlane.f32.xlu0 %v3869_v2 }
 0x5fc   : > { %13941 = vst [vmem:[#allocation7_spill] sm:$0xff] %v11637_v32  ;;  %v11643_v22 = vadd.f32 %v11637_v32, %v11625_v45  ;;  %v3841_v25 = vpop.xlane.xlu1 %3840  ;;  %v7218_v13 = vpop.eup %7217 }
 0x5fd   : > { %v3917_v39 = vsub.f32 %v11290_v1, %v3841_v25  ;;  %v3918_v8 = vsub.f32 %v11282_v0, %v3841_v25  ;;  %v7220_v40 = vpop.eup %7219  ;;  %v4181_v23 = vpack.c.bf16 %v11466_v49, %v7218_v13 }
 0x5fe   : > { %13942 = vst [vmem:[#allocation148_spill] sm:$0xff] %v11643_v22  ;;  %v11649_v31 = vpop.f32.mrf.mxu1  ;;  %v13943_v22 = vld [vmem:[#allocation69_spill] sm:$0xff]  ;;  %v4182_v1 = vpack.c.bf16 %v11480_v15, %v7220_v40  ;;  %v4109_v2 = vadd.f32 %v7220_v40, %v7218_v13  ;;  %v7752_v13 = vld [vmem:[%s13426_s3 + $0x1f0] sm:$0xff] }
 0x5ff   : > { %v7222_v11 = vpop.eup %7221  ;;  %v4017_v56 = vmul.f32 1.442695, %v3917_v39  ;;  %v4019_v57 = vmul.f32 1.442695, %v3918_v8  ;;  %v4265_v39 = vpop.f32.mrf.mxu2  ;;  %v13947_v40 = vld [vmem:[#allocation117_spill] sm:$0xff] }
 0x600   : > { %v7224_v62 = vpop.eup %7223  ;;  %v4354_v8 = vpop.f32.mrf.mxu3 }
 0x601   : > { %7225 = vpow2.f32 %v4017_v56  ;;  %6459 = vmatmul.msk.bf16.gmra.mxu1 %vm1550_vm0, %v13943_v22  ;;  %v11655_v0 = vadd.f32 %v7224_v62, %v7222_v11  ;;  %v4355_v22 = vadd.f32 %v4354_v8, %v4265_v39  ;;  %v7753_v39 = vld [vmem:[%s13426_s3 + $0x58] sm:$0xff] }
 0x602   : > { %7227 = vpow2.f32 %v4019_v57  ;;  %4287 = vmatmul.bf16.gmra.mxu2 %v4181_v23  ;;  %v7751_v57 = vld [vmem:[%s13426_s3 + $0x1f8] sm:$0xff]  ;;  %v11688_v8 = vadd.f32 %v7753_v39, %v11576_v38  ;;  %v7755_v38 = vld [vmem:[%s13426_s3 + $0x28] sm:$0xff] }
 0x603   : > { %13944 = vst [vmem:[#allocation69_spill] sm:$0xff] %v11655_v0  ;;  %7229 = vrcp.f32 %v11529_v30  ;;  %4376 = vmatmul.bf16.gmra.mxu3 %v4182_v1  ;;  %4110 = vadd.xlane.f32.xlu0 %v4109_v2  ;;  %v11666_v15 = vadd.f32 %v7751_v57, %v11428_v53  ;;  %v11670_v30 = vpop.f32.mrf.mxu0  ;;  %v11676_v1 = vadd.f32 %v7752_v13, %v13947_v40 }
 0x604   : > { %v4081_v25 = vpop.xlane.xlu1 %4080  ;;  %13946 = vst [vmem:[#allocation150_spill] sm:$0xff] %v11670_v30  ;;  %v4353_v0 = vadd.f32 %v4352_v59, %v4263_v37  ;;  %v13951_v30 = vld [vmem:[#allocation102_spill] sm:$0xff]  ;;  %v7754_v37 = vld [vmem:[%s13426_s3 + $0x50] sm:$0xff] }
 0x605   : > { %7231 = vrcp.f32 %v4081_v25  ;;  %13945 = vst [vmem:[#allocation149_spill] sm:$0xff] %v11666_v15  ;;  %v3878_v57 = vmax.f32 %v11676_v1, %v11666_v15  ;;  %v11696_v59 = vadd.f32 %v7754_v37, %v11346_v41  ;;  %v4183_v41 = vpack.c.bf16 %v7222_v11, %v11615_v21 }
 0x606   : > { %v11658_v49 = vpop.f32.mrf.mxu1  ;;  %13948 = vst [vmem:[#allocation117_spill] sm:$0xff] %v11676_v1 }
 0x607   : > { %v11660_v56 = vpop.eup %7225  ;;  %13950 = vst [vmem:[#allocation152_spill] sm:$0xff] %v11688_v8 }
 0x608   : > { %v11668_v23 = vpop.eup %7227  ;;  %13953 = vst [vmem:[#allocation102_spill] sm:$0xff] %v11696_v59 }
 0x609   : > { %v11680_v2 = vadd.f32 %v11668_v23, %v11660_v56  ;;  %v7230_v25 = vpop.eup %7229 }
 0x60a   : > { %v4462_v47 = vmul.f32 %v7230_v25, %v4355_v22  ;;  %v13954_v25 = vld [vmem:[#allocation124_spill] sm:$0xff] }
 0x60b   : > { %13949 = vst [vmem:[#allocation151_spill] sm:$0xff] %v11680_v2  ;;  %v7232_v53 = vpop.eup %7231  ;;  %3879 = vmax.xlane.f32.xlu0 %v3878_v57  ;;  %v13952_v2 = vld [vmem:[#allocation27_spill] sm:$0xff]  ;;  %v13955_v57 = vld [vmem:[#allocation74_spill] sm:$0xff] }
 0x60c   : > { %v4461_v13 = vmul.f32 %v7232_v53, %v4353_v0  ;;  %v3850_v40 = vpop.xlane.xlu1 %3849  ;;  %v11704_v0 = vadd.f32 %v7755_v38, %v11525_v26  ;;  %v11718_v26 = vpop.f32.mrf.mxu0  ;;  %v13956_v38 = vld [vmem:[#allocation125_spill] sm:$0xff] }
 0x60d   : > { %v3923_v32 = vsub.f32 %v13951_v30, %v3850_v40  ;;  %v3924_v3 = vsub.f32 %v13952_v2, %v3850_v40  ;;  %v4764_v2 = vmax.f32 %v11696_v59, %v11688_v8  ;;  %v7757_v40 = vld [vmem:[%s13426_s3 + $0x38] sm:$0xff] }
 0x60e   : > { %v11698_v15 = vpop.f32.mrf.mxu1  ;;  %v6637_v1 = vpack.i.bf16 %v4462_v47, %v4461_v13  ;;  %v7756_v47 = vld [vmem:[%s13426_s3 + $0x20] sm:$0xff]  ;;  %v11731_v37 = vadd.f32 %v7757_v40, %v11550_v24 }
 0x60f   : > { %v4029_v30 = vmul.f32 1.442695, %v3923_v32  ;;  %v4031_v22 = vmul.f32 1.442695, %v3924_v3  ;;  %v11714_v53 = vadd.f32 %v7756_v47, %v13954_v25  ;;  %v4184_v3 = vpack.c.bf16 %v7224_v62, %v11623_v54  ;;  %v7758_v62 = vld [vmem:[%s13426_s3 + $0x30] sm:$0xff] }
 0x610   : > { %6638 = vrot.lane.b32.xlu2 %v6637_v1, %s7880_s26 }
 0x611   : > { %7233 = vpow2.f32 %v4029_v30  ;;  %6460 = vmatmul.msk.bf16.gmra.mxu1 %vm1550_vm0, %v13955_v57  ;;  %v4755_v21 = vmax.f32 %v11714_v53, %v11704_v0  ;;  %v11739_v30 = vadd.f32 %v7758_v62, %v13956_v38  ;;  %v4185_v62 = vpack.c.bf16 %v11501_v17, %v11470_v36  ;;  %v7760_v38 = vld [vmem:[%s13426_s3 + $0x40] sm:$0xff] }
 0x612   : > { %7235 = vpow2.f32 %v4031_v22  ;;  %4765 = vmax.xlane.f32.xlu1 %v4764_v2  ;;  %4292 = vmatmul.bf16.gmra.mxu2 %v4183_v41 }
 0x613   : > { %4381 = vmatmul.bf16.gmra.mxu3 %v4184_v3  ;;  %4756 = vmax.xlane.f32.xlu0 %v4755_v21  ;;  %v4758_v2 = vmax.f32 %v11739_v30, %v11731_v37  ;;  %v7759_v21 = vld [vmem:[%s13426_s3 + $0x48] sm:$0xff] }
 0x614   : > { %v4090_v32 = vpop.xlane.xlu1 %4089  ;;  %v11749_v24 = vpop.f32.mrf.mxu0  ;;  %v11759_v40 = vadd.f32 %v7759_v21, %v11566_v20  ;;  %v4186_v20 = vpack.c.bf16 %v11503_v52, %v11478_v7  ;;  %v7761_v7 = vld [vmem:[%s13426_s3 + $0x68] sm:$0xff] }
 0x615   : > { %v4268_v11 = vpop.f32.mrf.mxu2  ;;  %7237 = vrcp.f32 %v4090_v32  ;;  %v13958_v32 = vld [vmem:[#allocation128_spill] sm:$0xff]  ;;  %v11788_v52 = vadd.f32 %v7761_v7, %v11589_v14 }
 0x616   : > { %v4357_v1 = vpop.f32.mrf.mxu3  ;;  %v11723_v39 = vpop.f32.mrf.mxu1  ;;  %7239 = vrcp.f32 %v11564_v42 }
 0x617   : > { %v11725_v13 = vpop.eup %7233  ;;  %v4358_v21 = vadd.f32 %v4357_v1, %v4268_v11 }
 0x618   : > { %v11733_v54 = vpop.eup %7235 }
 0x619   : > { %v11743_v22 = vadd.f32 %v11733_v54, %v11725_v13 }
 0x61b   : > { %13957 = vst [vmem:[#allocation27_spill] sm:$0xff] %v11743_v22  ;;  %v11747_v41 = vpop.xlane.xlu2 %4095  ;;  %4759 = vmax.xlane.f32.xlu0 %v4758_v2  ;;  %v11768_v2 = vadd.f32 %v7760_v38, %v13958_v32  ;;  %v7238_v17 = vpop.eup %7237 }
 0x61c   : > { %v11751_v47 = vpop.xlane.xlu1 %4092  ;;  %v11790_v1 = vpop.f32.mrf.mxu0 }
 0x61d   : > { %v4270_v25 = vpop.f32.mrf.mxu2  ;;  %v4761_v42 = vmax.f32 %v11768_v2, %v11759_v40 }
 0x61e   : > { %v4359_v57 = vpop.f32.mrf.mxu3  ;;  %v11753_v3 = vpop.f32.mrf.mxu1 }
 0x61f   : > { %v4360_v22 = vadd.f32 %v4359_v57, %v4270_v25  ;;  %v7240_v57 = vpop.eup %7239 }
 0x620   : > { %v4463_v11 = vmul.f32 %v7240_v57, %v4358_v21 }
 0x621   : > { %6461 = vmatmul.msk.bf16.gmra.mxu1 %vm1550_vm0, %v13911_v34  ;;  %v4464_v8 = vmul.f32 %v7238_v17, %v4360_v22 }
 0x622   : > { %4297 = vmatmul.bf16.gmra.mxu2 %v4185_v62 }
 0x623   : > { %v11776_v36 = vpop.xlane.xlu2 %4098  ;;  %4386 = vmatmul.bf16.gmra.mxu3 %v4186_v20  ;;  %v11778_v59 = vpop.xlane.xlu0 %4101  ;;  %4762 = vmax.xlane.f32.xlu0 %v4761_v42  ;;  %v6642_v20 = vpack.i.bf16 %v4464_v8, %v4463_v11 }
 0x624   : > { %v3859_v25 = vpop.xlane.xlu1 %3858 }
 0x625   : > { %v3929_v34 = vsub.f32 %v11378_v16, %v3859_v25  ;;  %v3930_v62 = vsub.f32 %v11372_v60, %v3859_v25  ;;  %v7762_v16 = vld [vmem:[%s13426_s3 + $0x60] sm:$0xff] }
 0x626   : > { %v11782_v38 = vpop.f32.mrf.mxu1  ;;  %v11796_v60 = vadd.f32 %v7762_v16, %v11364_v19 }
 0x627   : > { %v4041_v22 = vmul.f32 1.442695, %v3929_v34  ;;  %v4043_v32 = vmul.f32 1.442695, %v3930_v62 }
 0x628   : > { %v4767_v14 = vmax.f32 %v11796_v60, %v11788_v52 }
 0x629   : > { %7241 = vpow2.f32 %v4041_v22  ;;  %v7763_v22 = vld [vmem:[%s13426_s3 + $0x78] sm:$0xff] }
 0x62a   : > { %v11798_v42 = vpop.f32.mrf.mxu2  ;;  %7243 = vpow2.f32 %v4043_v32  ;;  %v11814_v32 = vadd.f32 %v7763_v22, %v11613_v27 }
 0x62b   : > { %6643 = vrot.lane.b32.xlu1 %v6642_v20, %s7880_s26  ;;  %v11803_v21 = vpop.f32.mrf.mxu3  ;;  %v3862_v17 = vpop.xlane.xlu2 %3861  ;;  %4768 = vmax.xlane.f32.xlu0 %v4767_v14  ;;  %v4187_v20 = vpack.c.bf16 %v11552_v44, %v11660_v56  ;;  %v4188_v44 = vpack.c.bf16 %v11554_v61, %v11668_v23 }
 0x62c   : > { %v3931_v25 = vsub.f32 %v11409_v10, %v3862_v17  ;;  %v3932_v57 = vsub.f32 %v11396_v48, %v3862_v17  ;;  %v3865_v34 = vpop.xlane.xlu0 %3864  ;;  %v11807_v19 = vpop.xlane.xlu1 %4104 }
 0x62d   : > { %v3933_v7 = vsub.f32 %v11424_v4, %v3865_v34  ;;  %v3934_v10 = vsub.f32 %v11415_v5, %v3865_v34  ;;  %v7764_v4 = vld [vmem:[%s13426_s3 + $0x70] sm:$0xff]  ;;  %v11831_v5 = vpop.f32.mrf.mxu0 }
 0x62e   : > { %v4045_v8 = vmul.f32 1.442695, %v3931_v25  ;;  %v4047_v62 = vmul.f32 1.442695, %v3932_v57  ;;  %v4704_v11 = vpop.f32.mrf.mxu1  ;;  %v11827_v17 = vadd.f32 %v7764_v4, %v11399_v18 }
 0x62f   : > { %v11817_v16 = vpop.eup %7241  ;;  %v4049_v48 = vmul.f32 1.442695, %v3933_v7  ;;  %v4051_v27 = vmul.f32 1.442695, %v3934_v10 }
 0x630   : > { %7245 = vpow2.f32 %v4045_v8  ;;  %v11821_v14 = vpop.eup %7243  ;;  %v4770_v18 = vmax.f32 %v11827_v17, %v11814_v32 }
 0x631   : > { %7247 = vpow2.f32 %v4047_v62  ;;  %6462 = vmatmul.msk.bf16.gmra.mxu1 %vm1550_vm0, %v13915_v50  ;;  %v11839_v56 = vadd.f32 %v11821_v14, %v11817_v16  ;;  %v7765_v50 = vld [vmem:[%s13426_s3 + $0x88] sm:$0xff]  ;;  %v7766_v62 = vld [vmem:[%s13426_s3 + $0x80] sm:$0xff] }
 0x632   : > { %7249 = vpow2.f32 %v4049_v48  ;;  %v11833_v25 = vpop.f32.mrf.mxu2  ;;  %4302 = vmatmul.bf16.gmra.mxu2 %v4187_v20  ;;  %v11847_v57 = vadd.f32 %v7765_v50, %v11649_v31  ;;  %v11857_v7 = vadd.f32 %v7766_v62, %v11585_v9  ;;  %v7767_v9 = vld [vmem:[%s13426_s3 + $0x98] sm:$0xff] }
 0x633   : > { %13959 = vst [vmem:[#allocation124_spill] sm:$0xff] %v11839_v56  ;;  %7251 = vpow2.f32 %v4051_v27  ;;  %v11849_v34 = vpop.f32.mrf.mxu3  ;;  %v3868_v8 = vpop.xlane.xlu2 %3867  ;;  %4391 = vmatmul.bf16.gmra.mxu3 %v4188_v44  ;;  %4771 = vmax.xlane.f32.xlu0 %v4770_v18  ;;  %v11872_v27 = vadd.f32 %v7767_v9, %v11658_v49  ;;  %v7770_v9 = vld [vmem:[%s13426_s3 + $0xe0] sm:$0xff] }
 0x634   : > { %v3935_v61 = vsub.f32 %v11448_v63, %v3868_v8  ;;  %v3936_v23 = vsub.f32 %v11440_v51, %v3868_v8  ;;  %v3874_v22 = vpop.xlane.xlu1 %3873  ;;  %v4773_v51 = vmax.f32 %v11857_v7, %v11847_v57  ;;  %v7768_v8 = vld [vmem:[%s13426_s3 + $0x90] sm:$0xff] }
 0x635   : > { %v3939_v20 = vsub.f32 %v11460_v35, %v3874_v22  ;;  %v3940_v44 = vsub.f32 %v11454_v12, %v3874_v22 }
 0x636   : > { %v11859_v31 = vpop.eup %7245  ;;  %v4053_v10 = vmul.f32 1.442695, %v3935_v61  ;;  %v4055_v48 = vmul.f32 1.442695, %v3936_v23  ;;  %v11862_v4 = vpop.f32.mrf.mxu1  ;;  %v11883_v61 = vadd.f32 %v7768_v8, %v11609_v28  ;;  %v7769_v28 = vld [vmem:[%s13426_s3 + $0xe8] sm:$0xff] }
 0x637   : > { %v11864_v63 = vpop.eup %7247  ;;  %v4061_v35 = vmul.f32 1.442695, %v3939_v20  ;;  %v4063_v23 = vmul.f32 1.442695, %v3940_v44  ;;  %v11908_v44 = vadd.f32 %v7770_v9, %v11790_v1 }
 0x638   : > { %v11875_v18 = vpop.eup %7249  ;;  %7253 = vpow2.f32 %v4053_v10  ;;  %v11887_v12 = vadd.f32 %v11864_v63, %v11859_v31  ;;  %v4776_v22 = vmax.f32 %v11883_v61, %v11872_v27  ;;  %v11898_v10 = vadd.f32 %v7769_v28, %v4704_v11 }
 0x639   : > { %v11877_v50 = vpop.eup %7251  ;;  %7255 = vpow2.f32 %v4055_v48  ;;  %4774 = vmax.xlane.f32.xlu2 %v4773_v51  ;;  %13963 = vst [vmem:[#allocation153_spill] sm:$0xff] %v11908_v44 }
 0x63a   : > { %7257 = vpow2.f32 %v4061_v35  ;;  %v4278_v49 = vpop.f32.mrf.mxu2  ;;  %13960 = vst [vmem:[#allocation74_spill] sm:$0xff] %v11887_v12  ;;  %v11891_v62 = vadd.f32 %v11877_v50, %v11875_v18  ;;  %v4620_v35 = vpop.f32.mrf.mxu0  ;;  %v7771_v12 = vld [vmem:[%s13426_s3 + $0x108] sm:$0xff] }
 0x63b   : > { %13962 = vst [vmem:[#allocation128_spill] sm:$0xff] %v11898_v10  ;;  %7259 = vpow2.f32 %v4063_v23  ;;  %v11900_v48 = vpop.xlane.xlu2 %4113  ;;  %v4367_v20 = vpop.f32.mrf.mxu3  ;;  %4777 = vmax.xlane.f32.xlu0 %v4776_v22  ;;  %v4791_v23 = vmax.f32 %v11908_v44, %v11898_v10  ;;  %v4190_v22 = vpack.c.bf16 %v11733_v54, %v11574_v43  ;;  %v7772_v43 = vld [vmem:[%s13426_s3 + $0x100] sm:$0xff] }
 0x63c   : > { %13961 = vst [vmem:[#allocation125_spill] sm:$0xff] %v11891_v62  ;;  %v11902_v51 = vadd.f32 %v4367_v20, %v4278_v49  ;;  %v4189_v49 = vpack.c.bf16 %v11725_v13, %v11570_v58  ;;  %7261 = vrcp.f32 %v11747_v41  ;;  %v11943_v54 = vadd.f32 %v7772_v43, %v4620_v35 }
 0x63d   : > { %7263 = vrcp.f32 %v11751_v47  ;;  %v4363_v41 = vadd.f32 %v11803_v21, %v11798_v42  ;;  %v7773_v42 = vld [vmem:[%s13426_s3 + $0xa8] sm:$0xff] }
 0x63e   : > { %v11910_v8 = vpop.eup %7253  ;;  %v4709_v62 = vpop.f32.mrf.mxu1  ;;  %v11966_v21 = vadd.f32 %v7773_v42, %v11698_v15 }
 0x63f   : > { %v11912_v11 = vpop.eup %7255  ;;  %v11935_v58 = vadd.f32 %v7771_v12, %v4709_v62 }
 0x640   : > { %v11916_v28 = vpop.eup %7257  ;;  %v11922_v20 = vadd.f32 %v11912_v11, %v11910_v8 }
 0x641   : > { %v11924_v1 = vpop.eup %7259  ;;  %4792 = vmax.xlane.f32.xlu2 %v4791_v23  ;;  %13966 = vst [vmem:[#allocation156_spill] sm:$0xff] %v11935_v58 }
 0x642   : > { %13964 = vst [vmem:[#allocation154_spill] sm:$0xff] %v11922_v20  ;;  %4307 = vmatmul.bf16.gmra.mxu2 %v4189_v49  ;;  %v11930_v9 = vadd.f32 %v11924_v1, %v11916_v28  ;;  %v11948_v62 = vpop.f32.mrf.mxu0  ;;  %v7262_v35 = vpop.eup %7261 }
 0x643   : > { %v3877_v13 = vpop.xlane.xlu2 %3876  ;;  %4396 = vmatmul.bf16.gmra.mxu3 %v4190_v22  ;;  %v7264_v22 = vpop.eup %7263 }
 0x644   : > { %13965 = vst [vmem:[#allocation155_spill] sm:$0xff] %v11930_v9  ;;  %v3941_v20 = vsub.f32 %v11521_v29, %v3877_v13  ;;  %v3942_v23 = vsub.f32 %v11509_v33, %v3877_v13  ;;  %v4365_v29 = vadd.f32 %v11849_v34, %v11833_v25  ;;  %v4797_v33 = vmax.f32 %v11943_v54, %v11935_v58 }
 0x645   : > { %v4465_v56 = vmul.f32 %v7264_v22, %v4363_v41 }
 0x646   : > { %v4065_v49 = vmul.f32 1.442695, %v3941_v20  ;;  %v4067_v9 = vmul.f32 1.442695, %v3942_v23  ;;  %v11946_v12 = vpop.f32.mrf.mxu1  ;;  %v4466_v47 = vmul.f32 %v7262_v35, %v4365_v29  ;;  %v13967_v23 = vld [vmem:[#allocation144_spill] sm:$0xff]  ;;  %v13970_v35 = vld [vmem:[#allocation7_spill] sm:$0xff] }
 0x648   : > { %7265 = vpow2.f32 %v4065_v49 }
 0x649   : > { %7267 = vpow2.f32 %v4067_v9  ;;  %4798 = vmax.xlane.f32.xlu2 %v4797_v33  ;;  %v6647_v9 = vpack.i.bf16 %v4466_v47, %v4465_v56  ;;  %v7774_v33 = vld [vmem:[%s13426_s3 + $0xa0] sm:$0xff]  ;;  %v13969_v56 = vld [vmem:[#allocation112_spill] sm:$0xff] }
 0x64a   : > { %v11980_v41 = vadd.f32 %v7774_v33, %v11647_v46  ;;  %v11982_v15 = vpop.f32.mrf.mxu0  ;;  %v7775_v46 = vld [vmem:[%s13426_s3 + $0xb8] sm:$0xff]  ;;  %v7778_v33 = vld [vmem:[%s13426_s3 + $0x130] sm:$0xff] }
 0x64b   : > { %v4754_v20 = vpop.xlane.xlu2 %4753  ;;  %v11997_v22 = vadd.f32 %v7775_v46, %v11723_v39  ;;  %v7777_v39 = vld [vmem:[%s13426_s3 + $0x138] sm:$0xff]  ;;  %v4193_v46 = vpack.c.bf16 %v11859_v31, %v11817_v16 }
 0x64c   : > { %v4847_v13 = vsub.f32 %v11546_v55, %v4754_v20  ;;  %v4848_v43 = vsub.f32 %v13967_v23, %v4754_v20  ;;  %v4191_v55 = vpack.c.bf16 %v11625_v45, %v11598_v6  ;;  %v4192_v6 = vpack.c.bf16 %v13970_v35, %v13969_v56  ;;  %v7776_v23 = vld [vmem:[%s13426_s3 + $0xb0] sm:$0xff]  ;;  %v7779_v35 = vld [vmem:[%s13426_s3 + $0xc8] sm:$0xff]  ;;  %v7781_v16 = vld [vmem:[%s13426_s3 + $0xd8] sm:$0xff] }
 0x64d   : > { %v4779_v45 = vmax.f32 %v11980_v41, %v11966_v21  ;;  %v12043_v31 = vadd.f32 %v7781_v16, %v11782_v38  ;;  %v12056_v38 = vpop.f32.mrf.mxu2  ;;  %v4195_v16 = vpack.c.bf16 %v11910_v8, %v11875_v18 }
 0x64e   : > { %v11958_v10 = vpop.eup %7265  ;;  %v4913_v25 = vmul.f32 1.442695, %v4847_v13  ;;  %v4915_v34 = vmul.f32 1.442695, %v4848_v43  ;;  %v11968_v49 = vpop.f32.mrf.mxu1  ;;  %v13971_v43 = vld [vmem:[#allocation150_spill] sm:$0xff] }
 0x64f   : > { %v11960_v44 = vpop.eup %7267  ;;  %6648 = vrot.lane.b32.xlu0 %v6647_v9, %s7880_s26 }
 0x650   : > { %7269 = vpow2.f32 %v4913_v25  ;;  %v11974_v29 = vadd.f32 %v11960_v44, %v11958_v10  ;;  %v12005_v25 = vadd.f32 %v7776_v23, %v13971_v43  ;;  %v4194_v43 = vpack.c.bf16 %v11864_v63, %v11821_v14  ;;  %v13972_v63 = vld [vmem:[#allocation139_spill] sm:$0xff] }
 0x651   : > { %7271 = vpow2.f32 %v4915_v34 }
 0x652   : > { %13968 = vst [vmem:[#allocation144_spill] sm:$0xff] %v11974_v29  ;;  %4312 = vmatmul.bf16.gmra.mxu2 %v4191_v55  ;;  %v4627_v42 = vpop.f32.mrf.mxu0  ;;  %v4782_v9 = vmax.f32 %v12005_v25, %v11997_v22 }
 0x653   : > { %4401 = vmatmul.bf16.gmra.mxu3 %v4192_v6  ;;  %v12017_v56 = vadd.f32 %v7778_v33, %v4627_v42  ;;  %v12023_v6 = vadd.f32 %v7779_v35, %v11753_v3  ;;  %v7782_v42 = vld [vmem:[%s13426_s3 + $0xd0] sm:$0xff]  ;;  %v13974_v35 = vld [vmem:[#allocation49_spill] sm:$0xff] }
 0x654   : > { %v12049_v14 = vadd.f32 %v7782_v42, %v11749_v24  ;;  %v7784_v42 = vld [vmem:[%s13426_s3 + $0xf0] sm:$0xff] }
 0x655   : > { %4780 = vmax.xlane.f32.xlu1 %v4779_v45 }
 0x656   : > { %v11989_v47 = vpop.eup %7269  ;;  %v4716_v34 = vpop.f32.mrf.mxu1 }
 0x657   : > { %v11991_v20 = vpop.eup %7271  ;;  %v12012_v55 = vadd.f32 %v7777_v39, %v4716_v34  ;;  %v4751_v34 = vpop.xlane.xlu1 %4750  ;;  %v13973_v39 = vld [vmem:[#allocation138_spill] sm:$0xff] }
 0x658   : > { %v5040_v13 = vadd.f32 %v11991_v20, %v11989_v47  ;;  %v4846_v33 = vsub.f32 %v13973_v39, %v4751_v34 }
 0x659   : > { %v4806_v45 = vmax.f32 %v12017_v56, %v12012_v55 }
 0x65a   : > { %5041 = vadd.xlane.f32.xlu2 %v5040_v13  ;;  %v7780_v13 = vld [vmem:[%s13426_s3 + $0xc0] sm:$0xff] }
 0x65b   : > { %v12033_v23 = vadd.f32 %v7780_v13, %v11718_v26  ;;  %v4911_v13 = vmul.f32 1.442695, %v4846_v33  ;;  %v13976_v33 = vld [vmem:[#allocation72_spill] sm:$0xff] }
 0x65d   : > { %4783 = vmax.xlane.f32.xlu1 %v4782_v9  ;;  %v4785_v3 = vmax.f32 %v12033_v23, %v12023_v6  ;;  %v4845_v9 = vsub.f32 %v13972_v63, %v4751_v34  ;;  %v12072_v63 = vadd.f32 %v7784_v42, %v11831_v5  ;;  %v7785_v5 = vld [vmem:[%s13426_s3 + $0x118] sm:$0xff] }
 0x662   : > { %4807 = vmax.xlane.f32.xlu2 %v4806_v45  ;;  %4317 = vmatmul.bf16.gmra.mxu2 %v4193_v46  ;;  %v4788_v45 = vmax.f32 %v12049_v14, %v12043_v31  ;;  %v4909_v46 = vmul.f32 1.442695, %v4845_v9  ;;  %v13975_v9 = vld [vmem:[#allocation54_spill] sm:$0xff] }
 0x663   : > { %4406 = vmatmul.bf16.gmra.mxu3 %v4194_v43  ;;  %v7783_v43 = vld [vmem:[%s13426_s3 + $0xf8] sm:$0xff] }
 0x664   : > { %v12062_v24 = vadd.f32 %v7783_v43, %v11862_v4  ;;  %7273 = vpow2.f32 %v4909_v46  ;;  %v4196_v4 = vpack.c.bf16 %v11912_v11, %v11877_v50  ;;  %v12084_v46 = vadd.f32 %v7785_v5, %v11946_v12  ;;  %v7786_v50 = vld [vmem:[%s13426_s3 + $0x110] sm:$0xff] }
 0x665   : > { %4786 = vmax.xlane.f32.xlu1 %v4785_v3  ;;  %v12064_v3 = vpop.f32.mrf.mxu3  ;;  %7275 = vpow2.f32 %v4911_v13  ;;  %v12092_v11 = vadd.f32 %v7786_v50, %v11948_v62 }
 0x666   : > { %v4108_v26 = vpop.xlane.xlu0 %4107  ;;  %v4794_v18 = vmax.f32 %v12072_v63, %v12062_v24  ;;  %13977 = vst [vmem:[#allocation112_spill] sm:$0xff] %v12084_v46 }
 0x667   : > { %13978 = vst [vmem:[#allocation7_spill] sm:$0xff] %v12092_v11  ;;  %v4800_v12 = vmax.f32 %v12092_v11, %v12084_v46  ;;  %v13981_v11 = vld [vmem:[#allocation149_spill] sm:$0xff] }
 0x66a   : > { %3120 = vadd.xlane.f32.xlu2 %v13974_v35  ;;  %v12086_v43 = vpop.eup %7273 }
 0x66d   : > { %4789 = vmax.xlane.f32.xlu1 %v4788_v45 }
 0x66e   : > { %v3871_v34 = vpop.xlane.xlu0 %3870 }
 0x66f   : > { %v3937_v39 = vsub.f32 %v13975_v9, %v3871_v34  ;;  %v3938_v35 = vsub.f32 %v13976_v33, %v3871_v34 }
 0x671   : > { %v4057_v8 = vmul.f32 1.442695, %v3937_v39  ;;  %v4059_v45 = vmul.f32 1.442695, %v3938_v35 }
 0x672   : > { %4322 = vmatmul.bf16.gmra.mxu2 %v4195_v16  ;;  %v12094_v16 = vpop.eup %7275 }
 0x673   : > { %4411 = vmatmul.bf16.gmra.mxu3 %v4196_v4  ;;  %7277 = vpow2.f32 %v4057_v8  ;;  %v5037_v33 = vadd.f32 %v12094_v16, %v12086_v43  ;;  %v12101_v4 = vpop.f32.mrf.mxu1  ;;  %v12105_v8 = vpop.f32.mrf.mxu0 }
 0x674   : > { %7279 = vpow2.f32 %v4059_v45  ;;  %v7787_v45 = vld [vmem:[%s13426_s3 + $0x128] sm:$0xff] }
 0x675   : > { %4795 = vmax.xlane.f32.xlu1 %v4794_v18  ;;  %v4283_v13 = vpop.f32.mrf.mxu2  ;;  %7281 = vrcp.f32 %v11807_v19  ;;  %v12111_v19 = vadd.f32 %v7787_v45, %v11968_v49 }
 0x676   : > { %v4372_v34 = vpop.f32.mrf.mxu3  ;;  %v4111_v9 = vpop.xlane.xlu0 %4110  ;;  %7283 = vrcp.f32 %v4108_v26 }
 0x677   : > { %v4373_v42 = vadd.f32 %v4372_v34, %v4283_v13 }
 0x679   : > { %v7278_v39 = vpop.eup %7277  ;;  %4801 = vmax.xlane.f32.xlu0 %v4800_v12 }
 0x67a   : > { %v7280_v35 = vpop.eup %7279  ;;  %v4197_v34 = vpack.c.bf16 %v11916_v28, %v7278_v39 }
 0x67b   : > { %v12103_v18 = vadd.f32 %v7280_v35, %v7278_v39  ;;  %v7282_v5 = vpop.eup %7281 }
 0x67c   : > { %v7284_v12 = vpop.eup %7283  ;;  %v12122_v49 = vmul.f32 %v7282_v5, %v4373_v42  ;;  %v12133_v5 = vpop.f32.mrf.mxu0 }
 0x67d   : > { %5038 = vadd.xlane.f32.xlu1 %v5037_v33  ;;  %v4285_v62 = vpop.f32.mrf.mxu2  ;;  %13979 = vst [vmem:[#allocation150_spill] sm:$0xff] %v12103_v18  ;;  %v7788_v33 = vld [vmem:[%s13426_s3 + $0x120] sm:$0xff] }
 0x67e   : > { %v4374_v26 = vpop.f32.mrf.mxu3  ;;  %v3880_v50 = vpop.xlane.xlu0 %3879  ;;  %v12118_v29 = vadd.f32 %v7788_v33, %v11982_v15  ;;  %v13980_v18 = vld [vmem:[#allocation117_spill] sm:$0xff] }
 0x67f   : > { %v4375_v13 = vadd.f32 %v4374_v26, %v4285_v62  ;;  %v3943_v46 = vsub.f32 %v13980_v18, %v3880_v50  ;;  %v3944_v58 = vsub.f32 %v13981_v11, %v3880_v50  ;;  %v4198_v62 = vpack.c.bf16 %v11924_v1, %v7280_v35  ;;  %v12131_v11 = vpop.f32.mrf.mxu1 }
 0x680   : > { %v4803_v28 = vmax.f32 %v12118_v29, %v12111_v19 }
 0x681   : > { %v12124_v45 = vmul.f32 %v7284_v12, %v4375_v13  ;;  %v4069_v39 = vmul.f32 1.442695, %v3943_v46  ;;  %v4071_v26 = vmul.f32 1.442695, %v3944_v58 }
 0x682   : > { %4327 = vmatmul.bf16.gmra.mxu2 %v4197_v34 }
 0x683   : > { %4416 = vmatmul.bf16.gmra.mxu3 %v4198_v62  ;;  %7285 = vpow2.f32 %v4069_v39 }
 0x684   : > { %7287 = vpow2.f32 %v4071_v26 }
 0x685   : > { %4804 = vmax.xlane.f32.xlu1 %v4803_v28  ;;  %v4288_v18 = vpop.f32.mrf.mxu2  ;;  %7289 = vrcp.f32 %v11900_v48  ;;  %v12140_v28 = vpop.permute.xlu1 %6633 }
 0x686   : > { %v4377_v42 = vpop.f32.mrf.mxu3  ;;  %v4757_v1 = vpop.xlane.xlu0 %4756  ;;  %7291 = vrcp.f32 %v4111_v9  ;;  %13983 = vst [vmem:[#allocation138_spill] sm:$0xff] %v12140_v28 }
 0x687   : > { %v4378_v13 = vadd.f32 %v4377_v42, %v4288_v18  ;;  %v4849_v35 = vsub.f32 %v11714_v53, %v4757_v1  ;;  %v4850_v46 = vsub.f32 %v11704_v0, %v4757_v1  ;;  %v12142_v18 = vpop.f32.mrf.mxu1 }
 0x689   : > { %v7286_v58 = vpop.eup %7285  ;;  %v4917_v50 = vmul.f32 1.442695, %v4849_v35  ;;  %v4919_v34 = vmul.f32 1.442695, %v4850_v46  ;;  %v12147_v35 = vpop.f32.mrf.mxu0 }
 0x68a   : > { %v7288_v12 = vpop.eup %7287  ;;  %v4199_v48 = vpack.c.bf16 %v7286_v58, %v11958_v10 }
 0x68b   : > { %7293 = vpow2.f32 %v4917_v50  ;;  %v12138_v62 = vadd.f32 %v7288_v12, %v7286_v58  ;;  %v7290_v26 = vpop.eup %7289 }
 0x68c   : > { %7295 = vpow2.f32 %v4919_v34  ;;  %v7292_v42 = vpop.eup %7291  ;;  %v4200_v34 = vpack.c.bf16 %v7288_v12, %v11960_v44 }
 0x68d   : > { %v4290_v33 = vpop.f32.mrf.mxu2  ;;  %13982 = vst [vmem:[#allocation139_spill] sm:$0xff] %v12138_v62  ;;  %v12149_v46 = vmul.f32 %v7292_v42, %v4378_v13  ;;  %v4766_v58 = vpop.xlane.xlu1 %4765  ;;  %v13986_v42 = vld [vmem:[#allocation102_spill] sm:$0xff] }
 0x68e   : > { %v4379_v39 = vpop.f32.mrf.mxu3  ;;  %v4760_v0 = vpop.xlane.xlu0 %4759 }
 0x68f   : > { %v4380_v53 = vadd.f32 %v4379_v39, %v4290_v33  ;;  %v4851_v9 = vsub.f32 %v11739_v30, %v4760_v0  ;;  %v4852_v1 = vsub.f32 %v11731_v37, %v4760_v0  ;;  %13984 = vst [vmem:[#allocation49_spill] sm:$0xff] %v12149_v46  ;;  %v12166_v0 = vpop.f32.mrf.mxu1 }
 0x691   : > { %v12151_v50 = vmul.f32 %v7290_v26, %v4380_v53  ;;  %v12154_v15 = vpop.eup %7293  ;;  %v4921_v33 = vmul.f32 1.442695, %v4851_v9  ;;  %v4923_v39 = vmul.f32 1.442695, %v4852_v1  ;;  %v4855_v9 = vsub.f32 %v13986_v42, %v4766_v58 }
 0x692   : > { %4332 = vmatmul.bf16.gmra.mxu2 %v4199_v48  ;;  %v12156_v62 = vpop.eup %7295 }
 0x693   : > { %13985 = vst [vmem:[#allocation54_spill] sm:$0xff] %v12151_v50  ;;  %4421 = vmatmul.bf16.gmra.mxu3 %v4200_v34  ;;  %7297 = vpow2.f32 %v4921_v33  ;;  %v5043_v37 = vadd.f32 %v12156_v62, %v12154_v15  ;;  %v13996_v50 = vld [vmem:[#allocation9_spill] sm:$0xff] }
 0x694   : > { %7299 = vpow2.f32 %v4923_v39  ;;  %v12173_v39 = vpop.f32.mrf.mxu0 }
 0x695   : > { %v4293_v10 = vpop.f32.mrf.mxu2  ;;  %5044 = vadd.xlane.f32.xlu0 %v5043_v37  ;;  %v13987_v37 = vld [vmem:[#allocation152_spill] sm:$0xff] }
 0x696   : > { %v4382_v13 = vpop.f32.mrf.mxu3  ;;  %v4763_v44 = vpop.xlane.xlu0 %4762  ;;  %v4856_v30 = vsub.f32 %v13987_v37, %v4766_v58  ;;  %v7789_v58 = vld [vmem:[%s13426_s3 + $0x148] sm:$0xff] }
 0x697   : > { %v12162_v12 = vadd.f32 %v4382_v13, %v4293_v10  ;;  %v4853_v26 = vsub.f32 %v11768_v2, %v4763_v44  ;;  %v4854_v53 = vsub.f32 %v11759_v40, %v4763_v44  ;;  %v4929_v40 = vmul.f32 1.442695, %v4855_v9  ;;  %v13988_v13 = vld [vmem:[#allocation45_spill] sm:$0xff] }
 0x698   : > { %v5134_v9 = vpack.c.bf16 %v11991_v20, %v12094_v16 }
 0x699   : > { %v12168_v48 = vpop.eup %7297  ;;  %v4925_v1 = vmul.f32 1.442695, %v4853_v26  ;;  %v4927_v34 = vmul.f32 1.442695, %v4854_v53  ;;  %v5133_v26 = vpack.c.bf16 %v11989_v47, %v12086_v43  ;;  %v4931_v53 = vmul.f32 1.442695, %v4856_v30 }
 0x69a   : > { %v12171_v33 = vpop.eup %7299  ;;  %v7790_v47 = vld [vmem:[%s13426_s3 + $0x140] sm:$0xff] }
 0x69b   : > { %7301 = vpow2.f32 %v4925_v1  ;;  %v5046_v2 = vadd.f32 %v12171_v33, %v12168_v48  ;;  %v12187_v1 = vadd.f32 %v7789_v58, %v12101_v4  ;;  %v12197_v43 = vadd.f32 %v7790_v47, %v12105_v8  ;;  %v12214_v58 = vpop.permute.xlu2 %6638 }
 0x69c   : > { %7303 = vpow2.f32 %v4927_v34  ;;  %v12209_v8 = vpop.f32.mrf.mxu0  ;;  %13991 = vst [vmem:[#allocation117_spill] sm:$0xff] %v12214_v58 }
 0x69d   : > { %v4295_v10 = vpop.f32.mrf.mxu2  ;;  %2141 = vadd.xlane.f32.xlu0 %v13988_v13  ;;  %5047 = vadd.xlane.f32.xlu1 %v5046_v2  ;;  %7305 = vpow2.f32 %v4929_v40  ;;  %v12201_v2 = vpop.f32.mrf.mxu1  ;;  %v4809_v20 = vmax.f32 %v12197_v43, %v12187_v1 }
 0x69e   : > { %v4384_v44 = vpop.f32.mrf.mxu3  ;;  %v4769_v37 = vpop.xlane.xlu0 %4768  ;;  %7307 = vpow2.f32 %v4931_v53 }
 0x69f   : > { %v12181_v42 = vadd.f32 %v4384_v44, %v4295_v10  ;;  %v4857_v4 = vsub.f32 %v11796_v60, %v4769_v37  ;;  %v4858_v16 = vsub.f32 %v11788_v52, %v4769_v37  ;;  %v7791_v52 = vld [vmem:[%s13426_s3 + $0x168] sm:$0xff] }
 0x6a0   : > { %v12220_v37 = vadd.f32 %v7791_v52, %v12142_v18  ;;  %v7794_v18 = vld [vmem:[%s13426_s3 + $0x150] sm:$0xff] }
 0x6a1   : > { %v12191_v34 = vpop.eup %7301  ;;  %v4933_v44 = vmul.f32 1.442695, %v4857_v4  ;;  %v7792_v4 = vld [vmem:[%s13426_s3 + $0x158] sm:$0xff] }
 0x6a2   : > { %5173 = vmatmul.bf16.vlgmr.msrb.gmra.mxu2 %v5133_v26  ;;  %v12199_v30 = vpop.eup %7303  ;;  %v13989_v26 = vld [vmem:[#allocation58_spill] sm:$0xff] }
 0x6a3   : > { %5262 = vmatmul.bf16.vlgmr.msrb.gmra.mxu3 %v5134_v9  ;;  %v5049_v10 = vadd.f32 %v12199_v30, %v12191_v34  ;;  %v7306_v60 = vpop.eup %7305  ;;  %v4935_v9 = vmul.f32 1.442695, %v4858_v16  ;;  %v12238_v16 = vadd.f32 %v7794_v18, %v12133_v5  ;;  %7309 = vpow2.f32 %v4933_v44 }
 0x6a4   : > { %v7308_v47 = vpop.eup %7307  ;;  %v5135_v5 = vpack.c.bf16 %v12168_v48, %v12154_v15 }
 0x6a5   : > { %v4298_v13 = vpop.f32.mrf.mxu2  ;;  %5050 = vadd.xlane.f32.xlu2 %v5049_v10  ;;  %4810 = vmax.xlane.f32.xlu0 %v4809_v20  ;;  %v12226_v20 = vadd.f32 %v7792_v4, %v12131_v11  ;;  %v7793_v10 = vld [vmem:[%s13426_s3 + $0x160] sm:$0xff]  ;;  %7311 = vpow2.f32 %v4935_v9  ;;  %v5052_v11 = vadd.f32 %v7308_v47, %v7306_v60  ;;  %v4731_v4 = vpop.f32.mrf.mxu1  ;;  %v5136_v9 = vpack.c.bf16 %v12171_v33, %v12156_v62 }
 0x6a6   : > { %v4387_v40 = vpop.f32.mrf.mxu3  ;;  %2138 = vadd.xlane.f32.xlu1 %v13989_v26  ;;  %v4772_v62 = vpop.xlane.xlu0 %4771  ;;  %7313 = vrcp.f32 %v11778_v59  ;;  %v5138_v59 = vpack.c.bf16 %v7308_v47, %v12199_v30  ;;  %v14001_v47 = vld [vmem:[#allocation69_spill] sm:$0xff] }
 0x6a7   : > { %v12212_v53 = vadd.f32 %v4387_v40, %v4298_v13  ;;  %v12232_v13 = vadd.f32 %v7793_v10, %v12147_v35  ;;  %v4812_v52 = vmax.f32 %v12238_v16, %v12226_v20  ;;  %v4642_v10 = vpop.f32.mrf.mxu0  ;;  %7315 = vrcp.f32 %v11776_v36 }
 0x6a9   : > { %13990 = vst [vmem:[#allocation72_spill] sm:$0xff] %v12212_v53  ;;  %v4815_v40 = vmax.f32 %v12232_v13, %v12220_v37  ;;  %v12250_v18 = vpop.eup %7309 }
 0x6ab   : > { %v12254_v53 = vpop.eup %7311 }
 0x6ac   : > { %v12248_v44 = vpop.xlane.xlu2 %4774  ;;  %v7314_v36 = vpop.eup %7313 }
 0x6ad   : > { %v4300_v26 = vpop.f32.mrf.mxu2  ;;  %4816 = vmax.xlane.f32.xlu2 %v4815_v40  ;;  %5053 = vadd.xlane.f32.xlu0 %v5052_v11  ;;  %v5055_v11 = vadd.f32 %v12254_v53, %v12250_v18 }
 0x6ae   : > { %v4389_v35 = vpop.f32.mrf.mxu3  ;;  %4813 = vmax.xlane.f32.xlu1 %v4812_v52 }
 0x6af   : > { %v12244_v58 = vadd.f32 %v4389_v35, %v4300_v26  ;;  %v13993_v26 = vld [vmem:[#allocation120_spill] sm:$0xff]  ;;  %v12259_v35 = vpop.f32.mrf.mxu1  ;;  %v12263_v48 = vpop.f32.mrf.mxu0 }
 0x6b1   : > { %13992 = vst [vmem:[#allocation149_spill] sm:$0xff] %v12244_v58 }
 0x6b2   : > { %5178 = vmatmul.bf16.gmra.mxu2 %v5135_v5 }
 0x6b3   : > { %5267 = vmatmul.bf16.gmra.mxu3 %v5136_v9  ;;  %v4859_v9 = vsub.f32 %v11827_v17, %v4772_v62 }
 0x6b4   : > { %v12265_v5 = vpop.xlane.xlu2 %4792 }
 0x6b5   : > { %v4303_v40 = vpop.f32.mrf.mxu2  ;;  %4116 = vadd.xlane.f32.xlu0 %v13993_v26  ;;  %v12270_v26 = vpop.permute.xlu1 %6643  ;;  %v4937_v17 = vmul.f32 1.442695, %v4859_v9 }
 0x6b6   : > { %v4392_v52 = vpop.f32.mrf.mxu3  ;;  %5056 = vadd.xlane.f32.xlu1 %v5055_v11  ;;  %13995 = vst [vmem:[#allocation152_spill] sm:$0xff] %v12270_v26 }
 0x6b7   : > { %v12261_v15 = vadd.f32 %v4392_v52, %v4303_v40  ;;  %v5137_v40 = vpack.c.bf16 %v7306_v60, %v12191_v34  ;;  %v4370_v52 = vadd.f32 %v12064_v3, %v12056_v38  ;;  %v12279_v28 = vpop.f32.mrf.mxu1  ;;  %v12282_v58 = vpop.f32.mrf.mxu0  ;;  %7317 = vpow2.f32 %v4937_v17  ;;  %v13999_v3 = vld [vmem:[#allocation107_spill] sm:$0xff] }
 0x6b8   : > { %v7316_v60 = vpop.eup %7315 }
 0x6b9   : > { %13994 = vst [vmem:[#allocation102_spill] sm:$0xff] %v12261_v15  ;;  %v4860_v15 = vsub.f32 %v11814_v32, %v4772_v62  ;;  %v4467_v38 = vmul.f32 %v7316_v60, %v11902_v51  ;;  %v13998_v32 = vld [vmem:[#allocation108_spill] sm:$0xff] }
 0x6ba   : > { %v14000_v62 = vpack.i.bf16 %v13998_v32, %v13999_v3  ;;  %v7795_v51 = vld [vmem:[%s13426_s3 + $0x198] sm:$0xff]  ;;  %v4861_v3 = vsub.f32 %v11857_v7, %v12248_v44 }
 0x6bb   : > { %v12299_v17 = vadd.f32 %v7795_v51, %v4731_v4 }
 0x6bc   : > { %v4941_v51 = vmul.f32 1.442695, %v4861_v3 }
 0x6bd   : > { %v4305_v33 = vpop.f32.mrf.mxu2 }
 0x6be   : > { %v4394_v46 = vpop.f32.mrf.mxu3  ;;  %3123 = vadd.xlane.f32.xlu1 %v13996_v50  ;;  %v4468_v50 = vmul.f32 %v7314_v36, %v4370_v52 }
 0x6bf   : > { %v12273_v11 = vadd.f32 %v4394_v46, %v4305_v33  ;;  %v4939_v46 = vmul.f32 1.442695, %v4860_v15  ;;  %v12284_v33 = vpop.xlane.xlu2 %4798 }
 0x6c0   : > { %v6657_v52 = vpack.i.bf16 %v4468_v50, %v4467_v38 }
 0x6c1   : > { %13997 = vst [vmem:[#allocation45_spill] sm:$0xff] %v12273_v11  ;;  %7319 = vpow2.f32 %v4939_v46  ;;  %v12307_v46 = vpop.f32.mrf.mxu1 }
 0x6c2   : > { %5183 = vmatmul.bf16.gmra.mxu2 %v5137_v40 }
 0x6c3   : > { %5272 = vmatmul.bf16.gmra.mxu3 %v5138_v59 }
 0x6c5   : > { %v4308_v34 = vpop.f32.mrf.mxu2  ;;  %6653 = vrot.lane.b32.xlu2 %v14000_v62, %s7878_s25 }
 0x6c6   : > { %v4397_v30 = vpop.f32.mrf.mxu3  ;;  %4119 = vadd.xlane.f32.xlu1 %v14001_v47 }
 0x6c7   : > { %v12292_v9 = vadd.f32 %v4397_v30, %v4308_v34  ;;  %v7796_v34 = vld [vmem:[%s13426_s3 + $0x190] sm:$0xff] }
 0x6c8   : > { %v4781_v40 = vpop.xlane.xlu1 %4780  ;;  %v12305_v50 = vadd.f32 %v7796_v34, %v4642_v10  ;;  %v12319_v10 = vpop.f32.mrf.mxu0 }
 0x6c9   : > { %14002 = vst [vmem:[#allocation58_spill] sm:$0xff] %v12292_v9  ;;  %v4865_v15 = vsub.f32 %v11980_v41, %v4781_v40  ;;  %v4866_v59 = vsub.f32 %v11966_v21, %v4781_v40  ;;  %6658 = vrot.lane.b32.xlu0 %v6657_v52, %s7880_s26  ;;  %v4778_v41 = vpop.xlane.xlu0 %4777  ;;  %v12309_v21 = vpop.eup %7317  ;;  %v4862_v40 = vsub.f32 %v11847_v57, %v12248_v44 }
 0x6ca   : > { %v4824_v32 = vmax.f32 %v12305_v50, %v12299_v17  ;;  %v12317_v62 = vpop.eup %7319  ;;  %v4863_v30 = vsub.f32 %v11883_v61, %v4778_v41  ;;  %v4864_v7 = vsub.f32 %v11872_v27, %v4778_v41  ;;  %v4741_v3 = vpop.f32.mrf.mxu1 }
 0x6cb   : > { %v4949_v36 = vmul.f32 1.442695, %v4865_v15  ;;  %v4951_v60 = vmul.f32 1.442695, %v4866_v59  ;;  %v5139_v59 = vpack.c.bf16 %v12309_v21, %v12250_v18  ;;  %v4943_v57 = vmul.f32 1.442695, %v4862_v40 }
 0x6cc   : > { %v4945_v61 = vmul.f32 1.442695, %v4863_v30  ;;  %v4947_v44 = vmul.f32 1.442695, %v4864_v7 }
 0x6cd   : > { %7321 = vpow2.f32 %v4949_v36  ;;  %v12311_v38 = vpop.xlane.xlu2 %5041  ;;  %v4310_v4 = vpop.f32.mrf.mxu2  ;;  %v5140_v36 = vpack.c.bf16 %v12317_v62, %v12254_v53 }
 0x6ce   : > { %7323 = vpow2.f32 %v4951_v60  ;;  %v4399_v47 = vpop.f32.mrf.mxu3  ;;  %4825 = vmax.xlane.f32.xlu1 %v4824_v32 }
 0x6cf   : > { %v12324_v52 = vadd.f32 %v4399_v47, %v4310_v4  ;;  %7325 = vpow2.f32 %v4941_v51  ;;  %v7797_v51 = vld [vmem:[%s13426_s3 + $0x1d8] sm:$0xff] }
 0x6d0   : > { %v4784_v15 = vpop.xlane.xlu1 %4783  ;;  %7327 = vpow2.f32 %v4945_v61  ;;  %v4652_v7 = vpop.f32.mrf.mxu0 }
 0x6d1   : > { %14003 = vst [vmem:[#allocation120_spill] sm:$0xff] %v12324_v52  ;;  %7329 = vpow2.f32 %v4943_v57 }
 0x6d2   : > { %5188 = vmatmul.bf16.gmra.mxu2 %v5139_v59  ;;  %7331 = vpow2.f32 %v4947_v44 }
 0x6d3   : > { %v12331_v60 = vpop.eup %7321  ;;  %5277 = vmatmul.bf16.gmra.mxu3 %v5140_v36  ;;  %v7798_v36 = vld [vmem:[%s13426_s3 + $0x1d0] sm:$0xff] }
 0x6d4   : > { %v12333_v34 = vpop.eup %7323  ;;  %v12353_v61 = vadd.f32 %v7798_v36, %v4652_v7  ;;  %v4868_v36 = vsub.f32 %v11997_v22, %v4784_v15 }
 0x6d5   : > { %v4808_v4 = vpop.xlane.xlu2 %4807  ;;  %v5067_v32 = vadd.f32 %v12333_v34, %v12331_v60  ;;  %v4313_v18 = vpop.f32.mrf.mxu2 }
 0x6d6   : > { %v4883_v27 = vsub.f32 %v12017_v56, %v4808_v4  ;;  %v4884_v41 = vsub.f32 %v12012_v55, %v4808_v4  ;;  %v4402_v53 = vpop.f32.mrf.mxu3  ;;  %v12346_v56 = vadd.f32 %v7797_v51, %v4741_v3  ;;  %v12348_v55 = vpop.eup %7325 }
 0x6d7   : > { %5068 = vadd.xlane.f32.xlu1 %v5067_v32  ;;  %v12339_v40 = vadd.f32 %v4402_v53, %v4313_v18  ;;  %v12355_v57 = vpop.eup %7327 }
 0x6d8   : > { %v4985_v30 = vmul.f32 1.442695, %v4883_v27  ;;  %v4987_v47 = vmul.f32 1.442695, %v4884_v41  ;;  %v12341_v59 = vpop.xlane.xlu1 %4786  ;;  %v12357_v32 = vpop.eup %7329  ;;  %v4836_v18 = vmax.f32 %v12353_v61, %v12346_v56  ;;  %v4867_v41 = vsub.f32 %v12005_v25, %v4784_v15 }
 0x6d9   : > { %14004 = vst [vmem:[#allocation9_spill] sm:$0xff] %v12339_v40  ;;  %v12361_v27 = vpop.eup %7331  ;;  %v5141_v7 = vpack.c.bf16 %v12355_v57, %v12348_v55 }
 0x6da   : > { %7333 = vpow2.f32 %v4985_v30  ;;  %v5142_v40 = vpack.c.bf16 %v12361_v27, %v12357_v32 }
 0x6db   : > { %7335 = vpow2.f32 %v4987_v47 }
 0x6dd   : > { %v3121_v4 = vpop.xlane.xlu2 %3120  ;;  %v4315_v44 = vpop.f32.mrf.mxu2 }
 0x6de   : > { %7337 = vrcp.f32 %v3121_v4  ;;  %v4404_v3 = vpop.f32.mrf.mxu3  ;;  %v4953_v4 = vmul.f32 1.442695, %v4867_v41 }
 0x6df   : > { %4837 = vmax.xlane.f32.xlu1 %v4836_v18  ;;  %v12366_v30 = vadd.f32 %v4404_v3, %v4315_v44  ;;  %v4955_v18 = vmul.f32 1.442695, %v4868_v36 }
 0x6e0   : > { %v12364_v53 = vpop.eup %7333  ;;  %v4790_v47 = vpop.xlane.xlu1 %4789  ;;  %7339 = vpow2.f32 %v4953_v4 }
 0x6e1   : > { %14005 = vst [vmem:[#allocation108_spill] sm:$0xff] %v12366_v30  ;;  %v12370_v51 = vpop.eup %7335  ;;  %v14007_v30 = vld [vmem:[#allocation34_spill] sm:$0xff]  ;;  %7341 = vpow2.f32 %v4955_v18 }
 0x6e2   : > { %5193 = vmatmul.bf16.gmra.mxu2 %v5141_v7  ;;  %v12377_v25 = vadd.f32 %v12370_v51, %v12364_v53 }
 0x6e3   : > { %5282 = vmatmul.bf16.gmra.mxu3 %v5142_v40 }
 0x6e4   : > { %14006 = vst [vmem:[#allocation107_spill] sm:$0xff] %v12377_v25  ;;  %v7338_v44 = vpop.eup %7337 }
 0x6e5   : > { %v4318_v3 = vpop.f32.mrf.mxu2  ;;  %v12380_v52 = vmul.f32 %v7338_v44, %v14007_v30  ;;  %v4871_v30 = vsub.f32 %v12049_v14, %v4790_v47  ;;  %v14008_v44 = vld [vmem:[#allocation8_spill] sm:$0xff] }
 0x6e6   : > { %v4407_v9 = vpop.f32.mrf.mxu3  ;;  %v12386_v41 = vpop.eup %7339 }
 0x6e7   : > { %v12382_v11 = vadd.f32 %v4407_v9, %v4318_v3  ;;  %v12388_v36 = vpop.eup %7341  ;;  %v4869_v9 = vsub.f32 %v12033_v23, %v12341_v59  ;;  %v5143_v18 = vpack.c.bf16 %v12386_v41, %v12331_v60  ;;  %v4870_v23 = vsub.f32 %v12023_v6, %v12341_v59  ;;  %v7799_v6 = vld [vmem:[%s13426_s3 + $0x178] sm:$0xff] }
 0x6e8   : > { %v4796_v22 = vpop.xlane.xlu1 %4795  ;;  %v5144_v14 = vpack.c.bf16 %v12388_v36, %v12333_v34  ;;  %v12422_v59 = vadd.f32 %v7799_v6, %v12166_v0  ;;  %v7802_v6 = vld [vmem:[%s13426_s3 + $0x180] sm:$0xff] }
 0x6e9   : > { %v4875_v15 = vsub.f32 %v12072_v63, %v4796_v22  ;;  %v4876_v7 = vsub.f32 %v12062_v24, %v4796_v22  ;;  %v4961_v22 = vmul.f32 1.442695, %v4871_v30 }
 0x6eb   : > { %v4969_v26 = vmul.f32 1.442695, %v4875_v15  ;;  %v4971_v25 = vmul.f32 1.442695, %v4876_v7  ;;  %v14010_v7 = vld [vmem:[#allocation156_spill] sm:$0xff] }
 0x6ec   : > { %v4878_v60 = vsub.f32 %v14010_v7, %v12284_v33 }
 0x6ed   : > { %7343 = vpow2.f32 %v4969_v26  ;;  %v4320_v40 = vpop.f32.mrf.mxu2  ;;  %v4872_v26 = vsub.f32 %v12043_v31, %v4790_v47  ;;  %v14011_v47 = vld [vmem:[#allocation59_spill] sm:$0xff] }
 0x6ee   : > { %7345 = vpow2.f32 %v4971_v25  ;;  %v4409_v4 = vpop.f32.mrf.mxu3  ;;  %2144 = vadd.xlane.f32.xlu2 %v14008_v44  ;;  %v4877_v25 = vsub.f32 %v11943_v54, %v12284_v33  ;;  %v5058_v44 = vadd.f32 %v12317_v62, %v12309_v21  ;;  %v4959_v33 = vmul.f32 1.442695, %v4870_v23  ;;  %v7800_v21 = vld [vmem:[%s13426_s3 + $0x170] sm:$0xff] }
 0x6ef   : > { %v12394_v63 = vadd.f32 %v4409_v4, %v4320_v40  ;;  %v4957_v40 = vmul.f32 1.442695, %v4869_v9  ;;  %v4963_v31 = vmul.f32 1.442695, %v4872_v26  ;;  %7347 = vpow2.f32 %v4961_v22 }
 0x6f0   : > { %v12396_v24 = vpop.xlane.xlu1 %5038  ;;  %v4973_v4 = vmul.f32 1.442695, %v4877_v25  ;;  %v4975_v9 = vmul.f32 1.442695, %v4878_v60  ;;  %v12430_v62 = vadd.f32 %v7800_v21, %v12173_v39 }
 0x6f1   : > { %14009 = vst [vmem:[#allocation69_spill] sm:$0xff] %v12394_v63  ;;  %7349 = vpow2.f32 %v4957_v40  ;;  %v14028_v63 = vld [vmem:[#allocation141_spill] sm:$0xff] }
 0x6f2   : > { %5198 = vmatmul.bf16.gmra.mxu2 %v5143_v18  ;;  %7351 = vpow2.f32 %v4963_v31  ;;  %v4818_v23 = vmax.f32 %v12430_v62, %v12422_v59  ;;  %v7801_v31 = vld [vmem:[%s13426_s3 + $0x188] sm:$0xff] }
 0x6f3   : > { %v12405_v3 = vpop.eup %7343  ;;  %5287 = vmatmul.bf16.gmra.mxu3 %v5144_v14  ;;  %2147 = vadd.xlane.f32.xlu0 %v14011_v47  ;;  %7353 = vpow2.f32 %v4973_v4  ;;  %v12434_v14 = vpop.permute.xlu0 %6648  ;;  %v12450_v47 = vadd.f32 %v7801_v31, %v12201_v2  ;;  %v12465_v2 = vadd.f32 %v7802_v6, %v12209_v8 }
 0x6f4   : > { %v12409_v15 = vpop.eup %7345  ;;  %7355 = vpow2.f32 %v4959_v33  ;;  %v14015_v33 = vld [vmem:[#allocation153_spill] sm:$0xff] }
 0x6f5   : > { %v5082_v54 = vadd.f32 %v12409_v15, %v12405_v3  ;;  %v4323_v34 = vpop.f32.mrf.mxu2  ;;  %7357 = vpow2.f32 %v4975_v9  ;;  %v12438_v60 = vpop.eup %7347  ;;  %v4821_v8 = vmax.f32 %v12465_v2, %v12450_v47 }
 0x6f6   : > { %v4412_v30 = vpop.f32.mrf.mxu3  ;;  %5059 = vadd.xlane.f32.xlu2 %v5058_v44 }
 0x6f7   : > { %5083 = vadd.xlane.f32.xlu1 %v5082_v54  ;;  %v12424_v18 = vadd.f32 %v4412_v30, %v4323_v34  ;;  %v12440_v40 = vpop.eup %7349  ;;  %v14013_v54 = vld [vmem:[#allocation55_spill] sm:$0xff]  ;;  %v4873_v30 = vsub.f32 %v14015_v33, %v12265_v5 }
 0x6f8   : > { %v4805_v26 = vpop.xlane.xlu1 %4804 }
 0x6f9   : > { %14012 = vst [vmem:[#allocation34_spill] sm:$0xff] %v12424_v18  ;;  %v4881_v0 = vsub.f32 %v12118_v29, %v4805_v26  ;;  %v4882_v25 = vsub.f32 %v12111_v19, %v4805_v26  ;;  %v5061_v29 = vadd.f32 %v12357_v32, %v12348_v55  ;;  %v12444_v19 = vpop.eup %7351  ;;  %v5145_v55 = vpack.c.bf16 %v12438_v60, %v12440_v40  ;;  %v7803_v26 = vld [vmem:[%s13426_s3 + $0x1a8] sm:$0xff] }
 0x6fa   : > { %v12453_v4 = vpop.eup %7353  ;;  %v12475_v21 = vadd.f32 %v7803_v26, %v12259_v35  ;;  %v7804_v35 = vld [vmem:[%s13426_s3 + $0x1a0] sm:$0xff]  ;;  %v4965_v31 = vmul.f32 1.442695, %v4873_v30  ;;  %v7805_v30 = vld [vmem:[%s13426_s3 + $0x1c8] sm:$0xff] }
 0x6fb   : > { %v4981_v22 = vmul.f32 1.442695, %v4881_v0  ;;  %v4983_v7 = vmul.f32 1.442695, %v4882_v25  ;;  %4819 = vmax.xlane.f32.xlu0 %v4818_v23  ;;  %v12459_v32 = vpop.eup %7355  ;;  %v4802_v0 = vpop.xlane.xlu0 %4801  ;;  %v12507_v26 = vadd.f32 %v7805_v30, %v12307_v46 }
 0x6fc   : > { %v12469_v9 = vpop.eup %7357  ;;  %v5146_v25 = vpack.c.bf16 %v12444_v19, %v12459_v32 }
 0x6fd   : > { %7359 = vpow2.f32 %v4981_v22  ;;  %v4325_v39 = vpop.f32.mrf.mxu2  ;;  %v14016_v22 = vld [vmem:[#allocation128_spill] sm:$0xff] }
 0x6fe   : > { %7361 = vpow2.f32 %v4983_v7  ;;  %v4414_v34 = vpop.f32.mrf.mxu3  ;;  %5062 = vadd.xlane.f32.xlu2 %v5061_v29  ;;  %v4874_v7 = vsub.f32 %v14016_v22, %v12265_v5  ;;  %v12491_v29 = vadd.f32 %v7804_v35, %v12263_v48  ;;  %v7806_v22 = vld [vmem:[%s13426_s3 + $0x1c0] sm:$0xff]  ;;  %v12519_v35 = vpop.f32.mrf.mxu1 }
 0x6ff   : > { %3126 = vadd.xlane.f32.xlu1 %v14013_v54  ;;  %v12455_v44 = vadd.f32 %v4414_v34, %v4325_v39  ;;  %v5085_v54 = vadd.f32 %v12469_v9, %v12453_v4  ;;  %7363 = vpow2.f32 %v4965_v31 }
 0x700   : > { %v4827_v5 = vmax.f32 %v12491_v29, %v12475_v21  ;;  %v4967_v6 = vmul.f32 1.442695, %v4874_v7  ;;  %v12517_v7 = vadd.f32 %v7806_v22, %v12319_v10  ;;  %v14018_v10 = vld [vmem:[#allocation7_spill] sm:$0xff] }
 0x701   : > { %14014 = vst [vmem:[#allocation8_spill] sm:$0xff] %v12455_v44  ;;  %v7808_v22 = vld [vmem:[%s13426_s3 + $0x1b0] sm:$0xff] }
 0x702   : > { %5203 = vmatmul.bf16.gmra.mxu2 %v5145_v55  ;;  %7365 = vpow2.f32 %v4967_v6  ;;  %v4833_v46 = vmax.f32 %v12517_v7, %v12507_v26 }
 0x703   : > { %v12479_v23 = vpop.eup %7359  ;;  %5292 = vmatmul.bf16.gmra.mxu3 %v5146_v25  ;;  %4822 = vmax.xlane.f32.xlu0 %v4821_v8  ;;  %v5064_v8 = vadd.f32 %v12361_v27, %v12355_v57  ;;  %v7807_v57 = vld [vmem:[%s13426_s3 + $0x1b8] sm:$0xff] }
 0x704   : > { %v12485_v39 = vpop.eup %7361  ;;  %v12531_v27 = vadd.f32 %v7807_v57, %v12279_v28  ;;  %v14020_v28 = vld [vmem:[#allocation112_spill] sm:$0xff] }
 0x705   : > { %v4328_v34 = vpop.f32.mrf.mxu2  ;;  %v12497_v55 = vadd.f32 %v12485_v39, %v12479_v23  ;;  %v4880_v57 = vsub.f32 %v14020_v28, %v4802_v0 }
 0x706   : > { %v4417_v33 = vpop.f32.mrf.mxu3  ;;  %4828 = vmax.xlane.f32.xlu2 %v4827_v5  ;;  %v4879_v5 = vsub.f32 %v14018_v10, %v4802_v0 }
 0x707   : > { %5086 = vadd.xlane.f32.xlu1 %v5085_v54  ;;  %v12501_v48 = vadd.f32 %v4417_v33, %v4328_v34  ;;  %v12523_v54 = vpop.eup %7363  ;;  %v12525_v34 = vpop.f32.mrf.mxu0 }
 0x708   : > { %v12509_v25 = vpop.xlane.xlu0 %5044  ;;  %v5147_v30 = vpack.c.bf16 %v12405_v3, %v12523_v54 }
 0x709   : > { %14017 = vst [vmem:[#allocation156_spill] sm:$0xff] %v12501_v48  ;;  %v12544_v48 = vadd.f32 %v7808_v22, %v12282_v58  ;;  %v5076_v58 = vadd.f32 %v12444_v19, %v12438_v60  ;;  %v4746_v22 = vpop.f32.mrf.mxu1 }
 0x70b   : > { %5065 = vadd.xlane.f32.xlu0 %v5064_v8  ;;  %v12538_v8 = vpop.eup %7365  ;;  %v4830_v3 = vmax.f32 %v12544_v48, %v12531_v27 }
 0x70d   : > { %v4330_v31 = vpop.f32.mrf.mxu2 }
 0x70e   : > { %v4419_v6 = vpop.f32.mrf.mxu3  ;;  %4834 = vmax.xlane.f32.xlu2 %v4833_v46  ;;  %v4977_v46 = vmul.f32 1.442695, %v4879_v5 }
 0x70f   : > { %v12534_v33 = vadd.f32 %v4419_v6, %v4330_v31  ;;  %v5148_v31 = vpack.c.bf16 %v12409_v15, %v12538_v8  ;;  %v4979_v6 = vmul.f32 1.442695, %v4880_v57  ;;  %v7809_v15 = vld [vmem:[%s13426_s3 + $0x1f8] sm:$0xff] }
 0x710   : > { %v2142_v44 = vpop.xlane.xlu0 %2141  ;;  %v12547_v10 = vpop.xlane.xlu1 %5047  ;;  %7367 = vpow2.f32 %v4977_v46  ;;  %v12560_v5 = vadd.f32 %v7809_v15, %v4746_v22  ;;  %v7810_v46 = vld [vmem:[%s13426_s3 + $0x1f0] sm:$0xff] }
 0x711   : > { %14019 = vst [vmem:[#allocation59_spill] sm:$0xff] %v12534_v33  ;;  %7369 = vpow2.f32 %v4979_v6 }
 0x712   : > { %5208 = vmatmul.bf16.gmra.mxu2 %v5147_v30  ;;  %v4657_v30 = vpop.f32.mrf.mxu0 }
 0x713   : > { %5297 = vmatmul.bf16.gmra.mxu3 %v5148_v31  ;;  %4831 = vmax.xlane.f32.xlu0 %v4830_v3  ;;  %v12571_v6 = vadd.f32 %v7810_v46, %v4657_v30 }
 0x715   : > { %v4333_v33 = vpop.f32.mrf.mxu2 }
 0x716   : > { %v4422_v0 = vpop.f32.mrf.mxu3  ;;  %5077 = vadd.xlane.f32.xlu2 %v5076_v58  ;;  %v12573_v58 = vpop.eup %7367 }
 0x717   : > { %v12555_v28 = vadd.f32 %v4422_v0, %v4333_v33  ;;  %v5070_v33 = vadd.f32 %v12388_v36, %v12386_v41  ;;  %v14024_v36 = vpack.i.bf16 %v12124_v45, %v12122_v49  ;;  %v5149_v30 = vpack.c.bf16 %v12573_v58, %v12453_v4 }
 0x718   : > { %v12562_v57 = vpop.xlane.xlu2 %5050  ;;  %v4811_v31 = vpop.xlane.xlu0 %4810  ;;  %v5073_v49 = vadd.f32 %v12459_v32, %v12440_v40 }
 0x719   : > { %14021 = vst [vmem:[#allocation55_spill] sm:$0xff] %v12555_v28  ;;  %v4885_v3 = vsub.f32 %v12197_v43, %v4811_v31  ;;  %v4886_v60 = vsub.f32 %v12187_v1, %v4811_v31  ;;  %v2139_v19 = vpop.xlane.xlu1 %2138  ;;  %v4842_v1 = vmax.f32 %v12571_v6, %v12560_v5  ;;  %v12579_v43 = vpop.eup %7369 }
 0x71a   : > { %7371 = vrcp.f32 %v2139_v19  ;;  %v5150_v19 = vpack.c.bf16 %v12579_v43, %v12469_v9  ;;  %v7811_v9 = vld [vmem:[%s13426_s3 + $0x1e8] sm:$0xff] }
 0x71b   : > { %v4989_v22 = vmul.f32 1.442695, %v4885_v3  ;;  %v4991_v0 = vmul.f32 1.442695, %v4886_v60  ;;  %5071 = vadd.xlane.f32.xlu0 %v5070_v33  ;;  %v14025_v33 = vld [vmem:[#allocation92_spill] sm:$0xff] }
 0x71d   : > { %v12575_v15 = vpop.f32.mrf.mxu2  ;;  %7373 = vpow2.f32 %v4989_v22 }
 0x71e   : > { %14022 = vst [vmem:[#allocation153_spill] sm:$0xff] %v12575_v15  ;;  %v12581_v41 = vpop.f32.mrf.mxu3  ;;  %7375 = vpow2.f32 %v4991_v0  ;;  %4843 = vmax.xlane.f32.xlu2 %v4842_v1 }
 0x71f   : > { %14023 = vst [vmem:[#allocation128_spill] sm:$0xff] %v12581_v41  ;;  %7377 = vrcp.f32 %v2142_v44 }
 0x720   : > { %6668 = vrot.lane.b32.xlu1 %v14024_v36, %s7880_s26  ;;  %v7372_v31 = vpop.eup %7371  ;;  %v12589_v3 = vpop.xlane.xlu2 %4816  ;;  %v12610_v36 = vadd.f32 %v7811_v9, %v12519_v35 }
 0x721   : > { %v12591_v60 = vpop.xlane.xlu0 %5053  ;;  %v2507_v46 = vmul.f32 %v7372_v31, %v14025_v33  ;;  %v4814_v22 = vpop.xlane.xlu1 %4813  ;;  %v7812_v31 = vld [vmem:[%s13426_s3 + $0x1e0] sm:$0xff]  ;;  %v14026_v33 = vld [vmem:[#allocation100_spill] sm:$0xff] }
 0x722   : > { %5213 = vmatmul.bf16.gmra.mxu2 %v5149_v30  ;;  %v4887_v45 = vsub.f32 %v12238_v16, %v4814_v22  ;;  %v4888_v4 = vsub.f32 %v12226_v20, %v4814_v22 }
 0x723   : > { %5302 = vmatmul.bf16.gmra.mxu3 %v5150_v19  ;;  %v12600_v44 = vpop.eup %7373  ;;  %5074 = vadd.xlane.f32.xlu0 %v5073_v49  ;;  %v12622_v19 = vadd.f32 %v7812_v31, %v12525_v34 }
 0x724   : > { %v12604_v1 = vpop.eup %7375  ;;  %v4993_v40 = vmul.f32 1.442695, %v4887_v45  ;;  %v4995_v32 = vmul.f32 1.442695, %v4888_v4  ;;  %v14027_v45 = vld [vmem:[#allocation93_spill] sm:$0xff] }
 0x725   : > { %v12602_v0 = vpop.f32.mrf.mxu2  ;;  %v12616_v20 = vadd.f32 %v12604_v1, %v12600_v44  ;;  %v7378_v30 = vpop.eup %7377  ;;  %v4839_v35 = vmax.f32 %v12622_v19, %v12610_v36 }
 0x726   : > { %v12612_v16 = vpop.f32.mrf.mxu3  ;;  %3129 = vadd.xlane.f32.xlu2 %v14026_v33  ;;  %7379 = vpow2.f32 %v4993_v40  ;;  %v2508_v4 = vmul.f32 %v7378_v30, %v14027_v45 }
 0x727   : > { %7381 = vpow2.f32 %v4995_v32  ;;  %v5151_v32 = vpack.c.bf16 %v12364_v53, %v12479_v23  ;;  %v5088_v53 = vadd.f32 %v12579_v43, %v12573_v58 }
 0x728   : > { %v6654_v22 = vpop.permute.xlu2 %6653 }
 0x729   : > { %v4117_v49 = vpop.xlane.xlu0 %4116  ;;  %v6656_v9 = vunpack.i.h.bf16 %v6654_v22  ;;  %v6655_v28 = vunpack.i.l.bf16 %v6654_v22  ;;  %v12628_v41 = vpop.xlane.xlu1 %5056 }
 0x72a   : > { %7383 = vrcp.f32 %v4117_v49  ;;  %v14029_v49 = vld [vmem:[#allocation11_spill] sm:$0xff] }
 0x72b   : > { %v5799_v15 = vsel %vm1550_vm0, %v2507_v46, %v6655_v28  ;;  %v5800_v34 = vsel %vm1550_vm0, %v2508_v4, %v6656_v9  ;;  %4840 = vmax.xlane.f32.xlu0 %v4839_v35  ;;  %v5152_v28 = vpack.c.bf16 %v12370_v51, %v12485_v39  ;;  %v5079_v35 = vadd.f32 %v12538_v8, %v12523_v54  ;;  %v14072_v8 = vld [vmem:[#allocation145_spill] sm:$0xff] }
 0x72c   : > { %v7380_v40 = vpop.eup %7379 }
 0x72d   : > { %v5176_v31 = vpop.f32.mrf.mxu2  ;;  %v7382_v18 = vpop.eup %7381 }
 0x72e   : > { %v5265_v33 = vpop.f32.mrf.mxu3  ;;  %4125 = vadd.xlane.f32.xlu2 %v14028_v63  ;;  %v12635_v45 = vadd.f32 %v7382_v18, %v7380_v40 }
 0x730   : > { %v7384_v30 = vpop.eup %7383 }
 0x731   : > { %v12638_v22 = vmul.f32 %v7384_v30, %v12162_v12  ;;  %v3124_v46 = vpop.xlane.xlu1 %3123  ;;  %v14030_v12 = vld [vmem:[#allocation39_spill] sm:$0xff]  ;;  %v14031_v30 = vld [vmem:[#allocation137_spill] sm:$0xff] }
 0x732   : > { %5218 = vmatmul.bf16.gmra.mxu2 %v5151_v32  ;;  %7385 = vrcp.f32 %v3124_v46  ;;  %v3341_v4 = vadd.f32 %v14030_v12, %v14029_v49  ;;  %v5154_v12 = vpack.c.bf16 %v7382_v18, %v12604_v1 }
 0x733   : > { %5307 = vmatmul.bf16.gmra.mxu3 %v5152_v28  ;;  %5080 = vadd.xlane.f32.xlu0 %v5079_v35 }
 0x735   : > { %v5179_v63 = vpop.f32.mrf.mxu2 }
 0x736   : > { %v5268_v23 = vpop.f32.mrf.mxu3  ;;  %5089 = vadd.xlane.f32.xlu2 %v5088_v53  ;;  %v5153_v53 = vpack.c.bf16 %v7380_v40, %v12600_v44  ;;  %v5266_v40 = vadd.f32 %v5265_v33, %v5176_v31 }
 0x738   : > { %v7386_v9 = vpop.eup %7385 }
 0x739   : > { %v12648_v32 = vmul.f32 %v7386_v9, %v3341_v4  ;;  %v4120_v51 = vpop.xlane.xlu1 %4119 }
 0x73a   : > { %7387 = vrcp.f32 %v4120_v51 }
 0x73b   : > { %v6659_v39 = vpop.permute.xlu0 %6658  ;;  %4122 = vadd.xlane.f32.xlu0 %v14031_v30  ;;  %7389 = vrcp.f32 %v12311_v38 }
 0x73c   : > { %v6661_v28 = vunpack.i.h.bf16 %v6659_v39  ;;  %v6660_v46 = vunpack.i.l.bf16 %v6659_v39  ;;  %7391 = vrcp.f32 %v12396_v24 }
 0x73d   : > { %v5181_v54 = vpop.f32.mrf.mxu2 }
 0x73e   : > { %v5270_v58 = vpop.f32.mrf.mxu3  ;;  %v12654_v43 = vsel %vm5823_vm1, %v5800_v34, %v6661_v28  ;;  %v12657_v35 = vsel %vm5823_vm1, %v5799_v15, %v6660_v46 }
 0x740   : > { %v7388_v49 = vpop.eup %7387 }
 0x741   : > { %v12663_v4 = vmul.f32 %v7388_v49, %v12181_v42  ;;  %v4826_v9 = vpop.xlane.xlu1 %4825  ;;  %v5264_v42 = vadd.f32 %v12612_v16, %v12602_v0  ;;  %v7390_v38 = vpop.eup %7389  ;;  %v5269_v49 = vadd.f32 %v5268_v23, %v5179_v63 }
 0x742   : > { %5223 = vmatmul.bf16.gmra.mxu2 %v5153_v53  ;;  %v4895_v51 = vsub.f32 %v12305_v50, %v4826_v9  ;;  %v4896_v34 = vsub.f32 %v12299_v17, %v4826_v9  ;;  %v5376_v50 = vmul.f32 %v7390_v38, %v5266_v40  ;;  %v7392_v30 = vpop.eup %7391  ;;  %v5271_v53 = vadd.f32 %v5270_v58, %v5181_v54 }
 0x743   : > { %5312 = vmatmul.bf16.gmra.mxu3 %v5154_v12  ;;  %v6722_v44 = vpack.i.bf16 %v12663_v4, %v12638_v22  ;;  %v5375_v24 = vmul.f32 %v7392_v30, %v5264_v42  ;;  %v14033_v12 = vld [vmem:[#allocation113_spill] sm:$0xff] }
 0x744   : > { %v5009_v39 = vmul.f32 1.442695, %v4895_v51  ;;  %v5011_v18 = vmul.f32 1.442695, %v4896_v34 }
 0x745   : > { %v5184_v15 = vpop.f32.mrf.mxu2  ;;  %v6672_v31 = vpack.i.bf16 %v5376_v50, %v5375_v24 }
 0x746   : > { %v5273_v1 = vpop.f32.mrf.mxu3  ;;  %7393 = vpow2.f32 %v5009_v39 }
 0x747   : > { %7395 = vpow2.f32 %v5011_v18  ;;  %v5274_v30 = vadd.f32 %v5273_v1, %v5184_v15 }
 0x748   : > { %7397 = vrcp.f32 %v12547_v10  ;;  %v14032_v10 = vld [vmem:[#allocation114_spill] sm:$0xff] }
 0x749   : > { %7399 = vrcp.f32 %v12509_v25  ;;  %v14034_v9 = vpack.i.bf16 %v14032_v10, %v14033_v12 }
 0x74a   : > { %v12672_v17 = vpop.xlane.xlu1 %5068  ;;  %7401 = vrcp.f32 %v12591_v60 }
 0x74b   : > { %7403 = vrcp.f32 %v12562_v57 }
 0x74c   : > { %v12675_v46 = vpop.eup %7393 }
 0x74d   : > { %v5186_v28 = vpop.f32.mrf.mxu2  ;;  %v12678_v33 = vpop.eup %7395 }
 0x74e   : > { %v5275_v0 = vpop.f32.mrf.mxu3  ;;  %6673 = vrot.lane.b32.xlu2 %v6672_v31, %s7879_s21  ;;  %v12683_v16 = vadd.f32 %v12678_v33, %v12675_v46  ;;  %v7398_v51 = vpop.eup %7397 }
 0x74f   : > { %6663 = vrot.lane.b32.xlu0 %v14034_v9, %s7878_s25  ;;  %v5378_v34 = vmul.f32 %v7398_v51, %v5271_v53  ;;  %v7400_v40 = vpop.eup %7399  ;;  %v5276_v38 = vadd.f32 %v5275_v0, %v5186_v28  ;;  %v4889_v51 = vsub.f32 %v12232_v13, %v12589_v3 }
 0x750   : > { %v5377_v39 = vmul.f32 %v7400_v40, %v5269_v49  ;;  %v7402_v24 = vpop.eup %7401 }
 0x751   : > { %v5380_v60 = vmul.f32 %v7402_v24, %v5276_v38  ;;  %v7404_v31 = vpop.eup %7403 }
 0x752   : > { %v4838_v25 = vpop.xlane.xlu1 %4837  ;;  %v6677_v42 = vpack.i.bf16 %v5378_v34, %v5377_v39 }
 0x753   : > { %v4903_v54 = vsub.f32 %v12353_v61, %v4838_v25  ;;  %v4904_v58 = vsub.f32 %v12346_v56, %v4838_v25  ;;  %v5379_v61 = vmul.f32 %v7404_v31, %v5274_v30  ;;  %v14035_v25 = vld [vmem:[#allocation57_spill] sm:$0xff]  ;;  %v14036_v30 = vld [vmem:[#allocation48_spill] sm:$0xff] }
 0x755   : > { %v5189_v18 = vpop.f32.mrf.mxu2  ;;  %v5025_v63 = vmul.f32 1.442695, %v4903_v54  ;;  %v5027_v23 = vmul.f32 1.442695, %v4904_v58  ;;  %v6682_v57 = vpack.i.bf16 %v5380_v60, %v5379_v61  ;;  %v4890_v58 = vsub.f32 %v12220_v37, %v12589_v3 }
 0x756   : > { %v5278_v50 = vpop.f32.mrf.mxu3 }
 0x757   : > { %7405 = vpow2.f32 %v5025_v63  ;;  %6678 = vrot.lane.b32.xlu0 %v6677_v42, %s7879_s21  ;;  %v4997_v63 = vmul.f32 1.442695, %v4889_v51  ;;  %v4999_v13 = vmul.f32 1.442695, %v4890_v58 }
 0x758   : > { %7407 = vpow2.f32 %v5027_v23  ;;  %v5279_v23 = vadd.f32 %v5278_v50, %v5189_v18 }
 0x75d   : > { %v5191_v53 = vpop.f32.mrf.mxu2  ;;  %v12694_v56 = vpop.eup %7405 }
 0x75e   : > { %v12696_v49 = vpop.eup %7407  ;;  %v5280_v10 = vpop.f32.mrf.mxu3 }
 0x75f   : > { %v12700_v28 = vadd.f32 %v12696_v49, %v12694_v56  ;;  %6683 = vrot.lane.b32.xlu0 %v6682_v57, %s7879_s21  ;;  %v5281_v31 = vadd.f32 %v5280_v10, %v5191_v53 }
 0x761   : > { %v2145_v15 = vpop.xlane.xlu2 %2144 }
 0x762   : > { %7409 = vrcp.f32 %v2145_v15 }
 0x765   : > { %v12703_v1 = vpop.f32.mrf.mxu2 }
 0x766   : > { %v12705_v0 = vpop.f32.mrf.mxu3  ;;  %v2148_v12 = vpop.xlane.xlu0 %2147 }
 0x767   : > { %7411 = vrcp.f32 %v2148_v12 }
 0x768   : > { %v7410_v9 = vpop.eup %7409  ;;  %7413 = vrcp.f32 %v12628_v41 }
 0x769   : > { %v12713_v40 = vmul.f32 %v7410_v9, %v14035_v25  ;;  %v5060_v54 = vpop.xlane.xlu2 %5059 }
 0x76a   : > { %v12709_v34 = vpop.xlane.xlu1 %5083  ;;  %7415 = vrcp.f32 %v5060_v54 }
 0x76b   : > { %7417 = vpow2.f32 %v4997_v63 }
 0x76d   : > { %v12717_v39 = vpop.f32.mrf.mxu2  ;;  %v7412_v42 = vpop.eup %7411 }
 0x76e   : > { %v12719_v38 = vpop.f32.mrf.mxu3  ;;  %v12722_v24 = vmul.f32 %v7412_v42, %v14036_v30  ;;  %v4820_v41 = vpop.xlane.xlu0 %4819 }
 0x76f   : > { %v7414_v60 = vpop.eup %7413  ;;  %v4891_v61 = vsub.f32 %v12430_v62, %v4820_v41  ;;  %v4892_v57 = vsub.f32 %v12422_v59, %v4820_v41 }
 0x770   : > { %v7416_v37 = vpop.eup %7415  ;;  %v5381_v3 = vmul.f32 %v7414_v60, %v5279_v23  ;;  %v14037_v23 = vld [vmem:[#allocation68_spill] sm:$0xff] }
 0x771   : > { %v5382_v12 = vmul.f32 %v7416_v37, %v5281_v31  ;;  %v5001_v18 = vmul.f32 1.442695, %v4891_v61  ;;  %v5003_v50 = vmul.f32 1.442695, %v4892_v57  ;;  %v5063_v9 = vpop.xlane.xlu2 %5062  ;;  %v12731_v59 = vpop.eup %7417  ;;  %v6542_v31 = vld [vmem:[%s13431_s8 + $0x38] sm:$0xff] }
 0x772   : > { %v3127_v15 = vpop.xlane.xlu1 %3126  ;;  %5973 = vmatpush.bf16.msrb.mxu0 %v6542_v31 }
 0x773   : > { %7419 = vrcp.f32 %v3127_v15  ;;  %v6687_v51 = vpack.i.bf16 %v5382_v12, %v5381_v3 }
 0x774   : > { %7421 = vpow2.f32 %v4999_v13 }
 0x775   : > { %7423 = vpow2.f32 %v5001_v18  ;;  %v12726_v25 = vpop.f32.mrf.mxu2  ;;  %6688 = vrot.lane.b32.xlu2 %v6687_v51, %s7879_s21 }
 0x776   : > { %7425 = vpow2.f32 %v5003_v50  ;;  %v12729_v62 = vpop.f32.mrf.mxu3  ;;  %v4823_v53 = vpop.xlane.xlu0 %4822 }
 0x777   : > { %v4893_v54 = vsub.f32 %v12465_v2, %v4823_v53  ;;  %v4894_v58 = vsub.f32 %v12450_v47, %v4823_v53 }
 0x779   : > { %v7420_v10 = vpop.eup %7419  ;;  %v5005_v30 = vmul.f32 1.442695, %v4893_v54  ;;  %v5007_v41 = vmul.f32 1.442695, %v4894_v58  ;;  %v4829_v60 = vpop.xlane.xlu2 %4828 }
 0x77a   : > { %v12735_v63 = vpop.eup %7421  ;;  %v12738_v42 = vmul.f32 %v7420_v10, %v14037_v23  ;;  %v4897_v57 = vsub.f32 %v12491_v29, %v4829_v60  ;;  %v4898_v2 = vsub.f32 %v12475_v21, %v4829_v60  ;;  %v6541_v21 = vld [vmem:[%s13431_s8 + $0x30] sm:$0xff]  ;;  %v6540_v10 = vld [vmem:[%s13431_s8 + $0x28] sm:$0xff]  ;;  %v5284_v60 = vadd.f32 %v12705_v0, %v12703_v1 }
 0x77b   : > { %v7424_v13 = vpop.eup %7423  ;;  %7427 = vpow2.f32 %v5005_v30  ;;  %5974 = vmatpush.bf16.msrb.mxu0 %v6541_v21 }
 0x77c   : > { %v7426_v61 = vpop.eup %7425  ;;  %v5155_v47 = vpack.c.bf16 %v7424_v13, %v12731_v59  ;;  %7429 = vpow2.f32 %v5007_v41  ;;  %v5013_v12 = vmul.f32 1.442695, %v4897_v57  ;;  %v5015_v18 = vmul.f32 1.442695, %v4898_v2 }
 0x77d   : > { %v5156_v37 = vpack.c.bf16 %v7426_v61, %v12735_v63  ;;  %v12747_v3 = vpop.f32.mrf.mxu2  ;;  %v12749_v15 = vadd.f32 %v7426_v61, %v7424_v13  ;;  %7431 = vrcp.f32 %v5063_v9 }
 0x77e   : > { %5228 = vmatmul.bf16.gmra.mxu2 %v5155_v47  ;;  %v12751_v50 = vpop.f32.mrf.mxu3  ;;  %7433 = vpow2.f32 %v5013_v12  ;;  %v5066_v29 = vpop.xlane.xlu0 %5065 }
 0x77f   : > { %5317 = vmatmul.bf16.gmra.mxu3 %v5156_v37  ;;  %7435 = vpow2.f32 %v5015_v18  ;;  %5975 = vmatpush.bf16.msrb.mxu0 %v6540_v10 }
 0x780   : > { %7437 = vrcp.f32 %v5066_v29 }
 0x781   : > { %v7428_v51 = vpop.eup %7427  ;;  %v4835_v53 = vpop.xlane.xlu2 %4834 }
 0x782   : > { %v7430_v54 = vpop.eup %7429  ;;  %v4901_v9 = vsub.f32 %v12517_v7, %v4835_v53  ;;  %v4902_v58 = vsub.f32 %v12507_v26, %v4835_v53  ;;  %v5286_v7 = vadd.f32 %v12719_v38, %v12717_v39  ;;  %v6539_v26 = vld [vmem:[%s13431_s8 + $0x20] sm:$0xff]  ;;  %v14038_v53 = vld [vmem:[#allocation15_spill] sm:$0xff] }
 0x783   : > { %v7432_v23 = vpop.eup %7431  ;;  %v12763_v30 = vadd.f32 %v7430_v54, %v7428_v51  ;;  %5976 = vmatpush.bf16.msrb.mxu0 %v6539_v26  ;;  %v6536_v26 = vld [vmem:[%s13431_s8 + $0x8] sm:$0xff] }
 0x784   : > { %v12765_v41 = vpop.eup %7433  ;;  %v5021_v31 = vmul.f32 1.442695, %v4901_v9  ;;  %v5023_v61 = vmul.f32 1.442695, %v4902_v58  ;;  %v5383_v37 = vmul.f32 %v7432_v23, %v5284_v60  ;;  %v6538_v9 = vld [vmem:[%s13431_s8 + $0x18] sm:$0xff]  ;;  %v5157_v58 = vpack.c.bf16 %v12675_v46, %v7428_v51  ;;  %v6537_v46 = vld [vmem:[%s13431_s8 + $0x10] sm:$0xff] }
 0x785   : > { %v12761_v13 = vpop.f32.mrf.mxu2  ;;  %v12769_v57 = vpop.eup %7435 }
 0x786   : > { %v12773_v2 = vpop.f32.mrf.mxu3  ;;  %v7438_v47 = vpop.eup %7437  ;;  %7439 = vpow2.f32 %v5021_v31  ;;  %v12780_v1 = vadd.f32 %v12769_v57, %v12765_v41 }
 0x787   : > { %v4832_v12 = vpop.xlane.xlu0 %4831  ;;  %v5384_v0 = vmul.f32 %v7438_v47, %v5286_v7  ;;  %7441 = vpow2.f32 %v5023_v61  ;;  %5977 = vmatpush.bf16.msrb.mxu0 %v6538_v9  ;;  %v14039_v7 = vld [vmem:[#allocation40_spill] sm:$0xff] }
 0x788   : > { %v4899_v18 = vsub.f32 %v12544_v48, %v4832_v12  ;;  %v4900_v39 = vsub.f32 %v12531_v27, %v4832_v12  ;;  %v5158_v48 = vpack.c.bf16 %v12678_v33, %v7430_v54 }
 0x789   : > { %v12784_v29 = vpop.xlane.xlu2 %5077  ;;  %2150 = vadd.xlane.f32.xlu0 %v14038_v53  ;;  %v6692_v10 = vpack.i.bf16 %v5384_v0, %v5383_v37  ;;  %v5289_v37 = vadd.f32 %v12729_v62, %v12726_v25  ;;  %v6535_v25 = vld [vmem:[%s13431_s8] sm:$0xff] }
 0x78a   : > { %v5017_v38 = vmul.f32 1.442695, %v4899_v18  ;;  %v5019_v21 = vmul.f32 1.442695, %v4900_v39 }
 0x78b   : > { %6693 = vrot.lane.b32.xlu1 %v6692_v10, %s7879_s21  ;;  %5978 = vmatpush.bf16.msrb.mxu0 %v6537_v46  ;;  %v14040_v46 = vld [vmem:[#allocation151_spill] sm:$0xff] }
 0x78c   : > { %7443 = vpow2.f32 %v5017_v38  ;;  %v12795_v23 = vpop.eup %7439  ;;  %v5291_v38 = vadd.f32 %v12751_v50, %v12747_v3 }
 0x78d   : > { %v12793_v27 = vpop.f32.mrf.mxu2  ;;  %7445 = vpow2.f32 %v5019_v21  ;;  %v12797_v60 = vpop.eup %7441 }
 0x78e   : > { %5233 = vmatmul.bf16.gmra.mxu2 %v5157_v58  ;;  %v12799_v31 = vpop.f32.mrf.mxu3  ;;  %7447 = vrcp.f32 %v12672_v17  ;;  %v12807_v33 = vadd.f32 %v12797_v60, %v12795_v23 }
 0x78f   : > { %5322 = vmatmul.bf16.gmra.mxu3 %v5158_v48  ;;  %v5072_v51 = vpop.xlane.xlu0 %5071  ;;  %5979 = vmatpush.bf16.msrb.mxu0 %v6536_v26 }
 0x790   : > { %7449 = vrcp.f32 %v5072_v51 }
 0x791   : > { %v4844_v61 = vpop.xlane.xlu2 %4843  ;;  %3135 = vadd.xlane.f32.xlu0 %v14039_v7 }
 0x792   : > { %v7444_v54 = vpop.eup %7443  ;;  %v4907_v17 = vsub.f32 %v12571_v6, %v4844_v61  ;;  %v4908_v12 = vsub.f32 %v12560_v5, %v4844_v61 }
 0x793   : > { %v7446_v47 = vpop.eup %7445  ;;  %5980 = vmatpush.bf16.msrb.mxu0 %v6535_v25  ;;  %v5159_v3 = vpack.c.bf16 %v7444_v54, %v12765_v41 }
 0x794   : > { %v12819_v18 = vadd.f32 %v7446_v47, %v7444_v54  ;;  %v7448_v39 = vpop.eup %7447  ;;  %v5033_v21 = vmul.f32 1.442695, %v4907_v17  ;;  %v5035_v53 = vmul.f32 1.442695, %v4908_v12  ;;  %v5160_v50 = vpack.c.bf16 %v7446_v47, %v12769_v57  ;;  %v14041_v12 = vld [vmem:[#allocation47_spill] sm:$0xff] }
 0x795   : > { %v12817_v0 = vpop.f32.mrf.mxu2  ;;  %v5385_v6 = vmul.f32 %v7448_v39, %v5289_v37  ;;  %v14042_v39 = vld [vmem:[#allocation37_spill] sm:$0xff] }
 0x796   : > { %v7450_v10 = vpop.eup %7449  ;;  %v5298_v9 = vpop.f32.mrf.mxu3  ;;  %7451 = vpow2.f32 %v5033_v21 }
 0x797   : > { %v5386_v62 = vmul.f32 %v7450_v10, %v5291_v38  ;;  %v12826_v5 = vpop.xlane.xlu0 %5074  ;;  %7453 = vpow2.f32 %v5035_v53  ;;  %v3346_v38 = vadd.f32 %v14042_v39, %v14041_v12 }
 0x799   : > { %v6697_v58 = vpack.i.bf16 %v5386_v62, %v5385_v6  ;;  %v3130_v48 = vpop.xlane.xlu2 %3129  ;;  %4128 = vadd.xlane.f32.xlu0 %v14040_v46  ;;  %v14043_v62 = vld [vmem:[#allocation61_spill] sm:$0xff]  ;;  %v14044_v46 = vld [vmem:[#allocation64_spill] sm:$0xff]  ;;  %v14071_v6 = vld [vmem:[#allocation130_spill] sm:$0xff] }
 0x79a   : > { %7455 = vrcp.f32 %v3130_v48 }
 0x79b   : > { %6698 = vrot.lane.b32.xlu2 %v6697_v58, %s7879_s21 }
 0x79c   : > { %v12832_v61 = vpop.eup %7451 }
 0x79d   : > { %v5211_v51 = vpop.f32.mrf.mxu2  ;;  %v12834_v7 = vpop.eup %7453 }
 0x79e   : > { %5238 = vmatmul.bf16.gmra.mxu2 %v5159_v3  ;;  %v5300_v26 = vpop.f32.mrf.mxu3  ;;  %v12838_v17 = vadd.f32 %v12834_v7, %v12832_v61 }
 0x79f   : > { %5327 = vmatmul.bf16.gmra.mxu3 %v5160_v50  ;;  %v4841_v37 = vpop.xlane.xlu0 %4840  ;;  %v5301_v39 = vadd.f32 %v5300_v26, %v5211_v51 }
 0x7a0   : > { %v4905_v41 = vsub.f32 %v12622_v19, %v4841_v37  ;;  %v4906_v57 = vsub.f32 %v12610_v36, %v4841_v37  ;;  %v7456_v54 = vpop.eup %7455  ;;  %v5087_v36 = vpop.xlane.xlu1 %5086 }
 0x7a1   : > { %v12844_v47 = vmul.f32 %v7456_v54, %v3346_v38  ;;  %v4126_v10 = vpop.xlane.xlu2 %4125  ;;  %5092 = vadd.xlane.f32.xlu0 %v12497_v55  ;;  %v14045_v55 = vld [vmem:[#allocation149_spill] sm:$0xff]  ;;  %v5161_v38 = vpack.c.bf16 %v12694_v56, %v12795_v23 }
 0x7a2   : > { %v5029_v21 = vmul.f32 1.442695, %v4905_v41  ;;  %v5031_v53 = vmul.f32 1.442695, %v4906_v57  ;;  %7457 = vrcp.f32 %v4126_v10 }
 0x7a4   : > { %7459 = vpow2.f32 %v5029_v21 }
 0x7a5   : > { %v5214_v25 = vpop.f32.mrf.mxu2  ;;  %7461 = vpow2.f32 %v5031_v53  ;;  %v5299_v53 = vadd.f32 %v5298_v9, %v12817_v0 }
 0x7a6   : > { %7463 = vrcp.f32 %v14043_v62  ;;  %v5303_v19 = vpop.f32.mrf.mxu3  ;;  %v14046_v62 = vld [vmem:[#allocation121_spill] sm:$0xff] }
 0x7a7   : > { %7465 = vrcp.f32 %v12709_v34  ;;  %v5081_v58 = vpop.xlane.xlu0 %5080  ;;  %v5162_v34 = vpack.c.bf16 %v12696_v49, %v12797_v60  ;;  %v6615_v56 = vunpack.i.l.bf16 %v14046_v62 }
 0x7a8   : > { %7467 = vrcp.f32 %v5081_v58  ;;  %v7458_v48 = vpop.eup %7457  ;;  %v5304_v58 = vadd.f32 %v5303_v19, %v5214_v25  ;;  %v14049_v19 = vld [vmem:[#allocation70_spill] sm:$0xff] }
 0x7a9   : > { %7469 = vrcp.f32 %v14044_v46  ;;  %v12853_v50 = vmul.f32 %v7458_v48, %v14045_v55  ;;  %v5090_v37 = vpop.xlane.xlu2 %5089  ;;  %v14047_v55 = vld [vmem:[#allocation138_spill] sm:$0xff] }
 0x7aa   : > { %v7460_v3 = vpop.eup %7459  ;;  %7471 = vrcp.f32 %v5087_v36  ;;  %v6616_v36 = vunpack.i.h.bf16 %v14046_v62  ;;  %v6635_v0 = vunpack.i.l.bf16 %v14047_v55 }
 0x7ab   : > { %v7462_v12 = vpop.eup %7461  ;;  %7473 = vrcp.f32 %v5090_v37  ;;  %v6636_v37 = vunpack.i.h.bf16 %v14047_v55 }
 0x7ac   : > { %v7464_v41 = vpop.eup %7463  ;;  %v12859_v54 = vadd.f32 %v7462_v12, %v7460_v3 }
 0x7ad   : > { %v5216_v57 = vpop.f32.mrf.mxu2  ;;  %v7466_v21 = vpop.eup %7465 }
 0x7ae   : > { %5243 = vmatmul.bf16.gmra.mxu2 %v5161_v38  ;;  %v7468_v10 = vpop.eup %7467  ;;  %v5305_v51 = vpop.f32.mrf.mxu3  ;;  %v12864_v23 = vmul.f32 %v7466_v21, %v5301_v39  ;;  %v14048_v38 = vld [vmem:[#allocation66_spill] sm:$0xff] }
 0x7af   : > { %5332 = vmatmul.bf16.gmra.mxu3 %v5162_v34  ;;  %v7470_v26 = vpop.eup %7469  ;;  %v12866_v48 = vmul.f32 %v7468_v10, %v5299_v53  ;;  %v4123_v49 = vpop.xlane.xlu0 %4122  ;;  %v5306_v60 = vadd.f32 %v5305_v51, %v5216_v57  ;;  %v2499_v25 = vmul.f32 %v7464_v41, %v14048_v38  ;;  %v14050_v38 = vld [vmem:[#allocation5_spill] sm:$0xff] }
 0x7b0   : > { %v7472_v46 = vpop.eup %7471  ;;  %7475 = vrcp.f32 %v4123_v49  ;;  %v2500_v34 = vmul.f32 %v7470_v26, %v14049_v19  ;;  %v14054_v19 = vld [vmem:[#allocation72_spill] sm:$0xff] }
 0x7b1   : > { %v7474_v9 = vpop.eup %7473  ;;  %v12874_v39 = vmul.f32 %v7472_v46, %v5304_v58  ;;  %v6674_v57 = vpop.permute.xlu2 %6673  ;;  %v5791_v10 = vsel %vm1550_vm0, %v2499_v25, %v6615_v56  ;;  %v14052_v56 = vld [vmem:[#allocation49_spill] sm:$0xff]  ;;  %v14087_v22 = vpack.i.bf16 %v12864_v23, %v12866_v48 }
 0x7b2   : > { %v12876_v21 = vmul.f32 %v7474_v9, %v5306_v60  ;;  %v5792_v53 = vsel %vm1550_vm0, %v2500_v34, %v6616_v36  ;;  %v6676_v51 = vunpack.i.h.bf16 %v6674_v57  ;;  %v6675_v49 = vunpack.i.l.bf16 %v6674_v57  ;;  %v14051_v36 = vld [vmem:[#allocation54_spill] sm:$0xff] }
 0x7b3   : > { %v5825_v55 = vsel %vm5823_vm1, %v5792_v53, %v6636_v37  ;;  %v5824_v41 = vsel %vm5823_vm1, %v5791_v10, %v6635_v0  ;;  %v14053_v25 = vpack.i.bf16 %v14051_v36, %v14052_v56  ;;  %v5163_v34 = vpack.c.bf16 %v12832_v61, %v7460_v3  ;;  %v14055_v53 = vld [vmem:[#allocation71_spill] sm:$0xff]  ;;  %v14063_v56 = vld [vmem:[#allocation85_spill] sm:$0xff] }
 0x7b4   : > { %v5857_v58 = vsel %vm5856_vm2, %v5824_v41, %v6675_v49  ;;  %v5858_v60 = vsel %vm5856_vm2, %v5825_v55, %v6676_v51  ;;  %v5164_v57 = vpack.c.bf16 %v12834_v7, %v7462_v12  ;;  %7477 = vrcp.f32 %v14055_v53  ;;  %v14056_v10 = vld [vmem:[#allocation111_spill] sm:$0xff]  ;;  %v14058_v55 = vld [vmem:[#allocation106_spill] sm:$0xff]  ;;  %v14062_v12 = vld [vmem:[#allocation32_spill] sm:$0xff] }
 0x7b5   : > { %v5889_v9 = vpack.c.bf16 %v5858_v60, %v5857_v58  ;;  %3132 = vadd.xlane.f32.xlu1 %v14050_v38  ;;  %6708 = vrot.lane.b32.xlu0 %v14053_v25, %s7880_s26  ;;  %7479 = vrcp.f32 %v14056_v10  ;;  %v14057_v51 = vld [vmem:[#allocation75_spill] sm:$0xff]  ;;  %v14061_v38 = vld [vmem:[#allocation22_spill] sm:$0xff]  ;;  %v14065_v53 = vld [vmem:[#allocation17_spill] sm:$0xff] }
 0x7b6   : > { %v7476_v46 = vpop.eup %7475  ;;  %7481 = vrcp.f32 %v14057_v51  ;;  %v14059_v60 = vld [vmem:[#allocation51_spill] sm:$0xff] }
 0x7b7   : > { %v12892_v37 = vmul.f32 %v7476_v46, %v14054_v19  ;;  %5981 = vmatmul.bf16.vlgmr.msrb.gmra.mxu0 %v5889_v9  ;;  %7483 = vrcp.f32 %v14058_v55  ;;  %v14060_v46 = vld [vmem:[#allocation116_spill] sm:$0xff]  ;;  %v14064_v25 = vld [vmem:[#allocation103_spill] sm:$0xff]  ;;  %v14067_v55 = vld [vmem:[#allocation73_spill] sm:$0xff] }
 0x7b8   : > { %v3336_v9 = vadd.f32 %v14060_v46, %v14059_v60  ;;  %7485 = vrcp.f32 %v14062_v12  ;;  %v6621_v19 = vunpack.i.h.bf16 %v14064_v25  ;;  %v14069_v60 = vld [vmem:[#allocation82_spill] sm:$0xff] }
 0x7b9   : > { %7487 = vrcp.f32 %v14063_v56 }
 0x7ba   : > { %v7478_v3 = vpop.eup %7477  ;;  %7489 = vrcp.f32 %v14065_v53 }
 0x7bb   : > { %v7480_v36 = vpop.eup %7479 }
 0x7bc   : > { %v3428_v10 = vmul.f32 %v7480_v36, %v3336_v9 }
 0x7be   : > { %5248 = vmatmul.bf16.gmra.mxu2 %v5163_v34  ;;  %v6620_v34 = vunpack.i.l.bf16 %v14064_v25 }
 0x7bf   : > { %5337 = vmatmul.bf16.gmra.mxu3 %v5164_v57  ;;  %v7482_v57 = vpop.eup %7481 }
 0x7c0   : > { %v2502_v46 = vmul.f32 %v7482_v57, %v14069_v60 }
 0x7c1   : > { %v6664_v49 = vpop.permute.xlu0 %6663 }
 0x7c2   : > { %v6666_v41 = vunpack.i.h.bf16 %v6664_v49  ;;  %v6665_v58 = vunpack.i.l.bf16 %v6664_v49  ;;  %v5794_v25 = vsel %vm1550_vm0, %v2502_v46, %v6621_v19  ;;  %v6651_v46 = vunpack.i.h.bf16 %v12434_v14 }
 0x7c4   : > { %2153 = vadd.xlane.f32.xlu2 %v14061_v38  ;;  %v12907_v61 = vsel %vm1550_vm0, %v12722_v24, %v6666_v41  ;;  %v12911_v7 = vsel %vm1550_vm0, %v12713_v40, %v6665_v58  ;;  %v14066_v24 = vld [vmem:[#allocation117_spill] sm:$0xff]  ;;  %v7484_v40 = vpop.eup %7483  ;;  %v2501_v41 = vmul.f32 %v7478_v3, %v14067_v55  ;;  %v14068_v58 = vld [vmem:[#allocation44_spill] sm:$0xff]  ;;  %v14070_v38 = vld [vmem:[#allocation115_spill] sm:$0xff] }
 0x7c5   : > { %v6641_v51 = vunpack.i.h.bf16 %v14066_v24  ;;  %v6640_v49 = vunpack.i.l.bf16 %v14066_v24  ;;  %7491 = vrcp.f32 %v14068_v58  ;;  %v3427_v12 = vmul.f32 %v7484_v40, %v14070_v38  ;;  %v7486_v36 = vpop.eup %7485  ;;  %v14073_v58 = vld [vmem:[#allocation146_spill] sm:$0xff] }
 0x7c6   : > { %v5793_v26 = vsel %vm1550_vm0, %v2501_v41, %v6620_v34  ;;  %v6626_v24 = vunpack.i.h.bf16 %v14071_v6  ;;  %v7488_v57 = vpop.eup %7487  ;;  %v6631_v40 = vunpack.i.h.bf16 %v14073_v58  ;;  %v6630_v60 = vunpack.i.l.bf16 %v14073_v58 }
 0x7c7   : > { %v6702_v0 = vpack.i.bf16 %v3428_v10, %v3427_v12  ;;  %v5826_v3 = vsel %vm5823_vm1, %v5793_v26, %v6640_v49  ;;  %v5827_v55 = vsel %vm5823_vm1, %v5794_v25, %v6641_v51  ;;  %v7490_v41 = vpop.eup %7489  ;;  %v6625_v10 = vunpack.i.l.bf16 %v14071_v6  ;;  %v14074_v49 = vld [vmem:[#allocation89_spill] sm:$0xff]  ;;  %v14075_v12 = vld [vmem:[#allocation90_spill] sm:$0xff]  ;;  %v14076_v25 = vld [vmem:[#allocation84_spill] sm:$0xff] }
 0x7c8   : > { %v2505_v51 = vmul.f32 %v7488_v57, %v14074_v49  ;;  %v2503_v58 = vmul.f32 %v7486_v36, %v14076_v25  ;;  %7493 = vrcp.f32 %v12826_v5 }
 0x7c9   : > { %v6679_v56 = vpop.permute.xlu0 %6678  ;;  %7495 = vrcp.f32 %v12784_v29  ;;  %v6669_v29 = vpop.permute.xlu1 %6668 }
 0x7ca   : > { %v6681_v53 = vunpack.i.h.bf16 %v6679_v56  ;;  %v6680_v9 = vunpack.i.l.bf16 %v6679_v56  ;;  %v2506_v56 = vmul.f32 %v7490_v41, %v14075_v12  ;;  %v6671_v5 = vunpack.i.h.bf16 %v6669_v29 }
 0x7cb   : > { %v7492_v26 = vpop.eup %7491 }
 0x7cc   : > { %4131 = vadd.xlane.f32.xlu2 %v14072_v8  ;;  %v5859_v19 = vsel %vm5856_vm2, %v5826_v3, %v6680_v9  ;;  %v5860_v34 = vsel %vm5856_vm2, %v5827_v55, %v6681_v53  ;;  %v6650_v8 = vunpack.i.l.bf16 %v12434_v14  ;;  %v14077_v9 = vld [vmem:[#allocation87_spill] sm:$0xff]  ;;  %v14078_v53 = vld [vmem:[#allocation152_spill] sm:$0xff]  ;;  %v5798_v14 = vsel %vm1550_vm0, %v2506_v56, %v6631_v40 }
 0x7cd   : > { %v5890_v38 = vpack.c.bf16 %v5860_v34, %v5859_v19  ;;  %v2504_v3 = vmul.f32 %v7492_v26, %v14077_v9  ;;  %v6646_v55 = vunpack.i.h.bf16 %v14078_v53  ;;  %v6645_v6 = vunpack.i.l.bf16 %v14078_v53  ;;  %v14079_v40 = vld [vmem:[#allocation107_spill] sm:$0xff] }
 0x7ce   : > { %6703 = vrot.lane.b32.xlu1 %v6702_v0, %s7878_s25  ;;  %v5797_v19 = vsel %vm1550_vm0, %v2505_v51, %v6630_v60  ;;  %v5795_v0 = vsel %vm1550_vm0, %v2503_v58, %v6625_v10  ;;  %v5831_v26 = vsel %vm5823_vm1, %v5798_v14, %v6651_v46  ;;  %v14080_v46 = vld [vmem:[#allocation63_spill] sm:$0xff]  ;;  %v7494_v56 = vpop.eup %7493  ;;  %v5294_v58 = vadd.f32 %v12773_v2, %v12761_v13 }
 0x7cf   : > { %v6689_v62 = vpop.permute.xlu2 %6688  ;;  %5986 = vmatmul.bf16.gmra.mxu0 %v5890_v38  ;;  %v5796_v41 = vsel %vm1550_vm0, %v2504_v3, %v6626_v24  ;;  %v5830_v36 = vsel %vm5823_vm1, %v5797_v19, %v6650_v8  ;;  %v5828_v60 = vsel %vm5823_vm1, %v5795_v0, %v6645_v6  ;;  %v5296_v3 = vadd.f32 %v12799_v31, %v12793_v27  ;;  %v7496_v53 = vpop.eup %7495  ;;  %v14081_v14 = vld [vmem:[#allocation147_spill] sm:$0xff] }
 0x7d0   : > { %v6691_v34 = vunpack.i.h.bf16 %v6689_v62  ;;  %v6690_v57 = vunpack.i.l.bf16 %v6689_v62  ;;  %v5829_v62 = vsel %vm5823_vm1, %v5796_v41, %v6646_v55  ;;  %v5387_v55 = vmul.f32 %v7494_v56, %v5294_v58 }
 0x7d1   : > { %v6684_v49 = vpop.permute.xlu0 %6683  ;;  %v5388_v6 = vmul.f32 %v7496_v53, %v5296_v3  ;;  %v5835_v27 = vsel %vm5823_vm1, %v12907_v61, %v6671_v5  ;;  %v14092_v53 = vld [vmem:[#allocation50_spill] sm:$0xff] }
 0x7d2   : > { %v6686_v12 = vunpack.i.h.bf16 %v6684_v49  ;;  %v6685_v25 = vunpack.i.l.bf16 %v6684_v49  ;;  %v5863_v9 = vsel %vm5856_vm2, %v5830_v36, %v6690_v57  ;;  %v5864_v38 = vsel %vm5856_vm2, %v5831_v26, %v6691_v34  ;;  %v14082_v49 = vld [vmem:[#allocation18_spill] sm:$0xff] }
 0x7d3   : > { %v5892_v24 = vpack.c.bf16 %v5864_v38, %v5863_v9  ;;  %v6712_v19 = vpack.i.bf16 %v5388_v6, %v5387_v55  ;;  %v6670_v34 = vunpack.i.l.bf16 %v6669_v29  ;;  %v14083_v9 = vld [vmem:[#allocation12_spill] sm:$0xff]  ;;  %v14093_v6 = vld [vmem:[#allocation119_spill] sm:$0xff] }
 0x7d4   : > { %5095 = vadd.xlane.f32.xlu2 %v14079_v40  ;;  %v5861_v10 = vsel %vm5856_vm2, %v5828_v60, %v6685_v25  ;;  %v5862_v51 = vsel %vm5856_vm2, %v5829_v62, %v6686_v12  ;;  %v14084_v60 = vld [vmem:[#allocation27_spill] sm:$0xff] }
 0x7d5   : > { %v5891_v8 = vpack.c.bf16 %v5862_v51, %v5861_v10  ;;  %v5834_v2 = vsel %vm5823_vm1, %v12911_v7, %v6670_v34  ;;  %v14086_v10 = vld [vmem:[#allocation79_spill] sm:$0xff]  ;;  %v5219_v34 = vpop.f32.mrf.mxu2 }
 0x7df   : > { %2159 = vadd.xlane.f32.xlu0 %v14080_v46  ;;  %5991 = vmatmul.bf16.gmra.mxu0 %v5891_v8  ;;  %v14090_v8 = vld [vmem:[#allocation118_spill] sm:$0xff] }
 0x7e0   : > { %v14091_v46 = vld [vmem:[#allocation46_spill] sm:$0xff] }
 0x7e1   : > { %v3351_v56 = vadd.f32 %v14091_v46, %v14090_v8 }
 0x7e7   : > { %4134 = vadd.xlane.f32.xlu0 %v14081_v14 }
 0x7ec   : > { %6713 = vrot.lane.b32.xlu2 %v6712_v19, %s7879_s21 }
 0x7ef   : > { %5098 = vadd.xlane.f32.xlu0 %v12616_v20  ;;  %5996 = vmatmul.bf16.gmra.mxu0 %v5892_v24 }
 0x7f5   : > { %v6699_v57 = vpop.permute.xlu2 %6698 }
 0x7f6   : > { %v6701_v41 = vunpack.i.h.bf16 %v6699_v57  ;;  %v6700_v13 = vunpack.i.l.bf16 %v6699_v57  ;;  %v5308_v57 = vpop.f32.mrf.mxu3 }
 0x7f8   : > { %v5867_v31 = vsel %vm5856_vm2, %v5834_v2, %v6700_v13  ;;  %v5868_v0 = vsel %vm5856_vm2, %v5835_v27, %v6701_v41  ;;  %2156 = vadd.xlane.f32.xlu1 %v14082_v49  ;;  %v14094_v2 = vld [vmem:[#allocation45_spill] sm:$0xff] }
 0x7f9   : > { %v5894_v20 = vpack.c.bf16 %v5868_v0, %v5867_v31 }
 0x7fc   : > { %v2151_v36 = vpop.xlane.xlu0 %2150 }
 0x7fd   : > { %v6694_v26 = vpop.permute.xlu1 %6693 }
 0x7fe   : > { %v6696_v12 = vunpack.i.h.bf16 %v6694_v26  ;;  %v6695_v25 = vunpack.i.l.bf16 %v6694_v26 }
 0x800   : > { %3141 = vadd.xlane.f32.xlu1 %v14083_v9  ;;  %v5865_v38 = vsel %vm5856_vm2, %v12657_v35, %v6695_v25  ;;  %v5866_v7 = vsel %vm5856_vm2, %v12654_v43, %v6696_v12  ;;  %v14085_v35 = vld [vmem:[#allocation102_spill] sm:$0xff]  ;;  %v5221_v12 = vpop.f32.mrf.mxu2  ;;  %v5310_v25 = vpop.f32.mrf.mxu3 }
 0x801   : > { %v5893_v61 = vpack.c.bf16 %v5866_v7, %v5865_v38 }
 0x803   : > { %6001 = vmatmul.bf16.gmra.mxu0 %v5893_v61  ;;  %6723 = vrot.lane.b32.xlu0 %v6722_v44, %s7880_s26  ;;  %v14089_v44 = vld [vmem:[#allocation67_spill] sm:$0xff] }
 0x804   : > { %v3136_v40 = vpop.xlane.xlu0 %3135 }
 0x808   : > { %4137 = vadd.xlane.f32.xlu1 %v14084_v60 }
 0x80c   : > { %v4129_v62 = vpop.xlane.xlu0 %4128 }
 0x80d   : > { %7497 = vrcp.f32 %v4129_v62  ;;  %v14097_v62 = vld [vmem:[#allocation98_spill] sm:$0xff] }
 0x80e   : > { %7499 = vrcp.f32 %v3136_v40  ;;  %v14096_v40 = vld [vmem:[#allocation60_spill] sm:$0xff] }
 0x810   : > { %5101 = vadd.xlane.f32.xlu1 %v12635_v45  ;;  %v14088_v45 = vpack.i.bf16 %v12648_v32, %v12380_v52  ;;  %v13011_v52 = vld [vmem:[%s13432_s9] ss:$0 sm:$0xff] }
 0x813   : > { %v7498_v24 = vpop.eup %7497  ;;  %6006 = vmatmul.bf16.gmra.mxu0 %v5894_v20 }
 0x814   : > { %v12986_v43 = vmul.f32 %v7498_v24, %v14085_v35  ;;  %v7500_v4 = vpop.eup %7499  ;;  %v5093_v41 = vpop.xlane.xlu0 %5092  ;;  %v5309_v35 = vadd.f32 %v5308_v57, %v5219_v34  ;;  %v14098_v34 = vld [vmem:[#allocation20_spill] sm:$0xff] }
 0x815   : > { %3138 = vadd.xlane.f32.xlu2 %v14086_v10  ;;  %v13001_v3 = vmul.f32 %v7500_v4, %v3351_v56  ;;  %v5311_v10 = vadd.f32 %v5310_v25, %v5221_v12  ;;  %v14101_v25 = vld [vmem:[#allocation58_spill] sm:$0xff] }
 0x827   : > { %v6709_v7 = vpop.permute.xlu0 %6708 }
 0x828   : > { %v3133_v51 = vpop.xlane.xlu1 %3132 }
 0x829   : > { %7501 = vrcp.f32 %v3133_v51  ;;  %6728 = vrot.lane.b32.xlu1 %v14087_v22, %s7879_s21 }
 0x82d   : > { %6718 = vrot.lane.b32.xlu2 %v14088_v45, %s7878_s25  ;;  %2165 = vadd.xlane.f32.xlu0 %v14089_v44 }
 0x82f   : > { %v7502_v58 = vpop.eup %7501 }
 0x830   : > { %v13004_v55 = vmul.f32 %v7502_v58, %v14092_v53 }
 0x832   : > { %v6747_v32 = vpack.i.bf16 %v13001_v3, %v13004_v55 }
 0x834   : > { %v5982_v23 = vpop.f32.mrf.mxu0 }
 0x835   : > { %v5983_v48 = vadd.f32 %v13011_v52, %v5982_v23  ;;  %4140 = vadd.xlane.f32.xlu0 %v14093_v6 }
 0x837   : > { %v2154_v14 = vpop.xlane.xlu2 %2153  ;;  %6062 = vst [vmem:[%s13017_s29] sm:$0xff] %v5983_v48 }
 0x83c   : > { %v5984_v19 = vpop.f32.mrf.mxu0 }
 0x83d   : > { %v5985_v29 = vadd.f32 %v13011_v52, %v5984_v19 }
 0x83f   : > { %v4132_v5 = vpop.xlane.xlu2 %4131  ;;  %6063 = vst [vmem:[%s13017_s29 + $0x8] sm:$0xff] %v5985_v29 }
 0x840   : > { %7503 = vrcp.f32 %v4132_v5  ;;  %v6704_v31 = vpop.permute.xlu1 %6703 }
 0x841   : > { %7505 = vrcp.f32 %v2151_v36  ;;  %v6706_v9 = vunpack.i.h.bf16 %v6704_v31  ;;  %v6705_v38 = vunpack.i.l.bf16 %v6704_v31  ;;  %v14095_v36 = vpack.i.bf16 %v12844_v47, %v12738_v42 }
 0x842   : > { %7507 = vrcp.f32 %v2154_v14  ;;  %v6711_v42 = vunpack.i.h.bf16 %v6709_v7  ;;  %v6710_v47 = vunpack.i.l.bf16 %v6709_v7  ;;  %v14102_v7 = vld [vmem:[#allocation148_spill] sm:$0xff] }
 0x843   : > { %7509 = vrcp.f32 %v5093_v41 }
 0x846   : > { %v7504_v13 = vpop.eup %7503 }
 0x847   : > { %v13023_v27 = vmul.f32 %v7504_v13, %v14094_v2  ;;  %v5096_v0 = vpop.xlane.xlu2 %5095  ;;  %v7506_v49 = vpop.eup %7505  ;;  %v14099_v13 = vld [vmem:[#allocation56_spill] sm:$0xff]  ;;  %v5103_v2 = vadd.f32 %v12735_v63, %v12731_v59 }
 0x848   : > { %7511 = vrcp.f32 %v5096_v0  ;;  %v7508_v20 = vpop.eup %7507  ;;  %v2511_v60 = vmul.f32 %v7506_v49, %v14096_v40 }
 0x849   : > { %v6752_v26 = vpack.i.bf16 %v13023_v27, %v12986_v43  ;;  %6733 = vrot.lane.b32.xlu0 %v14095_v36, %s7878_s25  ;;  %v7510_v61 = vpop.eup %7509  ;;  %v2512_v24 = vmul.f32 %v7508_v20, %v14097_v62  ;;  %v14100_v20 = vld [vmem:[#allocation101_spill] sm:$0xff]  ;;  %v14104_v62 = vpack.i.bf16 %v12853_v50, %v12892_v37  ;;  %v14118_v43 = vld [vmem:[#allocation6_spill] sm:$0xff] }
 0x84a   : > { %v5803_v4 = vsel %vm1550_vm0, %v2511_v60, %v6705_v38  ;;  %v13036_v8 = vmul.f32 %v7510_v61, %v5309_v35  ;;  %v14103_v60 = vld [vmem:[#allocation31_spill] sm:$0xff] }
 0x84b   : > { %v5804_v45 = vsel %vm1550_vm0, %v2512_v24, %v6706_v9  ;;  %v5836_v23 = vsel %vm5823_vm1, %v5803_v4, %v6710_v47  ;;  %v14106_v47 = vld [vmem:[#allocation120_spill] sm:$0xff] }
 0x84c   : > { %v5987_v51 = vpop.f32.mrf.mxu0  ;;  %v5837_v48 = vsel %vm5823_vm1, %v5804_v45, %v6711_v42  ;;  %v5313_v45 = vpop.f32.mrf.mxu3 }
 0x84d   : > { %v5988_v44 = vadd.f32 %v13011_v52, %v5987_v51  ;;  %v14105_v51 = vld [vmem:[#allocation104_spill] sm:$0xff] }
 0x84e   : > { %v7512_v22 = vpop.eup %7511 }
 0x84f   : > { %v13038_v46 = vmul.f32 %v7512_v22, %v5311_v10  ;;  %v6714_v56 = vpop.permute.xlu2 %6713  ;;  %6064 = vst [vmem:[%s13017_s29 + $0x10] sm:$0xff] %v5988_v44  ;;  %v5224_v22 = vpop.f32.mrf.mxu2 }
 0x850   : > { %v6716_v58 = vunpack.i.h.bf16 %v6714_v56  ;;  %v6715_v53 = vunpack.i.l.bf16 %v6714_v56  ;;  %v14107_v56 = vld [vmem:[#allocation124_spill] sm:$0xff] }
 0x851   : > { %v6757_v6 = vpack.i.bf16 %v13038_v46, %v13036_v8 }
 0x852   : > { %v5869_v14 = vsel %vm5856_vm2, %v5836_v23, %v6715_v53  ;;  %v5870_v19 = vsel %vm5856_vm2, %v5837_v48, %v6716_v58  ;;  %v13047_v29 = vpop.xlane.xlu0 %2159  ;;  %v14108_v58 = vpack.i.bf16 %v12876_v21, %v12874_v39 }
 0x853   : > { %v5895_v5 = vpack.c.bf16 %v5870_v19, %v5869_v14  ;;  %3144 = vadd.xlane.f32.xlu1 %v14098_v34  ;;  %v5314_v34 = vadd.f32 %v5313_v45, %v5224_v22 }
 0x854   : > { %v5989_v57 = vpop.f32.mrf.mxu0  ;;  %v5315_v48 = vpop.f32.mrf.mxu3 }
 0x855   : > { %6011 = vmatmul.bf16.gmra.mxu0 %v5895_v5  ;;  %v5990_v41 = vadd.f32 %v13011_v52, %v5989_v57 }
 0x856   : > { %2162 = vadd.xlane.f32.xlu2 %v14099_v13 }
 0x857   : > { %6065 = vst [vmem:[%s13017_s29 + $0x18] sm:$0xff] %v5990_v41  ;;  %v5226_v23 = vpop.f32.mrf.mxu2 }
 0x858   : > { %v5316_v57 = vadd.f32 %v5315_v48, %v5226_v23  ;;  %v14114_v48 = vld [vmem:[#allocation76_spill] sm:$0xff] }
 0x85a   : > { %v4135_v31 = vpop.xlane.xlu0 %4134 }
 0x85b   : > { %7513 = vrcp.f32 %v4135_v31  ;;  %5104 = vadd.xlane.f32.xlu1 %v5103_v2  ;;  %v14109_v31 = vld [vmem:[#allocation122_spill] sm:$0xff] }
 0x85c   : > { %v5992_v0 = vpop.f32.mrf.mxu0 }
 0x85d   : > { %v5993_v49 = vadd.f32 %v13011_v52, %v5992_v0  ;;  %v14110_v0 = vld [vmem:[#allocation123_spill] sm:$0xff] }
 0x85e   : > { %3147 = vadd.xlane.f32.xlu2 %v14100_v20 }
 0x85f   : > { %6066 = vst [vmem:[%s13017_s29 + $0x20] sm:$0xff] %v5993_v49  ;;  %v3356_v49 = vadd.f32 %v14110_v0, %v14109_v31  ;;  %v14117_v31 = vld [vmem:[#allocation9_spill] sm:$0xff] }
 0x861   : > { %v7514_v12 = vpop.eup %7513 }
 0x862   : > { %v13059_v9 = vmul.f32 %v7514_v12, %v14101_v25 }
 0x864   : > { %v5994_v38 = vpop.f32.mrf.mxu0 }
 0x865   : > { %v5995_v36 = vadd.f32 %v13011_v52, %v5994_v38  ;;  %v14111_v38 = vld [vmem:[#allocation13_spill] sm:$0xff] }
 0x866   : > { %4143 = vadd.xlane.f32.xlu2 %v14102_v7 }
 0x867   : > { %6067 = vst [vmem:[%s13017_s29 + $0x28] sm:$0xff] %v5995_v36 }
 0x86b   : > { %v2157_v59 = vpop.xlane.xlu1 %2156 }
 0x86c   : > { %v5997_v63 = vpop.f32.mrf.mxu0 }
 0x86d   : > { %v5998_v61 = vadd.f32 %v13011_v52, %v5997_v63 }
 0x86e   : > { %5107 = vadd.xlane.f32.xlu2 %v12749_v15  ;;  %v5099_v15 = vpop.xlane.xlu0 %5098 }
 0x86f   : > { %6068 = vst [vmem:[%s13017_s29 + $0x30] sm:$0xff] %v5998_v61 }
 0x873   : > { %v3142_v40 = vpop.xlane.xlu1 %3141  ;;  %2168 = vadd.xlane.f32.xlu0 %v14103_v60 }
 0x874   : > { %6738 = vrot.lane.b32.xlu1 %v14104_v62, %s7880_s26  ;;  %v5999_v24 = vpop.f32.mrf.mxu0 }
 0x875   : > { %v6000_v35 = vadd.f32 %v13011_v52, %v5999_v24 }
 0x877   : > { %6069 = vst [vmem:[%s13017_s29 + $0x38] sm:$0xff] %v6000_v35  ;;  %v14113_v35 = vld [vmem:[#allocation62_spill] sm:$0xff] }
 0x87b   : > { %v4138_v10 = vpop.xlane.xlu1 %4137  ;;  %3153 = vadd.xlane.f32.xlu0 %v14105_v51  ;;  %v6724_v51 = vpop.permute.xlu0 %6723 }
 0x87c   : > { %7515 = vrcp.f32 %v4138_v10 }
 0x87d   : > { %7517 = vrcp.f32 %v5099_v15 }
 0x880   : > { %v6002_v4 = vpop.f32.mrf.mxu0 }
 0x881   : > { %v6003_v44 = vadd.f32 %v13011_v52, %v6002_v4 }
 0x882   : > { %v7516_v42 = vpop.eup %7515 }
 0x883   : > { %v13077_v50 = vmul.f32 %v7516_v42, %v14106_v47  ;;  %6070 = vst [vmem:[%s13017_s29 + $0x40] sm:$0xff] %v6003_v44  ;;  %v5102_v37 = vpop.xlane.xlu1 %5101  ;;  %4146 = vadd.xlane.f32.xlu0 %v14107_v56  ;;  %v7518_v19 = vpop.eup %7517  ;;  %v6726_v44 = vunpack.i.h.bf16 %v6724_v51  ;;  %v6725_v42 = vunpack.i.l.bf16 %v6724_v51  ;;  %v14123_v51 = vld [vmem:[#allocation108_spill] sm:$0xff] }
 0x884   : > { %7519 = vrcp.f32 %v5102_v37  ;;  %v13088_v2 = vmul.f32 %v7518_v19, %v5314_v34 }
 0x885   : > { %v6767_v53 = vpack.i.bf16 %v13077_v50, %v13059_v9  ;;  %7521 = vrcp.f32 %v3142_v40 }
 0x886   : > { %6743 = vrot.lane.b32.xlu2 %v14108_v58, %s7879_s21 }
 0x888   : > { %v3139_v14 = vpop.xlane.xlu2 %3138  ;;  %v6004_v5 = vpop.f32.mrf.mxu0 }
 0x889   : > { %7523 = vrcp.f32 %v3139_v14  ;;  %v6005_v41 = vadd.f32 %v13011_v52, %v6004_v5 }
 0x88a   : > { %v7520_v13 = vpop.eup %7519  ;;  %7525 = vrcp.f32 %v13047_v29  ;;  %v14112_v29 = vld [vmem:[#allocation25_spill] sm:$0xff] }
 0x88b   : > { %v13090_v39 = vmul.f32 %v7520_v13, %v5316_v57  ;;  %6071 = vst [vmem:[%s13017_s29 + $0x48] sm:$0xff] %v6005_v41  ;;  %5110 = vadd.xlane.f32.xlu0 %v12763_v30  ;;  %v7522_v21 = vpop.eup %7521  ;;  %7527 = vrcp.f32 %v2157_v59  ;;  %v14115_v57 = vld [vmem:[#allocation74_spill] sm:$0xff]  ;;  %v14116_v13 = vld [vmem:[#allocation28_spill] sm:$0xff] }
 0x88c   : > { %v13099_v25 = vmul.f32 %v7522_v21, %v3356_v49 }
 0x88d   : > { %v6772_v20 = vpack.i.bf16 %v13090_v39, %v13088_v2  ;;  %v14133_v39 = vld [vmem:[#allocation69_spill] sm:$0xff] }
 0x88f   : > { %v7524_v12 = vpop.eup %7523 }
 0x890   : > { %v13102_v36 = vmul.f32 %v7524_v12, %v14111_v38  ;;  %v6007_v7 = vpop.f32.mrf.mxu0  ;;  %v6719_v61 = vpop.permute.xlu2 %6718 }
 0x891   : > { %v6008_v63 = vadd.f32 %v13011_v52, %v6007_v7  ;;  %v7526_v40 = vpop.eup %7525  ;;  %v6721_v62 = vunpack.i.h.bf16 %v6719_v61  ;;  %v6720_v24 = vunpack.i.l.bf16 %v6719_v61  ;;  %v14120_v7 = vld [vmem:[#allocation125_spill] sm:$0xff] }
 0x892   : > { %v6762_v30 = vpack.i.bf16 %v13099_v25, %v13102_v36  ;;  %v7528_v60 = vpop.eup %7527  ;;  %v2514_v59 = vmul.f32 %v7526_v40, %v14112_v29 }
 0x893   : > { %6072 = vst [vmem:[%s13017_s29 + $0x50] sm:$0xff] %v6008_v63  ;;  %v2513_v10 = vmul.f32 %v7528_v60, %v14113_v35  ;;  %v14122_v63 = vld [vmem:[#allocation127_spill] sm:$0xff]  ;;  %v5318_v60 = vpop.f32.mrf.mxu3 }
 0x894   : > { %v5806_v15 = vsel %vm1550_vm0, %v2514_v59, %v6721_v62 }
 0x895   : > { %v5805_v4 = vsel %vm1550_vm0, %v2513_v10, %v6720_v24  ;;  %v5839_v23 = vsel %vm5823_vm1, %v5806_v15, %v6726_v44 }
 0x896   : > { %v5838_v58 = vsel %vm5823_vm1, %v5805_v4, %v6725_v42 }
 0x898   : > { %v6009_v22 = vpop.f32.mrf.mxu0 }
 0x899   : > { %v6010_v45 = vadd.f32 %v13011_v52, %v6009_v22 }
 0x89b   : > { %6073 = vst [vmem:[%s13017_s29 + $0x58] sm:$0xff] %v6010_v45  ;;  %v6729_v47 = vpop.permute.xlu1 %6728  ;;  %v5320_v42 = vpop.f32.mrf.mxu3 }
 0x89c   : > { %v6731_v37 = vunpack.i.h.bf16 %v6729_v47  ;;  %v6730_v56 = vunpack.i.l.bf16 %v6729_v47 }
 0x89e   : > { %2171 = vadd.xlane.f32.xlu1 %v14114_v48  ;;  %v5871_v14 = vsel %vm5856_vm2, %v5838_v58, %v6730_v56  ;;  %v5872_v19 = vsel %vm5856_vm2, %v5839_v23, %v6731_v37  ;;  %v14124_v58 = vld [vmem:[#allocation41_spill] sm:$0xff] }
 0x89f   : > { %6753 = vrot.lane.b32.xlu0 %v6752_v26, %s7880_s26  ;;  %v5896_v5 = vpack.c.bf16 %v5872_v19, %v5871_v14  ;;  %v14119_v26 = vld [vmem:[#allocation16_spill] sm:$0xff] }
 0x8a0   : > { %v2166_v34 = vpop.xlane.xlu0 %2165 }
 0x8a1   : > { %6016 = vmatmul.bf16.gmra.mxu0 %v5896_v5 }
 0x8a6   : > { %4149 = vadd.xlane.f32.xlu1 %v14115_v57  ;;  %v14125_v57 = vld [vmem:[#allocation33_spill] sm:$0xff] }
 0x8a8   : > { %v4141_v41 = vpop.xlane.xlu0 %4140 }
 0x8a9   : > { %7529 = vrcp.f32 %v4141_v41 }
 0x8ae   : > { %5113 = vadd.xlane.f32.xlu1 %v12683_v16 }
 0x8af   : > { %3150 = vadd.xlane.f32.xlu2 %v14116_v13  ;;  %v7530_v21 = vpop.eup %7529 }
 0x8b0   : > { %v13127_v0 = vmul.f32 %v7530_v21, %v14117_v31 }
 0x8bb   : > { %v6734_v35 = vpop.permute.xlu0 %6733 }
 0x8bc   : > { %v6736_v56 = vunpack.i.h.bf16 %v6734_v35  ;;  %v6735_v13 = vunpack.i.l.bf16 %v6734_v35 }
 0x8c6   : > { %v3145_v49 = vpop.xlane.xlu1 %3144 }
 0x8c7   : > { %6748 = vrot.lane.b32.xlu2 %v6747_v32, %s7878_s25  ;;  %7531 = vrcp.f32 %v3145_v49  ;;  %6758 = vrot.lane.b32.xlu1 %v6757_v6, %s7879_s21  ;;  %v14121_v32 = vld [vmem:[#allocation126_spill] sm:$0xff]  ;;  %v5229_v6 = vpop.f32.mrf.mxu2 }
 0x8c8   : > { %v3361_v8 = vadd.f32 %v14122_v63, %v14121_v32  ;;  %v5319_v48 = vadd.f32 %v5318_v60, %v5229_v6 }
 0x8c9   : > { %v2163_v16 = vpop.xlane.xlu2 %2162  ;;  %2177 = vadd.xlane.f32.xlu0 %v14118_v43 }
 0x8cd   : > { %v7532_v27 = vpop.eup %7531 }
 0x8ce   : > { %v13139_v12 = vmul.f32 %v7532_v27, %v14119_v26  ;;  %v5105_v59 = vpop.xlane.xlu1 %5104 }
 0x8cf   : > { %v5231_v44 = vpop.f32.mrf.mxu2 }
 0x8d0   : > { %v5321_v14 = vadd.f32 %v5320_v42, %v5231_v44 }
 0x8d1   : > { %v3148_v38 = vpop.xlane.xlu2 %3147  ;;  %4152 = vadd.xlane.f32.xlu0 %v14120_v7 }
 0x8d2   : > { %7533 = vrcp.f32 %v3148_v38  ;;  %v6012_v3 = vpop.f32.mrf.mxu0 }
 0x8d3   : > { %v6013_v55 = vadd.f32 %v13011_v52, %v6012_v3 }
 0x8d5   : > { %6074 = vst [vmem:[%s13017_s29 + $0x60] sm:$0xff] %v6013_v55 }
 0x8d8   : > { %v7534_v46 = vpop.eup %7533 }
 0x8d9   : > { %v13146_v61 = vmul.f32 %v7534_v46, %v3361_v8  ;;  %v4144_v40 = vpop.xlane.xlu2 %4143  ;;  %v14126_v8 = vld [vmem:[#allocation81_spill] sm:$0xff] }
 0x8da   : > { %7535 = vrcp.f32 %v4144_v40  ;;  %v6014_v62 = vpop.f32.mrf.mxu0  ;;  %v14127_v46 = vld [vmem:[#allocation105_spill] sm:$0xff]  ;;  %v14128_v40 = vld [vmem:[#allocation35_spill] sm:$0xff] }
 0x8db   : > { %v6015_v24 = vadd.f32 %v13011_v52, %v6014_v62  ;;  %v6777_v29 = vpack.i.bf16 %v13146_v61, %v13139_v12  ;;  %7537 = vrcp.f32 %v2163_v16  ;;  %v14144_v12 = vld [vmem:[#allocation133_spill] sm:$0xff]  ;;  %v14145_v61 = vld [vmem:[#allocation134_spill] sm:$0xff] }
 0x8dc   : > { %7539 = vrcp.f32 %v2166_v34 }
 0x8dd   : > { %6075 = vst [vmem:[%s13017_s29 + $0x68] sm:$0xff] %v6015_v24  ;;  %7541 = vrcp.f32 %v5105_v59  ;;  %v14129_v24 = vld [vmem:[#allocation154_spill] sm:$0xff] }
 0x8de   : > { %v14130_v59 = vld [vmem:[#allocation86_spill] sm:$0xff] }
 0x8e0   : > { %v7536_v10 = vpop.eup %7535 }
 0x8e1   : > { %v13153_v22 = vmul.f32 %v7536_v10, %v14123_v51  ;;  %v5108_v45 = vpop.xlane.xlu2 %5107  ;;  %v7538_v15 = vpop.eup %7537  ;;  %v14131_v10 = vld [vmem:[#allocation110_spill] sm:$0xff] }
 0x8e2   : > { %7543 = vrcp.f32 %v5108_v45  ;;  %v7540_v47 = vpop.eup %7539  ;;  %v2515_v23 = vmul.f32 %v7538_v15, %v14124_v58  ;;  %v5234_v51 = vpop.f32.mrf.mxu2 }
 0x8e3   : > { %v6782_v4 = vpack.i.bf16 %v13153_v22, %v13127_v0  ;;  %v7542_v37 = vpop.eup %7541  ;;  %v2516_v41 = vmul.f32 %v7540_v47, %v14125_v57  ;;  %v5323_v45 = vpop.f32.mrf.mxu3  ;;  %v14135_v57 = vld [vmem:[#allocation132_spill] sm:$0xff] }
 0x8e4   : > { %v13165_v49 = vmul.f32 %v7542_v37, %v5319_v48  ;;  %v5807_v25 = vsel %vm1550_vm0, %v2515_v23, %v6735_v13 }
 0x8e5   : > { %6763 = vrot.lane.b32.xlu0 %v6762_v30, %s7878_s25  ;;  %v5808_v27 = vsel %vm1550_vm0, %v2516_v41, %v6736_v56 }
 0x8e6   : > { %v6739_v19 = vpop.permute.xlu1 %6738  ;;  %v13162_v5 = vpop.xlane.xlu0 %2168 }
 0x8e7   : > { %v6741_v21 = vunpack.i.h.bf16 %v6739_v19  ;;  %v6740_v31 = vunpack.i.l.bf16 %v6739_v19 }
 0x8e8   : > { %v7544_v34 = vpop.eup %7543 }
 0x8e9   : > { %v13167_v16 = vmul.f32 %v7544_v34, %v5321_v14  ;;  %v6744_v43 = vpop.permute.xlu2 %6743  ;;  %v5841_v26 = vsel %vm5823_vm1, %v5808_v27, %v6741_v21  ;;  %v5840_v38 = vsel %vm5823_vm1, %v5807_v25, %v6740_v31  ;;  %v14134_v34 = vld [vmem:[#allocation131_spill] sm:$0xff]  ;;  %v14136_v27 = vld [vmem:[#allocation129_spill] sm:$0xff] }
 0x8ea   : > { %v6746_v36 = vunpack.i.h.bf16 %v6744_v43  ;;  %v6745_v30 = vunpack.i.l.bf16 %v6744_v43  ;;  %v5236_v56 = vpop.f32.mrf.mxu2  ;;  %v3366_v41 = vadd.f32 %v14135_v57, %v14134_v34 }
 0x8eb   : > { %v6787_v7 = vpack.i.bf16 %v13167_v16, %v13165_v49  ;;  %v5325_v58 = vpop.f32.mrf.mxu3 }
 0x8ec   : > { %v5873_v3 = vsel %vm5856_vm2, %v5840_v38, %v6745_v30  ;;  %v5874_v55 = vsel %vm5856_vm2, %v5841_v26, %v6746_v36  ;;  %v5326_v48 = vadd.f32 %v5325_v58, %v5236_v56  ;;  %v14143_v58 = vld [vmem:[#allocation144_spill] sm:$0xff] }
 0x8ed   : > { %v5897_v32 = vpack.c.bf16 %v5874_v55, %v5873_v3 }
 0x8ee   : > { %v3154_v63 = vpop.xlane.xlu0 %3153 }
 0x8ef   : > { %6021 = vmatmul.bf16.gmra.mxu0 %v5897_v32  ;;  %v14137_v32 = vld [vmem:[#allocation65_spill] sm:$0xff] }
 0x8f0   : > { %2174 = vadd.xlane.f32.xlu2 %v14126_v8  ;;  %v14138_v8 = vld [vmem:[#allocation29_spill] sm:$0xff] }
 0x8f1   : > { %3156 = vadd.xlane.f32.xlu1 %v14127_v46 }
 0x8f3   : > { %v5328_v34 = vpop.f32.mrf.mxu3 }
 0x8f6   : > { %v4147_v6 = vpop.xlane.xlu0 %4146 }
 0x8f7   : > { %7545 = vrcp.f32 %v4147_v6 }
 0x8f8   : > { %3159 = vadd.xlane.f32.xlu2 %v14128_v40 }
 0x8f9   : > { %5119 = vadd.xlane.f32.xlu1 %v12819_v18 }
 0x8fd   : > { %v7546_v60 = vpop.eup %7545 }
 0x8fe   : > { %v13182_v62 = vmul.f32 %v7546_v60, %v12382_v11  ;;  %v5111_v11 = vpop.xlane.xlu0 %5110 }
 0x900   : > { %4155 = vadd.xlane.f32.xlu2 %v14129_v24 }
 0x908   : > { %5116 = vadd.xlane.f32.xlu2 %v12780_v1  ;;  %v14132_v1 = vld [vmem:[#allocation150_spill] sm:$0xff] }
 0x90f   : > { %2180 = vadd.xlane.f32.xlu0 %v14130_v59 }
 0x911   : > { %v2172_v35 = vpop.xlane.xlu1 %2171  ;;  %v6754_v6 = vpop.permute.xlu0 %6753 }
 0x912   : > { %6773 = vrot.lane.b32.xlu1 %v6772_v20, %s7879_s21  ;;  %v6756_v24 = vunpack.i.h.bf16 %v6754_v6 }
 0x917   : > { %3165 = vadd.xlane.f32.xlu0 %v14131_v10 }
 0x919   : > { %v4150_v18 = vpop.xlane.xlu1 %4149 }
 0x91a   : > { %7547 = vrcp.f32 %v4150_v18 }
 0x91b   : > { %7549 = vrcp.f32 %v5111_v11 }
 0x91c   : > { %7551 = vrcp.f32 %v3154_v63 }
 0x91e   : > { %v6017_v15 = vpop.f32.mrf.mxu0 }
 0x91f   : > { %v6018_v44 = vadd.f32 %v13011_v52, %v6017_v15  ;;  %4158 = vadd.xlane.f32.xlu0 %v14132_v1  ;;  %v14140_v1 = vld [vmem:[#allocation88_spill] sm:$0xff] }
 0x920   : > { %6768 = vrot.lane.b32.xlu2 %v6767_v53, %s7880_s26  ;;  %v7548_v2 = vpop.eup %7547  ;;  %v5324_v53 = vadd.f32 %v5323_v45, %v5234_v51  ;;  %v14139_v45 = vld [vmem:[#allocation109_spill] sm:$0xff] }
 0x921   : > { %v13199_v20 = vmul.f32 %v7548_v2, %v14133_v39  ;;  %6076 = vst [vmem:[%s13017_s29 + $0x70] sm:$0xff] %v6018_v44  ;;  %v5114_v42 = vpop.xlane.xlu1 %5113  ;;  %v7550_v23 = vpop.eup %7549  ;;  %v14141_v2 = vld [vmem:[#allocation155_spill] sm:$0xff] }
 0x922   : > { %v3151_v47 = vpop.xlane.xlu2 %3150  ;;  %7553 = vrcp.f32 %v5114_v42  ;;  %v7552_v50 = vpop.eup %7551  ;;  %v13208_v21 = vmul.f32 %v7550_v23, %v5324_v53  ;;  %v14146_v53 = vld [vmem:[#allocation78_spill] sm:$0xff] }
 0x923   : > { %7555 = vrcp.f32 %v3151_v47  ;;  %v6797_v37 = vpack.i.bf16 %v13199_v20, %v13182_v62  ;;  %v13213_v43 = vmul.f32 %v7552_v50, %v3366_v41  ;;  %v5239_v50 = vpop.f32.mrf.mxu2  ;;  %v14155_v20 = vld [vmem:[#allocation94_spill] sm:$0xff] }
 0x924   : > { %7557 = vrcp.f32 %v13162_v5  ;;  %v6755_v5 = vunpack.i.l.bf16 %v6754_v6 }
 0x925   : > { %7559 = vrcp.f32 %v2172_v35 }
 0x926   : > { %v6019_v9 = vpop.f32.mrf.mxu0 }
 0x927   : > { %v6020_v14 = vadd.f32 %v13011_v52, %v6019_v9  ;;  %5122 = vadd.xlane.f32.xlu0 %v12807_v33 }
 0x928   : > { %v7554_v19 = vpop.eup %7553 }
 0x929   : > { %v7556_v13 = vpop.eup %7555  ;;  %v13210_v31 = vmul.f32 %v7554_v19, %v5326_v48  ;;  %6077 = vst [vmem:[%s13017_s29 + $0x78] sm:$0xff] %v6020_v14 }
 0x92a   : > { %v13216_v25 = vmul.f32 %v7556_v13, %v14136_v27  ;;  %v6749_v30 = vpop.permute.xlu2 %6748  ;;  %v7558_v26 = vpop.eup %7557  ;;  %v14147_v27 = vld [vmem:[#allocation34_spill] sm:$0xff] }
 0x92b   : > { %v6802_v36 = vpack.i.bf16 %v13210_v31, %v13208_v21  ;;  %v7560_v38 = vpop.eup %7559  ;;  %v6751_v3 = vunpack.i.h.bf16 %v6749_v30  ;;  %v6750_v55 = vunpack.i.l.bf16 %v6749_v30  ;;  %v2517_v63 = vmul.f32 %v7558_v26, %v14137_v32  ;;  %v14148_v26 = vld [vmem:[#allocation8_spill] sm:$0xff] }
 0x92c   : > { %v6792_v33 = vpack.i.bf16 %v13213_v43, %v13216_v25  ;;  %v2518_v46 = vmul.f32 %v7560_v38, %v14138_v8  ;;  %v5330_v8 = vpop.f32.mrf.mxu3  ;;  %v14156_v43 = vld [vmem:[#allocation135_spill] sm:$0xff]  ;;  %v14157_v25 = vld [vmem:[#allocation136_spill] sm:$0xff] }
 0x92d   : > { %v5809_v40 = vsel %vm1550_vm0, %v2517_v63, %v6750_v55  ;;  %v5241_v55 = vpop.f32.mrf.mxu2 }
 0x92e   : > { %v5810_v60 = vsel %vm1550_vm0, %v2518_v46, %v6751_v3  ;;  %v5842_v35 = vsel %vm5823_vm1, %v5809_v40, %v6755_v5  ;;  %v14149_v40 = vld [vmem:[#allocation21_spill] sm:$0xff] }
 0x92f   : > { %v5843_v51 = vsel %vm5823_vm1, %v5810_v60, %v6756_v24  ;;  %v5329_v60 = vadd.f32 %v5328_v34, %v5239_v50  ;;  %v5331_v24 = vadd.f32 %v5330_v8, %v5241_v55  ;;  %v14160_v55 = vld [vmem:[#allocation59_spill] sm:$0xff] }
 0x935   : > { %v5244_v34 = vpop.f32.mrf.mxu2 }
 0x939   : > { %v6759_v59 = vpop.permute.xlu1 %6758 }
 0x93a   : > { %v6761_v10 = vunpack.i.h.bf16 %v6759_v59  ;;  %v6760_v18 = vunpack.i.l.bf16 %v6759_v59  ;;  %v14150_v59 = vld [vmem:[#allocation52_spill] sm:$0xff] }
 0x93b   : > { %6783 = vrot.lane.b32.xlu0 %v6782_v4, %s7880_s26  ;;  %v14142_v4 = vld [vmem:[#allocation91_spill] sm:$0xff] }
 0x93c   : > { %3162 = vadd.xlane.f32.xlu1 %v14139_v45  ;;  %v5875_v11 = vsel %vm5856_vm2, %v5842_v35, %v6760_v18  ;;  %v5876_v15 = vsel %vm5856_vm2, %v5843_v51, %v6761_v10  ;;  %v2178_v22 = vpop.xlane.xlu0 %2177  ;;  %v14151_v35 = vld [vmem:[#allocation23_spill] sm:$0xff] }
 0x93d   : > { %v5898_v44 = vpack.c.bf16 %v5876_v15, %v5875_v11 }
 0x93f   : > { %6026 = vmatmul.bf16.gmra.mxu0 %v5898_v44 }
 0x944   : > { %v4153_v23 = vpop.xlane.xlu0 %4152 }
 0x949   : > { %2183 = vadd.xlane.f32.xlu2 %v14140_v1 }
 0x951   : > { %4161 = vadd.xlane.f32.xlu2 %v14141_v2 }
 0x955   : > { %6778 = vrot.lane.b32.xlu1 %v6777_v29, %s7878_s25 }
 0x957   : > { %v6764_v46 = vpop.permute.xlu0 %6763 }
 0x958   : > { %v6766_v5 = vunpack.i.h.bf16 %v6764_v46  ;;  %v6765_v45 = vunpack.i.l.bf16 %v6764_v46 }
 0x959   : > { %5125 = vadd.xlane.f32.xlu2 %v12700_v28  ;;  %v3371_v28 = vadd.f32 %v14145_v61, %v14144_v12 }
 0x963   : > { %v2175_v0 = vpop.xlane.xlu2 %2174 }
 0x964   : > { %v3157_v39 = vpop.xlane.xlu1 %3156 }
 0x965   : > { %2189 = vadd.xlane.f32.xlu0 %v14142_v4  ;;  %7561 = vrcp.f32 %v3157_v39 }
 0x96b   : > { %v3160_v42 = vpop.xlane.xlu2 %3159  ;;  %v7562_v9 = vpop.eup %7561 }
 0x96c   : > { %7563 = vrcp.f32 %v3160_v42  ;;  %v6022_v47 = vpop.f32.mrf.mxu0  ;;  %v13254_v48 = vmul.f32 %v7562_v9, %v14146_v53  ;;  %v5120_v49 = vpop.xlane.xlu1 %5119 }
 0x96d   : > { %v6023_v56 = vadd.f32 %v13011_v52, %v6022_v47  ;;  %4164 = vadd.xlane.f32.xlu0 %v14143_v58  ;;  %7565 = vrcp.f32 %v4153_v23  ;;  %v14152_v23 = vld [vmem:[#allocation14_spill] sm:$0xff] }
 0x96f   : > { %6078 = vst [vmem:[%s13017_s29 + $0x80] sm:$0xff] %v6023_v56 }
 0x971   : > { %6788 = vrot.lane.b32.xlu2 %v6787_v7, %s7879_s21 }
 0x972   : > { %v7564_v29 = vpop.eup %7563 }
 0x973   : > { %v13256_v14 = vmul.f32 %v7564_v29, %v3371_v28  ;;  %v4156_v19 = vpop.xlane.xlu2 %4155  ;;  %v7566_v16 = vpop.eup %7565  ;;  %v14153_v28 = vld [vmem:[#allocation139_spill] sm:$0xff]  ;;  %v14154_v29 = vld [vmem:[#allocation36_spill] sm:$0xff] }
 0x974   : > { %7567 = vrcp.f32 %v4156_v19  ;;  %v6024_v57 = vpop.f32.mrf.mxu0  ;;  %v4485_v30 = vmul.f32 %v7566_v16, %v14147_v27 }
 0x975   : > { %v6025_v41 = vadd.f32 %v13011_v52, %v6024_v57  ;;  %v6807_v13 = vpack.i.bf16 %v13256_v14, %v13254_v48  ;;  %5128 = vadd.xlane.f32.xlu0 %v12859_v54  ;;  %7569 = vrcp.f32 %v2175_v0 }
 0x976   : > { %7571 = vrcp.f32 %v2178_v22 }
 0x977   : > { %6079 = vst [vmem:[%s13017_s29 + $0x88] sm:$0xff] %v6025_v41  ;;  %7573 = vrcp.f32 %v5120_v49 }
 0x97a   : > { %v7568_v7 = vpop.eup %7567 }
 0x97b   : > { %v4486_v38 = vmul.f32 %v7568_v7, %v14148_v26  ;;  %v5117_v3 = vpop.xlane.xlu2 %5116  ;;  %v7570_v63 = vpop.eup %7569 }
 0x97c   : > { %7575 = vrcp.f32 %v5117_v3  ;;  %v7572_v6 = vpop.eup %7571  ;;  %v2519_v10 = vmul.f32 %v7570_v63, %v14150_v59 }
 0x97d   : > { %v6812_v32 = vpack.i.bf16 %v4486_v38, %v4485_v30  ;;  %v7574_v54 = vpop.eup %7573  ;;  %v2520_v51 = vmul.f32 %v7572_v6, %v14151_v35  ;;  %v14159_v38 = vld [vmem:[#allocation156_spill] sm:$0xff] }
 0x97e   : > { %v5402_v11 = vmul.f32 %v7574_v54, %v5331_v24  ;;  %v5811_v22 = vsel %vm1550_vm0, %v2519_v10, %v6765_v45  ;;  %v14161_v10 = vld [vmem:[#allocation53_spill] sm:$0xff] }
 0x97f   : > { %2186 = vadd.xlane.f32.xlu1 %v14149_v40  ;;  %v5812_v0 = vsel %vm1550_vm0, %v2520_v51, %v6766_v5  ;;  %v5246_v40 = vpop.f32.mrf.mxu2  ;;  %v14162_v51 = vld [vmem:[#allocation10_spill] sm:$0xff] }
 0x982   : > { %v7576_v18 = vpop.eup %7575  ;;  %v2181_v50 = vpop.xlane.xlu0 %2180 }
 0x983   : > { %v5401_v15 = vmul.f32 %v7576_v18, %v5329_v60  ;;  %v6769_v44 = vpop.permute.xlu2 %6768 }
 0x984   : > { %v6771_v1 = vunpack.i.h.bf16 %v6769_v44  ;;  %v6770_v2 = vunpack.i.l.bf16 %v6769_v44  ;;  %v6774_v4 = vpop.permute.xlu1 %6773 }
 0x985   : > { %v6817_v39 = vpack.i.bf16 %v5402_v11, %v5401_v15  ;;  %v6776_v56 = vunpack.i.h.bf16 %v6774_v4  ;;  %v6775_v58 = vunpack.i.l.bf16 %v6774_v4 }
 0x986   : > { %v5845_v42 = vsel %vm5823_vm1, %v5812_v0, %v6771_v1  ;;  %v5844_v47 = vsel %vm5823_vm1, %v5811_v22, %v6770_v2 }
 0x987   : > { %3171 = vadd.xlane.f32.xlu1 %v14152_v23  ;;  %v5877_v9 = vsel %vm5856_vm2, %v5844_v47, %v6775_v58  ;;  %v5878_v12 = vsel %vm5856_vm2, %v5845_v42, %v6776_v56 }
 0x988   : > { %v5899_v61 = vpack.c.bf16 %v5878_v12, %v5877_v9 }
 0x989   : > { %6798 = vrot.lane.b32.xlu0 %v6797_v37, %s7880_s26 }
 0x98a   : > { %6031 = vmatmul.bf16.gmra.mxu0 %v5899_v61  ;;  %v3166_v62 = vpop.xlane.xlu0 %3165 }
 0x98f   : > { %4167 = vadd.xlane.f32.xlu1 %v14153_v28 }
 0x992   : > { %v4159_v48 = vpop.xlane.xlu0 %4158 }
 0x997   : > { %5131 = vadd.xlane.f32.xlu1 %v12838_v17 }
 0x99a   : > { %3168 = vadd.xlane.f32.xlu2 %v14154_v29  ;;  %v5123_v27 = vpop.xlane.xlu0 %5122  ;;  %v14163_v29 = vld [vmem:[#allocation26_spill] sm:$0xff] }
 0x9ad   : > { %v6784_v35 = vpop.permute.xlu0 %6783 }
 0x9ae   : > { %v6786_v22 = vunpack.i.h.bf16 %v6784_v35  ;;  %v6785_v4 = vunpack.i.l.bf16 %v6784_v35 }
 0x9af   : > { %v3163_v37 = vpop.xlane.xlu1 %3162 }
 0x9b0   : > { %6803 = vrot.lane.b32.xlu1 %v6802_v36, %s7879_s21  ;;  %7577 = vrcp.f32 %v3163_v37  ;;  %v3376_v36 = vadd.f32 %v14157_v25, %v14156_v43  ;;  %v14166_v37 = vld [vmem:[#allocation99_spill] sm:$0xff] }
 0x9b1   : > { %7579 = vrcp.f32 %v3166_v62  ;;  %v14165_v62 = vld [vmem:[#allocation30_spill] sm:$0xff] }
 0x9b2   : > { %6793 = vrot.lane.b32.xlu2 %v6792_v33, %s7878_s25  ;;  %v14158_v33 = vld [vmem:[#allocation83_spill] sm:$0xff]  ;;  %7581 = vrcp.f32 %v4159_v48 }
 0x9b3   : > { %2195 = vadd.xlane.f32.xlu0 %v14155_v20 }
 0x9b6   : > { %v7578_v21 = vpop.eup %7577 }
 0x9b7   : > { %v7580_v31 = vpop.eup %7579  ;;  %v3443_v19 = vmul.f32 %v7578_v21, %v14158_v33 }
 0x9b8   : > { %6808 = vrot.lane.b32.xlu1 %v6807_v13, %s7878_s25  ;;  %v3444_v57 = vmul.f32 %v7580_v31, %v3376_v36  ;;  %v5333_v13 = vpop.f32.mrf.mxu3  ;;  %v7582_v30 = vpop.eup %7581 }
 0x9b9   : > { %v4487_v3 = vmul.f32 %v7582_v30, %v14159_v38  ;;  %v5334_v11 = vadd.f32 %v5333_v13, %v5244_v34  ;;  %v14168_v34 = vld [vmem:[#allocation143_spill] sm:$0xff]  ;;  %v5249_v13 = vpop.f32.mrf.mxu2 }
 0x9ba   : > { %v6822_v7 = vpack.i.bf16 %v3444_v57, %v3443_v19  ;;  %v14167_v19 = vld [vmem:[#allocation142_spill] sm:$0xff] }
 0x9bb   : > { %v3381_v57 = vadd.f32 %v14168_v34, %v14167_v19 }
 0x9bc   : > { %v2184_v17 = vpop.xlane.xlu2 %2183  ;;  %v6027_v53 = vpop.f32.mrf.mxu0 }
 0x9bd   : > { %v6028_v14 = vadd.f32 %v13011_v52, %v6027_v53 }
 0x9bf   : > { %6080 = vst [vmem:[%s13017_s29 + $0x90] sm:$0xff] %v6028_v14 }
 0x9c0   : > { %6813 = vrot.lane.b32.xlu1 %v6812_v32, %s7880_s26  ;;  %v5335_v60 = vpop.f32.mrf.mxu3 }
 0x9c1   : > { %v5336_v15 = vadd.f32 %v5335_v60, %v5246_v40  ;;  %v14172_v40 = vld [vmem:[#allocation55_spill] sm:$0xff] }
 0x9c4   : > { %v4162_v41 = vpop.xlane.xlu2 %4161  ;;  %v6029_v49 = vpop.f32.mrf.mxu0 }
 0x9c5   : > { %7583 = vrcp.f32 %v4162_v41  ;;  %v6030_v16 = vadd.f32 %v13011_v52, %v6029_v49 }
 0x9c6   : > { %7585 = vrcp.f32 %v2181_v50  ;;  %v14164_v50 = vld [vmem:[#allocation96_spill] sm:$0xff] }
 0x9c7   : > { %7587 = vrcp.f32 %v2184_v17  ;;  %6081 = vst [vmem:[%s13017_s29 + $0x98] sm:$0xff] %v6030_v16  ;;  %6823 = vrot.lane.b32.xlu0 %v6822_v7, %s7878_s25  ;;  %v6779_v63 = vpop.permute.xlu1 %6778  ;;  %v14169_v7 = vld [vmem:[#allocation140_spill] sm:$0xff] }
 0x9c8   : > { %6818 = vrot.lane.b32.xlu1 %v6817_v39, %s7879_s21  ;;  %7589 = vrcp.f32 %v5123_v27  ;;  %v6781_v24 = vunpack.i.h.bf16 %v6779_v63  ;;  %v6780_v5 = vunpack.i.l.bf16 %v6779_v63  ;;  %v5338_v49 = vpop.f32.mrf.mxu3 }
 0x9cb   : > { %v7584_v26 = vpop.eup %7583 }
 0x9cc   : > { %v4488_v32 = vmul.f32 %v7584_v26, %v14160_v55  ;;  %v5126_v8 = vpop.xlane.xlu2 %5125  ;;  %v7586_v46 = vpop.eup %7585  ;;  %v14171_v55 = vld [vmem:[#allocation128_spill] sm:$0xff] }
 0x9cd   : > { %7591 = vrcp.f32 %v5126_v8  ;;  %v7588_v6 = vpop.eup %7587  ;;  %v2521_v18 = vmul.f32 %v7586_v46, %v14161_v10 }
 0x9ce   : > { %v6827_v54 = vpack.i.bf16 %v4488_v32, %v4487_v3  ;;  %v7590_v59 = vpop.eup %7589  ;;  %v2522_v45 = vmul.f32 %v7588_v6, %v14162_v51  ;;  %v14173_v51 = vld [vmem:[#allocation42_spill] sm:$0xff] }
 0x9cf   : > { %v5813_v2 = vsel %vm1550_vm0, %v2521_v18, %v6780_v5  ;;  %v5403_v0 = vmul.f32 %v7590_v59, %v5334_v11  ;;  %v14174_v11 = vld [vmem:[#allocation24_spill] sm:$0xff] }
 0x9d0   : > { %v5814_v1 = vsel %vm1550_vm0, %v2522_v45, %v6781_v24  ;;  %v5846_v23 = vsel %vm5823_vm1, %v5813_v2, %v6785_v4  ;;  %v5251_v24 = vpop.f32.mrf.mxu2  ;;  %v5340_v5 = vpop.f32.mrf.mxu3  ;;  %v5339_v4 = vadd.f32 %v5338_v49, %v5249_v13 }
 0x9d1   : > { %v5847_v9 = vsel %vm5823_vm1, %v5814_v1, %v6786_v22  ;;  %v5341_v1 = vadd.f32 %v5340_v5, %v5251_v24 }
 0x9d3   : > { %v7592_v44 = vpop.eup %7591 }
 0x9d4   : > { %v5404_v39 = vmul.f32 %v7592_v44, %v5336_v15  ;;  %v6789_v42 = vpop.permute.xlu2 %6788 }
 0x9d5   : > { %v6791_v47 = vunpack.i.h.bf16 %v6789_v42  ;;  %v6790_v56 = vunpack.i.l.bf16 %v6789_v42 }
 0x9d6   : > { %v6832_v58 = vpack.i.bf16 %v5404_v39, %v5403_v0 }
 0x9d7   : > { %v5879_v12 = vsel %vm5856_vm2, %v5846_v23, %v6790_v56  ;;  %v5880_v61 = vsel %vm5856_vm2, %v5847_v9, %v6791_v47  ;;  %v14175_v9 = vld [vmem:[#allocation77_spill] sm:$0xff] }
 0x9d8   : > { %6833 = vrot.lane.b32.xlu0 %v6832_v58, %s7879_s21  ;;  %v5900_v28 = vpack.c.bf16 %v5880_v61, %v5879_v12  ;;  %v2190_v53 = vpop.xlane.xlu0 %2189 }
 0x9da   : > { %6036 = vmatmul.bf16.gmra.mxu0 %v5900_v28 }
 0x9db   : > { %2192 = vadd.xlane.f32.xlu2 %v14163_v29 }
 0x9e0   : > { %v4165_v43 = vpop.xlane.xlu0 %4164 }
 0x9e3   : > { %2201 = vadd.xlane.f32.xlu2 %v14164_v50 }
 0x9e8   : > { %v5129_v3 = vpop.xlane.xlu0 %5128 }
 0x9f2   : > { %2198 = vadd.xlane.f32.xlu1 %v14165_v62  ;;  %v2187_v20 = vpop.xlane.xlu1 %2186 }
 0x9fa   : > { %v3172_v17 = vpop.xlane.xlu1 %3171 }
 0x9fb   : > { %6828 = vrot.lane.b32.xlu2 %v6827_v54, %s7880_s26  ;;  %7593 = vrcp.f32 %v3172_v17  ;;  %v6799_v44 = vpop.permute.xlu0 %6798 }
 0x9fc   : > { %v6801_v39 = vunpack.i.h.bf16 %v6799_v44  ;;  %v6800_v42 = vunpack.i.l.bf16 %v6799_v44 }
 0xa01   : > { %v7594_v33 = vpop.eup %7593 }
 0xa02   : > { %2207 = vadd.xlane.f32.xlu0 %v14166_v37  ;;  %v4168_v21 = vpop.xlane.xlu1 %4167  ;;  %v3446_v16 = vmul.f32 %v7594_v33, %v3381_v57  ;;  %v14177_v57 = vld [vmem:[#allocation19_spill] sm:$0xff] }
 0xa07   : > { %v6032_v48 = vpop.f32.mrf.mxu0 }
 0xa08   : > { %v6033_v14 = vadd.f32 %v13011_v52, %v6032_v48 }
 0xa0a   : > { %6082 = vst [vmem:[%s13017_s29 + $0xa0] sm:$0xff] %v6033_v14  ;;  %v5132_v30 = vpop.xlane.xlu1 %5131 }
 0xa0d   : > { %v3169_v31 = vpop.xlane.xlu2 %3168 }
 0xa0e   : > { %7595 = vrcp.f32 %v3169_v31  ;;  %v14176_v31 = vld [vmem:[#allocation80_spill] sm:$0xff] }
 0xa0f   : > { %v6034_v25 = vpop.f32.mrf.mxu0  ;;  %7597 = vrcp.f32 %v4168_v21 }
 0xa10   : > { %v6035_v36 = vadd.f32 %v13011_v52, %v6034_v25  ;;  %7599 = vrcp.f32 %v4165_v43  ;;  %v14170_v52 = vld [vmem:[#allocation153_spill] sm:$0xff] }
 0xa11   : > { %7601 = vrcp.f32 %v2190_v53  ;;  %v4425_v32 = vadd.f32 %v14171_v55, %v14170_v52 }
 0xa12   : > { %6083 = vst [vmem:[%s13017_s29 + $0xa8] sm:$0xff] %v6035_v36  ;;  %7603 = vrcp.f32 %v2187_v20 }
 0xa13   : > { %7605 = vrcp.f32 %v5132_v30 }
 0xa14   : > { %v7596_v41 = vpop.eup %7595  ;;  %7607 = vrcp.f32 %v5129_v3 }
 0xa15   : > { %v3445_v27 = vmul.f32 %v7596_v41, %v14169_v7  ;;  %v7598_v38 = vpop.eup %7597  ;;  %v6794_v46 = vpop.permute.xlu2 %6793 }
 0xa16   : > { %v7600_v63 = vpop.eup %7599  ;;  %v4490_v8 = vmul.f32 %v7598_v38, %v4425_v32  ;;  %v6796_v59 = vunpack.i.h.bf16 %v6794_v46  ;;  %v6795_v10 = vunpack.i.l.bf16 %v6794_v46 }
 0xa17   : > { %v6837_v26 = vpack.i.bf16 %v3446_v16, %v3445_v27  ;;  %v7602_v6 = vpop.eup %7601  ;;  %v4489_v60 = vmul.f32 %v7600_v63, %v14172_v40  ;;  %v13346_v27 = vld [vmem:[%s13432_s9] ss:$0 sm:$0xff] }
 0xa18   : > { %v7604_v54 = vpop.eup %7603  ;;  %v2524_v45 = vmul.f32 %v7602_v6, %v14173_v51 }
 0xa19   : > { %6838 = vrot.lane.b32.xlu1 %v6837_v26, %s7878_s25  ;;  %v6842_v18 = vpack.i.bf16 %v4490_v8, %v4489_v60  ;;  %v7606_v35 = vpop.eup %7605  ;;  %v2523_v15 = vmul.f32 %v7604_v54, %v14174_v11  ;;  %v14178_v60 = vld [vmem:[#allocation38_spill] sm:$0xff]  ;;  %v14179_v11 = vld [vmem:[#allocation43_spill] sm:$0xff] }
 0xa1a   : > { %v7608_v2 = vpop.eup %7607  ;;  %v5816_v0 = vsel %vm1550_vm0, %v2524_v45, %v6796_v59  ;;  %v5406_v47 = vmul.f32 %v7606_v35, %v5341_v1 }
 0xa1b   : > { %v5815_v22 = vsel %vm1550_vm0, %v2523_v15, %v6795_v10  ;;  %v5405_v12 = vmul.f32 %v7608_v2, %v5339_v4  ;;  %v5849_v28 = vsel %vm5823_vm1, %v5816_v0, %v6801_v39 }
 0xa1c   : > { %v5848_v61 = vsel %vm5823_vm1, %v5815_v22, %v6800_v42 }
 0xa1d   : > { %v6847_v20 = vpack.i.bf16 %v5406_v47, %v5405_v12 }
 0xa21   : > { %6843 = vrot.lane.b32.xlu1 %v6842_v18, %s7880_s26  ;;  %s6543_s26 = sshll.u32 %s7959_s17, 8 }
 0xa22   : > { %v6804_v56 = vpop.permute.xlu1 %6803  ;;  %s6106_s12 = scalar_lea.hbm %s13433_s10, %s6543_s26  ;;  %s7834_s26 = scalar_lea.hbm %s13433_s10, 512 }
 0xa23   : > { %v6806_v58 = vunpack.i.h.bf16 %v6804_v56  ;;  %v6805_v23 = vunpack.i.l.bf16 %v6804_v56  ;;  %s6109_s18 = sshll.u32 %s6106_s12, 4  ;;  %s6110_s18 = int_to_ptr.hbm [resolvable:$true] %s6109_s18 }
 0xa24   : > { %2204 = vadd.xlane.f32.xlu2 %v14175_v9  ;;  %s7828_s17 = sshra.s32 %s6110_s18, 4  ;;  %s7829_s17 = int_to_ptr.hbm [resolvable:$true] %s7828_s17 }
 0xa25   : > { %v5881_v29 = vsel %vm5856_vm2, %v5848_v61, %v6805_v23  ;;  %v5882_v50 = vsel %vm5856_vm2, %v5849_v28, %v6806_v58  ;;  %s7830_s28 = scalar_lea.hbm %s7829_s17, 256  ;;  %p7835_p0 = scmp.lt.s32.totalorder %s7829_s17, %s13433_s10 }
 0xa26   : > { %v5901_v62 = vpack.c.bf16 %v5882_v50, %v5881_v29  ;;  %v2196_v17 = vpop.xlane.xlu0 %2195  ;;  %p7831_p11 = scmp.ne.s32.totalorder %s7829_s17, %s7830_s28  ;;  %p7836_p1 = scmp.lt.s32.totalorder %s7834_s26, %s7830_s28 }
 0xa27   : > { %7609 = vrcp.f32 %v2196_v17  ;;  %v14181_v17 = vld [vmem:[#allocation95_spill] sm:$0xff] }
 0xa28   : > { %6041 = vmatmul.bf16.gmra.mxu0 %v5901_v62  ;;  %v14180_v62 = vld [vmem:[#allocation97_spill] sm:$0xff]  ;;  %p7832_p12 = pnand %p7831_p11, %p7976_p5  ;;  %p7837_p2 = por %p7836_p1, %p7835_p0 }
 0xa29   : > { %6848 = vrot.lane.b32.xlu1 %v6847_v20, %s7879_s21 }
 0xa2a   : > { %v6809_v37 = vpop.permute.xlu1 %6808  ;;  %p7833_p13 = pneg %p7832_p12 }
 0xa2b   : > { %v6811_v33 = vunpack.i.h.bf16 %v6809_v37  ;;  %v6810_v19 = vunpack.i.l.bf16 %v6809_v37 }
 0xa2c   : > { %p7838_p3 = pnand %p7837_p2, %p7833_p13 }
 0xa2d   : > { %v7610_v14 = vpop.eup %7609 }
 0xa2e   : > { %v2526_v43 = vmul.f32 %v7610_v14, %v14176_v31 }
 0xa30   : > { %v5818_v16 = vsel %vm1550_vm0, %v2526_v43, %v6811_v33 }
 0xa32   : > { %v6814_v53 = vpop.permute.xlu1 %6813 }
 0xa33   : > { %v6816_v36 = vunpack.i.h.bf16 %v6814_v53  ;;  %v6815_v13 = vunpack.i.l.bf16 %v6814_v53 }
 0xa35   : > { %v5851_v38 = vsel %vm5823_vm1, %v5818_v16, %v6816_v36 }
 0xa39   : > { %v6824_v54 = vpop.permute.xlu0 %6823 }
 0xa3a   : > { %v6819_v21 = vpop.permute.xlu1 %6818  ;;  %v6826_v59 = vunpack.i.h.bf16 %v6824_v54  ;;  %v6825_v45 = vunpack.i.l.bf16 %v6824_v54 }
 0xa3b   : > { %v6821_v34 = vunpack.i.h.bf16 %v6819_v21  ;;  %v6820_v7 = vunpack.i.l.bf16 %v6819_v21 }
 0xa3d   : > { %v5884_v55 = vsel %vm5856_vm2, %v5851_v38, %v6821_v34 }
 0xa4a   : > { %v6834_v51 = vpop.permute.xlu0 %6833 }
 0xa4b   : > { %v6836_v2 = vunpack.i.h.bf16 %v6834_v51  ;;  %v6835_v0 = vunpack.i.l.bf16 %v6834_v51 }
 0xa4e   : > { %v2193_v48 = vpop.xlane.xlu2 %2192 }
 0xa4f   : > { %7611 = vrcp.f32 %v2193_v48 }
 0xa55   : > { %v7612_v25 = vpop.eup %7611 }
 0xa56   : > { %v2525_v41 = vmul.f32 %v7612_v25, %v14177_v57  ;;  %v2202_v63 = vpop.xlane.xlu2 %2201 }
 0xa57   : > { %v6037_v49 = vpop.f32.mrf.mxu0  ;;  %7613 = vrcp.f32 %v2202_v63 }
 0xa58   : > { %v6038_v30 = vadd.f32 %v13346_v27, %v6037_v49  ;;  %v5817_v26 = vsel %vm1550_vm0, %v2525_v41, %v6810_v19 }
 0xa59   : > { %v5850_v3 = vsel %vm5823_vm1, %v5817_v26, %v6815_v13 }
 0xa5a   : > { %6084 = vst [vmem:[%s13017_s29 + $0xb0] sm:$0xff] %v6038_v30  ;;  %v5883_v52 = vsel %vm5856_vm2, %v5850_v3, %v6820_v7 }
 0xa5b   : > { %v5902_v32 = vpack.c.bf16 %v5884_v55, %v5883_v52 }
 0xa5d   : > { %6046 = vmatmul.bf16.gmra.mxu0 %v5902_v32  ;;  %v7614_v6 = vpop.eup %7613 }
 0xa5e   : > { %v2528_v24 = vmul.f32 %v7614_v6, %v14178_v60  ;;  %v6829_v5 = vpop.permute.xlu2 %6828 }
 0xa5f   : > { %v6039_v8 = vpop.f32.mrf.mxu0  ;;  %v6831_v10 = vunpack.i.h.bf16 %v6829_v5  ;;  %v6830_v44 = vunpack.i.l.bf16 %v6829_v5 }
 0xa60   : > { %v6040_v46 = vadd.f32 %v13346_v27, %v6039_v8  ;;  %v5820_v18 = vsel %vm1550_vm0, %v2528_v24, %v6826_v59 }
 0xa61   : > { %v5853_v1 = vsel %vm5823_vm1, %v5820_v18, %v6831_v10 }
 0xa62   : > { %6085 = vst [vmem:[%s13017_s29 + $0xb8] sm:$0xff] %v6040_v46  ;;  %v5886_v42 = vsel %vm5856_vm2, %v5853_v1, %v6836_v2 }
 0xa65   : > { %v2199_v40 = vpop.xlane.xlu1 %2198 }
 0xa66   : > { %7615 = vrcp.f32 %v2199_v40 }
 0xa6c   : > { %v7616_v35 = vpop.eup %7615 }
 0xa6d   : > { %v2527_v15 = vmul.f32 %v7616_v35, %v14179_v11 }
 0xa6f   : > { %v5819_v22 = vsel %vm1550_vm0, %v2527_v15, %v6825_v45 }
 0xa70   : > { %v5852_v4 = vsel %vm5823_vm1, %v5819_v22, %v6830_v44 }
 0xa71   : > { %v5885_v39 = vsel %vm5856_vm2, %v5852_v4, %v6835_v0 }
 0xa72   : > { %v5903_v47 = vpack.c.bf16 %v5886_v42, %v5885_v39 }
 0xa74   : > { %6051 = vmatmul.bf16.gmra.mxu0 %v5903_v47 }
 0xa75   : > { %v2208_v58 = vpop.xlane.xlu0 %2207 }
 0xa76   : > { %7617 = vrcp.f32 %v2208_v58 }
 0xa7c   : > { %v7618_v12 = vpop.eup %7617 }
 0xa7d   : > { %v2530_v20 = vmul.f32 %v7618_v12, %v14180_v62 }
 0xa8b   : > { %v6839_v56 = vpop.permute.xlu1 %6838 }
 0xa8c   : > { %v6841_v28 = vunpack.i.h.bf16 %v6839_v56  ;;  %v6840_v37 = vunpack.i.l.bf16 %v6839_v56 }
 0xa8e   : > { %v5822_v21 = vsel %vm1550_vm0, %v2530_v20, %v6841_v28 }
 0xa93   : > { %v6844_v23 = vpop.permute.xlu1 %6843 }
 0xa94   : > { %v6846_v50 = vunpack.i.h.bf16 %v6844_v23  ;;  %v6845_v14 = vunpack.i.l.bf16 %v6844_v23 }
 0xa96   : > { %v5855_v25 = vsel %vm5823_vm1, %v5822_v21, %v6846_v50 }
 0xa97   : > { %v2205_v9 = vpop.xlane.xlu2 %2204 }
 0xa98   : > { %7619 = vrcp.f32 %v2205_v9 }
 0xa9b   : > { %v6849_v61 = vpop.permute.xlu1 %6848 }
 0xa9c   : > { %v6851_v48 = vunpack.i.h.bf16 %v6849_v61  ;;  %v6850_v31 = vunpack.i.l.bf16 %v6849_v61 }
 0xa9e   : > { %v7620_v29 = vpop.eup %7619  ;;  %v5888_v19 = vsel %vm5856_vm2, %v5855_v25, %v6851_v48 }
 0xa9f   : > { %v2529_v53 = vmul.f32 %v7620_v29, %v14181_v17 }
 0xaa1   : > { %v5821_v43 = vsel %vm1550_vm0, %v2529_v53, %v6840_v37 }
 0xaa2   : > { %v5854_v36 = vsel %vm5823_vm1, %v5821_v43, %v6845_v14 }
 0xaa3   : > { %v5887_v33 = vsel %vm5856_vm2, %v5854_v36, %v6850_v31 }
 0xaa4   : > { %v5904_v34 = vpack.c.bf16 %v5888_v19, %v5887_v33 }
 0xaa5   : > { %v6042_v57 = vpop.f32.mrf.mxu0 }
 0xaa6   : > { %6056 = vmatmul.bf16.gmra.mxu0 %v5904_v34  ;;  %v6043_v41 = vadd.f32 %v13346_v27, %v6042_v57 }
 0xaa8   : > { %6086 = vst [vmem:[%s13017_s29 + $0xc0] sm:$0xff] %v6043_v41 }
 0xaad   : > { %v6044_v13 = vpop.f32.mrf.mxu0 }
 0xaae   : > { %v6045_v49 = vadd.f32 %v13346_v27, %v6044_v13 }
 0xab0   : > { %6087 = vst [vmem:[%s13017_s29 + $0xc8] sm:$0xff] %v6045_v49 }
 0xada   : > { %v6047_v16 = vpop.f32.mrf.mxu0 }
 0xadb   : > { %v6048_v7 = vadd.f32 %v13346_v27, %v6047_v16 }
 0xadd   : > { %6088 = vst [vmem:[%s13017_s29 + $0xd0] sm:$0xff] %v6048_v7 }
 0xae2   : > { %v6049_v30 = vpop.f32.mrf.mxu0 }
 0xae3   : > { %v6050_v26 = vadd.f32 %v13346_v27, %v6049_v30 }
 0xae5   : > { %6089 = vst [vmem:[%s13017_s29 + $0xd8] sm:$0xff] %v6050_v26 }
 0xaf1   : > { %v6052_v38 = vpop.f32.mrf.mxu0 }
 0xaf2   : > { %v6053_v3 = vadd.f32 %v13346_v27, %v6052_v38 }
 0xaf4   : > { %6090 = vst [vmem:[%s13017_s29 + $0xe0] sm:$0xff] %v6053_v3 }
 0xaf9   : > { %v6054_v52 = vpop.f32.mrf.mxu0 }
 0xafa   : > { %v6055_v55 = vadd.f32 %v13346_v27, %v6054_v52 }
 0xafc   : > { %6091 = vst [vmem:[%s13017_s29 + $0xe8] sm:$0xff] %v6055_v55 }
 0xb23   : > { %v6057_v32 = vpop.f32.mrf.mxu0 }
 0xb24   : > { %v6058_v63 = vadd.f32 %v13346_v27, %v6057_v32 }
 0xb26   : > { %6092 = vst [vmem:[%s13017_s29 + $0xf0] sm:$0xff] %v6058_v63 }
 0xb2b   : > { %v6059_v8 = vpop.f32.mrf.mxu0 }
 0xb2c   : > { %v6060_v46 = vadd.f32 %v13346_v27, %v6059_v8 }
 0xb2e   : > { %6093 = vst [vmem:[%s13017_s29 + $0xf8] sm:$0xff] %v6060_v46 }
 0xb2f   : > { %7841 = shalt.err (!%p7838_p3)
}
 0xb30   : > { %s7881_s27 = smov 128   ;;  %s7882_s29 = smov 8  }
 0xb31   : > { %6568 = dma.vmem_to_hbm [thread:$0]  (%p7976_p5), %s6108_s0, 4096, %s6110_s18, %s6095_s20, %s7881_s27, %s7881_s27, %s7882_s29  }
 0xb32 PF: > { %p6574_p4 = scmp.ge.s32.totalorder %s7876_s16, 2  ;;  %s6124_s12 = sand.u32 1, %s7864_s13  }
 0xb33   : > { %s6125_s25 = scalar_lea.sflag [#allocation3], %s6124_s12 }
 0xb34   : > { %p6571_p7 = pnand %p6574_p4, %p7980_p6 }
 0xb36   : > { %p6572_p8 = pneg %p6571_p7 }
 0xb38   : > { %7859 = dma.done.wait (%p6572_p8), %s6125_s25, 4096  }
 0xb39   : > { %7861 = vsyncadd (%p6572_p8), %s6125_s25, 4294963200  ;;  %p20_p9 = scmp.ge.s32.totalorder %s7963_s19, 4   ;;  %s14182_s13 = smov %s7868_s14 }
 0xb3a   : > { %s14183_s14 = smov %s7872_s15  ;;  %s14184_s15 = smov %s7974_s22 }
 0xb3b   : > { %s14185_s16 = smov %s7963_s19  ;;  %22 = sbr.rel (!%p20_p9) target bundleno = 5 (0x5), region = 101 }
 0xb40   :  { %6131 = vsyncpa [#allocation3], 1 }
 0xb41   :  { %6133 = vsyncpa [#allocation3 + $0x1], 1 }

</bundles_post_ra>
